<compile_context>
chip_gen: v7x
topology: tpu7x:2x2x1
jax: 0.10.0
libtpu: 0.0.40
codegen_flags: <defaults>
</compile_context>

<pallas_src>
import jax
import jax.numpy as jnp
from jax.experimental import pallas as pl
from jax.experimental.pallas import tpu as pltpu
import numpy as np


def _round_up(x, m):
    return -(-x // m) * m


def _sigmoid(x):
    # numerically-stable sigmoid that lowers to the EUP tanh unit
    return 0.5 * (jnp.tanh(0.5 * x) + 1.0)


def dkvmn_kernel(k_ref, v_ref, wk_ref, wv_ref, mv0_ref, wfr_ref,
                 be_ref, ba_ref, bf_ref, wp_ref, bp_ref,
                 p_ref,
                 wT_s, e_s, a_s, read_s, fk_s):
    Bt, Lp, D = k_ref.shape
    M = mv0_ref.shape[0]
    padK = wk_ref.shape[1] - D          # 128-aligned lane offset of the Wf_k half
    padV = wv_ref.shape[1] - D          # 128-aligned lane offset of the Wa half
    N = Bt * Lp

    # flatten (Bt, Lp, D) -> (Bt*Lp, D); Lp is sublane-aligned so this is free
    k2 = k_ref[...].reshape(N, D)
    v2 = v_ref[...].reshape(N, D)

    # --- fused shared-LHS projections: 3 MXU issues per grid step -----------
    # k2 @ [Mk.T | 0 | Wf_k.T] -> correlation logits + f-layer k-half
    kc = jnp.dot(k2, wk_ref[...], preferred_element_type=jnp.float32)    # (N, padK+D)
    s = kc[:, :M]                                                        # (N, M)
    fk_s[...] = kc[:, padK:]   # park the k-half in VMEM so the unrolled
                               # recurrence does not carry ~N*D/1024 extra vregs
    # v2 @ [We.T | 0 | Wa.T] -> erase / add vectors
    ea = jnp.dot(v2, wv_ref[...], preferred_element_type=jnp.float32)    # (N, padV+D)
    e_s[...] = _sigmoid(ea[:, :D] + be_ref[...]).reshape(Bt, Lp, D)
    a_s[...] = jnp.tanh(ea[:, padV:] + ba_ref[...]).reshape(Bt, Lp, D)

    # --- correlation weights: softmax over memory slots ----------------------
    s = s - jnp.max(s, axis=-1, keepdims=True)
    es = jnp.exp(s)
    w2 = es / jnp.sum(es, axis=-1, keepdims=True)                        # (N, M)
    # One fused batched transpose (replaces the old per-b loop): the per-step
    # slice wT_s[:, :, t:t+1] then yields a (Bt, M, 1) column that broadcasts
    # against the memory state with no further relayout.
    wT_s[...] = jnp.transpose(w2.reshape(Bt, Lp, M), (0, 2, 1))          # (Bt, M, Lp)

    # --- memory recurrence: fully unrolled, VPU + XLU only -------------------
    # Only Mv (~2*Bt vregs) stays live; w/e/a stream from VMEM scratch.
    # All scratch buffers are fully rewritten every grid step (required since
    # they persist across grid iterations).
    Mv = jnp.broadcast_to(mv0_ref[...], (Bt, M, D))                      # (Bt, M, D)
    for t in range(Lp):
        wt = wT_s[:, :, t:t + 1]                                         # (Bt, M, 1)
        # read uses the memory state BEFORE the step-t update
        read_s[:, t:t + 1, :] = jnp.sum(wt * Mv, axis=1, keepdims=True)  # (Bt, 1, D)
        et = e_s[:, t:t + 1, :]                                          # (Bt, 1, D)
        at = a_s[:, t:t + 1, :]
        Mv = Mv * (1.0 - wt * et) + wt * at
    # NOTE: trailing padded steps (t >= true L) run with k=v=0 (uniform w,
    # e=sigmoid(be), a=tanh(ba)); they only touch memory AFTER every real
    # read, and their outputs are sliced off in the wrapper.

    read2 = read_s[...].reshape(N, D)

    # --- f = tanh(concat([read, k]) @ Wf.T + bf); concat folded into 2 dots,
    #     the k-half already produced by the fused kc matmul -----------------
    f = jnp.tanh(
        jnp.dot(read2, wfr_ref[...], preferred_element_type=jnp.float32)
        + fk_s[...] + bf_ref[...])                                       # (N, D)

    # --- p = sigmoid(f @ Wp.T + bp); bp is an SMEM scalar --------------------
    logits = jnp.sum(f.reshape(Bt, Lp, D) * wp_ref[...][None, :, :], axis=-1)
    p_ref[...] = _sigmoid(logits + bp_ref[0])                            # (Bt, Lp)


def dkvmn_forward(q, r, params, bt=16):
    """Inference-mode DKVMN forward (qtest=False): returns p of shape (B, L)."""
    B, L = q.shape
    M, D = params["Mk"].shape

    # embedding gathers (glue, plain JAX)
    k = params["k_emb"][q].astype(jnp.float32)           # (B, L, D)
    v = k + params["v_emb"][r].astype(jnp.float32)       # (B, L, D)

    # --- tiling ---------------------------------------------------------------
    # Bt: multiple of 8, capped (default 16) so Mv ~ 2*Bt vregs stays
    # spill-free in the unrolled recurrence; N = Bt*Lp = 128 rows/step fills
    # the MXU row granularity and amortizes per-step pipeline overhead.
    Lp = _round_up(L, 8)
    Bt = min(_round_up(B, 8), _round_up(max(bt, 8), 8))
    Bpad = _round_up(B, Bt)
    nb = Bpad // Bt                                       # >= 2 when B allows (v7x 2-TC)
    if (Bpad, Lp) != (B, L):
        k = jnp.pad(k, ((0, Bpad - B), (0, Lp - L), (0, 0)))
        v = jnp.pad(v, ((0, Bpad - B), (0, Lp - L), (0, 0)))

    # --- weight prep: fuse shared-LHS projections, pad groups to 128 lanes ---
    padK = _round_up(M, 128)
    padV = _round_up(D, 128)
    wfT = params["Wf"].T                                  # (2D, D)
    wf_r_T = wfT[:D]                                      # (D, D) read half
    wk_cat = jnp.concatenate(
        [params["Mk"].T, jnp.zeros((D, padK - M), jnp.float32), wfT[D:]], axis=1)
    wv_cat = jnp.concatenate(
        [params["We"].T, jnp.zeros((D, padV - D), jnp.float32), params["Wa"].T],
        axis=1)
    be = params["be"].reshape(1, D)
    ba = params["ba"].reshape(1, D)
    bf = params["bf"].reshape(1, D)
    wp = params["Wp"].reshape(1, D)
    bp = params["bp"].reshape(1).astype(jnp.float32)      # scalar -> SMEM

    grid_spec = pltpu.PrefetchScalarGridSpec(
        num_scalar_prefetch=0,
        grid=(nb,),
        in_specs=[
            pl.BlockSpec((Bt, Lp, D), lambda b: (b, 0, 0)),       # k
            pl.BlockSpec((Bt, Lp, D), lambda b: (b, 0, 0)),       # v
            pl.BlockSpec((D, padK + D), lambda b: (0, 0)),        # [Mk.T | 0 | Wf_k.T]
            pl.BlockSpec((D, padV + D), lambda b: (0, 0)),        # [We.T | 0 | Wa.T]
            pl.BlockSpec((M, D), lambda b: (0, 0)),               # Mv0
            pl.BlockSpec((D, D), lambda b: (0, 0)),               # Wf.T (read half)
            pl.BlockSpec((1, D), lambda b: (0, 0)),               # be
            pl.BlockSpec((1, D), lambda b: (0, 0)),               # ba
            pl.BlockSpec((1, D), lambda b: (0, 0)),               # bf
            pl.BlockSpec((1, D), lambda b: (0, 0)),               # Wp row
            pl.BlockSpec(memory_space=pltpu.MemorySpace.SMEM),    # bp (scalar)
        ],
        out_specs=pl.BlockSpec((Bt, Lp), lambda b: (b, 0)),
        scratch_shapes=[
            pltpu.VMEM((Bt, M, Lp), jnp.float32),    # correlation weights, transposed
            pltpu.VMEM((Bt, Lp, D), jnp.float32),    # erase vectors
            pltpu.VMEM((Bt, Lp, D), jnp.float32),    # add vectors
            pltpu.VMEM((Bt, Lp, D), jnp.float32),    # per-step reads
            pltpu.VMEM((Bt * Lp, D), jnp.float32),   # f-layer k-half (fused matmul)
        ],
    )

    p = pl.pallas_call(
        dkvmn_kernel,
        out_shape=jax.ShapeDtypeStruct((Bpad, Lp), jnp.float32),
        grid_spec=grid_spec,
        compiler_params=pltpu.CompilerParams(
            dimension_semantics=("parallel",)),
    )(k, v, wk_cat, wv_cat, params["Mv0"], wf_r_T, be, ba, bf, wp, bp)
    return p[:B, :L]                                       # (B, L)


def dkvmn_reference(q, r, params):
    """Pure-JAX reference mirroring the PyTorch forward (qtest=False)."""
    k = params["k_emb"][q].astype(jnp.float32)
    v = k + params["v_emb"][r].astype(jnp.float32)
    B, L, D = k.shape
    M = params["Mk"].shape[0]
    w = jax.nn.softmax(k @ params["Mk"].T, axis=-1)                       # (B, L, M)
    e = jax.nn.sigmoid(v @ params["We"].T + params["be"])
    a = jnp.tanh(v @ params["Wa"].T + params["ba"])
    Mvt = jnp.broadcast_to(params["Mv0"][None], (B, M, D))
    reads = []
    for t in range(L):
        wt = w[:, t, :]
        reads.append(jnp.einsum("bm,bmd->bd", wt, Mvt))
        Mvt = (Mvt * (1.0 - wt[:, :, None] * e[:, t, None, :])
               + wt[:, :, None] * a[:, t, None, :])
    read = jnp.stack(reads, axis=1)                                       # (B, L, D)
    f = jnp.tanh(jnp.concatenate([read, k], axis=-1) @ params["Wf"].T + params["bf"])
    p = jax.nn.sigmoid(f @ params["Wp"].T + params["bp"])[..., 0]
    return p


def init_params(key, num_c, dim_s, size_m):
    ks = jax.random.split(key, 12)
    kaiming_std = np.sqrt(2.0 / dim_s)
    params = {
        "k_emb": jax.random.normal(ks[0], (num_c, dim_s), jnp.float32),
        "v_emb": jax.random.normal(ks[1], (2, dim_s), jnp.float32),
        "Mk": kaiming_std * jax.random.normal(ks[2], (size_m, dim_s), jnp.float32),
        "Mv0": kaiming_std * jax.random.normal(ks[3], (size_m, dim_s), jnp.float32),
        "We": 0.1 * jax.random.normal(ks[4], (dim_s, dim_s), jnp.float32),
        "be": 0.1 * jax.random.normal(ks[5], (dim_s,), jnp.float32),
        "Wa": 0.1 * jax.random.normal(ks[6], (dim_s, dim_s), jnp.float32),
        "ba": 0.1 * jax.random.normal(ks[7], (dim_s,), jnp.float32),
        "Wf": 0.1 * jax.random.normal(ks[8], (dim_s, 2 * dim_s), jnp.float32),
        "bf": 0.1 * jax.random.normal(ks[9], (dim_s,), jnp.float32),
        "Wp": 0.1 * jax.random.normal(ks[10], (1, dim_s), jnp.float32),
        "bp": 0.1 * jax.random.normal(ks[11], (1,), jnp.float32),
    }
    return params


if __name__ == "__main__":
    num_c, dim_s, size_m = 50, 32, 16
    B, L = 32, 8            # Bt=16 -> 2 grid steps, N=128 rows per step

    key = jax.random.PRNGKey(0)
    kp, kq, kr = jax.random.split(key, 3)
    params = init_params(kp, num_c, dim_s, size_m)
    q = jax.random.randint(kq, (B, L), 0, num_c, dtype=jnp.int32)
    r = jax.random.randint(kr, (B, L), 0, 2, dtype=jnp.int32)

    p_kernel = jax.block_until_ready(dkvmn_forward(q, r, params))
    p_ref = jax.block_until_ready(dkvmn_reference(q, r, params))

    assert p_kernel.shape == (B, L)
    np.testing.assert_allclose(np.asarray(p_kernel), np.asarray(p_ref),
                               atol=2e-3, rtol=2e-3)
    print("KERNEL_OK")
</pallas_src>

<mosaic_0001>
module attributes {stable_mosaic.version = 11 : i64} {
  func.func @dkvmn_kernel(%arg0: i32, %arg1: memref<16x8x32xf32, #tpu.memory_space<vmem>>, %arg2: memref<16x8x32xf32, #tpu.memory_space<vmem>>, %arg3: memref<32x160xf32, #tpu.memory_space<vmem>>, %arg4: memref<32x160xf32, #tpu.memory_space<vmem>>, %arg5: memref<16x32xf32, #tpu.memory_space<vmem>>, %arg6: memref<32x32xf32, #tpu.memory_space<vmem>>, %arg7: memref<1x32xf32, #tpu.memory_space<vmem>>, %arg8: memref<1x32xf32, #tpu.memory_space<vmem>>, %arg9: memref<1x32xf32, #tpu.memory_space<vmem>>, %arg10: memref<1x32xf32, #tpu.memory_space<vmem>>, %arg11: memref<1xf32, #tpu.memory_space<smem>>, %arg12: memref<16x8xf32, #tpu.memory_space<vmem>>, %arg13: memref<16x16x8xf32, #tpu.memory_space<vmem>>, %arg14: memref<16x8x32xf32, #tpu.memory_space<vmem>>, %arg15: memref<16x8x32xf32, #tpu.memory_space<vmem>>, %arg16: memref<16x8x32xf32, #tpu.memory_space<vmem>>, %arg17: memref<128x32xf32, #tpu.memory_space<vmem>>) attributes {dimension_semantics = [#tpu.dimension_semantics<parallel>], iteration_bounds = array<i64: 2>, scalar_prefetch = 0 : i64, scratch_operands = 5 : i64, tpu.core_type = #tpu.core_type<tc>, window_params = [{transform_indices = @transform_0, window_bounds = array<i64: 16, 8, 32>}, {transform_indices = @transform_1, window_bounds = array<i64: 16, 8, 32>}, {pipeline_mode = #tpu.pipeline_mode<synchronous>, transform_indices = @transform_2, window_bounds = array<i64: 32, 160>}, {pipeline_mode = #tpu.pipeline_mode<synchronous>, transform_indices = @transform_3, window_bounds = array<i64: 32, 160>}, {pipeline_mode = #tpu.pipeline_mode<synchronous>, transform_indices = @transform_4, window_bounds = array<i64: 16, 32>}, {pipeline_mode = #tpu.pipeline_mode<synchronous>, transform_indices = @transform_5, window_bounds = array<i64: 32, 32>}, {pipeline_mode = #tpu.pipeline_mode<synchronous>, transform_indices = @transform_6, window_bounds = array<i64: 1, 32>}, {pipeline_mode = #tpu.pipeline_mode<synchronous>, transform_indices = @transform_7, window_bounds = array<i64: 1, 32>}, {pipeline_mode = #tpu.pipeline_mode<synchronous>, transform_indices = @transform_8, window_bounds = array<i64: 1, 32>}, {pipeline_mode = #tpu.pipeline_mode<synchronous>, transform_indices = @transform_9, window_bounds = array<i64: 1, 32>}, {transform_indices = @transform_10, window_bounds = array<i64: 1>}, {transform_indices = @transform_11, window_bounds = array<i64: 16, 8>}]} {
    %c0 = arith.constant 0 : index
    %c0_0 = arith.constant 0 : index
    %c0_1 = arith.constant 0 : index
    %0 = vector.load %arg1[%c0, %c0_0, %c0_1] : memref<16x8x32xf32, #tpu.memory_space<vmem>>, vector<16x8x32xf32>
    %1 = vector.shape_cast %0 : vector<16x8x32xf32> to vector<128x32xf32>
    %c0_2 = arith.constant 0 : index
    %c0_3 = arith.constant 0 : index
    %c0_4 = arith.constant 0 : index
    %2 = vector.load %arg2[%c0_2, %c0_3, %c0_4] : memref<16x8x32xf32, #tpu.memory_space<vmem>>, vector<16x8x32xf32>
    %3 = vector.shape_cast %2 : vector<16x8x32xf32> to vector<128x32xf32>
    %c0_5 = arith.constant 0 : index
    %c0_6 = arith.constant 0 : index
    %4 = vector.load %arg3[%c0_5, %c0_6] : memref<32x160xf32, #tpu.memory_space<vmem>>, vector<32x160xf32>
    %cst = arith.constant dense<0.000000e+00> : vector<128x160xf32>
    %5 = tpu.matmul %1, %4, %cst {dimension_numbers = #tpu.dot_dimension_numbers<[1], [0], [0], [1], [0, 0, 1, 1], [], []>} : vector<128x32xf32>, vector<32x160xf32>, vector<128x160xf32> -> vector<128x160xf32>
    %6 = vector.extract_strided_slice %5 {offsets = [0, 0], sizes = [128, 16], strides = [1, 1]} : vector<128x160xf32> to vector<128x16xf32>
    %7 = vector.extract_strided_slice %5 {offsets = [0, 128], sizes = [128, 32], strides = [1, 1]} : vector<128x160xf32> to vector<128x32xf32>
    %c0_7 = arith.constant 0 : index
    %c0_8 = arith.constant 0 : index
    %8 = vector.load %arg17[%c0_7, %c0_8] : memref<128x32xf32, #tpu.memory_space<vmem>>, vector<128x32xf32>
    tpu.vector_store %arg17[%c0_7, %c0_8], %7 {strides = array<i32>} : memref<128x32xf32, #tpu.memory_space<vmem>>, vector<128x32xf32>,
    %c0_9 = arith.constant 0 : index
    %c0_10 = arith.constant 0 : index
    %9 = vector.load %arg4[%c0_9, %c0_10] : memref<32x160xf32, #tpu.memory_space<vmem>>, vector<32x160xf32>
    %cst_11 = arith.constant dense<0.000000e+00> : vector<128x160xf32>
    %10 = tpu.matmul %3, %9, %cst_11 {dimension_numbers = #tpu.dot_dimension_numbers<[1], [0], [0], [1], [0, 0, 1, 1], [], []>} : vector<128x32xf32>, vector<32x160xf32>, vector<128x160xf32> -> vector<128x160xf32>
    %11 = vector.extract_strided_slice %10 {offsets = [0, 0], sizes = [128, 32], strides = [1, 1]} : vector<128x160xf32> to vector<128x32xf32>
    %c0_12 = arith.constant 0 : index
    %c0_13 = arith.constant 0 : index
    %12 = vector.load %arg7[%c0_12, %c0_13] : memref<1x32xf32, #tpu.memory_space<vmem>>, vector<1x32xf32>
    %13 = vector.broadcast %12 : vector<1x32xf32> to vector<128x32xf32>
    %14 = arith.addf %11, %13 : vector<128x32xf32>
    %cst_14 = arith.constant 5.000000e-01 : f32
    %15 = vector.broadcast %cst_14 : f32 to vector<128x32xf32>
    %16 = arith.mulf %15, %14 : vector<128x32xf32>
    %17 = math.tanh %16 : vector<128x32xf32>
    %cst_15 = arith.constant 1.000000e+00 : f32
    %18 = vector.broadcast %cst_15 : f32 to vector<128x32xf32>
    %19 = arith.addf %17, %18 : vector<128x32xf32>
    %cst_16 = arith.constant 5.000000e-01 : f32
    %20 = vector.broadcast %cst_16 : f32 to vector<128x32xf32>
    %21 = arith.mulf %20, %19 : vector<128x32xf32>
    %22 = vector.shape_cast %21 : vector<128x32xf32> to vector<16x8x32xf32>
    %c0_17 = arith.constant 0 : index
    %c0_18 = arith.constant 0 : index
    %c0_19 = arith.constant 0 : index
    %23 = vector.load %arg14[%c0_17, %c0_18, %c0_19] : memref<16x8x32xf32, #tpu.memory_space<vmem>>, vector<16x8x32xf32>
    tpu.vector_store %arg14[%c0_17, %c0_18, %c0_19], %22 {strides = array<i32>} : memref<16x8x32xf32, #tpu.memory_space<vmem>>, vector<16x8x32xf32>,
    %24 = vector.extract_strided_slice %10 {offsets = [0, 128], sizes = [128, 32], strides = [1, 1]} : vector<128x160xf32> to vector<128x32xf32>
    %c0_20 = arith.constant 0 : index
    %c0_21 = arith.constant 0 : index
    %25 = vector.load %arg8[%c0_20, %c0_21] : memref<1x32xf32, #tpu.memory_space<vmem>>, vector<1x32xf32>
    %26 = vector.broadcast %25 : vector<1x32xf32> to vector<128x32xf32>
    %27 = arith.addf %24, %26 : vector<128x32xf32>
    %28 = math.tanh %27 : vector<128x32xf32>
    %29 = vector.shape_cast %28 : vector<128x32xf32> to vector<16x8x32xf32>
    %c0_22 = arith.constant 0 : index
    %c0_23 = arith.constant 0 : index
    %c0_24 = arith.constant 0 : index
    %30 = vector.load %arg15[%c0_22, %c0_23, %c0_24] : memref<16x8x32xf32, #tpu.memory_space<vmem>>, vector<16x8x32xf32>
    tpu.vector_store %arg15[%c0_22, %c0_23, %c0_24], %29 {strides = array<i32>} : memref<16x8x32xf32, #tpu.memory_space<vmem>>, vector<16x8x32xf32>,
    %cst_25 = arith.constant dense<0xFF800000> : vector<128xf32>
    %31 = vector.multi_reduction <maximumf>, %6, %cst_25 [1] : vector<128x16xf32> to vector<128xf32>
    %32 = vector.shape_cast %31 : vector<128xf32> to vector<128x1xf32>
    %33 = vector.broadcast %32 : vector<128x1xf32> to vector<128x16xf32>
    %34 = arith.subf %6, %33 : vector<128x16xf32>
    %35 = math.exp %34 : vector<128x16xf32>
    %cst_26 = arith.constant dense<0.000000e+00> : vector<128xf32>
    %36 = vector.multi_reduction <add>, %35, %cst_26 [1] : vector<128x16xf32> to vector<128xf32>
    %37 = vector.shape_cast %36 : vector<128xf32> to vector<128x1xf32>
    %38 = vector.broadcast %37 : vector<128x1xf32> to vector<128x16xf32>
    %39 = arith.divf %35, %38 : vector<128x16xf32>
    %40 = vector.shape_cast %39 : vector<128x16xf32> to vector<16x8x16xf32>
    %41 = tpu.transpose %40, [0, 2, 1] : vector<16x8x16xf32> -> vector<16x16x8xf32>
    %c0_27 = arith.constant 0 : index
    %c0_28 = arith.constant 0 : index
    %c0_29 = arith.constant 0 : index
    %42 = vector.load %arg13[%c0_27, %c0_28, %c0_29] : memref<16x16x8xf32, #tpu.memory_space<vmem>>, vector<16x16x8xf32>
    tpu.vector_store %arg13[%c0_27, %c0_28, %c0_29], %41 {strides = array<i32>} : memref<16x16x8xf32, #tpu.memory_space<vmem>>, vector<16x16x8xf32>,
    %c0_30 = arith.constant 0 : index
    %c0_31 = arith.constant 0 : index
    %43 = vector.load %arg5[%c0_30, %c0_31] : memref<16x32xf32, #tpu.memory_space<vmem>>, vector<16x32xf32>
    %44 = vector.shape_cast %43 : vector<16x32xf32> to vector<1x16x32xf32>
    %45 = vector.broadcast %44 : vector<1x16x32xf32> to vector<16x16x32xf32>
    %c0_32 = arith.constant 0 : index
    %c0_33 = arith.constant 0 : index
    %c0_34 = arith.constant 0 : index
    %46 = vector.load %arg13[%c0_32, %c0_33, %c0_34] : memref<16x16x8xf32, #tpu.memory_space<vmem>>, vector<16x16x1xf32>
    %47 = vector.broadcast %46 : vector<16x16x1xf32> to vector<16x16x32xf32>
    %48 = arith.mulf %47, %45 : vector<16x16x32xf32>
    %cst_35 = arith.constant dense<0.000000e+00> : vector<16x32xf32>
    %49 = vector.multi_reduction <add>, %48, %cst_35 [1] : vector<16x16x32xf32> to vector<16x32xf32>
    %50 = vector.shape_cast %49 : vector<16x32xf32> to vector<16x1x32xf32>
    %c0_36 = arith.constant 0 : index
    %c0_37 = arith.constant 0 : index
    %c0_38 = arith.constant 0 : index
    %51 = vector.load %arg16[%c0_36, %c0_37, %c0_38] : memref<16x8x32xf32, #tpu.memory_space<vmem>>, vector<16x1x32xf32>
    tpu.vector_store %arg16[%c0_36, %c0_37, %c0_38], %50 {strides = array<i32>} : memref<16x8x32xf32, #tpu.memory_space<vmem>>, vector<16x1x32xf32>,
    %c0_39 = arith.constant 0 : index
    %c0_40 = arith.constant 0 : index
    %c0_41 = arith.constant 0 : index
    %52 = vector.load %arg14[%c0_39, %c0_40, %c0_41] : memref<16x8x32xf32, #tpu.memory_space<vmem>>, vector<16x1x32xf32>
    %c0_42 = arith.constant 0 : index
    %c0_43 = arith.constant 0 : index
    %c0_44 = arith.constant 0 : index
    %53 = vector.load %arg15[%c0_42, %c0_43, %c0_44] : memref<16x8x32xf32, #tpu.memory_space<vmem>>, vector<16x1x32xf32>
    %54 = vector.broadcast %46 : vector<16x16x1xf32> to vector<16x16x32xf32>
    %55 = vector.broadcast %52 : vector<16x1x32xf32> to vector<16x16x32xf32>
    %56 = arith.mulf %54, %55 : vector<16x16x32xf32>
    %cst_45 = arith.constant 1.000000e+00 : f32
    %57 = vector.broadcast %cst_45 : f32 to vector<16x16x32xf32>
    %58 = arith.subf %57, %56 : vector<16x16x32xf32>
    %59 = arith.mulf %45, %58 : vector<16x16x32xf32>
    %60 = vector.broadcast %46 : vector<16x16x1xf32> to vector<16x16x32xf32>
    %61 = vector.broadcast %53 : vector<16x1x32xf32> to vector<16x16x32xf32>
    %62 = arith.mulf %60, %61 : vector<16x16x32xf32>
    %63 = arith.addf %59, %62 : vector<16x16x32xf32>
    %c0_46 = arith.constant 0 : index
    %c0_47 = arith.constant 0 : index
    %c1 = arith.constant 1 : index
    %64 = vector.load %arg13[%c0_46, %c0_47, %c1] : memref<16x16x8xf32, #tpu.memory_space<vmem>>, vector<16x16x1xf32>
    %65 = vector.broadcast %64 : vector<16x16x1xf32> to vector<16x16x32xf32>
    %66 = arith.mulf %65, %63 : vector<16x16x32xf32>
    %cst_48 = arith.constant dense<0.000000e+00> : vector<16x32xf32>
    %67 = vector.multi_reduction <add>, %66, %cst_48 [1] : vector<16x16x32xf32> to vector<16x32xf32>
    %68 = vector.shape_cast %67 : vector<16x32xf32> to vector<16x1x32xf32>
    %c0_49 = arith.constant 0 : index
    %c1_50 = arith.constant 1 : index
    %c0_51 = arith.constant 0 : index
    %69 = vector.load %arg16[%c0_49, %c1_50, %c0_51] : memref<16x8x32xf32, #tpu.memory_space<vmem>>, vector<16x1x32xf32>
    tpu.vector_store %arg16[%c0_49, %c1_50, %c0_51], %68 {strides = array<i32>} : memref<16x8x32xf32, #tpu.memory_space<vmem>>, vector<16x1x32xf32>,
    %c0_52 = arith.constant 0 : index
    %c1_53 = arith.constant 1 : index
    %c0_54 = arith.constant 0 : index
    %70 = vector.load %arg14[%c0_52, %c1_53, %c0_54] : memref<16x8x32xf32, #tpu.memory_space<vmem>>, vector<16x1x32xf32>
    %c0_55 = arith.constant 0 : index
    %c1_56 = arith.constant 1 : index
    %c0_57 = arith.constant 0 : index
    %71 = vector.load %arg15[%c0_55, %c1_56, %c0_57] : memref<16x8x32xf32, #tpu.memory_space<vmem>>, vector<16x1x32xf32>
    %72 = vector.broadcast %64 : vector<16x16x1xf32> to vector<16x16x32xf32>
    %73 = vector.broadcast %70 : vector<16x1x32xf32> to vector<16x16x32xf32>
    %74 = arith.mulf %72, %73 : vector<16x16x32xf32>
    %cst_58 = arith.constant 1.000000e+00 : f32
    %75 = vector.broadcast %cst_58 : f32 to vector<16x16x32xf32>
    %76 = arith.subf %75, %74 : vector<16x16x32xf32>
    %77 = arith.mulf %63, %76 : vector<16x16x32xf32>
    %78 = vector.broadcast %64 : vector<16x16x1xf32> to vector<16x16x32xf32>
    %79 = vector.broadcast %71 : vector<16x1x32xf32> to vector<16x16x32xf32>
    %80 = arith.mulf %78, %79 : vector<16x16x32xf32>
    %81 = arith.addf %77, %80 : vector<16x16x32xf32>
    %c0_59 = arith.constant 0 : index
    %c0_60 = arith.constant 0 : index
    %c2 = arith.constant 2 : index
    %82 = vector.load %arg13[%c0_59, %c0_60, %c2] : memref<16x16x8xf32, #tpu.memory_space<vmem>>, vector<16x16x1xf32>
    %83 = vector.broadcast %82 : vector<16x16x1xf32> to vector<16x16x32xf32>
    %84 = arith.mulf %83, %81 : vector<16x16x32xf32>
    %cst_61 = arith.constant dense<0.000000e+00> : vector<16x32xf32>
    %85 = vector.multi_reduction <add>, %84, %cst_61 [1] : vector<16x16x32xf32> to vector<16x32xf32>
    %86 = vector.shape_cast %85 : vector<16x32xf32> to vector<16x1x32xf32>
    %c0_62 = arith.constant 0 : index
    %c2_63 = arith.constant 2 : index
    %c0_64 = arith.constant 0 : index
    %87 = vector.load %arg16[%c0_62, %c2_63, %c0_64] : memref<16x8x32xf32, #tpu.memory_space<vmem>>, vector<16x1x32xf32>
    tpu.vector_store %arg16[%c0_62, %c2_63, %c0_64], %86 {strides = array<i32>} : memref<16x8x32xf32, #tpu.memory_space<vmem>>, vector<16x1x32xf32>,
    %c0_65 = arith.constant 0 : index
    %c2_66 = arith.constant 2 : index
    %c0_67 = arith.constant 0 : index
    %88 = vector.load %arg14[%c0_65, %c2_66, %c0_67] : memref<16x8x32xf32, #tpu.memory_space<vmem>>, vector<16x1x32xf32>
    %c0_68 = arith.constant 0 : index
    %c2_69 = arith.constant 2 : index
    %c0_70 = arith.constant 0 : index
    %89 = vector.load %arg15[%c0_68, %c2_69, %c0_70] : memref<16x8x32xf32, #tpu.memory_space<vmem>>, vector<16x1x32xf32>
    %90 = vector.broadcast %82 : vector<16x16x1xf32> to vector<16x16x32xf32>
    %91 = vector.broadcast %88 : vector<16x1x32xf32> to vector<16x16x32xf32>
    %92 = arith.mulf %90, %91 : vector<16x16x32xf32>
    %cst_71 = arith.constant 1.000000e+00 : f32
    %93 = vector.broadcast %cst_71 : f32 to vector<16x16x32xf32>
    %94 = arith.subf %93, %92 : vector<16x16x32xf32>
    %95 = arith.mulf %81, %94 : vector<16x16x32xf32>
    %96 = vector.broadcast %82 : vector<16x16x1xf32> to vector<16x16x32xf32>
    %97 = vector.broadcast %89 : vector<16x1x32xf32> to vector<16x16x32xf32>
    %98 = arith.mulf %96, %97 : vector<16x16x32xf32>
    %99 = arith.addf %95, %98 : vector<16x16x32xf32>
    %c0_72 = arith.constant 0 : index
    %c0_73 = arith.constant 0 : index
    %c3 = arith.constant 3 : index
    %100 = vector.load %arg13[%c0_72, %c0_73, %c3] : memref<16x16x8xf32, #tpu.memory_space<vmem>>, vector<16x16x1xf32>
    %101 = vector.broadcast %100 : vector<16x16x1xf32> to vector<16x16x32xf32>
    %102 = arith.mulf %101, %99 : vector<16x16x32xf32>
    %cst_74 = arith.constant dense<0.000000e+00> : vector<16x32xf32>
    %103 = vector.multi_reduction <add>, %102, %cst_74 [1] : vector<16x16x32xf32> to vector<16x32xf32>
    %104 = vector.shape_cast %103 : vector<16x32xf32> to vector<16x1x32xf32>
    %c0_75 = arith.constant 0 : index
    %c3_76 = arith.constant 3 : index
    %c0_77 = arith.constant 0 : index
    %105 = vector.load %arg16[%c0_75, %c3_76, %c0_77] : memref<16x8x32xf32, #tpu.memory_space<vmem>>, vector<16x1x32xf32>
    tpu.vector_store %arg16[%c0_75, %c3_76, %c0_77], %104 {strides = array<i32>} : memref<16x8x32xf32, #tpu.memory_space<vmem>>, vector<16x1x32xf32>,
    %c0_78 = arith.constant 0 : index
    %c3_79 = arith.constant 3 : index
    %c0_80 = arith.constant 0 : index
    %106 = vector.load %arg14[%c0_78, %c3_79, %c0_80] : memref<16x8x32xf32, #tpu.memory_space<vmem>>, vector<16x1x32xf32>
    %c0_81 = arith.constant 0 : index
    %c3_82 = arith.constant 3 : index
    %c0_83 = arith.constant 0 : index
    %107 = vector.load %arg15[%c0_81, %c3_82, %c0_83] : memref<16x8x32xf32, #tpu.memory_space<vmem>>, vector<16x1x32xf32>
    %108 = vector.broadcast %100 : vector<16x16x1xf32> to vector<16x16x32xf32>
    %109 = vector.broadcast %106 : vector<16x1x32xf32> to vector<16x16x32xf32>
    %110 = arith.mulf %108, %109 : vector<16x16x32xf32>
    %cst_84 = arith.constant 1.000000e+00 : f32
    %111 = vector.broadcast %cst_84 : f32 to vector<16x16x32xf32>
    %112 = arith.subf %111, %110 : vector<16x16x32xf32>
    %113 = arith.mulf %99, %112 : vector<16x16x32xf32>
    %114 = vector.broadcast %100 : vector<16x16x1xf32> to vector<16x16x32xf32>
    %115 = vector.broadcast %107 : vector<16x1x32xf32> to vector<16x16x32xf32>
    %116 = arith.mulf %114, %115 : vector<16x16x32xf32>
    %117 = arith.addf %113, %116 : vector<16x16x32xf32>
    %c0_85 = arith.constant 0 : index
    %c0_86 = arith.constant 0 : index
    %c4 = arith.constant 4 : index
    %118 = vector.load %arg13[%c0_85, %c0_86, %c4] : memref<16x16x8xf32, #tpu.memory_space<vmem>>, vector<16x16x1xf32>
    %119 = vector.broadcast %118 : vector<16x16x1xf32> to vector<16x16x32xf32>
    %120 = arith.mulf %119, %117 : vector<16x16x32xf32>
    %cst_87 = arith.constant dense<0.000000e+00> : vector<16x32xf32>
    %121 = vector.multi_reduction <add>, %120, %cst_87 [1] : vector<16x16x32xf32> to vector<16x32xf32>
    %122 = vector.shape_cast %121 : vector<16x32xf32> to vector<16x1x32xf32>
    %c0_88 = arith.constant 0 : index
    %c4_89 = arith.constant 4 : index
    %c0_90 = arith.constant 0 : index
    %123 = vector.load %arg16[%c0_88, %c4_89, %c0_90] : memref<16x8x32xf32, #tpu.memory_space<vmem>>, vector<16x1x32xf32>
    tpu.vector_store %arg16[%c0_88, %c4_89, %c0_90], %122 {strides = array<i32>} : memref<16x8x32xf32, #tpu.memory_space<vmem>>, vector<16x1x32xf32>,
    %c0_91 = arith.constant 0 : index
    %c4_92 = arith.constant 4 : index
    %c0_93 = arith.constant 0 : index
    %124 = vector.load %arg14[%c0_91, %c4_92, %c0_93] : memref<16x8x32xf32, #tpu.memory_space<vmem>>, vector<16x1x32xf32>
    %c0_94 = arith.constant 0 : index
    %c4_95 = arith.constant 4 : index
    %c0_96 = arith.constant 0 : index
    %125 = vector.load %arg15[%c0_94, %c4_95, %c0_96] : memref<16x8x32xf32, #tpu.memory_space<vmem>>, vector<16x1x32xf32>
    %126 = vector.broadcast %118 : vector<16x16x1xf32> to vector<16x16x32xf32>
    %127 = vector.broadcast %124 : vector<16x1x32xf32> to vector<16x16x32xf32>
    %128 = arith.mulf %126, %127 : vector<16x16x32xf32>
    %cst_97 = arith.constant 1.000000e+00 : f32
    %129 = vector.broadcast %cst_97 : f32 to vector<16x16x32xf32>
    %130 = arith.subf %129, %128 : vector<16x16x32xf32>
    %131 = arith.mulf %117, %130 : vector<16x16x32xf32>
    %132 = vector.broadcast %118 : vector<16x16x1xf32> to vector<16x16x32xf32>
    %133 = vector.broadcast %125 : vector<16x1x32xf32> to vector<16x16x32xf32>
    %134 = arith.mulf %132, %133 : vector<16x16x32xf32>
    %135 = arith.addf %131, %134 : vector<16x16x32xf32>
    %c0_98 = arith.constant 0 : index
    %c0_99 = arith.constant 0 : index
    %c5 = arith.constant 5 : index
    %136 = vector.load %arg13[%c0_98, %c0_99, %c5] : memref<16x16x8xf32, #tpu.memory_space<vmem>>, vector<16x16x1xf32>
    %137 = vector.broadcast %136 : vector<16x16x1xf32> to vector<16x16x32xf32>
    %138 = arith.mulf %137, %135 : vector<16x16x32xf32>
    %cst_100 = arith.constant dense<0.000000e+00> : vector<16x32xf32>
    %139 = vector.multi_reduction <add>, %138, %cst_100 [1] : vector<16x16x32xf32> to vector<16x32xf32>
    %140 = vector.shape_cast %139 : vector<16x32xf32> to vector<16x1x32xf32>
    %c0_101 = arith.constant 0 : index
    %c5_102 = arith.constant 5 : index
    %c0_103 = arith.constant 0 : index
    %141 = vector.load %arg16[%c0_101, %c5_102, %c0_103] : memref<16x8x32xf32, #tpu.memory_space<vmem>>, vector<16x1x32xf32>
    tpu.vector_store %arg16[%c0_101, %c5_102, %c0_103], %140 {strides = array<i32>} : memref<16x8x32xf32, #tpu.memory_space<vmem>>, vector<16x1x32xf32>,
    %c0_104 = arith.constant 0 : index
    %c5_105 = arith.constant 5 : index
    %c0_106 = arith.constant 0 : index
    %142 = vector.load %arg14[%c0_104, %c5_105, %c0_106] : memref<16x8x32xf32, #tpu.memory_space<vmem>>, vector<16x1x32xf32>
    %c0_107 = arith.constant 0 : index
    %c5_108 = arith.constant 5 : index
    %c0_109 = arith.constant 0 : index
    %143 = vector.load %arg15[%c0_107, %c5_108, %c0_109] : memref<16x8x32xf32, #tpu.memory_space<vmem>>, vector<16x1x32xf32>
    %144 = vector.broadcast %136 : vector<16x16x1xf32> to vector<16x16x32xf32>
    %145 = vector.broadcast %142 : vector<16x1x32xf32> to vector<16x16x32xf32>
    %146 = arith.mulf %144, %145 : vector<16x16x32xf32>
    %cst_110 = arith.constant 1.000000e+00 : f32
    %147 = vector.broadcast %cst_110 : f32 to vector<16x16x32xf32>
    %148 = arith.subf %147, %146 : vector<16x16x32xf32>
    %149 = arith.mulf %135, %148 : vector<16x16x32xf32>
    %150 = vector.broadcast %136 : vector<16x16x1xf32> to vector<16x16x32xf32>
    %151 = vector.broadcast %143 : vector<16x1x32xf32> to vector<16x16x32xf32>
    %152 = arith.mulf %150, %151 : vector<16x16x32xf32>
    %153 = arith.addf %149, %152 : vector<16x16x32xf32>
    %c0_111 = arith.constant 0 : index
    %c0_112 = arith.constant 0 : index
    %c6 = arith.constant 6 : index
    %154 = vector.load %arg13[%c0_111, %c0_112, %c6] : memref<16x16x8xf32, #tpu.memory_space<vmem>>, vector<16x16x1xf32>
    %155 = vector.broadcast %154 : vector<16x16x1xf32> to vector<16x16x32xf32>
    %156 = arith.mulf %155, %153 : vector<16x16x32xf32>
    %cst_113 = arith.constant dense<0.000000e+00> : vector<16x32xf32>
    %157 = vector.multi_reduction <add>, %156, %cst_113 [1] : vector<16x16x32xf32> to vector<16x32xf32>
    %158 = vector.shape_cast %157 : vector<16x32xf32> to vector<16x1x32xf32>
    %c0_114 = arith.constant 0 : index
    %c6_115 = arith.constant 6 : index
    %c0_116 = arith.constant 0 : index
    %159 = vector.load %arg16[%c0_114, %c6_115, %c0_116] : memref<16x8x32xf32, #tpu.memory_space<vmem>>, vector<16x1x32xf32>
    tpu.vector_store %arg16[%c0_114, %c6_115, %c0_116], %158 {strides = array<i32>} : memref<16x8x32xf32, #tpu.memory_space<vmem>>, vector<16x1x32xf32>,
    %c0_117 = arith.constant 0 : index
    %c6_118 = arith.constant 6 : index
    %c0_119 = arith.constant 0 : index
    %160 = vector.load %arg14[%c0_117, %c6_118, %c0_119] : memref<16x8x32xf32, #tpu.memory_space<vmem>>, vector<16x1x32xf32>
    %c0_120 = arith.constant 0 : index
    %c6_121 = arith.constant 6 : index
    %c0_122 = arith.constant 0 : index
    %161 = vector.load %arg15[%c0_120, %c6_121, %c0_122] : memref<16x8x32xf32, #tpu.memory_space<vmem>>, vector<16x1x32xf32>
    %162 = vector.broadcast %154 : vector<16x16x1xf32> to vector<16x16x32xf32>
    %163 = vector.broadcast %160 : vector<16x1x32xf32> to vector<16x16x32xf32>
    %164 = arith.mulf %162, %163 : vector<16x16x32xf32>
    %cst_123 = arith.constant 1.000000e+00 : f32
    %165 = vector.broadcast %cst_123 : f32 to vector<16x16x32xf32>
    %166 = arith.subf %165, %164 : vector<16x16x32xf32>
    %167 = arith.mulf %153, %166 : vector<16x16x32xf32>
    %168 = vector.broadcast %154 : vector<16x16x1xf32> to vector<16x16x32xf32>
    %169 = vector.broadcast %161 : vector<16x1x32xf32> to vector<16x16x32xf32>
    %170 = arith.mulf %168, %169 : vector<16x16x32xf32>
    %171 = arith.addf %167, %170 : vector<16x16x32xf32>
    %c0_124 = arith.constant 0 : index
    %c0_125 = arith.constant 0 : index
    %c7 = arith.constant 7 : index
    %172 = vector.load %arg13[%c0_124, %c0_125, %c7] : memref<16x16x8xf32, #tpu.memory_space<vmem>>, vector<16x16x1xf32>
    %173 = vector.broadcast %172 : vector<16x16x1xf32> to vector<16x16x32xf32>
    %174 = arith.mulf %173, %171 : vector<16x16x32xf32>
    %cst_126 = arith.constant dense<0.000000e+00> : vector<16x32xf32>
    %175 = vector.multi_reduction <add>, %174, %cst_126 [1] : vector<16x16x32xf32> to vector<16x32xf32>
    %176 = vector.shape_cast %175 : vector<16x32xf32> to vector<16x1x32xf32>
    %c0_127 = arith.constant 0 : index
    %c7_128 = arith.constant 7 : index
    %c0_129 = arith.constant 0 : index
    %177 = vector.load %arg16[%c0_127, %c7_128, %c0_129] : memref<16x8x32xf32, #tpu.memory_space<vmem>>, vector<16x1x32xf32>
    tpu.vector_store %arg16[%c0_127, %c7_128, %c0_129], %176 {strides = array<i32>} : memref<16x8x32xf32, #tpu.memory_space<vmem>>, vector<16x1x32xf32>,
    %c0_130 = arith.constant 0 : index
    %c0_131 = arith.constant 0 : index
    %c0_132 = arith.constant 0 : index
    %178 = vector.load %arg16[%c0_130, %c0_131, %c0_132] : memref<16x8x32xf32, #tpu.memory_space<vmem>>, vector<16x8x32xf32>
    %179 = vector.shape_cast %178 : vector<16x8x32xf32> to vector<128x32xf32>
    %c0_133 = arith.constant 0 : index
    %c0_134 = arith.constant 0 : index
    %180 = vector.load %arg6[%c0_133, %c0_134] : memref<32x32xf32, #tpu.memory_space<vmem>>, vector<32x32xf32>
    %cst_135 = arith.constant dense<0.000000e+00> : vector<128x32xf32>
    %181 = tpu.matmul %179, %180, %cst_135 {dimension_numbers = #tpu.dot_dimension_numbers<[1], [0], [0], [1], [0, 0, 1, 1], [], []>} : vector<128x32xf32>, vector<32x32xf32>, vector<128x32xf32> -> vector<128x32xf32>
    %c0_136 = arith.constant 0 : index
    %c0_137 = arith.constant 0 : index
    %182 = vector.load %arg17[%c0_136, %c0_137] : memref<128x32xf32, #tpu.memory_space<vmem>>, vector<128x32xf32>
    %183 = arith.addf %181, %182 : vector<128x32xf32>
    %c0_138 = arith.constant 0 : index
    %c0_139 = arith.constant 0 : index
    %184 = vector.load %arg9[%c0_138, %c0_139] : memref<1x32xf32, #tpu.memory_space<vmem>>, vector<1x32xf32>
    %185 = vector.broadcast %184 : vector<1x32xf32> to vector<128x32xf32>
    %186 = arith.addf %183, %185 : vector<128x32xf32>
    %187 = math.tanh %186 : vector<128x32xf32>
    %188 = vector.shape_cast %187 : vector<128x32xf32> to vector<16x8x32xf32>
    %c0_140 = arith.constant 0 : index
    %c0_141 = arith.constant 0 : index
    %189 = vector.load %arg10[%c0_140, %c0_141] : memref<1x32xf32, #tpu.memory_space<vmem>>, vector<1x32xf32>
    %190 = vector.shape_cast %189 : vector<1x32xf32> to vector<1x1x32xf32>
    %191 = vector.broadcast %190 : vector<1x1x32xf32> to vector<16x8x32xf32>
    %192 = arith.mulf %188, %191 : vector<16x8x32xf32>
    %cst_142 = arith.constant dense<0.000000e+00> : vector<16x8xf32>
    %193 = vector.multi_reduction <add>, %192, %cst_142 [2] : vector<16x8x32xf32> to vector<16x8xf32>
    %c0_143 = arith.constant 0 : index
    %194 = memref.load %arg11[%c0_143] : memref<1xf32, #tpu.memory_space<smem>>
    %195 = vector.broadcast %194 : f32 to vector<16x8xf32>
    %196 = arith.addf %193, %195 : vector<16x8xf32>
    %cst_144 = arith.constant 5.000000e-01 : f32
    %197 = vector.broadcast %cst_144 : f32 to vector<16x8xf32>
    %198 = arith.mulf %197, %196 : vector<16x8xf32>
    %199 = math.tanh %198 : vector<16x8xf32>
    %cst_145 = arith.constant 1.000000e+00 : f32
    %200 = vector.broadcast %cst_145 : f32 to vector<16x8xf32>
    %201 = arith.addf %199, %200 : vector<16x8xf32>
    %cst_146 = arith.constant 5.000000e-01 : f32
    %202 = vector.broadcast %cst_146 : f32 to vector<16x8xf32>
    %203 = arith.mulf %202, %201 : vector<16x8xf32>
    %c0_147 = arith.constant 0 : index
    %c0_148 = arith.constant 0 : index
    %204 = vector.load %arg12[%c0_147, %c0_148] : memref<16x8xf32, #tpu.memory_space<vmem>>, vector<16x8xf32>
    tpu.vector_store %arg12[%c0_147, %c0_148], %203 {strides = array<i32>} : memref<16x8xf32, #tpu.memory_space<vmem>>, vector<16x8xf32>,
    return
  }
  func.func @transform_0(%arg0: i32) -> (i32, i32, i32) {
    %c0_i32 = arith.constant 0 : i32
    %c0_i32_0 = arith.constant 0 : i32
    %c0_i32_1 = arith.constant 0 : i32
    return %arg0, %c0_i32, %c0_i32_0 : i32, i32, i32
  }
  func.func @transform_1(%arg0: i32) -> (i32, i32, i32) {
    %c0_i32 = arith.constant 0 : i32
    %c0_i32_0 = arith.constant 0 : i32
    %c0_i32_1 = arith.constant 0 : i32
    return %arg0, %c0_i32, %c0_i32_0 : i32, i32, i32
  }
  func.func @transform_2(%arg0: i32) -> (i32, i32) {
    %c0_i32 = arith.constant 0 : i32
    %c0_i32_0 = arith.constant 0 : i32
    %c0_i32_1 = arith.constant 0 : i32
    return %c0_i32, %c0_i32_0 : i32, i32
  }
  func.func @transform_3(%arg0: i32) -> (i32, i32) {
    %c0_i32 = arith.constant 0 : i32
    %c0_i32_0 = arith.constant 0 : i32
    %c0_i32_1 = arith.constant 0 : i32
    return %c0_i32, %c0_i32_0 : i32, i32
  }
  func.func @transform_4(%arg0: i32) -> (i32, i32) {
    %c0_i32 = arith.constant 0 : i32
    %c0_i32_0 = arith.constant 0 : i32
    %c0_i32_1 = arith.constant 0 : i32
    return %c0_i32, %c0_i32_0 : i32, i32
  }
  func.func @transform_5(%arg0: i32) -> (i32, i32) {
    %c0_i32 = arith.constant 0 : i32
    %c0_i32_0 = arith.constant 0 : i32
    %c0_i32_1 = arith.constant 0 : i32
    return %c0_i32, %c0_i32_0 : i32, i32
  }
  func.func @transform_6(%arg0: i32) -> (i32, i32) {
    %c0_i32 = arith.constant 0 : i32
    %c0_i32_0 = arith.constant 0 : i32
    %c0_i32_1 = arith.constant 0 : i32
    return %c0_i32, %c0_i32_0 : i32, i32
  }
  func.func @transform_7(%arg0: i32) -> (i32, i32) {
    %c0_i32 = arith.constant 0 : i32
    %c0_i32_0 = arith.constant 0 : i32
    %c0_i32_1 = arith.constant 0 : i32
    return %c0_i32, %c0_i32_0 : i32, i32
  }
  func.func @transform_8(%arg0: i32) -> (i32, i32) {
    %c0_i32 = arith.constant 0 : i32
    %c0_i32_0 = arith.constant 0 : i32
    %c0_i32_1 = arith.constant 0 : i32
    return %c0_i32, %c0_i32_0 : i32, i32
  }
  func.func @transform_9(%arg0: i32) -> (i32, i32) {
    %c0_i32 = arith.constant 0 : i32
    %c0_i32_0 = arith.constant 0 : i32
    %c0_i32_1 = arith.constant 0 : i32
    return %c0_i32, %c0_i32_0 : i32, i32
  }
  func.func @transform_10(%arg0: i32) -> i32 {
    %c0_i32 = arith.constant 0 : i32
    %c0_i32_0 = arith.constant 0 : i32
    return %c0_i32 : i32
  }
  func.func @transform_11(%arg0: i32) -> (i32, i32) {
    %c0_i32 = arith.constant 0 : i32
    %c0_i32_0 = arith.constant 0 : i32
    return %arg0, %c0_i32 : i32, i32
  }
}

</mosaic_0001>

<bundles_post_ra>
// kernel: tpu_custom_call.1
= control target key start
LH: loop header
LB: loop body
LE: loop exit
PB: predicated region body
PF: predicated region fallthrough
CT: control target
= control target key end

     0   :  { %s13538_s0 = inlined_call_operand.hbm [shape: f32[32,8,32], index: 0, kind: input, shape index: {}]   ;;  %s13539_s1 = inlined_call_operand.hbm [shape: f32[32,8,32], index: 1, kind: input, shape index: {}]   ;;  %s13540_s2 = inlined_call_operand.hbm [shape: f32[32,160], index: 2, kind: input, shape index: {}]   ;;  %s13541_s3 = inlined_call_operand.hbm [shape: f32[32,160], index: 3, kind: input, shape index: {}]   ;;  %s13542_s4 = inlined_call_operand.vmem [shape: f32[16,32], index: 4, kind: input, shape index: {}]   ;;  %s13543_s5 = inlined_call_operand.hbm [shape: f32[32,32], index: 5, kind: input, shape index: {}]   ;;  %s13544_s6 = inlined_call_operand.vmem [shape: f32[1,32], index: 6, kind: input, shape index: {}]   ;;  %s13545_s7 = inlined_call_operand.vmem [shape: f32[1,32], index: 7, kind: input, shape index: {}]   ;;  %s13546_s8 = inlined_call_operand.vmem [shape: f32[1,32], index: 8, kind: input, shape index: {}]   ;;  %s13547_s9 = inlined_call_operand.vmem [shape: f32[1,32], index: 9, kind: input, shape index: {}]   ;;  %s13548_s10 = inlined_call_operand.<no memory space> [shape: f32[1], index: 10, kind: input, shape index: {}]   ;;  %s13549_s11 = inlined_call_operand.vmem [shape: f32[32,8], index: 11, kind: output, shape index: {}]  }
   0x1   :  { %13794 = sst [smem:[#allocation99_spill]] %s13538_s0 }
   0x2   :  { %13795 = sst [smem:[#allocation100_spill]] %s13540_s2 }
   0x3   :  { %13796 = sst [smem:[#allocation101_spill]] %s13547_s9 }
   0x4   :  { %13797 = sst [smem:[#allocation102_spill]] %s13549_s11 }
   0x5   :  { %16 = sst [smem:[#allocation7]] %s13548_s10 }
   0x6   :  { %17 = vsyncpa [#allocation9], 0 }
   0x7   :  { %19 = vsyncpa [#allocation9 + $0x1], 0 }
   0x8   :  { %20 = vsyncpa [#allocation11], 0 }
   0x9   :  { %22 = vsyncpa [#allocation11 + $0x1], 0 }
   0xa   :  { %23 = vsyncpa [#allocation14], 0  ;;  %s9022_s19 = smov 0   ;;  %s9024_s20 = smov 0  }
   0xb   :  { %s9026_s21 = smov 0   ;;  %s9028_s22 = smov 0  }
   0xc LB: > { %s9041_s10 = sadd.s32 4294967295, %s8939_s22   ;;  %p49_p0 = scmp.ne.s32.totalorder %s8931_s20, %s8927_s19  ;;  %s8939_s22 = sphi %s9028_s22, %s14460_s22   ;;  %s8935_s21 = sphi %s9026_s21, %s14459_s21   ;;  %s8931_s20 = sphi %s9024_s20, %s14458_s20   ;;  %s8927_s19 = sphi %s9022_s19, %s14457_s19  }
   0xd   : > { %p13550_p1 = scmp.eq.s32.totalorder %s9041_s10, 0  ;;  %p7820_p2 = scmp.ge.s32.totalorder %s8939_s22, 1 }
   0xe   : > { %p301_p3 = scmp.lt.s32.totalorder %s8939_s22, 3  ;;  %s8941_s25 = smov [#allocation12]  }
   0xf   : > { %p9049_p4 = por %p13550_p1, %p49_p0  ;;  %s313_s26 = sshll.u32 %s8941_s25, 4  ;;  %s9057_s26 = int_to_ptr.vmem [resolvable:$true] %s313_s26 }
  0x10   : > { %p9053_p5 = pnand %p7820_p2, %p301_p3  ;;  %s8942_s28 = smov [#allocation13]  }
  0x11   : > { %s13798_s23 = scalar_select %p9049_p4, 1, 0 }
  0x12   : > { %s13799_s24 = scalar_select %p9053_p5, 1, 0 }
  0x13   : > { %p8215_p6 = pneg %p9053_p5  ;;  %s326_s29 = sshll.u32 %s8942_s28, 4  ;;  %s9067_s29 = int_to_ptr.vmem [resolvable:$true] %s326_s29 }
  0x14   : > { %s8943_s30 = smov [#allocation15]   ;;  %s13801_s2 = sld [smem:[#allocation100_spill]] }
  0x15   : > { %p9063_p7 = pnand %p8215_p6, %p13550_p1  ;;  %s9069_s12 = sshll.u32 %s8943_s30, 4  ;;  %s343_s12 = int_to_ptr.vmem [resolvable:$true] %s9069_s12 }
  0x17   : > { %p9079_p9 = pneg %p9063_p7 }
  0x1a   : > { %s8749_s15 = scalar_lea.hbm %s13801_s2, 1024 }
  0x1b   : > { %p8750_p8 = scmp.ne.s32.totalorder %s13801_s2, %s8749_s15  ;;  %p8756_p12 = scmp.lt.u32.totalorder %s8749_s15, %s13801_s2 }
  0x1d   : > { %p8752_p10 = pnand %p9079_p9, %p8750_p8 }
  0x1f   : > { %p8753_p11 = pneg %p8752_p10 }
  0x21   : > { %p8758_p13 = pnand %p8756_p12, %p8753_p11 }
  0x23   : > { %8761 = shalt.err (!%p8758_p13)
}
  0x24   : > { %s8762_s28 = scalar_lea.vmem %s9057_s26, 1024  ;;  %p8770_p6 = scmp.lt.s32.totalorder %s9057_s26, %s9057_s26 }
  0x25   : > { %p8763_p0 = scmp.ne.s32.totalorder %s9057_s26, %s8762_s28  ;;  %p8771_p1 = scmp.lt.s32.totalorder %s8762_s28, %s8762_s28 }
  0x27   : > { %p8765_p2 = pnand %p8763_p0, %p9079_p9  ;;  %p8772_p8 = por %p8771_p1, %p8770_p6 }
  0x29   : > { %p8766_p3 = pneg %p8765_p2 }
  0x2b   : > { %p8773_p10 = pnand %p8772_p8, %p8766_p3 }
  0x2d   : > { %8776 = shalt.err (!%p8773_p10)
}
  0x2e   : > { %s8944_s30 = smov 256   ;;  %s8945_s13 = smov 16  }
  0x2f   : > { %8218 = dma.hbm_to_vmem [thread:$0]  (!%p9063_p7), %s13801_s2, 1024, %s9057_s26, [#allocation11], %s8944_s30, %s8944_s30, %s8945_s13  }
  0x30   : > { %s8777_s19 = scalar_lea.hbm %s13541_s3, 1024 }
  0x31   : > { %p8778_p1 = scmp.ne.s32.totalorder %s13541_s3, %s8777_s19  ;;  %p8784_p13 = scmp.lt.u32.totalorder %s8777_s19, %s13541_s3 }
  0x33   : > { %p8780_p11 = pnand %p8778_p1, %p9079_p9 }
  0x35   : > { %p8781_p12 = pneg %p8780_p11 }
  0x37   : > { %p8786_p0 = pnand %p8784_p13, %p8781_p12 }
  0x39   : > { %8789 = shalt.err (!%p8786_p0)
}
  0x3a   : > { %s8790_s26 = scalar_lea.vmem %s9067_s29, 1024  ;;  %p8798_p8 = scmp.lt.s32.totalorder %s9067_s29, %s9067_s29 }
  0x3b   : > { %p8791_p2 = scmp.ne.s32.totalorder %s9067_s29, %s8790_s26  ;;  %p8799_p10 = scmp.lt.s32.totalorder %s8790_s26, %s8790_s26 }
  0x3d   : > { %p8793_p3 = pnand %p8791_p2, %p9079_p9  ;;  %p8800_p1 = por %p8799_p10, %p8798_p8 }
  0x3f   : > { %p8794_p6 = pneg %p8793_p3 }
  0x41   : > { %p8801_p11 = pnand %p8800_p1, %p8794_p6 }
  0x43   : > { %8804 = shalt.err (!%p8801_p11)
}
  0x44   : > { %8221 = dma.hbm_to_vmem [thread:$0]  (!%p9063_p7), %s13541_s3, 1024, %s9067_s29, [#allocation14], %s8944_s30, %s8944_s30, %s8945_s13  }
  0x45   : > { %s8805_s16 = scalar_lea.hbm %s13543_s5, 512 }
  0x46   : > { %p8806_p12 = scmp.ne.s32.totalorder %s13543_s5, %s8805_s16  ;;  %p8812_p2 = scmp.lt.u32.totalorder %s8805_s16, %s13543_s5 }
  0x48   : > { %p8808_p13 = pnand %p8806_p12, %p9079_p9 }
  0x4a   : > { %p8809_p0 = pneg %p8808_p13 }
  0x4c   : > { %p8814_p3 = pnand %p8812_p2, %p8809_p0 }
  0x4e   : > { %8817 = shalt.err (!%p8814_p3)
}
  0x4f   : > { %s8818_s26 = scalar_lea.vmem %s343_s12, 512  ;;  %p8826_p1 = scmp.lt.s32.totalorder %s343_s12, %s343_s12 }
  0x50   : > { %p8819_p6 = scmp.ne.s32.totalorder %s343_s12, %s8818_s26  ;;  %p8827_p11 = scmp.lt.s32.totalorder %s8818_s26, %s8818_s26 }
  0x52   : > { %p8821_p8 = pnand %p8819_p6, %p9079_p9  ;;  %p8828_p4 = por %p8827_p11, %p8826_p1 }
  0x54   : > { %p8822_p10 = pneg %p8821_p8 }
  0x56   : > { %p8829_p5 = pnand %p8828_p4, %p8822_p10 }
  0x58   : > { %8832 = shalt.err (!%p8829_p5)
}
  0x59   : > { %s13554_s29 = smov 128   ;;  %s13556_s18 = smov 8  }
  0x5a   : > { %8224 = dma.hbm_to_vmem [thread:$0]  (!%p9063_p7), %s13543_s5, 512, %s343_s12, [#allocation14], %s13554_s29, %s13554_s29, %s13556_s18  }
  0x5b   : > { %s9146_s9 = sadd.s32 1, %s8939_s22   ;;  %s36_s14 = sadd.s32 1, %s8935_s21 }
  0x5c   : > { %s33_s11 = ssub.s32 %s8939_s22, %s9146_s9  ;;  %p43_p5 = scmp.ne.s32.totalorder %s8935_s21, %s8931_s20 }
  0x5d   : > { %p34_p4 = scmp.eq.s32.totalorder %s33_s11, 0  ;;  %p44_p9 = scmp.eq.s32.totalorder %s8939_s22, 0 }
  0x5e   : > { %p8235_p12 = scmp.lt.s32.totalorder %s8939_s22, 2  ;;  %s371_s27 = sand.u32 1, %s8935_s21  }
  0x5f   : > { %s9156_s15 = scalar_select %p34_p4, %s8935_s21, %s36_s14  }
  0x60   : > { %p45_p13 = por %p44_p9, %p43_p5  ;;  %s7825_s16 = sshll.u32 %s371_s27, 7 }
  0x61   : > { %s8117_s17 = sshll.u32 %s8939_s22, 11  ;;  %s13803_s0 = sld [smem:[#allocation99_spill]] }
  0x62   : > { %s375_s12 = scalar_lea.vmem [#allocation8], %s7825_s16  ;;  %p9167_p7 = pnand %p8235_p12, %p45_p13 }
  0x63   : > { %s382_s26 = sshll.u32 %s375_s12, 4  ;;  %s9174_s14 = scalar_lea.hbm %s13539_s1, %s8117_s17  ;;  %s9165_s26 = int_to_ptr.vmem [resolvable:$true] %s382_s26 }
  0x64   : > { %s396_s19 = scalar_lea.vmem [#allocation10], %s7825_s16  ;;  %s9178_s29 = scalar_lea.sflag [#allocation9], %s371_s27 }
  0x65   : > { %s9176_s25 = sshll.u32 %s396_s19, 4  ;;  %p8835_p2 = pneg %p9167_p7  ;;  %s9210_s25 = int_to_ptr.vmem [resolvable:$true] %s9176_s25 }
  0x67   : > { %s9163_s28 = scalar_lea.hbm %s13803_s0, %s8117_s17  ;;  %s8838_s13 = scalar_lea.hbm %s13803_s0, 4096 }
  0x68   : > { %s8833_s12 = scalar_lea.hbm %s9163_s28, 2048  ;;  %p8839_p8 = scmp.lt.u32.totalorder %s9163_s28, %s13803_s0 }
  0x69   : > { %p8834_p0 = scmp.ne.s32.totalorder %s9163_s28, %s8833_s12  ;;  %p8840_p10 = scmp.lt.u32.totalorder %s8838_s13, %s8833_s12 }
  0x6a   : > { %p8842_p11 = scmp.lt.u32.totalorder %s8833_s12, %s9163_s28 }
  0x6b   : > { %p8836_p3 = pnand %p8835_p2, %p8834_p0  ;;  %p8841_p1 = por %p8840_p10, %p8839_p8 }
  0x6d   : > { %p8837_p6 = pneg %p8836_p3  ;;  %p8843_p4 = por %p8842_p11, %p8841_p1 }
  0x6f   : > { %p8844_p5 = pnand %p8843_p4, %p8837_p6 }
  0x71   : > { %8847 = shalt.err (!%p8844_p5)
}
  0x72   : > { %s8848_s27 = scalar_lea.vmem %s9165_s26, 2048  ;;  %s8948_s2 = smov [#allocation8]  }
  0x73   : > { %p8849_p9 = scmp.ne.s32.totalorder %s9165_s26, %s8848_s27  ;;  %s8853_s18 = sshll.u32 %s8948_s2, 4  ;;  %s8854_s18 = int_to_ptr.vmem [resolvable:$false] %s8853_s18 }
  0x74   : > { %s8855_s16 = scalar_lea.vmem %s8854_s18, 4096  ;;  %p8856_p0 = scmp.lt.s32.totalorder %s9165_s26, %s8854_s18 }
  0x75   : > { %p8851_p12 = pnand %p8849_p9, %p8835_p2  ;;  %p8857_p3 = scmp.lt.s32.totalorder %s8855_s16, %s8848_s27 }
  0x77   : > { %p8852_p13 = pneg %p8851_p12  ;;  %p8858_p8 = por %p8857_p3, %p8856_p0 }
  0x79   : > { %p8859_p10 = pnand %p8858_p8, %p8852_p13 }
  0x7b   : > { %8862 = shalt.err (!%p8859_p10)
}
  0x7c   : > { %s13805_s19 = smov 8   ;;  %s13806_s12 = smov 128  }
  0x7d   : > { %8228 = dma.hbm_to_vmem [thread:$0]  (!%p9167_p7), %s9163_s28, 2048, %s9165_s26, %s9178_s29, %s13806_s12, %s13806_s12, %s13805_s19  }
  0x7e   : > { %s392_s13 = sand.u32 1, %s8939_s22   ;;  %s8863_s17 = scalar_lea.hbm %s9174_s14, 2048 }
  0x7f   : > { %s9213_s11 = scalar_lea.sflag [#allocation11], %s392_s13  ;;  %p8864_p6 = scmp.ne.s32.totalorder %s9174_s14, %s8863_s17 }
  0x80   : > { %s8868_s18 = scalar_lea.hbm %s13539_s1, 4096  ;;  %p8869_p4 = scmp.lt.u32.totalorder %s9174_s14, %s13539_s1 }
  0x81   : > { %p8866_p1 = pnand %p8864_p6, %p8835_p2  ;;  %p8870_p5 = scmp.lt.u32.totalorder %s8868_s18, %s8863_s17 }
  0x82   : > { %p8872_p12 = scmp.lt.u32.totalorder %s8863_s17, %s9174_s14 }
  0x83   : > { %p8867_p11 = pneg %p8866_p1  ;;  %p8871_p9 = por %p8870_p5, %p8869_p4 }
  0x85   : > { %p8873_p13 = por %p8872_p12, %p8871_p9 }
  0x87   : > { %p8874_p0 = pnand %p8873_p13, %p8867_p11 }
  0x89   : > { %8877 = shalt.err (!%p8874_p0)
}
  0x8a   : > { %s8878_s22 = scalar_lea.vmem %s9210_s25, 2048  ;;  %s8949_s29 = smov [#allocation10]  }
  0x8b   : > { %p8879_p3 = scmp.ne.s32.totalorder %s9210_s25, %s8878_s22  ;;  %s8883_s28 = sshll.u32 %s8949_s29, 4  ;;  %s8884_s28 = int_to_ptr.vmem [resolvable:$false] %s8883_s28 }
  0x8c   : > { %s8885_s0 = scalar_lea.vmem %s8884_s28, 4096  ;;  %p8886_p6 = scmp.lt.s32.totalorder %s9210_s25, %s8884_s28 }
  0x8d   : > { %p8881_p8 = pnand %p8879_p3, %p8835_p2  ;;  %p8887_p1 = scmp.lt.s32.totalorder %s8885_s0, %s8878_s22 }
  0x8f   : > { %p8882_p10 = pneg %p8881_p8  ;;  %p8888_p4 = por %p8887_p1, %p8886_p6 }
  0x91   : > { %p8889_p5 = pnand %p8888_p4, %p8882_p10 }
  0x93   : > { %8892 = shalt.err (!%p8889_p5)
}
  0x94   : > { %8231 = dma.hbm_to_vmem [thread:$0]  (!%p9167_p7), %s9174_s14, 2048, %s9210_s25, %s9213_s11, %s13806_s12, %s13806_s12, %s13805_s19  }
  0x95   : > { %p13807_p2 = scmp.ne.s32.totalorder %s13799_s24, 0 }
  0x97   : > { %415 = sbr.rel (%p13807_p2) target bundleno = 2094 (0x82e), region = 64 }
  0x9e   : > { %s417_s26 = sand.u32 1, %s8931_s20   ;;  %p13808_p11 = scmp.ne.s32.totalorder %s13798_s23, 0 }
  0x9f   : > { %s7832_s13 = sshll.u32 %s417_s26, 7  ;;  %s418_s17 = scalar_lea.sflag [#allocation9], %s417_s26 }
  0xa0   : > { %s9245_s27 = scalar_lea.vmem [#allocation8], %s7832_s13 }
  0xa1   : > { %8910 = dma.done.wait (%p13808_p11), %s418_s17, 2048  }
  0xa2   : > { %8912 = vsyncadd (%p13808_p11), %s418_s17, 4294965248  ;;  %s426_s30 = sand.u32 1, %s9041_s10   ;;  %s9252_s14 = scalar_lea.vmem [#allocation10], %s7832_s13 }
  0xa3   : > { %s427_s2 = scalar_lea.sflag [#allocation11], %s426_s30 }
  0xa4   : > { %8914 = dma.done.wait (%p13808_p11), %s427_s2, 2048  }
  0xa5   : > { %8916 = vsyncadd (%p13808_p11), %s427_s2, 4294965248  ;;  %p13809_p7 = scmp.eq.s32.totalorder %s9041_s10, 0 }
  0xa7   : > { %8918 = dma.done.wait (%p13809_p7), [#allocation11], 1024   ;;  %p13810_p9 = pmov %p13809_p7 }
  0xa8   : > { %p13811_p12 = pmov %p13809_p7 }
  0xa9   : > { %8920 = vsyncadd (%p13810_p9), [#allocation11], 4294966272 }
  0xaa   : > { %8922 = dma.done.wait (%p13811_p12), [#allocation14], 1536   ;;  %p13812_p13 = pmov %p13809_p7 }
  0xab   : > { %v8950_v0 = vmov 0.0   ;;  %v527_v1 = vld [vmem:[#allocation12 + $0x8] sm:$0xff]  ;;  %v529_v2 = vld [vmem:[#allocation12 + $0x18] sm:$0xff]  ;;  %v526_v3 = vld [vmem:[#allocation12] sm:$0xff]  ;;  %vm534_vm0 = vcmask 261120   ;;  %vm1135_vm1 = vcmask 130048  }
  0xac   : > { %8924 = vsyncadd (%p13812_p13), [#allocation14], 4294965760  ;;  %647 = vmatprep.mubr.f32.mxu0 %v8950_v0  ;;  %719 = vmatprep.mubr.f32.mxu1 %v8950_v0  ;;  %v8171_v4 = vpack.c.bf16 %v529_v2, %v527_v1  ;;  %v528_v5 = vld [vmem:[#allocation12 + $0x10] sm:$0xff]  ;;  %v531_v6 = vld [vmem:[#allocation12 + $0x28] sm:$0xff]  ;;  %vm1824_vm2 = vcmask 64512   ;;  %vm2227_vm3 = vcmask 253952  }
  0xad   : > { %v533_v7 = vld [vmem:[#allocation12 + $0x38] sm:$0xff]  ;;  %v8173_v8 = vpack.c.bf16 %v528_v5, %v526_v3  ;;  %v530_v10 = vld [vmem:[#allocation12 + $0x20] sm:$0xff]  ;;  %v532_v11 = vld [vmem:[#allocation12 + $0x30] sm:$0xff]  ;;  %s14258_s0 = sld [smem:[#allocation101_spill]]  ;;  %s7511_s11 = sld [smem:[#allocation7]]  ;;  %vm7675_vm4 = vcmask 1041409  }
  0xae   : > { %v8175_v9 = vpack.c.bf16 %v533_v7, %v531_v6  ;;  %8172 = vmatprep.subr.bf16.mxu0 %v8171_v4  ;;  %8195 = vmatprep.subr.bf16.mxu1 %v8171_v4  ;;  %v8177_v12 = vpack.c.bf16 %v532_v11, %v530_v10  ;;  %v494_v13 = vld [vmem:[%s9245_s27] sm:$0xff]  ;;  %v495_v15 = vld [vmem:[%s9245_s27 + $0x8] sm:$0xff]  ;;  %v496_v17 = vld [vmem:[%s9245_s27 + $0x10] sm:$0xff]  ;;  %s7837_s18 = sshll.u32 %s9041_s10, 1  ;;  %vm7677_vm5 = vcmask 1042434   ;;  %vm7679_vm6 = vcmask 1043459  }
  0xaf   : > { %8174 = vmatpush1.bf16.msra.mxu0 %v8173_v8  ;;  %8197 = vmatpush1.bf16.msra.mxu1 %v8173_v8  ;;  %v506_v14 = vld [vmem:[%s9245_s27 + $0x60] sm:$0xff]  ;;  %v507_v16 = vld [vmem:[%s9245_s27 + $0x68] sm:$0xff]  ;;  %v508_v18 = vld [vmem:[%s9245_s27 + $0x70] sm:$0xff]  ;;  %p489_p0 = scmp.lt.s32.totalorder %s7837_s18, 3  ;;  %vm7681_vm7 = vcmask 1044484   ;;  %vm7683_vm8 = vcmask 1045509  }
  0xb0   : > { %8176 = vmatprep.subr.bf16.mxu0 %v8175_v9  ;;  %8196 = vmatprep.subr.bf16.mxu1 %v8175_v9  ;;  %v497_v19 = vld [vmem:[%s9245_s27 + $0x18] sm:$0xff]  ;;  %v498_v21 = vld [vmem:[%s9245_s27 + $0x20] sm:$0xff]  ;;  %v499_v22 = vld [vmem:[%s9245_s27 + $0x28] sm:$0xff]  ;;  %vm7685_vm9 = vcmask 1046534   ;;  %vm7687_vm10 = vcmask 1047559   ;;  %s14456_s29 = sld [smem:[#allocation102_spill]] }
  0xb1   : > { %v509_v20 = vld [vmem:[%s9245_s27 + $0x78] sm:$0xff]  ;;  %v500_v23 = vld [vmem:[%s9245_s27 + $0x30] sm:$0xff]  ;;  %v502_v25 = vld [vmem:[%s9245_s27 + $0x40] sm:$0xff]  ;;  %s14462_s18 = smov (!%p489_p0, %s7837_s18), 3 }
  0xb2   : > { %v501_v24 = vld [vmem:[%s9245_s27 + $0x38] sm:$0xff]  ;;  %v503_v26 = vld [vmem:[%s9245_s27 + $0x48] sm:$0xff]  ;;  %v504_v27 = vld [vmem:[%s9245_s27 + $0x50] sm:$0xff]  ;;  %s7838_s10 = sshll.u32 %s14462_s18, 3 }
  0xb3   : > { %8178 = vmatpush1.bf16.msra.mxu0 %v8177_v12  ;;  %8198 = vmatpush1.bf16.msra.mxu1 %v8177_v12  ;;  %v505_v28 = vld [vmem:[%s9245_s27 + $0x58] sm:$0xff] }
  0xb6   : > { %7839 = vmatmul.mubr.msk.f32.vlgmr.msra.gmra.mrb[0].mxu0 %vm534_vm0, %v494_v13  ;;  %7851 = vmatmul.mubr.msk.f32.vlgmr.msra.gmra.mrb[0].mxu1 %vm534_vm0, %v506_v14  ;;  %v761_v14 = vld [vmem:[#allocation13 + $0x8] sm:$0xff]  ;;  %s13495_s28 = scalar_lea.vmem %s14456_s29, %s7838_s10 }
  0xb7   : > { %653 = vmatprep.mubr.f32.mxu0 %v8950_v0  ;;  %725 = vmatprep.mubr.f32.mxu1 %v8950_v0 }
  0xba   : > { %7840 = vmatmul.mubr.msk.f32.gmra.mrb[2].mxu0 %vm534_vm0, %v495_v15  ;;  %7852 = vmatmul.mubr.msk.f32.gmra.mrb[2].mxu1 %vm534_vm0, %v507_v16  ;;  %v763_v15 = vld [vmem:[#allocation13 + $0x18] sm:$0xff]  ;;  %v760_v16 = vld [vmem:[#allocation13] sm:$0xff] }
  0xbb   : > { %659 = vmatprep.mubr.f32.mxu0 %v8950_v0  ;;  %731 = vmatprep.mubr.f32.mxu1 %v8950_v0 }
  0xbe   : > { %7841 = vmatmul.mubr.msk.f32.gmra.mrb[4].mxu0 %vm534_vm0, %v496_v17  ;;  %7853 = vmatmul.mubr.msk.f32.gmra.mrb[4].mxu1 %vm534_vm0, %v508_v18  ;;  %v8179_v17 = vpack.c.bf16 %v763_v15, %v761_v14  ;;  %v762_v18 = vld [vmem:[#allocation13 + $0x10] sm:$0xff] }
  0xbf   : > { %665 = vmatprep.mubr.f32.mxu0 %v8950_v0  ;;  %737 = vmatprep.mubr.f32.mxu1 %v8950_v0 }
  0xc0   : > { %8180 = vmatprep.subr.bf16.mxu1 %v8179_v17 }
  0xc2   : > { %7842 = vmatmul.mubr.msk.f32.gmra.mrb[6].mxu0 %vm534_vm0, %v497_v19  ;;  %7854 = vmatmul.mubr.msk.f32.gmra.mrb[6].mxu1 %vm534_vm0, %v509_v20  ;;  %v765_v19 = vld [vmem:[#allocation13 + $0x28] sm:$0xff]  ;;  %v767_v20 = vld [vmem:[#allocation13 + $0x38] sm:$0xff] }
  0xc3   : > { %671 = vmatprep.mubr.f32.mxu0 %v8950_v0  ;;  %880 = vmatprep.mubr.f32.mxu1 %v8950_v0 }
  0xc6   : > { %7843 = vmatmul.mubr.msk.f32.gmra.mrb[8].mxu0 %vm534_vm0, %v498_v21  ;;  %v8181_v21 = vpack.c.bf16 %v762_v18, %v760_v16 }
  0xc7   : > { %677 = vmatprep.mubr.f32.mxu0 %v8950_v0 }
  0xc8   : > { %8182 = vmatpush1.bf16.msra.mxu1 %v8181_v21 }
  0xca   : > { %7844 = vmatmul.mubr.msk.f32.gmra.mrb[10].mxu0 %vm534_vm0, %v499_v22  ;;  %v8183_v22 = vpack.c.bf16 %v767_v20, %v765_v19  ;;  %v512_v19 = vld [vmem:[%s9252_s14 + $0x10] sm:$0xff] }
  0xcb   : > { %683 = vmatprep.mubr.f32.mxu0 %v8950_v0 }
  0xcc   : > { %8184 = vmatprep.subr.bf16.mxu1 %v8183_v22 }
  0xce   : > { %7845 = vmatmul.mubr.msk.f32.gmra.mrb[12].mxu0 %vm534_vm0, %v500_v23  ;;  %v764_v23 = vld [vmem:[#allocation13 + $0x20] sm:$0xff] }
  0xcf   : > { %689 = vmatprep.mubr.f32.mxu0 %v8950_v0 }
  0xd2   : > { %7846 = vmatmul.mubr.msk.f32.gmra.mrb[14].mxu0 %vm534_vm0, %v501_v24  ;;  %v766_v24 = vld [vmem:[#allocation13 + $0x30] sm:$0xff] }
  0xd3   : > { %695 = vmatprep.mubr.f32.mxu0 %v8950_v0 }
  0xd6   : > { %7847 = vmatmul.mubr.msk.f32.gmra.mrb[16].mxu0 %vm534_vm0, %v502_v25  ;;  %v8185_v25 = vpack.c.bf16 %v766_v24, %v764_v23 }
  0xd7   : > { %701 = vmatprep.mubr.f32.mxu0 %v8950_v0 }
  0xd8   : > { %8186 = vmatpush1.bf16.msra.mxu1 %v8185_v25 }
  0xda   : > { %7848 = vmatmul.mubr.msk.f32.gmra.mrb[18].mxu0 %vm534_vm0, %v503_v26  ;;  %v510_v26 = vld [vmem:[%s9252_s14] sm:$0xff] }
  0xdb   : > { %707 = vmatprep.mubr.f32.mxu0 %v8950_v0  ;;  %7855 = vmatmul.mubr.msk.f32.vlgmr.msra.gmra.mrb[8].mxu1 %vm534_vm0, %v510_v26 }
  0xdc   : > { %886 = vmatprep.mubr.f32.mxu1 %v8950_v0 }
  0xde   : > { %7849 = vmatmul.mubr.msk.f32.gmra.mrb[20].mxu0 %vm534_vm0, %v504_v27  ;;  %v511_v27 = vld [vmem:[%s9252_s14 + $0x8] sm:$0xff] }
  0xdf   : > { %713 = vmatprep.mubr.f32.mxu0 %v8950_v0  ;;  %7856 = vmatmul.mubr.msk.f32.gmra.mrb[10].mxu1 %vm534_vm0, %v511_v27 }
  0xe0   : > { %892 = vmatprep.mubr.f32.mxu1 %v8950_v0 }
  0xe2   : > { %7850 = vmatmul.mubr.msk.f32.gmra.mrb[22].mxu0 %vm534_vm0, %v505_v28 }
  0xe3   : > { %7857 = vmatmul.mubr.msk.f32.gmra.mrb[12].mxu1 %vm534_vm0, %v512_v19 }
  0xe4   : > { %898 = vmatprep.mubr.f32.mxu1 %v8950_v0 }
 0x189   : > { %v9315_v29 = vpop.f32.mrb[0].mxu0  ;;  %v9317_v30 = vpop.f32.mrb[0].mxu1 }
 0x18a   : > { %v651_v31 = vpop.f32.mrb[1].mxu0  ;;  %v1136_v32 = vsel %vm1135_vm1, %v9315_v29, -inf  ;;  %v723_v33 = vpop.f32.mrb[1].mxu1  ;;  %v1172_v34 = vsel %vm1135_vm1, %v9317_v30, -inf }
 0x18b   : > { %744 = vst.msk [vmem:[#allocation6] sm:$0xff] %vm534_vm0, %v651_v31  ;;  %1137 = vmax.xlane.f32.xlu0 %v1136_v32  ;;  %756 = vst.msk [vmem:[#allocation6 + $0x60] sm:$0xff] %vm534_vm0, %v723_v33 }
 0x18d   : > { %v9325_v35 = vpop.f32.mrb[2].mxu1  ;;  %v9327_v36 = vpop.f32.mrb[2].mxu0 }
 0x18e   : > { %v1175_v37 = vsel %vm1135_vm1, %v9325_v35, -inf  ;;  %v657_v38 = vpop.f32.mrb[3].mxu0  ;;  %v729_v39 = vpop.f32.mrb[3].mxu1  ;;  %v1139_v40 = vsel %vm1135_vm1, %v9327_v36, -inf }
 0x18f   : > { %1176 = vmax.xlane.f32.xlu1 %v1175_v37  ;;  %1173 = vmax.xlane.f32.xlu0 %v1172_v34  ;;  %745 = vst.msk [vmem:[#allocation6 + $0x8] sm:$0xff] %vm534_vm0, %v657_v38  ;;  %757 = vst.msk [vmem:[#allocation6 + $0x68] sm:$0xff] %vm534_vm0, %v729_v39 }
 0x191   : > { %v9335_v41 = vpop.f32.mrb[4].mxu0  ;;  %v9337_v42 = vpop.f32.mrb[4].mxu1 }
 0x192   : > { %v1142_v43 = vsel %vm1135_vm1, %v9335_v41, -inf  ;;  %v663_v44 = vpop.f32.mrb[5].mxu0  ;;  %v735_v45 = vpop.f32.mrb[5].mxu1  ;;  %v1178_v46 = vsel %vm1135_vm1, %v9337_v42, -inf }
 0x193   : > { %1140 = vmax.xlane.f32.xlu0 %v1139_v40  ;;  %1143 = vmax.xlane.f32.xlu1 %v1142_v43  ;;  %746 = vst.msk [vmem:[#allocation6 + $0x10] sm:$0xff] %vm534_vm0, %v663_v44  ;;  %758 = vst.msk [vmem:[#allocation6 + $0x70] sm:$0xff] %vm534_vm0, %v735_v45 }
 0x195   : > { %v9345_v47 = vpop.f32.mrb[6].mxu0  ;;  %v9347_v48 = vpop.f32.mrb[6].mxu1 }
 0x196   : > { %v1145_v49 = vsel %vm1135_vm1, %v9345_v47, -inf  ;;  %v669_v50 = vpop.f32.mrb[7].mxu0  ;;  %v741_v51 = vpop.f32.mrb[7].mxu1  ;;  %v1181_v52 = vsel %vm1135_vm1, %v9347_v48, -inf }
 0x197   : > { %1179 = vmax.xlane.f32.xlu0 %v1178_v46  ;;  %1146 = vmax.xlane.f32.xlu1 %v1145_v49  ;;  %747 = vst.msk [vmem:[#allocation6 + $0x18] sm:$0xff] %vm534_vm0, %v669_v50  ;;  %759 = vst.msk [vmem:[#allocation6 + $0x78] sm:$0xff] %vm534_vm0, %v741_v51 }
 0x199   : > { %v9355_v53 = vpop.f32.mrb[8].mxu0 }
 0x19a   : > { %v1148_v54 = vsel %vm1135_vm1, %v9355_v53, -inf  ;;  %v675_v55 = vpop.f32.mrb[9].mxu0 }
 0x19b   : > { %1182 = vmax.xlane.f32.xlu1 %v1181_v52  ;;  %1149 = vmax.xlane.f32.xlu0 %v1148_v54  ;;  %748 = vst.msk [vmem:[#allocation6 + $0x20] sm:$0xff] %vm534_vm0, %v675_v55 }
 0x19d   : > { %v9360_v56 = vpop.f32.mrb[10].mxu0 }
 0x19e   : > { %v1151_v57 = vsel %vm1135_vm1, %v9360_v56, -inf  ;;  %v681_v58 = vpop.f32.mrb[11].mxu0 }
 0x19f   : > { %1152 = vmax.xlane.f32.xlu1 %v1151_v57  ;;  %749 = vst.msk [vmem:[#allocation6 + $0x28] sm:$0xff] %vm534_vm0, %v681_v58 }
 0x1a1   : > { %v9365_v59 = vpop.f32.mrb[12].mxu0 }
 0x1a2   : > { %v1154_v60 = vsel %vm1135_vm1, %v9365_v59, -inf  ;;  %v687_v61 = vpop.f32.mrb[13].mxu0 }
 0x1a3   : > { %1155 = vmax.xlane.f32.xlu0 %v1154_v60  ;;  %750 = vst.msk [vmem:[#allocation6 + $0x30] sm:$0xff] %vm534_vm0, %v687_v61 }
 0x1a5   : > { %v9370_v62 = vpop.f32.mrb[14].mxu0 }
 0x1a6   : > { %v1157_v63 = vsel %vm1135_vm1, %v9370_v62, -inf  ;;  %v693_v1 = vpop.f32.mrb[15].mxu0 }
 0x1a7   : > { %1158 = vmax.xlane.f32.xlu1 %v1157_v63  ;;  %751 = vst.msk [vmem:[#allocation6 + $0x38] sm:$0xff] %vm534_vm0, %v693_v1 }
 0x1a9   : > { %v9375_v2 = vpop.f32.mrb[16].mxu0 }
 0x1aa   : > { %v1160_v3 = vsel %vm1135_vm1, %v9375_v2, -inf  ;;  %v699_v4 = vpop.f32.mrb[17].mxu0 }
 0x1ab   : > { %1161 = vmax.xlane.f32.xlu0 %v1160_v3  ;;  %752 = vst.msk [vmem:[#allocation6 + $0x40] sm:$0xff] %vm534_vm0, %v699_v4 }
 0x1ad   : > { %v9380_v5 = vpop.f32.mrb[18].mxu0 }
 0x1ae   : > { %v1163_v6 = vsel %vm1135_vm1, %v9380_v5, -inf  ;;  %v705_v7 = vpop.f32.mrb[19].mxu0 }
 0x1af   : > { %1164 = vmax.xlane.f32.xlu1 %v1163_v6  ;;  %753 = vst.msk [vmem:[#allocation6 + $0x48] sm:$0xff] %vm534_vm0, %v705_v7 }
 0x1b1   : > { %v9385_v8 = vpop.f32.mrb[20].mxu0 }
 0x1b2   : > { %v1166_v9 = vsel %vm1135_vm1, %v9385_v8, -inf  ;;  %v711_v10 = vpop.f32.mrb[21].mxu0 }
 0x1b3   : > { %1167 = vmax.xlane.f32.xlu0 %v1166_v9  ;;  %754 = vst.msk [vmem:[#allocation6 + $0x50] sm:$0xff] %vm534_vm0, %v711_v10 }
 0x1b5   : > { %v9390_v11 = vpop.f32.mrb[22].mxu0 }
 0x1b6   : > { %v1169_v12 = vsel %vm1135_vm1, %v9390_v11, -inf  ;;  %v717_v13 = vpop.f32.mrb[23].mxu0 }
 0x1b7   : > { %1170 = vmax.xlane.f32.xlu1 %v1169_v12  ;;  %755 = vst.msk [vmem:[#allocation6 + $0x58] sm:$0xff] %vm534_vm0, %v717_v13 }
 0x218   : > { %v1138_v28 = vpop.xlane.xlu0 %1137 }
 0x219   : > { %v1184_v31 = vsub.f32 %v9315_v29, %v1138_v28  ;;  %v513_v28 = vld [vmem:[%s9252_s14 + $0x18] sm:$0xff] }
 0x21a   : > { %7858 = vmatmul.mubr.msk.f32.gmra.mrb[14].mxu1 %vm534_vm0, %v513_v28 }
 0x21b   : > { %v1200_v32 = vmul.f32 1.442695, %v1184_v31  ;;  %904 = vmatprep.mubr.f32.mxu1 %v8950_v0 }
 0x21c   : > { %v1177_v33 = vpop.xlane.xlu1 %1176  ;;  %v1174_v34 = vpop.xlane.xlu0 %1173 }
 0x21d   : > { %8477 = vpow2.f32 %v1200_v32  ;;  %v1196_v37 = vsub.f32 %v9317_v30, %v1174_v34  ;;  %v1197_v38 = vsub.f32 %v9325_v35, %v1177_v33 }
 0x21f   : > { %v1224_v39 = vmul.f32 1.442695, %v1196_v37  ;;  %v1226_v46 = vmul.f32 1.442695, %v1197_v38 }
 0x220   : > { %v1141_v40 = vpop.xlane.xlu0 %1140  ;;  %v1144_v43 = vpop.xlane.xlu1 %1143 }
 0x221   : > { %v1185_v44 = vsub.f32 %v9327_v36, %v1141_v40  ;;  %v1186_v45 = vsub.f32 %v9335_v41, %v1144_v43  ;;  %8479 = vpow2.f32 %v1224_v39  ;;  %v514_v39 = vld [vmem:[%s9252_s14 + $0x20] sm:$0xff] }
 0x222   : > { %7859 = vmatmul.mubr.msk.f32.gmra.mrb[16].mxu1 %vm534_vm0, %v514_v39 }
 0x223   : > { %v1202_v49 = vmul.f32 1.442695, %v1185_v44  ;;  %v1204_v50 = vmul.f32 1.442695, %v1186_v45  ;;  %910 = vmatprep.mubr.f32.mxu1 %v8950_v0 }
 0x224   : > { %v1180_v29 = vpop.xlane.xlu0 %1179  ;;  %v1147_v51 = vpop.xlane.xlu1 %1146 }
 0x225   : > { %8481 = vpow2.f32 %v1202_v49  ;;  %v1198_v52 = vsub.f32 %v9337_v42, %v1180_v29  ;;  %v1187_v30 = vsub.f32 %v9345_v47, %v1147_v51  ;;  %v516_v51 = vld [vmem:[%s9252_s14 + $0x30] sm:$0xff] }
 0x226   : > { %8483 = vpow2.f32 %v1204_v50 }
 0x227   : > { %v9408_v35 = vpop.eup %8477  ;;  %8485 = vpow2.f32 %v1226_v46  ;;  %v1228_v54 = vmul.f32 1.442695, %v1198_v52  ;;  %v1206_v55 = vmul.f32 1.442695, %v1187_v30  ;;  %v515_v46 = vld [vmem:[%s9252_s14 + $0x28] sm:$0xff]  ;;  %v517_v30 = vld [vmem:[%s9252_s14 + $0x38] sm:$0xff] }
 0x228   : > { %v1183_v36 = vpop.xlane.xlu1 %1182  ;;  %v1150_v57 = vpop.xlane.xlu0 %1149  ;;  %v1232_v41 = vsel %vm1135_vm1, %v9408_v35, 0.0  ;;  %7860 = vmatmul.mubr.msk.f32.gmra.mrb[18].mxu1 %vm534_vm0, %v515_v46 }
 0x229   : > { %8487 = vpow2.f32 %v1228_v54  ;;  %v1199_v58 = vsub.f32 %v9347_v48, %v1183_v36  ;;  %v1188_v60 = vsub.f32 %v9355_v53, %v1150_v57  ;;  %1233 = vadd.xlane.f32.xlu0 %v1232_v41  ;;  %916 = vmatprep.mubr.f32.mxu1 %v8950_v0  ;;  %v518_v36 = vld [vmem:[%s9252_s14 + $0x40] sm:$0xff] }
 0x22a   : > { %8489 = vpow2.f32 %v1206_v55 }
 0x22b   : > { %v1230_v42 = vmul.f32 1.442695, %v1199_v58  ;;  %v1208_v47 = vmul.f32 1.442695, %v1188_v60  ;;  %v9414_v61 = vpop.eup %8479  ;;  %v519_v58 = vld [vmem:[%s9252_s14 + $0x48] sm:$0xff]  ;;  %v520_v60 = vld [vmem:[%s9252_s14 + $0x50] sm:$0xff] }
 0x22c   : > { %v1153_v63 = vpop.xlane.xlu1 %1152  ;;  %v1268_v3 = vsel %vm1135_vm1, %v9414_v61, 0.0  ;;  %7861 = vmatmul.mubr.msk.f32.gmra.mrb[20].mxu1 %vm534_vm0, %v516_v51 }
 0x22d   : > { %v1189_v1 = vsub.f32 %v9360_v56, %v1153_v63  ;;  %8491 = vpow2.f32 %v1208_v47  ;;  %1269 = vadd.xlane.f32.xlu0 %v1268_v3  ;;  %922 = vmatprep.mubr.f32.mxu1 %v8950_v0  ;;  %v522_v47 = vld [vmem:[%s9252_s14 + $0x60] sm:$0xff]  ;;  %v523_v63 = vld [vmem:[%s9252_s14 + $0x68] sm:$0xff] }
 0x22e   : > { %8493 = vpow2.f32 %v1230_v42  ;;  %v521_v42 = vld [vmem:[%s9252_s14 + $0x58] sm:$0xff] }
 0x22f   : > { %v9419_v4 = vpop.eup %8481  ;;  %v1210_v48 = vmul.f32 1.442695, %v1189_v1 }
 0x230   : > { %v9421_v6 = vpop.eup %8483  ;;  %v1156_v53 = vpop.xlane.xlu0 %1155  ;;  %v1235_v7 = vsel %vm1135_vm1, %v9419_v4, 0.0  ;;  %7862 = vmatmul.mubr.msk.f32.gmra.mrb[22].mxu1 %vm534_vm0, %v517_v30 }
 0x231   : > { %v9425_v9 = vpop.eup %8485  ;;  %v1190_v10 = vsub.f32 %v9365_v59, %v1156_v53  ;;  %v1238_v56 = vsel %vm1135_vm1, %v9421_v6, 0.0  ;;  %1236 = vadd.xlane.f32.xlu1 %v1235_v7  ;;  %8495 = vpow2.f32 %v1210_v48  ;;  %928 = vmatprep.mubr.f32.mxu1 %v8950_v0 }
 0x232   : > { %1239 = vadd.xlane.f32.xlu0 %v1238_v56  ;;  %v1271_v16 = vsel %vm1135_vm1, %v9425_v9, 0.0 }
 0x233   : > { %v9430_v12 = vpop.eup %8487  ;;  %v1212_v13 = vmul.f32 1.442695, %v1190_v10 }
 0x234   : > { %v1159_v14 = vpop.xlane.xlu1 %1158  ;;  %v1274_v15 = vsel %vm1135_vm1, %v9430_v12, 0.0  ;;  %v9436_v17 = vpop.eup %8489  ;;  %7863 = vmatmul.mubr.msk.f32.gmra.mrb[24].mxu1 %vm534_vm0, %v518_v36 }
 0x235   : > { %8497 = vpow2.f32 %v1212_v13  ;;  %v1191_v59 = vsub.f32 %v9370_v62, %v1159_v14  ;;  %1272 = vadd.xlane.f32.xlu1 %v1271_v16  ;;  %v1241_v22 = vsel %vm1135_vm1, %v9436_v17, 0.0  ;;  %934 = vmatprep.mubr.f32.mxu1 %v8950_v0 }
 0x236   : > { %1275 = vadd.xlane.f32.xlu0 %v1274_v15 }
 0x237   : > { %v1214_v18 = vmul.f32 1.442695, %v1191_v59  ;;  %v9440_v20 = vpop.eup %8491 }
 0x238   : > { %v1162_v21 = vpop.xlane.xlu0 %1161  ;;  %v9445_v23 = vpop.eup %8493  ;;  %v1244_v62 = vsel %vm1135_vm1, %v9440_v20, 0.0  ;;  %7864 = vmatmul.mubr.msk.f32.gmra.mrb[26].mxu1 %vm534_vm0, %v519_v58 }
 0x239   : > { %8499 = vpow2.f32 %v1214_v18  ;;  %v1192_v24 = vsub.f32 %v9375_v2, %v1162_v21  ;;  %1242 = vadd.xlane.f32.xlu1 %v1241_v22  ;;  %v1277_v27 = vsel %vm1135_vm1, %v9445_v23, 0.0  ;;  %940 = vmatprep.mubr.f32.mxu1 %v8950_v0 }
 0x23a   : > { %1245 = vadd.xlane.f32.xlu0 %v1244_v62 }
 0x23b   : > { %v1216_v25 = vmul.f32 1.442695, %v1192_v24  ;;  %v9454_v31 = vpop.eup %8495 }
 0x23c   : > { %v1165_v26 = vpop.xlane.xlu1 %1164  ;;  %v1247_v38 = vsel %vm1135_vm1, %v9454_v31, 0.0  ;;  %7865 = vmatmul.mubr.msk.f32.gmra.mrb[28].mxu1 %vm534_vm0, %v520_v60 }
 0x23d   : > { %8501 = vpow2.f32 %v1216_v25  ;;  %v1193_v32 = vsub.f32 %v9380_v5, %v1165_v26  ;;  %1278 = vadd.xlane.f32.xlu1 %v1277_v27  ;;  %946 = vmatprep.mubr.f32.mxu1 %v8950_v0 }
 0x23f   : > { %v9459_v2 = vpop.eup %8497  ;;  %v1218_v33 = vmul.f32 1.442695, %v1193_v32 }
 0x240   : > { %v1168_v34 = vpop.xlane.xlu0 %1167  ;;  %v1250_v37 = vsel %vm1135_vm1, %v9459_v2, 0.0  ;;  %7866 = vmatmul.mubr.msk.f32.gmra.mrb[30].mxu1 %vm534_vm0, %v521_v42 }
 0x241   : > { %8503 = vpow2.f32 %v1218_v33  ;;  %v1194_v5 = vsub.f32 %v9385_v8, %v1168_v34  ;;  %1251 = vadd.xlane.f32.xlu0 %v1250_v37  ;;  %1248 = vadd.xlane.f32.xlu1 %v1247_v38 }
 0x242   : > { %952 = vmatprep.mubr.f32.mxu1 %v8950_v0 }
 0x243   : > { %v9468_v40 = vpop.eup %8499  ;;  %v1220_v43 = vmul.f32 1.442695, %v1194_v5 }
 0x244   : > { %v1171_v44 = vpop.xlane.xlu1 %1170  ;;  %v1253_v45 = vsel %vm1135_vm1, %v9468_v40, 0.0  ;;  %7867 = vmatmul.mubr.msk.f32.gmra.mrb[32].mxu1 %vm534_vm0, %v522_v47 }
 0x245   : > { %8505 = vpow2.f32 %v1220_v43  ;;  %v1195_v49 = vsub.f32 %v9390_v11, %v1171_v44  ;;  %1254 = vadd.xlane.f32.xlu1 %v1253_v45  ;;  %958 = vmatprep.mubr.f32.mxu1 %v8950_v0 }
 0x247   : > { %v9476_v8 = vpop.eup %8501  ;;  %v1222_v50 = vmul.f32 1.442695, %v1195_v49 }
 0x248   : > { %v1256_v29 = vsel %vm1135_vm1, %v9476_v8, 0.0  ;;  %7868 = vmatmul.mubr.msk.f32.gmra.mrb[34].mxu1 %vm534_vm0, %v523_v63 }
 0x249   : > { %8507 = vpow2.f32 %v1222_v50  ;;  %1257 = vadd.xlane.f32.xlu0 %v1256_v29  ;;  %964 = vmatprep.mubr.f32.mxu1 %v8950_v0 }
 0x24b   : > { %v9483_v52 = vpop.eup %8503 }
 0x24c   : > { %v1259_v11 = vsel %vm1135_vm1, %v9483_v52, 0.0 }
 0x24d   : > { %1260 = vadd.xlane.f32.xlu1 %v1259_v11  ;;  %v882_v11 = vpop.f32.mrb[8].mxu1 }
 0x24f   : > { %v9489_v54 = vpop.eup %8505 }
 0x250   : > { %v1262_v55 = vsel %vm1135_vm1, %v9489_v54, 0.0 }
 0x251   : > { %1263 = vadd.xlane.f32.xlu0 %v1262_v55 }
 0x253   : > { %v9496_v57 = vpop.eup %8507 }
 0x254   : > { %v1265_v41 = vsel %vm1135_vm1, %v9496_v57, 0.0 }
 0x255   : > { %1266 = vadd.xlane.f32.xlu1 %v1265_v41 }
 0x2b6   : > { %v1234_v1 = vpop.xlane.xlu0 %1233 }
 0x2b7   : > { %8509 = vrcp.f32 %v1234_v1 }
 0x2ba   : > { %v1270_v3 = vpop.xlane.xlu0 %1269 }
 0x2bb   : > { %8511 = vrcp.f32 %v1270_v3 }
 0x2be   : > { %v1237_v48 = vpop.xlane.xlu1 %1236 }
 0x2bf   : > { %v1240_v53 = vpop.xlane.xlu0 %1239  ;;  %8513 = vrcp.f32 %v1237_v48 }
 0x2c1   : > { %v8510_v7 = vpop.eup %8509 }
 0x2c2   : > { %v1273_v10 = vpop.xlane.xlu1 %1272  ;;  %v1281_v56 = vmul.f32 %v8510_v7, %v9408_v35 }
 0x2c3   : > { %v1276_v13 = vpop.xlane.xlu0 %1275  ;;  %8515 = vrcp.f32 %v1273_v10 }
 0x2c4   : > { %8517 = vrcp.f32 %v1276_v13  ;;  %1312 = vxpose.xlu0.b32.start.end [1/1] (short) (narrow) %v1281_v56, 16  ;;  %v525_v56 = vld [vmem:[%s9252_s14 + $0x78] sm:$0xff] }
 0x2c5   : > { %v8512_v14 = vpop.eup %8511  ;;  %8519 = vrcp.f32 %v1240_v53 }
 0x2c6   : > { %v1243_v15 = vpop.xlane.xlu1 %1242  ;;  %v1305_v59 = vmul.f32 %v8512_v14, %v9414_v61 }
 0x2c7   : > { %v1246_v16 = vpop.xlane.xlu0 %1245 }
 0x2c8   : > { %8521 = vrcp.f32 %v1246_v16  ;;  %1696 = vxpose.xlu1.b32.start.end [1/1] (short) (narrow) %v1305_v59, 16 }
 0x2c9   : > { %v8514_v18 = vpop.eup %8513  ;;  %8523 = vrcp.f32 %v1243_v15 }
 0x2ca   : > { %v1283_v19 = vmul.f32 %v8514_v18, %v9419_v4  ;;  %v1279_v21 = vpop.xlane.xlu1 %1278 }
 0x2cd   : > { %v8516_v22 = vpop.eup %8515  ;;  %1344 = vxpose.xlu1.b32.start.end [1/1] (short) (narrow) %v1283_v19, 16 }
 0x2ce   : > { %v8518_v24 = vpop.eup %8517  ;;  %v1252_v35 = vpop.xlane.xlu0 %1251  ;;  %v1307_v62 = vmul.f32 %v8516_v22, %v9425_v9 }
 0x2cf   : > { %8525 = vrcp.f32 %v1252_v35  ;;  %v8520_v25 = vpop.eup %8519  ;;  %v1249_v26 = vpop.xlane.xlu1 %1248  ;;  %v1309_v61 = vmul.f32 %v8518_v24, %v9430_v12 }
 0x2d0   : > { %8527 = vrcp.f32 %v1279_v21  ;;  %1728 = vxpose.xlu0.b32.start.end [1/1] (short) (narrow) %v1307_v62, 16  ;;  %v1285_v28 = vmul.f32 %v8520_v25, %v9421_v6  ;;  %v524_v6 = vld [vmem:[%s9252_s14 + $0x70] sm:$0xff] }
 0x2d1   : > { %8529 = vrcp.f32 %v1249_v26  ;;  %7869 = vmatmul.mubr.msk.f32.gmra.mrb[36].mxu1 %vm534_vm0, %v524_v6 }
 0x2d2   : > { %v8522_v27 = vpop.eup %8521  ;;  %1760 = vxpose.xlu1.b32.start.end [1/1] (short) (narrow) %v1309_v61, 16  ;;  %970 = vmatprep.mubr.f32.mxu1 %v8950_v0 }
 0x2d3   : > { %v8524_v4 = vpop.eup %8523  ;;  %v1289_v33 = vmul.f32 %v8522_v27, %v9440_v20  ;;  %v1255_v34 = vpop.xlane.xlu1 %1254 }
 0x2d4   : > { %v1287_v9 = vmul.f32 %v8524_v4, %v9436_v17 }
 0x2d5   : > { %1376 = vxpose.xlu0.b32.start.end [1/1] (short) (narrow) %v1285_v28, 16  ;;  %7870 = vmatmul.mubr.msk.f32.gmra.mrb[38].mxu1 %vm534_vm0, %v525_v56 }
 0x2d6   : > { %v1258_v32 = vpop.xlane.xlu0 %1257 }
 0x2d7   : > { %8531 = vrcp.f32 %v1258_v32  ;;  %1440 = vxpose.xlu1.b32.start.end [1/1] (short) (narrow) %v1289_v33, 16 }
 0x2d8   : > { %8533 = vrcp.f32 %v1255_v34 }
 0x2d9   : > { %v8526_v37 = vpop.eup %8525 }
 0x2da   : > { %v8528_v38 = vpop.eup %8527  ;;  %1408 = vxpose.xlu0.b32.start.end [1/1] (short) (narrow) %v1287_v9, 16  ;;  %v1293_v12 = vmul.f32 %v8526_v37, %v9459_v2  ;;  %v1261_v39 = vpop.xlane.xlu1 %1260 }
 0x2db   : > { %v1311_v5 = vmul.f32 %v8528_v38, %v9445_v23  ;;  %8535 = vrcp.f32 %v1261_v39  ;;  %v8530_v43 = vpop.eup %8529 }
 0x2dc   : > { %1504 = vxpose.xlu1.b32.start.end [1/1] (short) (narrow) %v1293_v12, 16  ;;  %v1291_v2 = vmul.f32 %v8530_v43, %v9454_v31  ;;  %v13574_v31 = vmov 0  }
 0x2de   : > { %v1264_v20 = vpop.xlane.xlu0 %1263 }
 0x2df   : > { %8537 = vrcp.f32 %v1264_v20  ;;  %1792 = vxpose.xlu0.b32.start.end [1/1] (short) (narrow) %v1311_v5, 16 }
 0x2e1   : > { %v8532_v17 = vpop.eup %8531 }
 0x2e2   : > { %v1267_v44 = vpop.xlane.xlu1 %1266  ;;  %v1297_v45 = vmul.f32 %v8532_v17, %v9476_v8  ;;  %v8534_v46 = vpop.eup %8533 }
 0x2e3   : > { %8539 = vrcp.f32 %v1267_v44  ;;  %v1295_v49 = vmul.f32 %v8534_v46, %v9468_v40  ;;  %v9541_v40 = vld [vmem:[%s13544_s6] ss:$0 sm:$0xff] }
 0x2e4   : > { %1568 = vxpose.xlu1.b32.start.end [1/1] (short) (narrow) %v1297_v45, 16  ;;  %1472 = vxpose.xlu0.b32.start.end [1/1] (short) (narrow) %v1291_v2, 16  ;;  %v984_v30 = vadd.f32 %v9541_v40, %v882_v11 }
 0x2e5   : > { %v8536_v23 = vpop.eup %8535 }
 0x2e6   : > { %v1299_v29 = vmul.f32 %v8536_v23, %v9483_v52  ;;  %v9547_v52 = vld [vmem:[%s13545_s7] ss:$0 sm:$0xff]  ;;  %v1000_v55 = vmul.f32 0.5, %v984_v30 }
 0x2e8   : > { %8541 = vtanh.f32 %v1000_v55 }
 0x2e9   : > { %v8538_v50 = vpop.eup %8537  ;;  %1536 = vxpose.xlu0.b32.start.end [1/1] (short) (narrow) %v1295_v49, 16 }
 0x2ea   : > { %v1301_v0 = vmul.f32 %v8538_v50, %v9489_v54  ;;  %v884_v54 = vpop.f32.mrb[9].mxu1 }
 0x2eb   : > { %v1087_v36 = vadd.f32 %v9547_v52, %v884_v54 }
 0x2ec   : > { %1632 = vxpose.xlu1.b32.start.end [1/1] (short) (narrow) %v1301_v0, 16 }
 0x2ed   : > { %v8540_v51 = vpop.eup %8539  ;;  %8543 = vtanh.f32 %v1087_v36 }
 0x2ee   : > { %1600 = vxpose.xlu0.b32.start.end [1/1] (short) (narrow) %v1299_v29, 16  ;;  %v1303_v8 = vmul.f32 %v8540_v51, %v9496_v57  ;;  %v888_v57 = vpop.f32.mrb[10].mxu1 }
 0x2ef   : > { %v985_v41 = vadd.f32 %v9541_v40, %v888_v57  ;;  %v890_v58 = vpop.f32.mrb[11].mxu1 }
 0x2f0   : > { %v1088_v60 = vadd.f32 %v9547_v52, %v890_v58  ;;  %v894_v42 = vpop.f32.mrb[12].mxu1 }
 0x2f1   : > { %v1001_v47 = vmul.f32 0.5, %v985_v41  ;;  %v986_v63 = vadd.f32 %v9541_v40, %v894_v42  ;;  %v896_v1 = vpop.f32.mrb[13].mxu1 }
 0x2f2   : > { %8545 = vtanh.f32 %v1088_v60  ;;  %v1089_v3 = vadd.f32 %v9547_v52, %v896_v1  ;;  %v900_v48 = vpop.f32.mrb[14].mxu1  ;;  %v8542_v27 = vpop.eup %8541 }
 0x2f3   : > { %1664 = vxpose.xlu0.b32.start.end [1/1] (short) (narrow) %v1303_v8, 16  ;;  %8547 = vtanh.f32 %v1001_v47  ;;  %v1002_v53 = vmul.f32 0.5, %v986_v63  ;;  %v987_v7 = vadd.f32 %v9541_v40, %v900_v48  ;;  %v902_v10 = vpop.f32.mrb[15].mxu1  ;;  %v1032_v33 = vadd.f32 1.0, %v8542_v27 }
 0x2f4   : > { %8549 = vtanh.f32 %v1089_v3  ;;  %v1090_v13 = vadd.f32 %v9547_v52, %v902_v10 }
 0x2f5   : > { %v906_v14 = vpop.f32.mrb[16].mxu1  ;;  %8551 = vtanh.f32 %v1002_v53  ;;  %v1003_v15 = vmul.f32 0.5, %v987_v7  ;;  %v1048_v5 = vmul.f32 0.5, %v1032_v33 }
 0x2f6   : > { %v988_v16 = vadd.f32 %v9541_v40, %v906_v14  ;;  %v908_v59 = vpop.f32.mrb[17].mxu1  ;;  %8553 = vtanh.f32 %v1090_v13 }
 0x2f7   : > { %v1091_v18 = vadd.f32 %v9547_v52, %v908_v59  ;;  %8555 = vtanh.f32 %v1003_v15  ;;  %v8544_v32 = vpop.eup %8543  ;;  %1064 = vst.msk [vmem:[#allocation3] sm:$0xff] %vm534_vm0, %v1048_v5 }
 0x2f8   : > { %v1004_v21 = vmul.f32 0.5, %v988_v16  ;;  %1119 = vst.msk [vmem:[#allocation4] sm:$0xff] %vm534_vm0, %v8544_v32 }
 0x2f9   : > { %8557 = vtanh.f32 %v1091_v18 }
 0x2fa   : > { %8559 = vtanh.f32 %v1004_v21 }
 0x2fb   : > { %v912_v19 = vpop.f32.mrb[18].mxu1 }
 0x2fc   : > { %v989_v22 = vadd.f32 %v9541_v40, %v912_v19  ;;  %v914_v24 = vpop.f32.mrb[19].mxu1  ;;  %v8546_v38 = vpop.eup %8545 }
 0x2fd   : > { %v1092_v35 = vadd.f32 %v9547_v52, %v914_v24  ;;  %v8548_v6 = vpop.eup %8547  ;;  %1120 = vst.msk [vmem:[#allocation4 + $0x8] sm:$0xff] %vm534_vm0, %v8546_v38 }
 0x2fe   : > { %v1005_v25 = vmul.f32 0.5, %v989_v22  ;;  %v8550_v44 = vpop.eup %8549  ;;  %v1033_v45 = vadd.f32 1.0, %v8548_v6 }
 0x2ff   : > { %v918_v62 = vpop.f32.mrb[20].mxu1  ;;  %8561 = vtanh.f32 %v1092_v35  ;;  %v8552_v49 = vpop.eup %8551  ;;  %1121 = vst.msk [vmem:[#allocation4 + $0x10] sm:$0xff] %vm534_vm0, %v8550_v44 }
 0x300   : > { %v990_v26 = vadd.f32 %v9541_v40, %v918_v62  ;;  %v920_v61 = vpop.f32.mrb[21].mxu1  ;;  %8563 = vtanh.f32 %v1005_v25  ;;  %v8554_v29 = vpop.eup %8553  ;;  %v1049_v51 = vmul.f32 0.5, %v1033_v45  ;;  %v1034_v8 = vadd.f32 1.0, %v8552_v49 }
 0x301   : > { %v1093_v28 = vadd.f32 %v9547_v52, %v920_v61  ;;  %v8556_v54 = vpop.eup %8555  ;;  %1122 = vst.msk [vmem:[#allocation4 + $0x18] sm:$0xff] %vm534_vm0, %v8554_v29 }
 0x302   : > { %v1006_v34 = vmul.f32 0.5, %v990_v26  ;;  %1065 = vst.msk [vmem:[#allocation3 + $0x8] sm:$0xff] %vm534_vm0, %v1049_v51  ;;  %v1050_v58 = vmul.f32 0.5, %v1034_v8  ;;  %v1035_v60 = vadd.f32 1.0, %v8556_v54  ;;  %v13568_v54 = vmov 1  }
 0x303   : > { %v924_v4 = vpop.f32.mrb[22].mxu1  ;;  %8565 = vtanh.f32 %v1093_v28  ;;  %v8558_v41 = vpop.eup %8557 }
 0x304   : > { %v991_v9 = vadd.f32 %v9541_v40, %v924_v4  ;;  %v926_v37 = vpop.f32.mrb[23].mxu1  ;;  %8567 = vtanh.f32 %v1006_v34  ;;  %v8560_v63 = vpop.eup %8559  ;;  %1123 = vst.msk [vmem:[#allocation4 + $0x20] sm:$0xff] %vm534_vm0, %v8558_v41  ;;  %1066 = vst.msk [vmem:[#allocation3 + $0x10] sm:$0xff] %vm534_vm0, %v1050_v58  ;;  %v1051_v7 = vmul.f32 0.5, %v1035_v60  ;;  %v13570_v58 = vmov 2  }
 0x305   : > { %v1094_v12 = vadd.f32 %v9547_v52, %v926_v37  ;;  %v1036_v10 = vadd.f32 1.0, %v8560_v63 }
 0x306   : > { %v1007_v20 = vmul.f32 0.5, %v991_v9  ;;  %1067 = vst.msk [vmem:[#allocation3 + $0x18] sm:$0xff] %vm534_vm0, %v1051_v7 }
 0x307   : > { %v930_v39 = vpop.f32.mrb[24].mxu1  ;;  %8569 = vtanh.f32 %v1094_v12  ;;  %v1052_v59 = vmul.f32 0.5, %v1036_v10 }
 0x308   : > { %v992_v43 = vadd.f32 %v9541_v40, %v930_v39  ;;  %v932_v17 = vpop.f32.mrb[25].mxu1  ;;  %8571 = vtanh.f32 %v1007_v20 }
 0x309   : > { %v1095_v2 = vadd.f32 %v9547_v52, %v932_v17  ;;  %v8562_v53 = vpop.eup %8561  ;;  %1068 = vst.msk [vmem:[#allocation3 + $0x20] sm:$0xff] %vm534_vm0, %v1052_v59 }
 0x30a   : > { %8287 = vset.pattern.permute.xlu1 %v13574_v31  ;;  %v1008_v23 = vmul.f32 0.5, %v992_v43  ;;  %v8564_v13 = vpop.eup %8563  ;;  %1124 = vst.msk [vmem:[#allocation4 + $0x28] sm:$0xff] %vm534_vm0, %v8562_v53 }
 0x30b   : > { %v936_v46 = vpop.f32.mrb[26].mxu1  ;;  %8573 = vtanh.f32 %v1095_v2  ;;  %v1037_v18 = vadd.f32 1.0, %v8564_v13  ;;  %v13558_v13 = vmov 6  }
 0x30c   : > { %v993_v50 = vadd.f32 %v9541_v40, %v936_v46  ;;  %v938_v0 = vpop.f32.mrb[27].mxu1  ;;  %8575 = vtanh.f32 %v1008_v23 }
 0x30d   : > { %v1096_v11 = vadd.f32 %v9547_v52, %v938_v0  ;;  %v8566_v16 = vpop.eup %8565  ;;  %v1053_v24 = vmul.f32 0.5, %v1037_v18  ;;  %v13562_v18 = vmov 5  }
 0x30e   : > { %v1009_v55 = vmul.f32 0.5, %v993_v50  ;;  %v8568_v21 = vpop.eup %8567  ;;  %1125 = vst.msk [vmem:[#allocation4 + $0x30] sm:$0xff] %vm534_vm0, %v8566_v16 }
 0x30f   : > { %v942_v30 = vpop.f32.mrb[28].mxu1  ;;  %8577 = vtanh.f32 %v1096_v11  ;;  %v1038_v35 = vadd.f32 1.0, %v8568_v21  ;;  %1069 = vst.msk [vmem:[#allocation3 + $0x28] sm:$0xff] %vm534_vm0, %v1053_v24 }
 0x310   : > { %v994_v36 = vadd.f32 %v9541_v40, %v942_v30  ;;  %v944_v57 = vpop.f32.mrb[29].mxu1  ;;  %8579 = vtanh.f32 %v1009_v55 }
 0x311   : > { %v1097_v42 = vadd.f32 %v9547_v52, %v944_v57  ;;  %v8570_v22 = vpop.eup %8569  ;;  %v1054_v61 = vmul.f32 0.5, %v1038_v35 }
 0x312   : > { %v1010_v1 = vmul.f32 0.5, %v994_v36  ;;  %v8572_v25 = vpop.eup %8571  ;;  %1126 = vst.msk [vmem:[#allocation4 + $0x38] sm:$0xff] %vm534_vm0, %v8570_v22 }
 0x313   : > { %v948_v47 = vpop.f32.mrb[30].mxu1  ;;  %8581 = vtanh.f32 %v1097_v42  ;;  %v1039_v27 = vadd.f32 1.0, %v8572_v25  ;;  %1070 = vst.msk [vmem:[#allocation3 + $0x30] sm:$0xff] %vm534_vm0, %v1054_v61 }
 0x314   : > { %v995_v3 = vadd.f32 %v9541_v40, %v948_v47  ;;  %v950_v48 = vpop.f32.mrb[31].mxu1  ;;  %8583 = vtanh.f32 %v1010_v1  ;;  %v13566_v47 = vmov 3  }
 0x315   : > { %v1098_v56 = vadd.f32 %v9547_v52, %v950_v48  ;;  %v8574_v26 = vpop.eup %8573  ;;  %v1055_v34 = vmul.f32 0.5, %v1039_v27 }
 0x316   : > { %v1011_v14 = vmul.f32 0.5, %v995_v3  ;;  %v8576_v4 = vpop.eup %8575  ;;  %1127 = vst.msk [vmem:[#allocation4 + $0x40] sm:$0xff] %vm534_vm0, %v8574_v26  ;;  %v13564_v3 = vmov 4  }
 0x317   : > { %v954_v15 = vpop.f32.mrb[32].mxu1  ;;  %8585 = vtanh.f32 %v1098_v56  ;;  %v1040_v9 = vadd.f32 1.0, %v8576_v4  ;;  %1071 = vst.msk [vmem:[#allocation3 + $0x38] sm:$0xff] %vm534_vm0, %v1055_v34 }
 0x318   : > { %v996_v19 = vadd.f32 %v9541_v40, %v954_v15  ;;  %8587 = vtanh.f32 %v1011_v14  ;;  %v956_v28 = vpop.f32.mrb[33].mxu1 }
 0x319   : > { %v1099_v32 = vadd.f32 %v9547_v52, %v956_v28  ;;  %v8578_v33 = vpop.eup %8577  ;;  %v1056_v12 = vmul.f32 0.5, %v1040_v9 }
 0x31a   : > { %v1012_v62 = vmul.f32 0.5, %v996_v19  ;;  %v8580_v37 = vpop.eup %8579  ;;  %1128 = vst.msk [vmem:[#allocation4 + $0x48] sm:$0xff] %vm534_vm0, %v8578_v33  ;;  %v13560_v19 = vmov 7  }
 0x31b   : > { %v1041_v39 = vadd.f32 1.0, %v8580_v37  ;;  %1072 = vst.msk [vmem:[#allocation3 + $0x40] sm:$0xff] %vm534_vm0, %v1056_v12  ;;  %v960_v7 = vpop.f32.mrb[34].mxu1 }
 0x31c   : > { %8288 = vset.pattern.permute.xlu0 %v13574_v31  ;;  %8589 = vtanh.f32 %v1012_v62  ;;  %v997_v56 = vadd.f32 %v9541_v40, %v960_v7  ;;  %v962_v35 = vpop.f32.mrb[35].mxu1 }
 0x31d   : > { %8591 = vtanh.f32 %v1099_v32  ;;  %v8582_v38 = vpop.eup %8581  ;;  %v1057_v20 = vmul.f32 0.5, %v1041_v39  ;;  %v1100_v62 = vadd.f32 %v9547_v52, %v962_v35 }
 0x31e   : > { %v8584_v6 = vpop.eup %8583  ;;  %1129 = vst.msk [vmem:[#allocation4 + $0x50] sm:$0xff] %vm534_vm0, %v8582_v38  ;;  %v1013_v15 = vmul.f32 0.5, %v997_v56 }
 0x31f   : > { %v1042_v43 = vadd.f32 1.0, %v8584_v6  ;;  %1073 = vst.msk [vmem:[#allocation3 + $0x48] sm:$0xff] %vm534_vm0, %v1057_v20 }
 0x320   : > { %8593 = vtanh.f32 %v1013_v15 }
 0x321   : > { %v8586_v5 = vpop.eup %8585  ;;  %v1058_v44 = vmul.f32 0.5, %v1042_v43  ;;  %8595 = vtanh.f32 %v1100_v62 }
 0x322   : > { %v8588_v17 = vpop.eup %8587  ;;  %1130 = vst.msk [vmem:[#allocation4 + $0x58] sm:$0xff] %vm534_vm0, %v8586_v5 }
 0x323   : > { %v1043_v45 = vadd.f32 1.0, %v8588_v17  ;;  %1074 = vst.msk [vmem:[#allocation3 + $0x50] sm:$0xff] %vm534_vm0, %v1058_v44 }
 0x325   : > { %v1059_v49 = vmul.f32 0.5, %v1043_v45 }
 0x326   : > { %v8590_v46 = vpop.eup %8589 }
 0x327   : > { %v1044_v23 = vadd.f32 1.0, %v8590_v46  ;;  %1075 = vst.msk [vmem:[#allocation3 + $0x58] sm:$0xff] %vm534_vm0, %v1059_v49  ;;  %v8592_v50 = vpop.eup %8591 }
 0x328   : > { %1131 = vst.msk [vmem:[#allocation4 + $0x60] sm:$0xff] %vm534_vm0, %v8592_v50 }
 0x329   : > { %v1060_v29 = vmul.f32 0.5, %v1044_v23 }
 0x32a   : > { %v8594_v27 = vpop.eup %8593 }
 0x32b   : > { %1076 = vst.msk [vmem:[#allocation3 + $0x60] sm:$0xff] %vm534_vm0, %v1060_v29  ;;  %v1045_v4 = vadd.f32 1.0, %v8594_v27  ;;  %v8596_v12 = vpop.eup %8595 }
 0x32c   : > { %1132 = vst.msk [vmem:[#allocation4 + $0x68] sm:$0xff] %vm534_vm0, %v8596_v12 }
 0x32d   : > { %v1061_v34 = vmul.f32 0.5, %v1045_v4  ;;  %v9820_v4 = vld [vmem:[#allocation3 + $0x1] ss:$0 sm:$0xff] }
 0x32f   : > { %1077 = vst.msk [vmem:[#allocation3 + $0x68] sm:$0xff] %vm534_vm0, %v1061_v34 }
 0x344   : > { %v1328_v2 = vpop.trf.xlu0 }
 0x345   : > { %1825 = vst.msk [vmem:[#allocation2] sm:$0xff] %vm1824_vm2, %v1328_v2 }
 0x348   : > { %v1329_v0 = vpop.trf.xlu0  ;;  %v1712_v51 = vpop.trf.xlu1 }
 0x349   : > { %1826 = vst.msk [vmem:[#allocation2 + $0x8] sm:$0xff] %vm1824_vm2, %v1329_v0  ;;  %1849 = vst.msk [vmem:[#allocation2 + $0xc0] sm:$0xff] %vm1824_vm2, %v1712_v51 }
 0x34c   : > { %v9605_v8 = vld [vmem:[#allocation2] sm:$0xff]  ;;  %v1713_v11 = vpop.trf.xlu1 }
 0x34d   : > { %1893 = vperm.xlu1 %8287, %v9605_v8   ;;  %1850 = vst.msk [vmem:[#allocation2 + $0xc8] sm:$0xff] %vm1824_vm2, %v1713_v11 }
 0x350   : > { %v1744_v30 = vpop.trf.xlu0  ;;  %v9610_v55 = vld [vmem:[#allocation2 + $0xc0] sm:$0xff]  ;;  %v1360_v36 = vpop.trf.xlu1  ;;  %v9649_v22 = vld [vmem:[#allocation2 + $0x8] sm:$0xff] }
 0x351   : > { %8290 = vset.pattern.permute.xlu1 %v13568_v54  ;;  %1851 = vst.msk [vmem:[#allocation2 + $0xd0] sm:$0xff] %vm1824_vm2, %v1744_v30  ;;  %2013 = vperm.xlu0 %8288, %v9610_v55   ;;  %1827 = vst.msk [vmem:[#allocation2 + $0x10] sm:$0xff] %vm1824_vm2, %v1360_v36 }
 0x352   : > { %2718 = vperm.xlu1 %8290, %v9610_v55  }
 0x354   : > { %v1745_v57 = vpop.trf.xlu0  ;;  %v1361_v41 = vpop.trf.xlu1  ;;  %v9668_v9 = vld [vmem:[#allocation2 + $0xc8] sm:$0xff] }
 0x355   : > { %1852 = vst.msk [vmem:[#allocation2 + $0xd8] sm:$0xff] %vm1824_vm2, %v1745_v57  ;;  %8289 = vset.pattern.permute.xlu0 %v13568_v54  ;;  %1828 = vst.msk [vmem:[#allocation2 + $0x18] sm:$0xff] %vm1824_vm2, %v1361_v41 }
 0x356   : > { %8291 = vset.pattern.permute.xlu1 %v13570_v58  ;;  %2598 = vperm.xlu0 %8289, %v9605_v8  }
 0x357   : > { %3302 = vperm.xlu1 %8291, %v9605_v8  }
 0x358   : > { %v1392_v60 = vpop.trf.xlu0  ;;  %v1776_v42 = vpop.trf.xlu1  ;;  %v1885_v26 = vld [vmem:[#allocation2 + $0xd0] sm:$0xff] }
 0x359   : > { %1829 = vst.msk [vmem:[#allocation2 + $0x20] sm:$0xff] %vm1824_vm2, %v1392_v60  ;;  %1853 = vst.msk [vmem:[#allocation2 + $0xe0] sm:$0xff] %vm1824_vm2, %v1776_v42  ;;  %v9659_v28 = vld [vmem:[#allocation2 + $0x10] sm:$0xff] }
 0x35a   : > { %8292 = vset.pattern.permute.xlu0 %v13570_v58 }
 0x35b   : > { %8294 = vset.pattern.permute.xlu1 %v13566_v47  ;;  %3422 = vperm.xlu0 %8292, %v9610_v55  }
 0x35c   : > { %4126 = vperm.xlu1 %8294, %v9610_v55   ;;  %v1393_v63 = vpop.trf.xlu0  ;;  %v1777_v1 = vpop.trf.xlu1  ;;  %v9706_v45 = vld [vmem:[#allocation2 + $0x18] sm:$0xff] }
 0x35d   : > { %1830 = vst.msk [vmem:[#allocation2 + $0x28] sm:$0xff] %vm1824_vm2, %v1393_v63  ;;  %1854 = vst.msk [vmem:[#allocation2 + $0xe8] sm:$0xff] %vm1824_vm2, %v1777_v1  ;;  %v9711_v2 = vld [vmem:[#allocation2 + $0xd8] sm:$0xff] }
 0x35f   : > { %8293 = vset.pattern.permute.xlu0 %v13566_v47 }
 0x360   : > { %8295 = vset.pattern.permute.xlu1 %v13564_v3  ;;  %v1424_v48 = vpop.trf.xlu0  ;;  %4006 = vperm.xlu0 %8293, %v9605_v8   ;;  %v1456_v53 = vpop.trf.xlu1  ;;  %v9700_v44 = vld [vmem:[#allocation2 + $0xe0] sm:$0xff] }
 0x361   : > { %4710 = vperm.xlu1 %8295, %v9605_v8   ;;  %1831 = vst.msk [vmem:[#allocation2 + $0x30] sm:$0xff] %vm1824_vm2, %v1424_v48  ;;  %1833 = vst.msk [vmem:[#allocation2 + $0x40] sm:$0xff] %vm1824_vm2, %v1456_v53  ;;  %v9716_v46 = vld [vmem:[#allocation2 + $0x20] sm:$0xff] }
 0x364   : > { %v1425_v10 = vpop.trf.xlu0  ;;  %8296 = vset.pattern.permute.xlu0 %v13564_v3  ;;  %v1457_v14 = vpop.trf.xlu1  ;;  %v9761_v60 = vld [vmem:[#allocation2 + $0xe8] sm:$0xff] }
 0x365   : > { %8298 = vset.pattern.permute.xlu1 %v13558_v13  ;;  %1832 = vst.msk [vmem:[#allocation2 + $0x38] sm:$0xff] %vm1824_vm2, %v1425_v10  ;;  %4830 = vperm.xlu0 %8296, %v9610_v55   ;;  %1834 = vst.msk [vmem:[#allocation2 + $0x48] sm:$0xff] %vm1824_vm2, %v1457_v14  ;;  %v7873_v14 = vld [vmem:[#allocation3] ss:$0 sm:$0xff] }
 0x366   : > { %6118 = vperm.xlu1 %8298, %v9605_v8  }
 0x368   : > { %v1808_v16 = vpop.trf.xlu0  ;;  %v1520_v59 = vpop.trf.xlu1  ;;  %v9738_v29 = vld [vmem:[#allocation2 + $0x30] sm:$0xff] }
 0x369   : > { %1855 = vst.msk [vmem:[#allocation2 + $0xf0] sm:$0xff] %vm1824_vm2, %v1808_v16  ;;  %8297 = vset.pattern.permute.xlu0 %v13562_v18  ;;  %1837 = vst.msk [vmem:[#allocation2 + $0x60] sm:$0xff] %vm1824_vm2, %v1520_v59  ;;  %v9802_v59 = vld [vmem:[%s13542_s4] sm:$0xff] }
 0x36a   : > { %8299 = vset.pattern.permute.xlu1 %v13560_v19  ;;  %5414 = vperm.xlu0 %8297, %v9605_v8  }
 0x36b   : > { %6822 = vperm.xlu1 %8299, %v9605_v8  }
 0x36c   : > { %v1809_v21 = vpop.trf.xlu0  ;;  %v1521_v24 = vpop.trf.xlu1 }
 0x36d   : > { %1856 = vst.msk [vmem:[#allocation2 + $0xf8] sm:$0xff] %vm1824_vm2, %v1809_v21  ;;  %1838 = vst.msk [vmem:[#allocation2 + $0x68] sm:$0xff] %vm1824_vm2, %v1521_v24  ;;  %v9810_v24 = vld [vmem:[%s13542_s4 + $0x8] sm:$0xff] }
 0x36e   : > { %8301 = vset.pattern.permute.xlu0 %v13574_v31  ;;  %13813 = vst [vmem:[#allocation20_spill] sm:$0xff] %v9810_v24 }
 0x36f   : > { %8300 = vset.pattern.permute.xlu1 %v13562_v18  ;;  %1898 = vperm.xlu0 %8301, %v9649_v22  }
 0x370   : > { %5534 = vperm.xlu1 %8300, %v9610_v55   ;;  %v1488_v25 = vpop.trf.xlu0  ;;  %v1584_v61 = vpop.trf.xlu1  ;;  %v9744_v8 = vld [vmem:[#allocation2 + $0xf0] sm:$0xff] }
 0x371   : > { %1835 = vst.msk [vmem:[#allocation2 + $0x50] sm:$0xff] %vm1824_vm2, %v1488_v25  ;;  %1841 = vst.msk [vmem:[#allocation2 + $0x80] sm:$0xff] %vm1824_vm2, %v1584_v61 }
 0x373   : > { %2023 = vperm.xlu0 %8301, %v1885_v26  }
 0x374   : > { %8302 = vset.pattern.permute.xlu1 %v13574_v31  ;;  %v1489_v32 = vpop.trf.xlu0  ;;  %v1585_v33 = vpop.trf.xlu1 }
 0x375   : > { %1903 = vperm.xlu1 %8302, %v9659_v28   ;;  %1836 = vst.msk [vmem:[#allocation2 + $0x58] sm:$0xff] %vm1824_vm2, %v1489_v32  ;;  %1842 = vst.msk [vmem:[#allocation2 + $0x88] sm:$0xff] %vm1824_vm2, %v1585_v33  ;;  %v7889_v32 = vld [vmem:[#allocation4] ss:$0 sm:$0xff] }
 0x377   : > { %8304 = vset.pattern.permute.xlu0 %v13568_v54 }
 0x378   : > { %v1552_v37 = vpop.trf.xlu0  ;;  %2723 = vperm.xlu0 %8304, %v9668_v9   ;;  %v1648_v38 = vpop.trf.xlu1 }
 0x379   : > { %2018 = vperm.xlu1 %8302, %v9668_v9   ;;  %1839 = vst.msk [vmem:[#allocation2 + $0x70] sm:$0xff] %vm1824_vm2, %v1552_v37  ;;  %1845 = vst.msk [vmem:[#allocation2 + $0xa0] sm:$0xff] %vm1824_vm2, %v1648_v38 }
 0x37c   : > { %v1553_v39 = vpop.trf.xlu0  ;;  %8305 = vset.pattern.permute.xlu0 %v13570_v58  ;;  %v1649_v6 = vpop.trf.xlu1 }
 0x37d   : > { %8303 = vset.pattern.permute.xlu1 %v13568_v54  ;;  %1840 = vst.msk [vmem:[#allocation2 + $0x78] sm:$0xff] %vm1824_vm2, %v1553_v39  ;;  %3307 = vperm.xlu0 %8305, %v9649_v22   ;;  %1846 = vst.msk [vmem:[#allocation2 + $0xa8] sm:$0xff] %vm1824_vm2, %v1649_v6 }
 0x37e   : > { %2603 = vperm.xlu1 %8303, %v9649_v22  }
 0x380   : > { %v1616_v5 = vpop.trf.xlu0 }
 0x381   : > { %1843 = vst.msk [vmem:[#allocation2 + $0x90] sm:$0xff] %vm1824_vm2, %v1616_v5  ;;  %3432 = vperm.xlu0 %8305, %v1885_v26  }
 0x382   : > { %2608 = vperm.xlu1 %8303, %v9659_v28  }
 0x384   : > { %v1617_v20 = vpop.trf.xlu0 }
 0x385   : > { %1844 = vst.msk [vmem:[#allocation2 + $0x98] sm:$0xff] %vm1824_vm2, %v1617_v20  ;;  %8308 = vset.pattern.permute.xlu0 %v13566_v47 }
 0x386   : > { %2728 = vperm.xlu1 %8303, %v1885_v26   ;;  %4131 = vperm.xlu0 %8308, %v9668_v9  }
 0x388   : > { %v1680_v43 = vpop.trf.xlu0 }
 0x389   : > { %1847 = vst.msk [vmem:[#allocation2 + $0xb0] sm:$0xff] %vm1824_vm2, %v1680_v43 }
 0x38a   : > { %8306 = vset.pattern.permute.xlu1 %v13570_v58  ;;  %8309 = vset.pattern.permute.xlu0 %v13564_v3 }
 0x38b   : > { %3312 = vperm.xlu1 %8306, %v9659_v28   ;;  %4715 = vperm.xlu0 %8309, %v9649_v22  }
 0x38c   : > { %v1681_v17 = vpop.trf.xlu0 }
 0x38d   : > { %1848 = vst.msk [vmem:[#allocation2 + $0xb8] sm:$0xff] %vm1824_vm2, %v1681_v17  ;;  %v9836_v17 = vld [vmem:[#allocation3 + $0x61] ss:$0 sm:$0xff] }
 0x38f   : > { %3427 = vperm.xlu1 %8306, %v9668_v9   ;;  %8312 = vset.pattern.permute.xlu0 %v13558_v13 }
 0x390   : > { %6123 = vperm.xlu0 %8312, %v9649_v22  }
 0x393   : > { %8307 = vset.pattern.permute.xlu1 %v13566_v47 }
 0x394   : > { %4011 = vperm.xlu1 %8307, %v9649_v22   ;;  %6128 = vperm.xlu0 %8312, %v9659_v28  }
 0x398   : > { %4016 = vperm.xlu1 %8307, %v9659_v28   ;;  %8314 = vset.pattern.permute.xlu0 %v13564_v3 }
 0x399   : > { %4840 = vperm.xlu0 %8314, %v1885_v26  }
 0x39c   : > { %4136 = vperm.xlu1 %8307, %v1885_v26  }
 0x39d   : > { %8317 = vset.pattern.permute.xlu0 %v13574_v31 }
 0x39e   : > { %2033 = vperm.xlu0 %8317, %v9700_v44  }
 0x3a0   : > { %8310 = vset.pattern.permute.xlu1 %v13564_v3 }
 0x3a1   : > { %4720 = vperm.xlu1 %8310, %v9659_v28  }
 0x3a2   : > { %8318 = vset.pattern.permute.xlu0 %v13568_v54 }
 0x3a3   : > { %2613 = vperm.xlu0 %8318, %v9706_v45  }
 0x3a4   : > { %v966_v49 = vpop.f32.mrb[36].mxu1 }
 0x3a5   : > { %4835 = vperm.xlu1 %8310, %v9668_v9   ;;  %v998_v23 = vadd.f32 %v9541_v40, %v966_v49  ;;  %v968_v0 = vpop.f32.mrb[37].mxu1 }
 0x3a6   : > { %v1101_v40 = vadd.f32 %v9547_v52, %v968_v0  ;;  %v9751_v52 = vld [vmem:[#allocation2 + $0x28] sm:$0xff] }
 0x3a7   : > { %2733 = vperm.xlu0 %8318, %v9711_v2   ;;  %v1014_v50 = vmul.f32 0.5, %v998_v23  ;;  %v7901_v23 = vld [vmem:[#allocation4 + $0x60] ss:$0 sm:$0xff] }
 0x3a9   : > { %8311 = vset.pattern.permute.xlu1 %v13562_v18  ;;  %8597 = vtanh.f32 %v1014_v50 }
 0x3aa   : > { %5419 = vperm.xlu1 %8311, %v9649_v22   ;;  %8599 = vtanh.f32 %v1101_v40 }
 0x3ab   : > { %8321 = vset.pattern.permute.xlu0 %v13570_v58 }
 0x3ac   : > { %3322 = vperm.xlu0 %8321, %v9716_v46  }
 0x3ae   : > { %5424 = vperm.xlu1 %8311, %v9659_v28  }
 0x3b0   : > { %3442 = vperm.xlu0 %8321, %v9700_v44  }
 0x3b2   : > { %8313 = vset.pattern.permute.xlu1 %v13560_v19 }
 0x3b3   : > { %6827 = vperm.xlu1 %8313, %v9649_v22   ;;  %v8598_v51 = vpop.eup %8597  ;;  %v7885_v22 = vld [vmem:[#allocation3 + $0x60] ss:$0 sm:$0xff] }
 0x3b4   : > { %8322 = vset.pattern.permute.xlu0 %v13566_v47  ;;  %v1046_v11 = vadd.f32 1.0, %v8598_v51  ;;  %v8600_v41 = vpop.eup %8599 }
 0x3b5   : > { %4021 = vperm.xlu0 %8322, %v9706_v45   ;;  %1133 = vst.msk [vmem:[#allocation4 + $0x70] sm:$0xff] %vm534_vm0, %v8600_v41 }
 0x3b6   : > { %v1062_v55 = vmul.f32 0.5, %v1046_v11 }
 0x3b7   : > { %6832 = vperm.xlu1 %8313, %v9659_v28  }
 0x3b8   : > { %1078 = vst.msk [vmem:[#allocation3 + $0x70] sm:$0xff] %vm534_vm0, %v1062_v55 }
 0x3b9   : > { %4141 = vperm.xlu0 %8322, %v9711_v2  }
 0x3bb   : > { %8315 = vset.pattern.permute.xlu1 %v13562_v18 }
 0x3bc   : > { %5539 = vperm.xlu1 %8315, %v9668_v9  }
 0x3bd   : > { %8325 = vset.pattern.permute.xlu0 %v13564_v3 }
 0x3be   : > { %4730 = vperm.xlu0 %8325, %v9716_v46  }
 0x3c0   : > { %8316 = vset.pattern.permute.xlu1 %v13574_v31 }
 0x3c1   : > { %1908 = vperm.xlu1 %8316, %v9706_v45  }
 0x3c2   : > { %8326 = vset.pattern.permute.xlu0 %v13562_v18 }
 0x3c3   : > { %5429 = vperm.xlu0 %8326, %v9706_v45  }
 0x3c5   : > { %1913 = vperm.xlu1 %8316, %v9716_v46  }
 0x3c7   : > { %8332 = vset.pattern.permute.xlu0 %v13574_v31 }
 0x3c8   : > { %1923 = vperm.xlu0 %8332, %v9738_v29  }
 0x3c9   : > { %2028 = vperm.xlu1 %8316, %v9711_v2  }
 0x3cc   : > { %v9746_v30 = vpop.permute.xlu1 %1893  ;;  %2043 = vperm.xlu0 %8332, %v9744_v8  }
 0x3cd   : > { %8319 = vset.pattern.permute.xlu1 %v13568_v54  ;;  %v2340_v21 = vmul.f32 %v7873_v14, %v9746_v30  ;;  %v2051_v35 = vmul.f32 %v9746_v30, %v9802_v59  ;;  %v2500_v20 = vmul.f32 %v7889_v32, %v9746_v30 }
 0x3ce   : > { %2618 = vperm.xlu1 %8319, %v9716_v46  }
 0x3cf   : > { %v2372_v62 = vsub.f32 1.0, %v2340_v21  ;;  %v2083_v33 = vsel %vm534_vm0, %v2051_v35, 0.0 }
 0x3d0   : > { %v9754_v36 = vpop.permute.xlu0 %2013  ;;  %8333 = vset.pattern.permute.xlu0 %v13568_v54 }
 0x3d1   : > { %v9757_v57 = vpop.permute.xlu1 %2718  ;;  %2623 = vperm.xlu0 %8333, %v9751_v52   ;;  %v2364_v61 = vmul.f32 %v7885_v22, %v9754_v36  ;;  %v2404_v37 = vmul.f32 %v2372_v62, %v9802_v59  ;;  %v2075_v50 = vmul.f32 %v9754_v36, %v9802_v59  ;;  %v2524_v21 = vmul.f32 %v7901_v23, %v9754_v36 }
 0x3d2   : > { %2738 = vperm.xlu1 %8319, %v9700_v44   ;;  %v3068_v55 = vmul.f32 %v9836_v17, %v9757_v57 }
 0x3d3   : > { %v2396_v39 = vsub.f32 1.0, %v2364_v61  ;;  %v2532_v0 = vadd.f32 %v2500_v20, %v2404_v37  ;;  %v2191_v61 = vsel %vm534_vm0, %v2075_v50, 0.0  ;;  %v9859_v20 = vld [vmem:[#allocation4 + $0x61] ss:$0 sm:$0xff] }
 0x3d4   : > { %v3100_v36 = vsub.f32 1.0, %v3068_v55 }
 0x3d5   : > { %v9764_v42 = vpop.permute.xlu0 %2598  ;;  %2743 = vperm.xlu0 %8333, %v9761_v60   ;;  %v2428_v51 = vmul.f32 %v2396_v39, %v9802_v59 }
 0x3d6   : > { %v9767_v63 = vpop.permute.xlu1 %3302  ;;  %8320 = vset.pattern.permute.xlu1 %v13570_v58  ;;  %v3044_v6 = vmul.f32 %v9820_v4, %v9764_v42 }
 0x3d7   : > { %3317 = vperm.xlu1 %8320, %v9706_v45  }
 0x3d8   : > { %v3076_v11 = vsub.f32 1.0, %v3044_v6 }
 0x3d9   : > { %8336 = vset.pattern.permute.xlu0 %v13570_v58 }
 0x3da   : > { %v9772_v1 = vpop.permute.xlu0 %3422  ;;  %3332 = vperm.xlu0 %8336, %v9738_v29  }
 0x3db   : > { %v9775_v48 = vpop.permute.xlu1 %4126  ;;  %3437 = vperm.xlu1 %8320, %v9711_v2  }
 0x3de   : > { %3452 = vperm.xlu0 %8336, %v9744_v8  }
 0x3df   : > { %v9779_v53 = vpop.permute.xlu0 %4006  ;;  %8323 = vset.pattern.permute.xlu1 %v13566_v47 }
 0x3e0   : > { %v9782_v7 = vpop.permute.xlu1 %4710  ;;  %4026 = vperm.xlu1 %8323, %v9716_v46  }
 0x3e2   : > { %8337 = vset.pattern.permute.xlu0 %v13566_v47 }
 0x3e3   : > { %4031 = vperm.xlu0 %8337, %v9751_v52  }
 0x3e4   : > { %v9787_v10 = vpop.permute.xlu0 %4830  ;;  %4146 = vperm.xlu1 %8323, %v9700_v44  }
 0x3e5   : > { %v9790_v56 = vpop.permute.xlu1 %6118 }
 0x3e7   : > { %4151 = vperm.xlu0 %8337, %v9761_v60  }
 0x3e8   : > { %8324 = vset.pattern.permute.xlu1 %v13564_v3 }
 0x3e9   : > { %v9794_v15 = vpop.permute.xlu0 %5414  ;;  %4725 = vperm.xlu1 %8324, %v9706_v45  }
 0x3ea   : > { %v9797_v16 = vpop.permute.xlu1 %6822 }
 0x3eb   : > { %8340 = vset.pattern.permute.xlu0 %v13564_v3 }
 0x3ec   : > { %4740 = vperm.xlu0 %8340, %v9738_v29  }
 0x3ed   : > { %8327 = vset.pattern.permute.xlu1 %v13562_v18 }
 0x3ee   : > { %v1899_v25 = vpop.permute.xlu0 %1898  ;;  %5434 = vperm.xlu1 %8327, %v9716_v46  }
 0x3ef   : > { %v9816_v26 = vpop.permute.xlu1 %5534  ;;  %v2052_v27 = vmul.f32 %v1899_v25, %v9810_v24  ;;  %v2341_v28 = vmul.f32 %v7873_v14, %v1899_v25  ;;  %v2501_v49 = vmul.f32 %v7889_v32, %v1899_v25 }
 0x3f0   : > { %8341 = vset.pattern.permute.xlu0 %v13562_v18  ;;  %v4704_v18 = vld [vmem:[#allocation2 + $0xe0] sm:$0xff] }
 0x3f1   : > { %v2084_v34 = vsel %vm534_vm0, %v2052_v27, 0.0  ;;  %v2373_v9 = vsub.f32 1.0, %v2341_v28  ;;  %5439 = vperm.xlu0 %8341, %v9751_v52   ;;  %v7921_v27 = vld [vmem:[#allocation4 + $0x1] ss:$0 sm:$0xff]  ;;  %v2756_v28 = vmul.f32 %v9764_v42, %v2532_v0 }
 0x3f2   : > { %v2085_v38 = vadd.f32 %v2084_v34, %v2083_v33  ;;  %8328 = vset.pattern.permute.xlu1 %v13558_v13  ;;  %v9828_v12 = vpop.permute.xlu0 %2023  ;;  %v2556_v33 = vadd.f32 %v2524_v21, %v2428_v51  ;;  %v3108_v34 = vmul.f32 %v3076_v11, %v2532_v0  ;;  %v9866_v51 = vld [vmem:[#allocation3 + $0x62] ss:$0 sm:$0xff] }
 0x3f3   : > { %6133 = vperm.xlu1 %8328, %v9706_v45   ;;  %v2405_v44 = vmul.f32 %v2373_v9, %v9810_v24  ;;  %v2788_v0 = vsel %vm534_vm0, %v2756_v28, 0.0 }
 0x3f4   : > { %v9833_v5 = vpop.permute.xlu1 %1903  ;;  %v2086_v43 = vrot.slane %v2085_v38, 4 }
 0x3f5   : > { %8343 = vset.pattern.permute.xlu0 %v13558_v13  ;;  %v2533_v25 = vadd.f32 %v2501_v49, %v2405_v44 }
 0x3f6   : > { %v2087_v40 = vadd.f32 %v2086_v43, %v2085_v38  ;;  %6143 = vperm.xlu0 %8343, %v9751_v52   ;;  %v3204_v43 = vmul.f32 %v7921_v27, %v9764_v42 }
 0x3f7   : > { %6138 = vperm.xlu1 %8328, %v9716_v46   ;;  %v9847_v14 = vpop.permute.xlu0 %2723 }
 0x3f8   : > { %v2019_v30 = vpop.permute.xlu1 %2018  ;;  %v2088_v41 = vrot.slane %v2087_v40, 2  ;;  %v3236_v21 = vadd.f32 %v3204_v43, %v3108_v34  ;;  %v3132_v34 = vmul.f32 %v3100_v36, %v2556_v33 }
 0x3f9   : > { %v2076_v35 = vmul.f32 %v2019_v30, %v9810_v24  ;;  %v2365_v62 = vmul.f32 %v7885_v22, %v2019_v30  ;;  %v2525_v49 = vmul.f32 %v7901_v23, %v2019_v30  ;;  %v3228_v30 = vmul.f32 %v9859_v20, %v9757_v57 }
 0x3fa   : > { %v2089_v32 = vadd.f32 %v2088_v41, %v2087_v40  ;;  %6148 = vperm.xlu0 %8343, %v9738_v29   ;;  %v9864_v40 = vld [vmem:[#allocation3 + $0x2] ss:$0 sm:$0xff]  ;;  %v2780_v41 = vmul.f32 %v9757_v57, %v2556_v33  ;;  %v3772_v57 = vmul.f32 %v9866_v51, %v9772_v1  ;;  %v3460_v33 = vmul.f32 %v9767_v63, %v3236_v21 }
 0x3fb   : > { %v2192_v9 = vsel %vm534_vm0, %v2076_v35, 0.0  ;;  %v2397_v37 = vsub.f32 1.0, %v2365_v62  ;;  %8329 = vset.pattern.permute.xlu1 %v13560_v19  ;;  %v9877_v35 = vld [vmem:[#allocation4 + $0x2] ss:$0 sm:$0xff] }
 0x3fc   : > { %v2090_v38 = vrot.slane %v2089_v32, 1  ;;  %v2193_v22 = vadd.f32 %v2192_v9, %v2191_v61  ;;  %6837 = vperm.xlu1 %8329, %v9706_v45   ;;  %v9857_v39 = vpop.permute.xlu0 %3307  ;;  %v3748_v9 = vmul.f32 %v9864_v40, %v9767_v63  ;;  %v3908_v36 = vmul.f32 %v9877_v35, %v9767_v63 }
 0x3fd   : > { %v2604_v6 = vpop.permute.xlu1 %2603  ;;  %v2429_v44 = vmul.f32 %v2397_v37, %v9810_v24  ;;  %v3804_v63 = vsub.f32 1.0, %v3772_v57 }
 0x3fe   : > { %v2757_v50 = vmul.f32 %v2604_v6, %v2533_v25  ;;  %v2091_v11 = vadd.f32 %v2090_v38, %v2089_v32  ;;  %v2194_v55 = vrot.slane %v2193_v22, 4  ;;  %v3045_v45 = vmul.f32 %v9820_v4, %v2604_v6  ;;  %8345 = vset.pattern.permute.xlu0 %v13564_v3  ;;  %v9891_v38 = vld [vmem:[#allocation3 + $0x63] ss:$0 sm:$0xff] }
 0x3ff   : > { %v9871_v42 = vadd.f32 %v2525_v49, %v2429_v44  ;;  %4855 = vperm.xlu0 %8345, %v9761_v60   ;;  %v9893_v49 = vld [vmem:[#allocation2 + $0x40] sm:$0xff] }
 0x400   : > { %v2789_v23 = vsel %vm534_vm0, %v2757_v50, 0.0  ;;  %2228 = vst.msk [vmem:[#allocation5] sm:$0x1] %vm2227_vm3, %v2091_v11  ;;  %v2195_v62 = vadd.f32 %v2194_v55, %v2193_v22  ;;  %v3077_v61 = vsub.f32 1.0, %v3045_v45  ;;  %6842 = vperm.xlu1 %8329, %v9716_v46   ;;  %v9881_v28 = vpop.permute.xlu0 %3432  ;;  %v3205_v46 = vmul.f32 %v7921_v27, %v2604_v6  ;;  %v9901_v11 = vpop.f32.mrb[38].mxu1 }
 0x401   : > { %v2790_v4 = vadd.f32 %v2789_v23, %v2788_v0  ;;  %v9883_v32 = vpop.permute.xlu1 %2608  ;;  %v2781_v37 = vmul.f32 %v9847_v14, %v9871_v42  ;;  %v2896_v50 = vsel %vm534_vm0, %v2780_v41, 0.0  ;;  %v9903_v55 = vld [vmem:[#allocation3 + $0x3] ss:$0 sm:$0xff]  ;;  %v3780_v23 = vsub.f32 1.0, %v3748_v9 }
 0x402   : > { %v2196_v22 = vrot.slane %v2195_v62, 2  ;;  %v3109_v44 = vmul.f32 %v3077_v61, %v2533_v25  ;;  %v3260_v61 = vadd.f32 %v3228_v30, %v3132_v34  ;;  %v3492_v30 = vsel %vm534_vm0, %v3460_v33, 0.0  ;;  %v9932_v33 = vld [vmem:[#allocation4 + $0x3] ss:$0 sm:$0xff] }
 0x403   : > { %v2791_v43 = vrot.slane %v2790_v4, 4  ;;  %v2897_v0 = vsel %vm534_vm0, %v2781_v37, 0.0  ;;  %8348 = vset.pattern.permute.xlu0 %v13574_v31  ;;  %v9912_v37 = vmul.f32 %v9891_v38, %v9775_v48  ;;  %v3812_v34 = vmul.f32 %v3780_v23, %v3236_v21 }
 0x404   : > { %v2197_v45 = vadd.f32 %v2196_v22, %v2195_v62  ;;  %v2898_v25 = vadd.f32 %v2897_v0, %v2896_v50  ;;  %v9905_v6 = vadd.f32 %v3205_v46, %v3109_v44  ;;  %8330 = vset.pattern.permute.xlu1 %v13564_v3  ;;  %1933 = vperm.xlu0 %8348, %v9893_v49   ;;  %v9918_v62 = vld [vmem:[#allocation4 + $0x62] ss:$0 sm:$0xff]  ;;  %v9927_v46 = vld [vmem:[#allocation2 + $0x38] sm:$0xff] }
 0x405   : > { %v2792_v27 = vadd.f32 %v2791_v43, %v2790_v4  ;;  %v9908_v41 = vpop.permute.xlu1 %2728  ;;  %v9915_v13 = vpop.permute.xlu0 %4131  ;;  %4845 = vperm.xlu1 %8330, %v9711_v2   ;;  %v4452_v57 = vmul.f32 %v9903_v55, %v9779_v53  ;;  %v3069_v44 = vmul.f32 %v9836_v17, %v9847_v14  ;;  %v3836_v3 = vmul.f32 %v3804_v63, %v3260_v61 }
 0x406   : > { %v2198_v4 = vrot.slane %v2197_v45, 1  ;;  %v2899_v22 = vrot.slane %v2898_v25, 4  ;;  %v3461_v9 = vmul.f32 %v9857_v39, %v9905_v6  ;;  %v3932_v47 = vmul.f32 %v9918_v62, %v9772_v1 }
 0x407   : > { %v2793_v43 = vrot.slane %v2792_v27, 2  ;;  %v3484_v17 = vmul.f32 %v9772_v1, %v3260_v61  ;;  %v4508_v1 = vsub.f32 1.0, %v9912_v37  ;;  %v4612_v61 = vmul.f32 %v9932_v33, %v9779_v53 }
 0x408   : > { %v2199_v2 = vadd.f32 %v2198_v4, %v2197_v45  ;;  %v2900_v50 = vadd.f32 %v2899_v22, %v2898_v25  ;;  %v3493_v19 = vsel %vm534_vm0, %v3461_v9, 0.0  ;;  %8349 = vset.pattern.permute.xlu0 %v13568_v54  ;;  %v3749_v25 = vmul.f32 %v9864_v40, %v9857_v39  ;;  %v9944_v22 = vld [vmem:[#allocation3 + $0x4] ss:$0 sm:$0xff]  ;;  %v9946_v9 = vld [vmem:[#allocation2 + $0xf8] sm:$0xff] }
 0x409   : > { %v2794_v0 = vadd.f32 %v2793_v43, %v2792_v27  ;;  %v3494_v21 = vadd.f32 %v3493_v19, %v3492_v30  ;;  %4850 = vperm.xlu1 %8330, %v4704_v18   ;;  %2633 = vperm.xlu0 %8349, %v9927_v46   ;;  %v3940_v4 = vadd.f32 %v3908_v36, %v3812_v34  ;;  %v4484_v19 = vsub.f32 1.0, %v4452_v57  ;;  %v9955_v57 = vpop.f32.mrb[39].mxu1 }
 0x40a   : > { %v9935_v23 = vpop.permute.xlu1 %3312  ;;  %2240 = vst.msk [vmem:[#allocation5 + $0x60] sm:$0x1] %vm2227_vm3, %v2199_v2  ;;  %v2901_v45 = vrot.slane %v2900_v50, 2  ;;  %v9942_v63 = vpop.permute.xlu0 %4715  ;;  %v3101_v18 = vsub.f32 1.0, %v3069_v44  ;;  %13814 = vst [vmem:[#allocation21_spill] sm:$0xff] %v9946_v9  ;;  %v3964_v2 = vadd.f32 %v3932_v47, %v3836_v3  ;;  %v3229_v54 = vmul.f32 %v9859_v20, %v9847_v14 }
 0x40b   : > { %v2795_v27 = vrot.slane %v2794_v0, 1  ;;  %v3495_v43 = vrot.slane %v3494_v21, 4  ;;  %v5156_v37 = vmul.f32 %v9944_v22, %v9782_v7  ;;  %v3781_v24 = vsub.f32 1.0, %v3749_v25 }
 0x40c   : > { %v2902_v30 = vadd.f32 %v2901_v45, %v2900_v50  ;;  %v3133_v36 = vmul.f32 %v3101_v18, %v9871_v42  ;;  %v4164_v3 = vmul.f32 %v9779_v53, %v3940_v4  ;;  %v4516_v14 = vmul.f32 %v4484_v19, %v3940_v4  ;;  %v9973_v4 = vld [vmem:[#allocation3 + $0x64] ss:$0 sm:$0xff] }
 0x40d   : > { %v2796_v40 = vadd.f32 %v2795_v27, %v2794_v0  ;;  %v3496_v58 = vadd.f32 %v3495_v43, %v3494_v21  ;;  %8331 = vset.pattern.permute.xlu1 %v13574_v31  ;;  %2753 = vperm.xlu0 %8349, %v9946_v9   ;;  %v3909_v21 = vmul.f32 %v9877_v35, %v9857_v39  ;;  %v3600_v53 = vsel %vm534_vm0, %v3484_v17, 0.0 }
 0x40e   : > { %v3428_v34 = vpop.permute.xlu1 %3427  ;;  %v2903_v44 = vrot.slane %v2902_v30, 1  ;;  %1918 = vperm.xlu1 %8331, %v9751_v52   ;;  %v3261_v42 = vadd.f32 %v3229_v54, %v3133_v36  ;;  %v3813_v25 = vmul.f32 %v3781_v24, %v9905_v6  ;;  %v4188_v27 = vmul.f32 %v9775_v48, %v3964_v2  ;;  %v9979_v6 = vld [vmem:[#allocation3 + $0x5] ss:$0 sm:$0xff] }
 0x40f   : > { %2932 = vst.msk [vmem:[#allocation5 + $0x1] sm:$0x1] %vm2227_vm3, %v2796_v40  ;;  %v3773_v47 = vmul.f32 %v9866_v51, %v3428_v34  ;;  %v3497_v20 = vrot.slane %v3496_v58, 2  ;;  %v9964_v50 = vpop.permute.xlu0 %6123  ;;  %v9970_v18 = vmul.f32 %v4508_v1, %v3964_v2  ;;  %v3933_v19 = vmul.f32 %v9918_v62, %v3428_v34 }
 0x410   : > { %v2904_v0 = vadd.f32 %v2903_v44, %v2902_v30  ;;  %v3485_v51 = vmul.f32 %v3428_v34, %v3261_v42  ;;  %v13815_v30 = vmov 2   ;;  %v3941_v24 = vadd.f32 %v3909_v21, %v3813_v25  ;;  %v10002_v25 = vld [vmem:[#allocation4 + $0x4] ss:$0 sm:$0xff] }
 0x411   : > { %v3805_v45 = vsub.f32 1.0, %v3773_v47  ;;  %v3498_v43 = vadd.f32 %v3497_v20, %v3496_v58  ;;  %8352 = vset.pattern.permute.xlu0 %v13815_v30  ;;  %v5188_v35 = vsub.f32 1.0, %v5156_v37  ;;  %v4644_v2 = vadd.f32 %v4612_v61, %v4516_v14 }
 0x412   : > { %2944 = vst.msk [vmem:[#allocation5 + $0x61] sm:$0x1] %vm2227_vm3, %v2904_v0  ;;  %2038 = vperm.xlu1 %8331, %v9761_v60   ;;  %v3601_v1 = vsel %vm534_vm0, %v3485_v51, 0.0  ;;  %3342 = vperm.xlu0 %8352, %v9893_v49   ;;  %v4196_v44 = vsel %vm534_vm0, %v4164_v3, 0.0  ;;  %v5180_v37 = vmul.f32 %v9973_v4, %v9787_v10  ;;  %v5860_v0 = vmul.f32 %v9979_v6, %v9794_v15 }
 0x413   : > { %v3837_v54 = vmul.f32 %v3805_v45, %v3261_v42  ;;  %v4012_v39 = vpop.permute.xlu1 %4011  ;;  %v3499_v58 = vrot.slane %v3498_v43, 1  ;;  %v9983_v17 = vpop.permute.xlu0 %6128  ;;  %v3602_v62 = vadd.f32 %v3601_v1, %v3600_v53  ;;  %v9991_v42 = vld [vmem:[#allocation4 + $0x63] ss:$0 sm:$0xff]  ;;  %v13816_v14 = vmov 1  }
 0x414   : > { %v4453_v40 = vmul.f32 %v9903_v55, %v4012_v39  ;;  %v4165_v34 = vmul.f32 %v4012_v39, %v3941_v24  ;;  %v4304_v3 = vsel %vm534_vm0, %v4188_v27, 0.0  ;;  %v4613_v53 = vmul.f32 %v9932_v33, %v4012_v39 }
 0x415   : > { %v9986_v36 = vadd.f32 %v3933_v19, %v3837_v54  ;;  %v3500_v47 = vadd.f32 %v3499_v58, %v3498_v43  ;;  %v3603_v21 = vrot.slane %v3602_v62, 4  ;;  %v13817_v54 = vmov 3  }
 0x416   : > { %v4485_v20 = vsub.f32 1.0, %v4453_v40  ;;  %v4197_v61 = vsel %vm534_vm0, %v4165_v34, 0.0  ;;  %8334 = vset.pattern.permute.xlu1 %v13816_v14  ;;  %8353 = vset.pattern.permute.xlu0 %v13817_v54  ;;  %v4868_v19 = vmul.f32 %v9782_v7, %v4644_v2  ;;  %v5220_v58 = vmul.f32 %v5188_v35, %v4644_v2 }
 0x417   : > { %v4189_v55 = vmul.f32 %v9915_v13, %v9986_v36  ;;  %v9999_v45 = vpop.permute.xlu1 %4016  ;;  %3636 = vst.msk [vmem:[#allocation5 + $0x2] sm:$0x1] %vm2227_vm3, %v3500_v47  ;;  %v4198_v43 = vadd.f32 %v4197_v61, %v4196_v44  ;;  %2628 = vperm.xlu1 %8334, %v9738_v29   ;;  %v3604_v1 = vadd.f32 %v3603_v21, %v3602_v62  ;;  %v5212_v39 = vsub.f32 1.0, %v5180_v37 }
 0x418   : > { %v4517_v51 = vmul.f32 %v4485_v20, %v3941_v24  ;;  %4041 = vperm.xlu0 %8353, %v9927_v46   ;;  %v4636_v27 = vmul.f32 %v9991_v42, %v9775_v48  ;;  %v10015_v33 = vpop.permute.xlu0 %4840  ;;  %v5316_v29 = vmul.f32 %v10002_v25, %v9782_v7  ;;  %v5892_v47 = vsub.f32 1.0, %v5860_v0  ;;  %v10031_v0 = vld [vmem:[#allocation4 + $0x5] ss:$0 sm:$0xff] }
 0x419   : > { %v4305_v40 = vsel %vm534_vm0, %v4189_v55, 0.0  ;;  %v4199_v44 = vrot.slane %v4198_v43, 4  ;;  %v3605_v35 = vrot.slane %v3604_v1, 2  ;;  %v4900_v48 = vsel %vm534_vm0, %v4868_v19, 0.0  ;;  %v10025_v55 = vld [vmem:[#allocation4 + $0x64] ss:$0 sm:$0xff] }
 0x41a   : > { %v4306_v34 = vadd.f32 %v4305_v40, %v4304_v3  ;;  %v10013_v24 = vadd.f32 %v4613_v53, %v4517_v51  ;;  %v4668_v61 = vadd.f32 %v4636_v27, %v9970_v18  ;;  %v10028_v3 = vld [vmem:[#allocation3 + $0x6] ss:$0 sm:$0xff]  ;;  %v5348_v7 = vadd.f32 %v5316_v29, %v5220_v58 }
 0x41b   : > { %v10019_v2 = vpop.permute.xlu1 %4136  ;;  %v4200_v20 = vadd.f32 %v4199_v44, %v4198_v43  ;;  %2748 = vperm.xlu1 %8334, %v9744_v8   ;;  %v3606_v37 = vadd.f32 %v3605_v35, %v3604_v1  ;;  %v4477_v43 = vmul.f32 %v9891_v38, %v9915_v13  ;;  %v5340_v58 = vmul.f32 %v10025_v55, %v9787_v10 }
 0x41c   : > { %v4307_v62 = vrot.slane %v4306_v34, 4  ;;  %v4869_v21 = vmul.f32 %v9942_v63, %v10013_v24  ;;  %4161 = vperm.xlu0 %8353, %v9946_v9   ;;  %v5244_v40 = vmul.f32 %v5212_v39, %v4668_v61  ;;  %v5924_v44 = vmul.f32 %v5892_v47, %v5348_v7 }
 0x41d   : > { %v4201_v53 = vrot.slane %v4200_v20, 2  ;;  %v10036_v19 = vpop.permute.xlu0 %2033  ;;  %v3607_v18 = vrot.slane %v3606_v37, 1  ;;  %v6564_v1 = vmul.f32 %v10028_v3, %v9790_v56  ;;  %v5157_v39 = vmul.f32 %v9944_v22, %v9942_v63  ;;  %v10058_v22 = vld [vmem:[#allocation3 + $0x65] ss:$0 sm:$0xff] }
 0x41e   : > { %v4308_v51 = vadd.f32 %v4307_v62, %v4306_v34  ;;  %v4901_v8 = vsel %vm534_vm0, %v4869_v21, 0.0  ;;  %13818 = vst [vmem:[#allocation22_spill] sm:$0xff] %v10036_v19  ;;  %v6020_v34 = vmul.f32 %v10031_v0, %v9794_v15  ;;  %v13820_v21 = vmov 4   ;;  %13822 = vst [vmem:[#allocation25_spill] sm:$0xff] %v10058_v22 }
 0x41f   : > { %v4902_v27 = vadd.f32 %v4901_v8, %v4900_v48  ;;  %v4202_v35 = vadd.f32 %v4201_v53, %v4200_v20  ;;  %8335 = vset.pattern.permute.xlu1 %v13815_v30  ;;  %v3608_v47 = vadd.f32 %v3607_v18, %v3606_v37  ;;  %v4892_v48 = vmul.f32 %v9787_v10, %v4668_v61  ;;  %v10052_v8 = vld [vmem:[#allocation4 + $0x6] ss:$0 sm:$0xff] }
 0x420   : > { %v4309_v29 = vrot.slane %v4308_v51, 2  ;;  %v10043_v38 = vpop.permute.xlu1 %4720  ;;  %8356 = vset.pattern.permute.xlu0 %v13820_v21  ;;  %3327 = vperm.xlu1 %8335, %v9751_v52   ;;  %v4509_v20 = vsub.f32 1.0, %v4477_v43  ;;  %v5572_v19 = vmul.f32 %v9794_v15, %v5348_v7  ;;  %v10056_v9 = vadd.f32 %v5340_v58, %v5244_v40  ;;  %v8061_v7 = vld [vmem:[#allocation4 + $0x65] ss:$0 sm:$0xff] }
 0x421   : > { %13819 = vst [vmem:[#allocation23_spill] sm:$0xff] %v10043_v38  ;;  %v4903_v62 = vrot.slane %v4902_v27, 4  ;;  %v4203_v31 = vrot.slane %v4202_v35, 1  ;;  %4750 = vperm.xlu0 %8356, %v9893_v49   ;;  %v6052_v38 = vadd.f32 %v6020_v34, %v5924_v44  ;;  %3648 = vst.msk [vmem:[#allocation5 + $0x62] sm:$0x1] %vm2227_vm3, %v3608_v47  ;;  %v4637_v10 = vmul.f32 %v9991_v42, %v9915_v13 }
 0x422   : > { %v4310_v53 = vadd.f32 %v4309_v29, %v4308_v51  ;;  %13821 = vst [vmem:[#allocation24_spill] sm:$0xff] %v10056_v9  ;;  %v10061_v52 = vpop.permute.xlu0 %2613  ;;  %v4541_v51 = vmul.f32 %v4509_v20, %v9986_v36  ;;  %v6724_v15 = vmul.f32 %v10052_v8, %v9790_v56  ;;  %v5596_v40 = vmul.f32 %v9816_v26, %v10056_v9  ;;  %v8669_v9 = vld [vmem:[%s13544_s6] ss:$0 sm:$0xff] }
 0x423   : > { %v4904_v37 = vadd.f32 %v4903_v62, %v4902_v27  ;;  %v4204_v43 = vadd.f32 %v4203_v31, %v4202_v35  ;;  %v5189_v44 = vsub.f32 1.0, %v5157_v39  ;;  %v6596_v58 = vsub.f32 1.0, %v6564_v1  ;;  %v10077_v31 = vld [vmem:[#allocation3 + $0x68] ss:$0 sm:$0xff] }
 0x424   : > { %v4311_v61 = vrot.slane %v4310_v53, 1  ;;  %v10066_v18 = vpop.permute.xlu1 %4835  ;;  %3447 = vperm.xlu1 %8335, %v9761_v60   ;;  %v10075_v13 = vmul.f32 %v10058_v22, %v9816_v26  ;;  %v13824_v42 = vmov 5   ;;  %v10081_v29 = vadd.f32 %v4637_v10, %v4541_v51  ;;  %v10107_v10 = vld [vmem:[#allocation2 + $0x50] sm:$0xff]  ;;  %v10111_v51 = vld [vmem:[#allocation3 + $0x8] ss:$0 sm:$0xff] }
 0x425   : > { %v4905_v27 = vrot.slane %v4904_v37, 2  ;;  %4340 = vst.msk [vmem:[#allocation5 + $0x3] sm:$0x1] %vm2227_vm3, %v4204_v43  ;;  %8358 = vset.pattern.permute.xlu0 %v13824_v42  ;;  %v5008_v35 = vsel %vm534_vm0, %v4892_v48, 0.0  ;;  %v5317_v34 = vmul.f32 %v10002_v25, %v9942_v63  ;;  %v5221_v1 = vmul.f32 %v5189_v44, %v10013_v24  ;;  %v10100_v25 = vld [vmem:[#allocation4 + $0x68] ss:$0 sm:$0xff] }
 0x426   : > { %13823 = vst [vmem:[#allocation26_spill] sm:$0xff] %v10075_v13  ;;  %v4312_v36 = vadd.f32 %v4311_v61, %v4310_v53  ;;  %5454 = vperm.xlu0 %8358, %v9893_v49   ;;  %v10088_v39 = vpop.permute.xlu0 %2733  ;;  %v5604_v47 = vsel %vm534_vm0, %v5572_v19, 0.0  ;;  %v6628_v62 = vmul.f32 %v6596_v58, %v6052_v38  ;;  %v10092_v20 = vmul.f32 %v8061_v7, %v9816_v26  ;;  %v10105_v19 = vld [vmem:[#allocation2 + $0x30] sm:$0xff] }
 0x427   : > { %v4906_v60 = vadd.f32 %v4905_v27, %v4904_v37  ;;  %v4893_v48 = vmul.f32 %v10066_v18, %v10081_v29  ;;  %v10098_v63 = vsel %vm534_vm0, %v5596_v40, 0.0  ;;  %v2366_v24 = vmul.f32 %v10077_v31, %v9828_v12 }
 0x428   : > { %13825 = vst [vmem:[#allocation27_spill] sm:$0xff] %v10092_v20  ;;  %4352 = vst.msk [vmem:[#allocation5 + $0x63] sm:$0x1] %vm2227_vm3, %v4312_v36  ;;  %8338 = vset.pattern.permute.xlu1 %v13817_v54  ;;  %v5349_v26 = vadd.f32 %v5317_v34, %v5221_v1  ;;  %v6276_v61 = vmul.f32 %v9790_v56, %v6052_v38  ;;  %v10118_v44 = vmul.f32 %v9828_v12, %v9802_v59  ;;  %v13826_v36 = vmov 0   ;;  %v10125_v1 = vld [vmem:[#allocation4 + $0x8] ss:$0 sm:$0xff] }
 0x429   : > { %v4907_v53 = vrot.slane %v4906_v60, 1  ;;  %v5420_v37 = vpop.permute.xlu1 %5419  ;;  %v5009_v7 = vsel %vm534_vm0, %v4893_v48, 0.0  ;;  %4036 = vperm.xlu1 %8338, %v10105_v19   ;;  %v6756_v56 = vadd.f32 %v6724_v15, %v6628_v62  ;;  %v10123_v38 = vmul.f32 %v10100_v25, %v9828_v12  ;;  %v10136_v62 = vld [vmem:[#allocation2 + $0xf0] sm:$0xff] }
 0x42a   : > { %v5861_v40 = vmul.f32 %v9979_v6, %v5420_v37  ;;  %v5010_v58 = vadd.f32 %v5009_v7, %v5008_v35  ;;  %8362 = vset.pattern.permute.xlu0 %v13826_v36  ;;  %v5573_v34 = vmul.f32 %v5420_v37, %v5349_v26  ;;  %v6565_v48 = vmul.f32 %v10028_v3, %v9964_v50 }
 0x42b   : > { %v4908_v27 = vadd.f32 %v4907_v53, %v4906_v60  ;;  %1943 = vperm.xlu0 %8362, %v10107_v10   ;;  %v10130_v43 = vpop.permute.xlu0 %3322  ;;  %v2398_v60 = vsub.f32 1.0, %v2366_v24  ;;  %v2342_v35 = vmul.f32 %v10111_v51, %v9833_v5  ;;  %v5181_v3 = vmul.f32 %v9973_v4, %v10066_v18 }
 0x42c   : > { %v5893_v6 = vsub.f32 1.0, %v5861_v40  ;;  %13827 = vst [vmem:[#allocation28_spill] sm:$0xff] %v10130_v43  ;;  %v5011_v15 = vrot.slane %v5010_v58, 4  ;;  %v5605_v12 = vsel %vm534_vm0, %v5573_v34, 0.0  ;;  %v6021_v20 = vmul.f32 %v10031_v0, %v5420_v37  ;;  %v10149_v34 = vld [vmem:[#allocation3 + $0x9] ss:$0 sm:$0xff] }
 0x42d   : > { %5044 = vst.msk [vmem:[#allocation5 + $0x4] sm:$0x1] %vm2227_vm3, %v4908_v27  ;;  %v10138_v53 = vpop.permute.xlu1 %5424  ;;  %v5606_v7 = vadd.f32 %v5605_v12, %v5604_v47  ;;  %4156 = vperm.xlu1 %8338, %v10136_v62   ;;  %v6308_v24 = vsel %vm534_vm0, %v6276_v61, 0.0  ;;  %v10147_v27 = vmul.f32 %v10125_v1, %v9833_v5  ;;  %v999_v4 = vadd.f32 %v8669_v9, %v9901_v11  ;;  %v10156_v0 = vld [vmem:[#allocation3 + $0x69] ss:$0 sm:$0xff] }
 0x42e   : > { %13828 = vst [vmem:[#allocation29_spill] sm:$0xff] %v10138_v53  ;;  %v5925_v40 = vmul.f32 %v5893_v6, %v5349_v26  ;;  %v5012_v13 = vadd.f32 %v5011_v15, %v5010_v58  ;;  %v6980_v47 = vmul.f32 %v9797_v16, %v6756_v56  ;;  %v6597_v26 = vsub.f32 1.0, %v6565_v48  ;;  %v10159_v61 = vld [vmem:[#allocation2 + $0x48] sm:$0xff] }
 0x42f   : > { %v5607_v37 = vrot.slane %v5606_v7, 4  ;;  %8363 = vset.pattern.permute.xlu0 %v13816_v14  ;;  %13829 = vst [vmem:[#allocation30_spill] sm:$0xff] %v10159_v61  ;;  %v10161_v6 = vpop.permute.xlu0 %3442  ;;  %v2430_v58 = vmul.f32 %v2398_v60, %v9802_v59  ;;  %v2374_v15 = vsub.f32 1.0, %v2342_v35  ;;  %v6725_v16 = vmul.f32 %v10052_v8, %v9964_v50  ;;  %v10168_v56 = vld [vmem:[#allocation2 + $0x28] sm:$0xff] }
 0x430   : > { %13830 = vst [vmem:[#allocation31_spill] sm:$0xff] %v10161_v6  ;;  %v6053_v12 = vadd.f32 %v6021_v20, %v5925_v40  ;;  %v5013_v22 = vrot.slane %v5012_v13, 2  ;;  %2643 = vperm.xlu0 %8363, %v10159_v61   ;;  %v5213_v11 = vsub.f32 1.0, %v5181_v3  ;;  %v3046_v20 = vmul.f32 %v10149_v34, %v9883_v32 }
 0x431   : > { %v5608_v9 = vadd.f32 %v5607_v37, %v5606_v7  ;;  %8339 = vset.pattern.permute.xlu1 %v13820_v21  ;;  %v3070_v60 = vmul.f32 %v10156_v0, %v9908_v41  ;;  %v1015_v8 = vmul.f32 0.5, %v999_v4  ;;  %v7012_v3 = vsel %vm534_vm0, %v6980_v47, 0.0 }
 0x432   : > { %v6277_v48 = vmul.f32 %v9964_v50, %v6053_v12  ;;  %v6629_v43 = vmul.f32 %v6597_v26, %v6053_v12  ;;  %v6828_v6 = vpop.permute.xlu1 %6827  ;;  %v5014_v35 = vadd.f32 %v5013_v22, %v5012_v13  ;;  %4735 = vperm.xlu1 %8339, %v10168_v56   ;;  %v8670_v22 = vld [vmem:[%s13545_s7] ss:$0 sm:$0xff]  ;;  %v2406_v4 = vmul.f32 %v2374_v15, %v9802_v59 }
 0x433   : > { %v5609_v7 = vrot.slane %v5608_v9, 2  ;;  %8601 = vtanh.f32 %v1015_v8  ;;  %v1102_v13 = vadd.f32 %v8670_v22, %v9955_v57  ;;  %v5245_v47 = vmul.f32 %v5213_v11, %v10081_v29  ;;  %v7189_v11 = vld [vmem:[#allocation15 + $0x8] sm:$0xff]  ;;  %v7190_v22 = vld [vmem:[#allocation15 + $0x10] sm:$0xff] }
 0x434   : > { %v6309_v40 = vsel %vm534_vm0, %v6277_v48, 0.0  ;;  %v6757_v37 = vadd.f32 %v6725_v16, %v6629_v43  ;;  %v5015_v53 = vrot.slane %v5014_v35, 1  ;;  %8366 = vset.pattern.permute.xlu0 %v13815_v30  ;;  %v10179_v26 = vpop.permute.xlu0 %4021  ;;  %v3102_v16 = vsub.f32 1.0, %v3070_v60 }
 0x435   : > { %v6310_v50 = vadd.f32 %v6309_v40, %v6308_v24  ;;  %13831 = vst [vmem:[#allocation32_spill] sm:$0xff] %v10179_v26  ;;  %v5610_v12 = vadd.f32 %v5609_v7, %v5608_v9  ;;  %3352 = vperm.xlu0 %8366, %v10107_v10   ;;  %v3078_v24 = vsub.f32 1.0, %v3046_v20  ;;  %v10191_v26 = vld [vmem:[#allocation3 + $0xa] ss:$0 sm:$0xff]  ;;  %v5341_v57 = vmul.f32 %v10025_v55, %v10066_v18 }
 0x436   : > { %v6981_v48 = vmul.f32 %v6828_v6, %v6757_v37  ;;  %v10188_v43 = vpop.permute.xlu1 %6832  ;;  %v5016_v40 = vadd.f32 %v5015_v53, %v5014_v35  ;;  %8342 = vset.pattern.permute.xlu1 %v13824_v42  ;;  %8603 = vtanh.f32 %v1102_v13  ;;  %v7188_v6 = vld [vmem:[#allocation15] sm:$0xff]  ;;  %v10199_v9 = vsel %vm534_vm0, %v10118_v44, 0.0  ;;  %v10203_v20 = vld [vmem:[#allocation3 + $0x6a] ss:$0 sm:$0xff]  ;;  %v7191_v13 = vld [vmem:[#allocation15 + $0x18] sm:$0xff] }
 0x437   : > { %13832 = vst [vmem:[#allocation33_spill] sm:$0xff] %v10188_v43  ;;  %v6311_v8 = vrot.slane %v6310_v50, 4  ;;  %v5611_v15 = vrot.slane %v5610_v12, 1  ;;  %5444 = vperm.xlu1 %8342, %v10105_v19   ;;  %v2053_v53 = vmul.f32 %v9833_v5, %v9802_v59  ;;  %v2534_v35 = vadd.f32 %v10147_v27, %v2406_v4  ;;  %v10213_v59 = vld [vmem:[#allocation4 + $0x9] ss:$0 sm:$0xff]  ;;  %v13837_v43 = vld [vmem:[#allocation20_spill] sm:$0xff] }
 0x438   : > { %v7013_v29 = vsel %vm534_vm0, %v6981_v48, 0.0  ;;  %5056 = vst.msk [vmem:[#allocation5 + $0x64] sm:$0x1] %vm2227_vm3, %v5016_v40  ;;  %v10206_v60 = vpop.permute.xlu0 %4141  ;;  %v2558_v7 = vadd.f32 %v10123_v38, %v2430_v58  ;;  %v10211_v44 = vadd.f32 %v5341_v57, %v5245_v47  ;;  %v10215_v5 = vld [vmem:[#allocation4 + $0x69] ss:$0 sm:$0xff]  ;;  %v8187_v38 = vpack.c.bf16 %v7189_v11, %v7188_v6 }
 0x439   : > { %v6312_v55 = vadd.f32 %v6311_v8, %v6310_v50  ;;  %v7014_v18 = vadd.f32 %v7013_v29, %v7012_v3  ;;  %v5612_v37 = vadd.f32 %v5611_v15, %v5610_v12  ;;  %8367 = vset.pattern.permute.xlu0 %v13817_v54  ;;  %v3750_v3 = vmul.f32 %v10191_v26, %v9935_v23  ;;  %v10229_v57 = vld [vmem:[#allocation4 + $0x6a] ss:$0 sm:$0xff] }
 0x43a   : > { %13833 = vst [vmem:[#allocation34_spill] sm:$0xff] %v10211_v44  ;;  %4051 = vperm.xlu0 %8367, %v10159_v61   ;;  %v3774_v58 = vmul.f32 %v10203_v20, %v9881_v28  ;;  %v3110_v4 = vmul.f32 %v3078_v24, %v2534_v35  ;;  %v3134_v47 = vmul.f32 %v3102_v16, %v2558_v7  ;;  %v13835_v12 = vmov 7  }
 0x43b   : > { %v6313_v50 = vrot.slane %v6312_v55, 2  ;;  %v7015_v48 = vrot.slane %v7014_v18, 4  ;;  %v10220_v27 = vpop.permute.xlu1 %5539  ;;  %5748 = vst.msk [vmem:[#allocation5 + $0x5] sm:$0x1] %vm2227_vm3, %v5612_v37  ;;  %8344 = vset.pattern.permute.xlu1 %v13835_v12  ;;  %v2092_v8 = vsel %vm534_vm0, %v2053_v53, 0.0  ;;  %8188 = vmatprep.subr.bf16.mxu0 %v8187_v38  ;;  %v8191_v6 = vpack.c.bf16 %v7191_v13, %v7190_v22 }
 0x43c   : > { %13834 = vst [vmem:[#allocation35_spill] sm:$0xff] %v10220_v27  ;;  %v5597_v40 = vmul.f32 %v10220_v27, %v10211_v44  ;;  %6847 = vperm.xlu1 %8344, %v10168_v56   ;;  %v2758_v24 = vmul.f32 %v9883_v32, %v2534_v35  ;;  %v3206_v16 = vmul.f32 %v10213_v59, %v9883_v32  ;;  %v3806_v35 = vsub.f32 1.0, %v3774_v58  ;;  %v10249_v58 = vld [vmem:[#allocation4 + $0xa] ss:$0 sm:$0xff] }
 0x43d   : > { %v6314_v15 = vadd.f32 %v6313_v50, %v6312_v55  ;;  %v7016_v29 = vadd.f32 %v7015_v48, %v7014_v18  ;;  %v3230_v11 = vmul.f32 %v10215_v5, %v9908_v41  ;;  %v10238_v44 = vpop.permute.xlu0 %4730  ;;  %8190 = vmatpush3.bf16.msra.mxu0 %v8187_v38  ;;  %v8602_v53 = vpop.eup %8601  ;;  %v3782_v55 = vsub.f32 1.0, %v3750_v3  ;;  %v10245_v38 = vld [vmem:[#allocation3 + $0xb] ss:$0 sm:$0xff] }
 0x43e   : > { %v5713_v37 = vsel %vm534_vm0, %v5597_v40, 0.0  ;;  %13836 = vst [vmem:[#allocation36_spill] sm:$0xff] %v10238_v44  ;;  %8370 = vset.pattern.permute.xlu0 %v13820_v21  ;;  %8192 = vmatprep.subr.bf16.mxu0 %v8191_v6  ;;  %v3934_v32 = vmul.f32 %v10229_v57, %v9881_v28  ;;  %v1047_v48 = vadd.f32 1.0, %v8602_v53  ;;  %v3238_v40 = vadd.f32 %v3206_v16, %v3110_v4  ;;  %v10269_v53 = vld [vmem:[#allocation3 + $0xe] ss:$0 sm:$0xff] }
 0x43f   : > { %v6315_v18 = vrot.slane %v6314_v15, 1  ;;  %v7017_v50 = vrot.slane %v7016_v29, 2  ;;  %v5714_v56 = vadd.f32 %v5713_v37, %v10098_v63  ;;  %v3262_v22 = vadd.f32 %v3230_v11, %v3134_v47  ;;  %4760 = vperm.xlu0 %8370, %v10107_v10   ;;  %13839 = vst [vmem:[#allocation20_spill] sm:$0xff] %v10269_v53 }
 0x440   : > { %v1909_v13 = vpop.permute.xlu1 %1908  ;;  %6852 = vperm.xlu1 %8344, %v10105_v19   ;;  %v8604_v63 = vpop.eup %8603  ;;  %v2782_v37 = vmul.f32 %v9908_v41, %v2558_v7  ;;  %v1063_v10 = vmul.f32 0.5, %v1047_v48  ;;  %v10254_v4 = vsel %vm534_vm0, %v2758_v24, 0.0  ;;  %v3814_v16 = vmul.f32 %v3782_v55, %v3238_v40 }
 0x441   : > { %v6316_v3 = vadd.f32 %v6315_v18, %v6314_v15  ;;  %v7018_v12 = vadd.f32 %v7017_v50, %v7016_v29  ;;  %v5715_v44 = vrot.slane %v5714_v56, 4  ;;  %v2054_v27 = vmul.f32 %v1909_v13, %v13837_v43  ;;  %8194 = vmatpush3.bf16.msra.mxu0 %v8191_v6  ;;  %1134 = vst.msk [vmem:[#allocation4 + $0x78] sm:$0xff] %vm534_vm0, %v8604_v63 }
 0x442   : > { %v2343_v47 = vmul.f32 %v10111_v51, %v1909_v13  ;;  %v4454_v41 = vmul.f32 %v10245_v38, %v9999_v45  ;;  %v3838_v19 = vmul.f32 %v3806_v35, %v3262_v22  ;;  %v10261_v51 = vpop.permute.xlu0 %5429  ;;  %v13838_v6 = vmov 6   ;;  %1079 = vst.msk [vmem:[#allocation3 + $0x78] sm:$0xff] %vm534_vm0, %v1063_v10  ;;  %v10297_v10 = vld [vmem:[#allocation2 + $0x60] sm:$0xff] }
 0x443   : > { %6452 = vst.msk [vmem:[#allocation5 + $0x6] sm:$0x1] %vm2227_vm3, %v6316_v3  ;;  %v7019_v15 = vrot.slane %v7018_v12, 1  ;;  %v5716_v29 = vadd.f32 %v5715_v44, %v5714_v56  ;;  %v2093_v7 = vsel %vm534_vm0, %v2054_v27, 0.0  ;;  %8372 = vset.pattern.permute.xlu0 %v13838_v6  ;;  %v3910_v44 = vmul.f32 %v10249_v58, %v9935_v23 }
 0x444   : > { %v2375_v11 = vsub.f32 1.0, %v2343_v47  ;;  %v10264_v24 = vpop.permute.xlu1 %1913  ;;  %v2094_v50 = vadd.f32 %v2093_v7, %v2092_v8  ;;  %6163 = vperm.xlu0 %8372, %v10159_v61   ;;  %8346 = vset.pattern.permute.xlu1 %v13820_v21  ;;  %v10274_v27 = vsel %vm534_vm0, %v2782_v37, 0.0  ;;  %v3462_v56 = vmul.f32 %v9935_v23, %v3238_v40  ;;  %v10282_v8 = vld [vmem:[#allocation4 + $0xe] ss:$0 sm:$0xff]  ;;  %v10326_v61 = vld [vmem:[#allocation2 + $0x58] sm:$0xff] }
 0x445   : > { %v7020_v55 = vadd.f32 %v7019_v15, %v7018_v12  ;;  %v5717_v18 = vrot.slane %v5716_v29, 2  ;;  %v2503_v48 = vmul.f32 %v10125_v1, %v1909_v13  ;;  %4860 = vperm.xlu1 %8346, %v10136_v62   ;;  %v3486_v3 = vmul.f32 %v9881_v28, %v3262_v22  ;;  %13840 = vst [vmem:[#allocation37_spill] sm:$0xff] %v10282_v8  ;;  %v10294_v28 = vld [vmem:[#allocation3 + $0x6b] ss:$0 sm:$0xff] }
 0x446   : > { %v2407_v35 = vmul.f32 %v2375_v11, %v13837_v43  ;;  %v3942_v12 = vadd.f32 %v3910_v44, %v3814_v16  ;;  %v2095_v47 = vrot.slane %v2094_v50, 4  ;;  %v10286_v37 = vmul.f32 %v10269_v53, %v9983_v17  ;;  %v10302_v16 = vld [vmem:[%s13542_s4 + $0x8] sm:$0xff] }
 0x447   : > { %7156 = vst.msk [vmem:[#allocation5 + $0x7] sm:$0x1] %vm2227_vm3, %v7020_v55  ;;  %v5718_v63 = vadd.f32 %v5717_v18, %v5716_v29  ;;  %v4486_v23 = vsub.f32 1.0, %v4454_v41  ;;  %v10288_v40 = vadd.f32 %v3934_v32, %v3838_v19  ;;  %v10292_v62 = vpop.permute.xlu0 %1923  ;;  %13842 = vst [vmem:[#allocation39_spill] sm:$0xff] %v10302_v16  ;;  %v10307_v29 = vsel %vm534_vm0, %v3462_v56, 0.0 }
 0x448   : > { %v10290_v43 = vadd.f32 %v2503_v48, %v2407_v35  ;;  %v2029_v1 = vpop.permute.xlu1 %2028  ;;  %13841 = vst [vmem:[#allocation38_spill] sm:$0xff] %v10292_v62  ;;  %v2096_v13 = vadd.f32 %v2095_v47, %v2094_v50  ;;  %8376 = vset.pattern.permute.xlu0 %v13826_v36  ;;  %v4166_v41 = vmul.f32 %v9999_v45, %v3942_v12  ;;  %v8014_v11 = vld [vmem:[#allocation3 + $0x6c] ss:$0 sm:$0xff]  ;;  %v10320_v50 = vld [vmem:[#allocation4 + $0xb] ss:$0 sm:$0xff] }
 0x449   : > { %v5719_v22 = vrot.slane %v5718_v63, 1  ;;  %v2078_v32 = vmul.f32 %v10302_v16, %v2029_v1  ;;  %v2367_v15 = vmul.f32 %v10077_v31, %v2029_v1  ;;  %v10312_v19 = vmul.f32 %v10282_v8, %v9983_v17  ;;  %1953 = vperm.xlu0 %8376, %v10297_v10   ;;  %8347 = vset.pattern.permute.xlu1 %v13826_v36 }
 0x44a   : > { %v2759_v7 = vmul.f32 %v10061_v52, %v10290_v43  ;;  %v2097_v55 = vrot.slane %v2096_v13, 2  ;;  %1928 = vperm.xlu1 %8347, %v9927_v46   ;;  %v4518_v56 = vmul.f32 %v4486_v23, %v3942_v12  ;;  %v4478_v35 = vmul.f32 %v10294_v28, %v10019_v2 }
 0x44b   : > { %v5720_v44 = vadd.f32 %v5719_v22, %v5718_v63  ;;  %v2201_v31 = vsel %vm534_vm0, %v2078_v32, 0.0  ;;  %v2399_v18 = vsub.f32 1.0, %v2367_v15  ;;  %v10328_v62 = vpop.permute.xlu0 %2043  ;;  %v2527_v12 = vmul.f32 %v10100_v25, %v2029_v1  ;;  %v10353_v15 = vld [vmem:[#allocation3 + $0xc] ss:$0 sm:$0xff] }
 0x44c   : > { %v2798_v48 = vsel %vm534_vm0, %v2759_v7, 0.0  ;;  %v2202_v47 = vadd.f32 %v2201_v31, %v10199_v9  ;;  %13843 = vst [vmem:[#allocation40_spill] sm:$0xff] %v10328_v62  ;;  %v2098_v63 = vadd.f32 %v2097_v55, %v2096_v13  ;;  %v10338_v7 = vmul.f32 %v8014_v11, %v10015_v33  ;;  %v8030_v13 = vld [vmem:[#allocation4 + $0x6c] ss:$0 sm:$0xff] }
 0x44d   : > { %5760 = vst.msk [vmem:[#allocation5 + $0x65] sm:$0x1] %vm2227_vm3, %v5720_v44  ;;  %v2799_v22 = vadd.f32 %v2798_v48, %v10254_v4  ;;  %v2431_v32 = vmul.f32 %v10302_v16, %v2399_v18  ;;  %v10334_v23 = vpop.permute.xlu1 %2618  ;;  %8377 = vset.pattern.permute.xlu0 %v13816_v14  ;;  %v10342_v44 = vsel %vm534_vm0, %v3486_v3, 0.0  ;;  %v4614_v4 = vmul.f32 %v10320_v50, %v9999_v45  ;;  %v13846_v18 = vld [vmem:[#allocation21_spill] sm:$0xff] }
 0x44e   : > { %13844 = vst [vmem:[#allocation41_spill] sm:$0xff] %v10334_v23  ;;  %13845 = vst [vmem:[#allocation42_spill] sm:$0xff] %v10338_v7  ;;  %v2203_v9 = vrot.slane %v2202_v47, 4  ;;  %v7172_v31 = vld [vmem:[#allocation5] sm:$0xff]  ;;  %v2099_v55 = vrot.slane %v2098_v63, 1  ;;  %2653 = vperm.xlu0 %8377, %v10326_v61   ;;  %2048 = vperm.xlu1 %8347, %v13846_v18   ;;  %v10351_v11 = vsel %vm534_vm0, %v4166_v41, 0.0  ;;  %v3047_v3 = vmul.f32 %v10149_v34, %v10061_v52 }
 0x44f   : > { %v2800_v25 = vrot.slane %v2799_v22, 4  ;;  %v10346_v1 = vadd.f32 %v2527_v12, %v2431_v32  ;;  %v4510_v48 = vsub.f32 1.0, %v4478_v35  ;;  %8147 = vmatprep.mubr.msk.f32.mxu0 %vm534_vm0, %v7172_v31  ;;  %v10358_v45 = vld [vmem:[#allocation4 + $0x6b] ss:$0 sm:$0xff]  ;;  %v4646_v32 = vadd.f32 %v4614_v4, %v4518_v56  ;;  %v13851_v31 = vld [vmem:[#allocation23_spill] sm:$0xff] }
 0x450   : > { %v2204_v16 = vadd.f32 %v2203_v9, %v2202_v47  ;;  %13847 = vst [vmem:[#allocation21_spill] sm:$0xff] %v10358_v45  ;;  %v2100_v12 = vadd.f32 %v2099_v55, %v2098_v63  ;;  %v10362_v53 = vpop.permute.xlu0 %2623  ;;  %v10366_v35 = vmul.f32 %v8030_v13, %v10015_v33  ;;  %v4190_v34 = vmul.f32 %v10019_v2, %v10288_v40  ;;  %v10382_v55 = vld [vmem:[#allocation4 + $0xc] ss:$0 sm:$0xff]  ;;  %v10403_v23 = vld [vmem:[#allocation3 + $0xd] ss:$0 sm:$0xff] }
 0x451   : > { %v2801_v62 = vadd.f32 %v2800_v25, %v2799_v22  ;;  %v2783_v8 = vmul.f32 %v10088_v39, %v10346_v1  ;;  %13848 = vst [vmem:[#allocation43_spill] sm:$0xff] %v10362_v53  ;;  %v10370_v9 = vpop.permute.xlu1 %2738  ;;  %v5158_v56 = vmul.f32 %v10353_v15, %v13851_v31  ;;  %v3071_v63 = vmul.f32 %v10156_v0, %v10088_v39 }
 0x452   : > { %13849 = vst [vmem:[#allocation44_spill] sm:$0xff] %v10366_v35  ;;  %v2205_v47 = vrot.slane %v2204_v16, 2  ;;  %13850 = vst [vmem:[#allocation45_spill] sm:$0xff] %v10370_v9  ;;  %8380 = vset.pattern.permute.xlu0 %v13815_v30  ;;  %8350 = vset.pattern.permute.xlu1 %v13816_v14  ;;  %v4638_v13 = vmul.f32 %v10358_v45, %v10019_v2  ;;  %v3079_v25 = vsub.f32 1.0, %v3047_v3  ;;  %v13852_v35 = vld [vmem:[#allocation22_spill] sm:$0xff] }
 0x453   : > { %2229 = vst.msk [vmem:[#allocation5 + $0x8] sm:$0x1] %vm2227_vm3, %v2100_v12  ;;  %v2802_v22 = vrot.slane %v2801_v62, 2  ;;  %v2906_v4 = vsel %vm534_vm0, %v2783_v8, 0.0  ;;  %3362 = vperm.xlu0 %8380, %v10297_v10   ;;  %v4542_v0 = vmul.f32 %v4510_v48, %v10288_v40  ;;  %v4870_v12 = vmul.f32 %v13851_v31, %v4646_v32  ;;  %v10391_v8 = vld [vmem:[%s13542_s4] sm:$0xff]  ;;  %2638 = vperm.xlu1 %8350, %v9893_v49  }
 0x454   : > { %v2206_v41 = vadd.f32 %v2205_v47, %v2204_v16  ;;  %v2907_v53 = vadd.f32 %v2906_v4, %v10274_v27  ;;  %v2079_v2 = vmul.f32 %v10391_v8, %v13852_v35  ;;  %v10396_v16 = vpop.permute.xlu0 %2743  ;;  %v3207_v27 = vmul.f32 %v10213_v59, %v10061_v52 }
 0x455   : > { %v2803_v7 = vadd.f32 %v2802_v22, %v2801_v62  ;;  %v3111_v48 = vmul.f32 %v3079_v25, %v10290_v43  ;;  %v5190_v47 = vsub.f32 1.0, %v5158_v56  ;;  %v5318_v4 = vmul.f32 %v10382_v55, %v13851_v31 }
 0x456   : > { %v2207_v3 = vrot.slane %v2206_v41, 1  ;;  %v2908_v40 = vrot.slane %v2907_v53, 4  ;;  %v3103_v9 = vsub.f32 1.0, %v3071_v63  ;;  %v3318_v14 = vpop.permute.xlu1 %3317  ;;  %v10408_v59 = vsel %vm534_vm0, %v4190_v34, 0.0 }
 0x457   : > { %v2804_v45 = vrot.slane %v2803_v7, 1  ;;  %8381 = vset.pattern.permute.xlu0 %v13817_v54  ;;  %v3239_v22 = vadd.f32 %v3207_v27, %v3111_v48  ;;  %v3751_v52 = vmul.f32 %v10191_v26, %v3318_v14  ;;  %v10410_v43 = vadd.f32 %v4638_v13, %v4542_v0  ;;  %8351 = vset.pattern.permute.xlu1 %v13815_v30  ;;  %v10428_v27 = vld [vmem:[#allocation3 + $0x70] ss:$0 sm:$0xff] }
 0x458   : > { %v2208_v62 = vadd.f32 %v2207_v3, %v2206_v41  ;;  %v2909_v49 = vadd.f32 %v2908_v40, %v2907_v53  ;;  %v3231_v31 = vmul.f32 %v10215_v5, %v10088_v39  ;;  %4061 = vperm.xlu0 %8381, %v10326_v61   ;;  %3337 = vperm.xlu1 %8351, %v9927_v46   ;;  %v10422_v25 = vsel %vm534_vm0, %v2079_v2, 0.0  ;;  %v13855_v39 = vld [vmem:[#allocation29_spill] sm:$0xff] }
 0x459   : > { %v2805_v56 = vadd.f32 %v2804_v45, %v2803_v7  ;;  %v3463_v41 = vmul.f32 %v3318_v14, %v3239_v22  ;;  %v3783_v63 = vsub.f32 1.0, %v3751_v52  ;;  %v3135_v26 = vmul.f32 %v3103_v9, %v10346_v1  ;;  %v10419_v34 = vpop.permute.xlu0 %3332  ;;  %13854 = vst [vmem:[#allocation22_spill] sm:$0xff] %v10422_v25  ;;  %13856 = vst [vmem:[#allocation29_spill] sm:$0xff] %v10428_v27 }
 0x45a   : > { %2241 = vst.msk [vmem:[#allocation5 + $0x68] sm:$0x1] %vm2227_vm3, %v2208_v62  ;;  %v2910_v53 = vrot.slane %v2909_v49, 2  ;;  %13853 = vst [vmem:[#allocation23_spill] sm:$0xff] %v10419_v34  ;;  %v5222_v13 = vmul.f32 %v5190_v47, %v4646_v32  ;;  %v5862_v5 = vmul.f32 %v10403_v23, %v13855_v39  ;;  %v3911_v7 = vmul.f32 %v10249_v58, %v3318_v14  ;;  %v3438_v45 = vpop.permute.xlu1 %3437  ;;  %v13857_v14 = vld [vmem:[#allocation32_spill] sm:$0xff] }
 0x45b   : > { %2933 = vst.msk [vmem:[#allocation5 + $0x9] sm:$0x1] %vm2227_vm3, %v2805_v56  ;;  %v3502_v46 = vsel %vm534_vm0, %v3463_v41, 0.0  ;;  %v3815_v1 = vmul.f32 %v3783_v63, %v3239_v22  ;;  %v3263_v9 = vadd.f32 %v3231_v31, %v3135_v26  ;;  %v10433_v32 = vmul.f32 %v10015_v33, %v10410_v43  ;;  %v10459_v41 = vld [vmem:[#allocation4 + $0x12] ss:$0 sm:$0xff] }
 0x45c   : > { %v2911_v0 = vadd.f32 %v2910_v53, %v2909_v49  ;;  %v10436_v2 = vsel %vm534_vm0, %v4870_v12, 0.0  ;;  %v3503_v3 = vadd.f32 %v3502_v46, %v10307_v29  ;;  %v3775_v40 = vmul.f32 %v10203_v20, %v3438_v45  ;;  %8384 = vset.pattern.permute.xlu0 %v13820_v21  ;;  %3457 = vperm.xlu1 %8351, %v13846_v18   ;;  %v10447_v49 = vld [vmem:[#allocation3 + $0x12] ss:$0 sm:$0xff]  ;;  %v10449_v29 = vld [vmem:[#allocation4 + $0x70] ss:$0 sm:$0xff] }
 0x45d   : > { %v4455_v58 = vmul.f32 %v10245_v38, %v13857_v14  ;;  %v3943_v47 = vadd.f32 %v3911_v7, %v3815_v1  ;;  %v3487_v62 = vmul.f32 %v3438_v45, %v3263_v9  ;;  %4770 = vperm.xlu0 %8384, %v10297_v10   ;;  %v10445_v33 = vpop.permute.xlu0 %3452  ;;  %v5350_v12 = vadd.f32 %v5318_v4, %v5222_v13  ;;  %v13862_v7 = vld [vmem:[#allocation28_spill] sm:$0xff] }
 0x45e   : > { %v2912_v48 = vrot.slane %v2911_v0, 1  ;;  %13858 = vst [vmem:[#allocation32_spill] sm:$0xff] %v10445_v33  ;;  %13859 = vst [vmem:[#allocation46_spill] sm:$0xff] %v10447_v49  ;;  %v10453_v20 = vmul.f32 %v10428_v27, %v13852_v35  ;;  %v3504_v22 = vrot.slane %v3503_v3, 4  ;;  %v3807_v38 = vsub.f32 1.0, %v3775_v40 }
 0x45f   : > { %13860 = vst [vmem:[#allocation47_spill] sm:$0xff] %v10449_v29  ;;  %v5894_v52 = vsub.f32 1.0, %v5862_v5  ;;  %v4167_v56 = vmul.f32 %v13857_v14, %v3943_v47  ;;  %v3610_v53 = vsel %vm534_vm0, %v3487_v62, 0.0  ;;  %v10457_v18 = vpop.permute.xlu1 %4026  ;;  %13861 = vst [vmem:[#allocation48_spill] sm:$0xff] %v10459_v41  ;;  %v3935_v13 = vmul.f32 %v10229_v57, %v3438_v45  ;;  %v10477_v57 = vld [vmem:[#allocation4 + $0xd] ss:$0 sm:$0xff] }
 0x460   : > { %v2913_v31 = vadd.f32 %v2912_v48, %v2911_v0  ;;  %v3505_v4 = vadd.f32 %v3504_v22, %v3503_v3  ;;  %v3611_v63 = vadd.f32 %v3610_v53, %v10342_v44  ;;  %v3839_v26 = vmul.f32 %v3807_v38, %v3263_v9  ;;  %8354 = vset.pattern.permute.xlu1 %v13817_v54  ;;  %v10475_v44 = vld [vmem:[#allocation2 + $0x40] sm:$0xff] }
 0x461   : > { %v10465_v46 = vmul.f32 %v10447_v49, %v13862_v7  ;;  %v4487_v5 = vsub.f32 1.0, %v4455_v58  ;;  %v10470_v0 = vmul.f32 %v10449_v29, %v13852_v35  ;;  %v4206_v1 = vsel %vm534_vm0, %v4167_v56, 0.0  ;;  %8386 = vset.pattern.permute.xlu0 %v13824_v42  ;;  %4046 = vperm.xlu1 %8354, %v10475_v44  }
 0x462   : > { %2945 = vst.msk [vmem:[#allocation5 + $0x69] sm:$0x1] %vm2227_vm3, %v2913_v31  ;;  %v3506_v45 = vrot.slane %v3505_v4, 2  ;;  %v4207_v9 = vadd.f32 %v4206_v1, %v10351_v11  ;;  %v3612_v3 = vrot.slane %v3611_v63, 4  ;;  %v10480_v40 = vadd.f32 %v3935_v13, %v3839_v26  ;;  %5474 = vperm.xlu0 %8386, %v10297_v10   ;;  %v10484_v35 = vpop.permute.xlu0 %4031  ;;  %v10493_v11 = vld [vmem:[#allocation3 + $0x72] ss:$0 sm:$0xff] }
 0x463   : > { %13863 = vst [vmem:[#allocation28_spill] sm:$0xff] %v10484_v35  ;;  %v5574_v58 = vmul.f32 %v13855_v39, %v5350_v12  ;;  %v5926_v48 = vmul.f32 %v5894_v52, %v5350_v12  ;;  %v10489_v62 = vmul.f32 %v10459_v41, %v13862_v7  ;;  %v10491_v22 = vpop.permute.xlu1 %4146  ;;  %v4519_v38 = vmul.f32 %v4487_v5, %v3943_v47 }
 0x464   : > { %13864 = vst [vmem:[#allocation49_spill] sm:$0xff] %v10493_v11  ;;  %v3507_v31 = vadd.f32 %v3506_v45, %v3505_v4  ;;  %v4208_v56 = vrot.slane %v4207_v9, 4  ;;  %v3613_v53 = vadd.f32 %v3612_v3, %v3611_v63  ;;  %v4191_v10 = vmul.f32 %v10206_v60, %v10480_v40  ;;  %v10504_v45 = vld [vmem:[#allocation4 + $0x72] ss:$0 sm:$0xff]  ;;  %v10508_v63 = vld [vmem:[#allocation2 + $0x38] sm:$0xff] }
 0x465   : > { %v6022_v26 = vmul.f32 %v10477_v57, %v13855_v39  ;;  %v4615_v52 = vmul.f32 %v10320_v50, %v13857_v14  ;;  %v2400_v13 = vsub.f32 1.0, %v10453_v20  ;;  %13865 = vst [vmem:[#allocation50_spill] sm:$0xff] %v10504_v45  ;;  %8355 = vset.pattern.permute.xlu1 %v13820_v21  ;;  %v10513_v3 = vsel %vm534_vm0, %v5574_v58, 0.0  ;;  %v13867_v50 = vld [vmem:[#allocation31_spill] sm:$0xff] }
 0x466   : > { %v3508_v1 = vrot.slane %v3507_v31, 1  ;;  %v4209_v47 = vadd.f32 %v4208_v56, %v4207_v9  ;;  %v3614_v5 = vrot.slane %v3613_v53, 2  ;;  %v4314_v4 = vsel %vm534_vm0, %v4191_v10, 0.0  ;;  %8387 = vset.pattern.permute.xlu0 %v13838_v6  ;;  %v10510_v39 = vpop.permute.xlu0 %4151  ;;  %v10519_v9 = vld [vmem:[#allocation3 + $0x10] ss:$0 sm:$0xff]  ;;  %4745 = vperm.xlu1 %8355, %v10508_v63  }
 0x467   : > { %13866 = vst [vmem:[#allocation51_spill] sm:$0xff] %v10510_v39  ;;  %v10517_v14 = vmul.f32 %v10493_v11, %v13867_v50  ;;  %v6054_v20 = vadd.f32 %v6022_v26, %v5926_v48  ;;  %13868 = vst [vmem:[#allocation31_spill] sm:$0xff] %v10519_v9  ;;  %v4315_v56 = vadd.f32 %v4314_v4, %v10408_v59  ;;  %6173 = vperm.xlu0 %8387, %v10326_v61   ;;  %v10530_v26 = vld [vmem:[#allocation2 + $0x70] sm:$0xff]  ;;  %v13879_v39 = vld [vmem:[#allocation20_spill] sm:$0xff] }
 0x468   : > { %v3509_v10 = vadd.f32 %v3508_v1, %v3507_v31  ;;  %v4210_v12 = vrot.slane %v4209_v47, 2  ;;  %v3615_v33 = vadd.f32 %v3614_v5, %v3613_v53  ;;  %v4647_v41 = vadd.f32 %v4615_v52, %v4519_v38  ;;  %v4726_v49 = vpop.permute.xlu1 %4725 }
 0x469   : > { %v2432_v58 = vmul.f32 %v10391_v8, %v2400_v13  ;;  %v4316_v29 = vrot.slane %v4315_v56, 4  ;;  %v10527_v11 = vmul.f32 %v10504_v45, %v13867_v50  ;;  %v5159_v48 = vmul.f32 %v10353_v15, %v4726_v49 }
 0x46a   : > { %v2344_v61 = vmul.f32 %v10519_v9, %v10264_v24  ;;  %3637 = vst.msk [vmem:[#allocation5 + $0xa] sm:$0x1] %vm2227_vm3, %v3509_v10  ;;  %v4211_v59 = vadd.f32 %v4210_v12, %v4209_v47  ;;  %v3616_v31 = vrot.slane %v3615_v33, 1  ;;  %v4871_v38 = vmul.f32 %v4726_v49, %v4647_v41  ;;  %8357 = vset.pattern.permute.xlu1 %v13824_v42 }
 0x46b   : > { %v6278_v53 = vmul.f32 %v9983_v17, %v6054_v20  ;;  %v13869_v52 = vsub.f32 1.0, %v10286_v37  ;;  %v4317_v1 = vadd.f32 %v4316_v29, %v4315_v56  ;;  %v5191_v5 = vsub.f32 1.0, %v5159_v48  ;;  %8391 = vset.pattern.permute.xlu0 %v13826_v36  ;;  %v10540_v15 = vpop.permute.xlu0 %4740  ;;  %5449 = vperm.xlu1 %8357, %v10508_v63   ;;  %v10547_v17 = vld [vmem:[#allocation3 + $0x11] ss:$0 sm:$0xff] }
 0x46c   : > { %13870 = vst [vmem:[#allocation52_spill] sm:$0xff] %v10540_v15  ;;  %v5863_v4 = vmul.f32 %v10403_v23, %v10261_v51  ;;  %v4212_v10 = vrot.slane %v4211_v59, 1  ;;  %v3617_v12 = vadd.f32 %v3616_v31, %v3615_v33  ;;  %v4910_v47 = vsel %vm534_vm0, %v4871_v38, 0.0  ;;  %1963 = vperm.xlu0 %8391, %v10530_v26  }
 0x46d   : > { %v6630_v13 = vmul.f32 %v13869_v52, %v6054_v20  ;;  %v4318_v37 = vrot.slane %v4317_v1, 2  ;;  %v4911_v29 = vadd.f32 %v4910_v47, %v10436_v2  ;;  %v5223_v20 = vmul.f32 %v5191_v5, %v4647_v41  ;;  %v10551_v48 = vpop.permute.xlu1 %5434  ;;  %v13873_v41 = vld [vmem:[#allocation41_spill] sm:$0xff] }
 0x46e   : > { %v5319_v56 = vmul.f32 %v10382_v55, %v4726_v49  ;;  %13871 = vst [vmem:[#allocation53_spill] sm:$0xff] %v10551_v48  ;;  %v2376_v52 = vsub.f32 1.0, %v2344_v61  ;;  %v10555_v33 = vadd.f32 %v10470_v0, %v2432_v58  ;;  %v4213_v31 = vadd.f32 %v4212_v10, %v4211_v59  ;;  %3649 = vst.msk [vmem:[#allocation5 + $0x6a] sm:$0x1] %vm2227_vm3, %v3617_v12  ;;  %v10563_v49 = vld [vmem:[#allocation4 + $0x10] ss:$0 sm:$0xff] }
 0x46f   : > { %v6758_v38 = vadd.f32 %v10312_v19, %v6630_v13  ;;  %v4319_v45 = vadd.f32 %v4318_v37, %v4317_v1  ;;  %v4912_v15 = vrot.slane %v4911_v29, 4  ;;  %v10561_v2 = vmul.f32 %v10294_v28, %v10206_v60  ;;  %13872 = vst [vmem:[#allocation54_spill] sm:$0xff] %v10563_v49  ;;  %8359 = vset.pattern.permute.xlu1 %v13838_v6  ;;  %v10570_v19 = vld [vmem:[#allocation2 + $0x68] sm:$0xff]  ;;  %v13877_v10 = vld [vmem:[#allocation35_spill] sm:$0xff] }
 0x470   : > { %v5351_v25 = vadd.f32 %v5319_v56, %v5223_v20  ;;  %v5895_v55 = vsub.f32 1.0, %v5863_v4  ;;  %v3048_v61 = vmul.f32 %v10547_v17, %v13873_v41  ;;  %4341 = vst.msk [vmem:[#allocation5 + $0xb] sm:$0x1] %vm2227_vm3, %v4213_v31  ;;  %v13874_v0 = vmov 1   ;;  %v10573_v59 = vpop.permute.xlu0 %5439  ;;  %v13876_v28 = vld [vmem:[#allocation21_spill] sm:$0xff]  ;;  %6153 = vperm.xlu1 %8359, %v10508_v63  }
 0x471   : > { %8392 = vset.pattern.permute.xlu0 %v13874_v0  ;;  %v6317_v58 = vsel %vm534_vm0, %v6278_v53, 0.0  ;;  %13875 = vst [vmem:[#allocation41_spill] sm:$0xff] %v10573_v59  ;;  %v10577_v13 = vmul.f32 %v13876_v28, %v10206_v60  ;;  %v4320_v1 = vrot.slane %v4319_v45, 1  ;;  %v4913_v5 = vadd.f32 %v4912_v15, %v4911_v29  ;;  %v13878_v12 = vld [vmem:[#allocation25_spill] sm:$0xff]  ;;  %v10589_v20 = vld [vmem:[#allocation3 + $0x71] ss:$0 sm:$0xff] }
 0x472   : > { %v5575_v4 = vmul.f32 %v10261_v51, %v5351_v25  ;;  %2663 = vperm.xlu0 %8392, %v10570_v19   ;;  %v10584_v47 = vmul.f32 %v13878_v12, %v13877_v10  ;;  %v6023_v53 = vmul.f32 %v10477_v57, %v10261_v51  ;;  %v2408_v37 = vmul.f32 %v10391_v8, %v2376_v52  ;;  %v6134_v56 = vpop.permute.xlu1 %6133  ;;  %v13880_v51 = vld [vmem:[#allocation33_spill] sm:$0xff] }
 0x473   : > { %v5927_v60 = vmul.f32 %v5895_v55, %v5351_v25  ;;  %v2504_v15 = vmul.f32 %v10563_v49, %v10264_v24  ;;  %v4321_v29 = vadd.f32 %v4320_v1, %v4319_v45  ;;  %v4914_v31 = vrot.slane %v4913_v5, 2  ;;  %v13881_v52 = vld [vmem:[#allocation45_spill] sm:$0xff]  ;;  %v10608_v55 = vld [vmem:[#allocation3 + $0x14] ss:$0 sm:$0xff] }
 0x474   : > { %v5614_v28 = vsel %vm534_vm0, %v5575_v4, 0.0  ;;  %v3080_v23 = vsub.f32 1.0, %v3048_v61  ;;  %v6567_v27 = vmul.f32 %v13879_v39, %v6134_v56  ;;  %v6982_v57 = vmul.f32 %v13880_v51, %v6758_v38  ;;  %6158 = vperm.xlu1 %8359, %v10475_v44   ;;  %13883 = vst [vmem:[#allocation35_spill] sm:$0xff] %v10608_v55 }
 0x475   : > { %v5615_v12 = vadd.f32 %v5614_v28, %v10513_v3  ;;  %v6055_v59 = vadd.f32 %v6023_v53, %v5927_v60  ;;  %v3072_v35 = vmul.f32 %v10589_v20, %v13881_v52  ;;  %4353 = vst.msk [vmem:[#allocation5 + $0x6b] sm:$0x1] %vm2227_vm3, %v4321_v29  ;;  %v4915_v25 = vadd.f32 %v4914_v31, %v4913_v5  ;;  %v10602_v45 = vpop.permute.xlu0 %6143  ;;  %v10617_v60 = vld [vmem:[#allocation4 + $0x11] ss:$0 sm:$0xff] }
 0x476   : > { %8395 = vset.pattern.permute.xlu0 %v13815_v30  ;;  %13882 = vst [vmem:[#allocation21_spill] sm:$0xff] %v10602_v45  ;;  %v10606_v3 = vsel %vm534_vm0, %v10433_v32, 0.0  ;;  %v10610_v39 = vadd.f32 %v2504_v15, %v2408_v37  ;;  %v6599_v1 = vsub.f32 1.0, %v6567_v27  ;;  %v10613_v5 = vpop.permute.xlu1 %6138  ;;  %v4511_v4 = vsub.f32 1.0, %v10561_v2  ;;  %v13885_v32 = vld [vmem:[#allocation42_spill] sm:$0xff] }
 0x477   : > { %v5616_v38 = vrot.slane %v5615_v12, 4  ;;  %v6279_v61 = vmul.f32 %v6134_v56, %v6055_v59  ;;  %3372 = vperm.xlu0 %8395, %v10530_v26   ;;  %13884 = vst [vmem:[#allocation25_spill] sm:$0xff] %v10613_v5  ;;  %v5917_v53 = vsub.f32 1.0, %v10584_v47  ;;  %v4916_v29 = vrot.slane %v4915_v25, 1  ;;  %v10622_v37 = vld [vmem:[#allocation4 + $0x14] ss:$0 sm:$0xff] }
 0x478   : > { %v13886_v31 = vsub.f32 1.0, %v13885_v32  ;;  %13887 = vst [vmem:[#allocation20_spill] sm:$0xff] %v10622_v37  ;;  %v3112_v15 = vmul.f32 %v3080_v23, %v10610_v39  ;;  %v6631_v45 = vmul.f32 %v6599_v1, %v6055_v59  ;;  %v13888_v5 = vld [vmem:[#allocation36_spill] sm:$0xff]  ;;  %v3104_v47 = vsub.f32 1.0, %v3072_v35  ;;  %v13891_v59 = vld [vmem:[#allocation37_spill] sm:$0xff] }
 0x479   : > { %v5617_v27 = vadd.f32 %v5616_v38, %v5615_v12  ;;  %v6318_v51 = vsel %vm534_vm0, %v6279_v61, 0.0  ;;  %v10628_v2 = vmul.f32 %v10608_v55, %v13888_v5  ;;  %v4917_v49 = vadd.f32 %v4916_v29, %v4915_v25  ;;  %v10631_v30 = vpop.permute.xlu0 %6148  ;;  %v10644_v25 = vld [vmem:[#allocation3 + $0x18] ss:$0 sm:$0xff]  ;;  %v13894_v1 = vld [vmem:[#allocation24_spill] sm:$0xff]  ;;  %v13895_v29 = vld [vmem:[#allocation26_spill] sm:$0xff] }
 0x47a   : > { %v5246_v28 = vmul.f32 %v13886_v31, %v10410_v43  ;;  %v6319_v9 = vadd.f32 %v6318_v51, %v6317_v58  ;;  %v13889_v48 = vmov 7   ;;  %13890 = vst [vmem:[#allocation33_spill] sm:$0xff] %v10631_v30  ;;  %v8673_v43 = vld [vmem:[#allocation4 + $0x65] ss:$0 sm:$0xff]  ;;  %v3208_v23 = vmul.f32 %v10617_v60, %v13873_v41  ;;  %13893 = vst [vmem:[#allocation42_spill] sm:$0xff] %v10644_v25 }
 0x47b   : > { %8360 = vset.pattern.permute.xlu1 %v13889_v48  ;;  %v6045_v32 = vmul.f32 %v8673_v43, %v13877_v10  ;;  %v5618_v12 = vrot.slane %v5617_v27, 2  ;;  %8396 = vset.pattern.permute.xlu0 %v13817_v54  ;;  %v6727_v38 = vmul.f32 %v13891_v59, %v6134_v56  ;;  %v7021_v35 = vsel %vm534_vm0, %v6982_v57, 0.0  ;;  %5045 = vst.msk [vmem:[#allocation5 + $0xc] sm:$0x1] %vm2227_vm3, %v4917_v49  ;;  %v6838_v61 = vpop.permute.xlu1 %6837  ;;  %v10653_v56 = vld [vmem:[#allocation4 + $0x71] ss:$0 sm:$0xff] }
 0x47c   : > { %6857 = vperm.xlu1 %8360, %v10508_v63   ;;  %v10642_v58 = vmul.f32 %v10622_v37, %v13888_v5  ;;  %v6320_v10 = vrot.slane %v6319_v9, 4  ;;  %4071 = vperm.xlu0 %8396, %v10570_v19   ;;  %v13896_v31 = vsub.f32 1.0, %v13895_v29  ;;  %v10651_v51 = vadd.f32 %v3208_v23, %v3112_v15  ;;  %v10655_v57 = vld [vmem:[#allocation3 + $0x13] ss:$0 sm:$0xff]  ;;  %v13897_v37 = vld [vmem:[#allocation44_spill] sm:$0xff] }
 0x47d   : > { %v5619_v43 = vadd.f32 %v5618_v12, %v5617_v27  ;;  %v6759_v59 = vadd.f32 %v6727_v38, %v6631_v45  ;;  %v10658_v55 = vadd.f32 %v13897_v37, %v5246_v28  ;;  %v3136_v48 = vmul.f32 %v3104_v47, %v10555_v33  ;;  %v13900_v23 = vld [vmem:[#allocation38_spill] sm:$0xff] }
 0x47e   : > { %13892 = vst [vmem:[#allocation45_spill] sm:$0xff] %v10642_v58  ;;  %v5948_v63 = vmul.f32 %v13896_v31, %v13894_v1  ;;  %v6321_v30 = vadd.f32 %v6320_v10, %v6319_v9  ;;  %v13899_v58 = vld [vmem:[#allocation34_spill] sm:$0xff]  ;;  %v2055_v15 = vmul.f32 %v10391_v8, %v10264_v24  ;;  %v2346_v1 = vmul.f32 %v10644_v25, %v13900_v23  ;;  %v10668_v45 = vpop.permute.xlu0 %4855 }
 0x47f   : > { %13898 = vst [vmem:[#allocation36_spill] sm:$0xff] %v10658_v55  ;;  %v5949_v54 = vmul.f32 %v5917_v53, %v13899_v58  ;;  %v5620_v29 = vrot.slane %v5619_v43, 1  ;;  %v6983_v31 = vmul.f32 %v6838_v61, %v6759_v59  ;;  %13901 = vst [vmem:[#allocation37_spill] sm:$0xff] %v10668_v45  ;;  %v3232_v28 = vmul.f32 %v10653_v56, %v13881_v52  ;;  %v10675_v53 = vpop.permute.xlu1 %6842  ;;  %v10817_v55 = vld [vmem:[#allocation2 + $0x80] sm:$0xff] }
 0x480   : > { %6862 = vperm.xlu1 %8360, %v10475_v44   ;;  %v4456_v9 = vmul.f32 %v10655_v57, %v10457_v18  ;;  %v6322_v37 = vrot.slane %v6321_v30, 2  ;;  %8399 = vset.pattern.permute.xlu0 %v13820_v21  ;;  %v4543_v24 = vmul.f32 %v4511_v4, %v10480_v40  ;;  %v2057_v27 = vmul.f32 %v10391_v8, %v13900_v23 }
 0x481   : > { %v13902_v44 = vsub.f32 1.0, %v10465_v46  ;;  %v5621_v12 = vadd.f32 %v5620_v29, %v5619_v43  ;;  %v7022_v38 = vsel %vm534_vm0, %v6983_v31, 0.0  ;;  %4780 = vperm.xlu0 %8399, %v10530_v26   ;;  %v10685_v58 = vadd.f32 %v3232_v28, %v3136_v48  ;;  %v13904_v46 = vld [vmem:[#allocation27_spill] sm:$0xff] }
 0x482   : > { %v6323_v10 = vadd.f32 %v6322_v37, %v6321_v30  ;;  %v7023_v61 = vadd.f32 %v7022_v38, %v7021_v35  ;;  %v10687_v59 = vadd.f32 %v6045_v32, %v5949_v54  ;;  %v2760_v40 = vmul.f32 %v13873_v41, %v10610_v39  ;;  %v10698_v48 = vld [vmem:[#allocation4 + $0x18] ss:$0 sm:$0xff]  ;;  %v13907_v32 = vld [vmem:[#allocation30_spill] sm:$0xff] }
 0x483   : > { %v3816_v47 = vmul.f32 %v13902_v44, %v10651_v51  ;;  %v2378_v4 = vsub.f32 1.0, %v2346_v1  ;;  %v2784_v49 = vmul.f32 %v13881_v52, %v10555_v33  ;;  %5749 = vst.msk [vmem:[#allocation5 + $0xd] sm:$0x1] %vm2227_vm3, %v5621_v12  ;;  %v10696_v43 = vadd.f32 %v13904_v46, %v5948_v63  ;;  %13906 = vst [vmem:[#allocation44_spill] sm:$0xff] %v10698_v48  ;;  %v13910_v52 = vld [vmem:[#allocation40_spill] sm:$0xff]  ;;  %v10716_v31 = vpop.permute.xlu0 %1933  ;;  %v13915_v38 = vld [vmem:[#allocation43_spill] sm:$0xff] }
 0x484   : > { %13903 = vst [vmem:[#allocation24_spill] sm:$0xff] %v10687_v59  ;;  %8361 = vset.pattern.permute.xlu1 %v13826_v36  ;;  %v4488_v30 = vsub.f32 1.0, %v4456_v9  ;;  %v6324_v35 = vrot.slane %v6323_v10, 1  ;;  %v7024_v54 = vrot.slane %v7023_v61, 4  ;;  %v10702_v41 = vadd.f32 %v10577_v13, %v4543_v24  ;;  %v10714_v29 = vpop.permute.xlu1 %4845  ;;  %13912 = vst [vmem:[#allocation30_spill] sm:$0xff] %v10716_v31 }
 0x485   : > { %13905 = vst [vmem:[#allocation26_spill] sm:$0xff] %v10696_v43  ;;  %1938 = vperm.xlu1 %8361, %v13907_v32   ;;  %v10705_v39 = vsel %vm534_vm0, %v2055_v15, 0.0  ;;  %v10708_v33 = vsel %vm534_vm0, %v2057_v27, 0.0  ;;  %v2081_v63 = vmul.f32 %v10391_v8, %v13910_v52  ;;  %v3944_v1 = vadd.f32 %v10489_v62, %v3816_v47  ;;  %8401 = vset.pattern.permute.xlu0 %v13824_v42  ;;  %v10721_v15 = vld [vmem:[#allocation3 + $0x73] ss:$0 sm:$0xff] }
 0x486   : > { %13908 = vst [vmem:[#allocation34_spill] sm:$0xff] %v10702_v41  ;;  %13909 = vst [vmem:[#allocation38_spill] sm:$0xff] %v10708_v33  ;;  %v13913_v13 = vsub.f32 1.0, %v10517_v14  ;;  %v6325_v9 = vadd.f32 %v6324_v35, %v6323_v10  ;;  %v7025_v37 = vadd.f32 %v7024_v54, %v7023_v61  ;;  %5484 = vperm.xlu0 %8401, %v10530_v26   ;;  %v10726_v62 = vld [vmem:[#allocation2 + $0x50] sm:$0xff]  ;;  %v10729_v27 = vsel %vm534_vm0, %v2760_v40, 0.0 }
 0x487   : > { %13911 = vst [vmem:[#allocation27_spill] sm:$0xff] %v10714_v29  ;;  %v4895_v24 = vmul.f32 %v10714_v29, %v10702_v41  ;;  %v10732_v44 = vmul.f32 %v10391_v8, %v2378_v4  ;;  %v10736_v14 = vmul.f32 %v10698_v48, %v13900_v23  ;;  %v10739_v47 = vsel %vm534_vm0, %v2784_v49, 0.0  ;;  %v7987_v12 = vld [vmem:[#allocation4 + $0x13] ss:$0 sm:$0xff]  ;;  %v10741_v26 = vld [vmem:[#allocation3 + $0x1a] ss:$0 sm:$0xff] }
 0x488   : > { %v3840_v28 = vmul.f32 %v13913_v13, %v10685_v58  ;;  %13914 = vst [vmem:[#allocation40_spill] sm:$0xff] %v10741_v26  ;;  %v10745_v10 = vmul.f32 %v10547_v17, %v13915_v38  ;;  %v4520_v61 = vmul.f32 %v4488_v30, %v3944_v1  ;;  %6453 = vst.msk [vmem:[#allocation5 + $0xe] sm:$0x1] %vm2227_vm3, %v6325_v9  ;;  %v7026_v40 = vrot.slane %v7025_v37, 2  ;;  %v10761_v46 = vpop.permute.xlu1 %4850  ;;  %v10781_v9 = vld [vmem:[#allocation4 + $0x1a] ss:$0 sm:$0xff] }
 0x489   : > { %v5018_v8 = vsel %vm534_vm0, %v4895_v24, 0.0  ;;  %8364 = vset.pattern.permute.xlu1 %v13874_v0  ;;  %v10751_v23 = vsel %vm534_vm0, %v2081_v63, 0.0  ;;  %v10755_v49 = vmul.f32 %v10589_v20, %v10396_v16  ;;  %v4480_v4 = vmul.f32 %v10721_v15, %v10491_v22  ;;  %13917 = vst [vmem:[#allocation55_spill] sm:$0xff] %v10761_v46  ;;  %v10770_v20 = vpop.permute.xlu0 %2633  ;;  %13920 = vst [vmem:[#allocation58_spill] sm:$0xff] %v10781_v9  ;;  %v8067_v41 = vld [vmem:[#allocation3 + $0x16] ss:$0 sm:$0xff] }
 0x48a   : > { %13916 = vst [vmem:[#allocation43_spill] sm:$0xff] %v10751_v23  ;;  %v5019_v17 = vadd.f32 %v5018_v8, %v10606_v3  ;;  %2648 = vperm.xlu1 %8364, %v10726_v62   ;;  %v4616_v30 = vmul.f32 %v7987_v12, %v10457_v18  ;;  %v10766_v35 = vmul.f32 %v10741_v26, %v10419_v34  ;;  %13919 = vst [vmem:[#allocation57_spill] sm:$0xff] %v10770_v20  ;;  %v13921_v8 = vmov 2  }
 0x48b   : > { %v3968_v54 = vadd.f32 %v10527_v11, %v3840_v28  ;;  %v7027_v32 = vadd.f32 %v7026_v40, %v7025_v37  ;;  %8402 = vset.pattern.permute.xlu0 %v13838_v6  ;;  %v10774_v3 = vmul.f32 %v13862_v7, %v10651_v51  ;;  %v10778_v63 = vmul.f32 %v10617_v60, %v13915_v38  ;;  %v10786_v40 = vld [vmem:[#allocation3 + $0x15] ss:$0 sm:$0xff]  ;;  %v10796_v60 = vld [vmem:[#allocation4 + $0x73] ss:$0 sm:$0xff]  ;;  %v13925_v11 = vld [vmem:[#allocation39_spill] sm:$0xff] }
 0x48c   : > { %13918 = vst [vmem:[#allocation56_spill] sm:$0xff] %v10766_v35  ;;  %v4168_v13 = vmul.f32 %v10457_v18, %v3944_v1  ;;  %v5020_v24 = vrot.slane %v5019_v17, 4  ;;  %6183 = vperm.xlu0 %8402, %v10570_v19   ;;  %v4648_v28 = vadd.f32 %v4616_v30, %v4520_v61  ;;  %v10790_v51 = vmul.f32 %v13867_v50, %v10685_v58  ;;  %v10799_v61 = vld [vmem:[#allocation2 + $0x48] sm:$0xff] }
 0x48d   : > { %v4192_v37 = vmul.f32 %v10491_v22, %v3968_v54  ;;  %v7028_v7 = vrot.slane %v7027_v32, 1  ;;  %v10794_v18 = vmul.f32 %v10653_v56, %v10396_v16  ;;  %v4512_v1 = vsub.f32 1.0, %v4480_v4  ;;  %v10808_v56 = vpop.permute.xlu0 %2753  ;;  %v1919_v43 = vpop.permute.xlu1 %1918 }
 0x48e   : > { %v5021_v19 = vadd.f32 %v5020_v24, %v5019_v17  ;;  %8365 = vset.pattern.permute.xlu1 %v13921_v8  ;;  %v10805_v50 = vmul.f32 %v10781_v9, %v10419_v34  ;;  %13923 = vst [vmem:[#allocation60_spill] sm:$0xff] %v10808_v56  ;;  %v10811_v4 = vsel %vm534_vm0, %v4168_v13, 0.0  ;;  %v13924_v17 = vld [vmem:[#allocation53_spill] sm:$0xff]  ;;  %v2056_v30 = vmul.f32 %v13925_v11, %v1919_v43  ;;  %v13927_v9 = vld [vmem:[#allocation31_spill] sm:$0xff]  ;;  %v13936_v34 = vld [vmem:[#allocation54_spill] sm:$0xff] }
 0x48f   : > { %v7029_v58 = vadd.f32 %v7028_v7, %v7027_v32  ;;  %3347 = vperm.xlu1 %8365, %v10799_v61   ;;  %v5864_v24 = vmul.f32 %v10786_v40, %v13924_v17  ;;  %v10820_v32 = vmul.f32 %v13888_v5, %v4648_v28  ;;  %v10823_v7 = vsel %vm534_vm0, %v4192_v37, 0.0  ;;  %v13929_v37 = vld [vmem:[#allocation28_spill] sm:$0xff] }
 0x490   : > { %13922 = vst [vmem:[#allocation59_spill] sm:$0xff] %v10805_v50  ;;  %v5022_v59 = vrot.slane %v5021_v19, 2  ;;  %8405 = vset.pattern.permute.xlu0 %v13826_v36  ;;  %13926 = vst [vmem:[#allocation53_spill] sm:$0xff] %v10823_v7  ;;  %v10827_v13 = vmul.f32 %v10796_v60, %v10491_v22  ;;  %v2345_v26 = vmul.f32 %v13927_v9, %v1919_v43  ;;  %v13928_v48 = vsub.f32 1.0, %v10628_v2 }
 0x491   : > { %7157 = vst.msk [vmem:[#allocation5 + $0xf] sm:$0x1] %vm2227_vm3, %v7029_v58  ;;  %1973 = vperm.xlu0 %8405, %v10817_v55   ;;  %v10832_v23 = vmul.f32 %v4512_v1, %v3968_v54  ;;  %v2102_v50 = vsel %vm534_vm0, %v2056_v30, 0.0  ;;  %v10839_v25 = vmul.f32 %v10655_v57, %v13929_v37  ;;  %v10842_v22 = vmul.f32 %v7987_v12, %v13929_v37  ;;  %v2039_v54 = vpop.permute.xlu1 %2038  ;;  %v10846_v1 = vld [vmem:[#allocation2 + $0x78] sm:$0xff] }
 0x492   : > { %v5224_v33 = vmul.f32 %v13928_v48, %v4648_v28  ;;  %v5023_v5 = vadd.f32 %v5022_v59, %v5021_v19  ;;  %v2103_v58 = vadd.f32 %v2102_v50, %v10705_v39  ;;  %v2377_v9 = vsub.f32 1.0, %v2345_v26  ;;  %v10848_v59 = vpop.permute.xlu0 %3342  ;;  %v13933_v28 = vld [vmem:[#allocation29_spill] sm:$0xff]  ;;  %v13934_v12 = vld [vmem:[#allocation51_spill] sm:$0xff] }
 0x493   : > { %13930 = vst [vmem:[#allocation39_spill] sm:$0xff] %v10842_v22  ;;  %v13931_v35 = vmov 3   ;;  %v5896_v2 = vsub.f32 1.0, %v5864_v24  ;;  %13932 = vst [vmem:[#allocation31_spill] sm:$0xff] %v10848_v59  ;;  %v2080_v57 = vmul.f32 %v13925_v11, %v2039_v54  ;;  %v2369_v19 = vmul.f32 %v13933_v28, %v2039_v54  ;;  %v8004_v39 = vld [vmem:[#allocation3 + $0x1c] ss:$0 sm:$0xff] }
 0x494   : > { %8368 = vset.pattern.permute.xlu1 %v13931_v35  ;;  %v5024_v48 = vrot.slane %v5023_v5, 1  ;;  %v10855_v30 = vmul.f32 %v10721_v15, %v13934_v12  ;;  %v2104_v26 = vrot.slane %v2103_v58, 4  ;;  %v2409_v50 = vmul.f32 %v13925_v11, %v2377_v9  ;;  %v13937_v24 = vld [vmem:[#allocation45_spill] sm:$0xff]  ;;  %v8051_v28 = vld [vmem:[#allocation4 + $0x15] ss:$0 sm:$0xff] }
 0x495   : > { %4056 = vperm.xlu1 %8368, %v10726_v62   ;;  %v2505_v56 = vmul.f32 %v13936_v34, %v1919_v43  ;;  %8406 = vset.pattern.permute.xlu0 %v13874_v0  ;;  %v5352_v59 = vadd.f32 %v13937_v24, %v5224_v33  ;;  %v2210_v20 = vsel %vm534_vm0, %v2080_v57, 0.0  ;;  %v2401_v46 = vsub.f32 1.0, %v2369_v19  ;;  %v13938_v9 = vld [vmem:[#allocation22_spill] sm:$0xff]  ;;  %v13939_v43 = vld [vmem:[#allocation52_spill] sm:$0xff] }
 0x496   : > { %13935 = vst [vmem:[#allocation28_spill] sm:$0xff] %v10855_v30  ;;  %v5025_v22 = vadd.f32 %v5024_v48, %v5023_v5  ;;  %2673 = vperm.xlu0 %8406, %v10846_v1   ;;  %v2105_v7 = vadd.f32 %v2104_v26, %v2103_v58  ;;  %v2211_v31 = vadd.f32 %v2210_v20, %v13938_v9  ;;  %v13941_v5 = vld [vmem:[#allocation47_spill] sm:$0xff]  ;;  %v10874_v19 = vpop.permute.xlu1 %2628  ;;  %v13942_v58 = vld [vmem:[#allocation25_spill] sm:$0xff] }
 0x497   : > { %v10864_v29 = vadd.f32 %v2505_v56, %v2409_v50  ;;  %v5928_v34 = vmul.f32 %v5896_v2, %v5352_v59  ;;  %v10868_v0 = vmul.f32 %v8004_v39, %v13939_v43  ;;  %v2433_v33 = vmul.f32 %v13925_v11, %v2401_v46  ;;  %v10880_v39 = vpop.permute.xlu0 %4041 }
 0x498   : > { %5057 = vst.msk [vmem:[#allocation5 + $0x6c] sm:$0x1] %vm2227_vm3, %v5025_v22  ;;  %v2529_v48 = vmul.f32 %v13941_v5, %v2039_v54  ;;  %v7173_v57 = vld [vmem:[#allocation5 + $0x8] sm:$0xff]  ;;  %v6568_v56 = vmul.f32 %v8067_v41, %v13942_v58  ;;  %v2106_v26 = vrot.slane %v2105_v7, 2  ;;  %v2212_v2 = vrot.slane %v2211_v31, 4 }
 0x499   : > { %13940 = vst [vmem:[#allocation29_spill] sm:$0xff] %v10868_v0  ;;  %8369 = vset.pattern.permute.xlu1 %v13820_v21  ;;  %v2761_v20 = vmul.f32 %v13915_v38, %v10864_v29  ;;  %8148 = vmatmul.mubr.msk.f32.vlgmr.msra.gmra.mrb[24].mxu0 %vm534_vm0, %v7173_v57  ;;  %v10886_v11 = vmul.f32 %v10796_v60, %v13934_v12  ;;  %v10892_v38 = vld [vmem:[#allocation4 + $0x1c] ss:$0 sm:$0xff]  ;;  %v10898_v5 = vsel %vm534_vm0, %v10774_v3, 0.0 }
 0x49a   : > { %4755 = vperm.xlu1 %8369, %v10799_v61   ;;  %v6024_v22 = vmul.f32 %v8051_v28, %v13924_v17  ;;  %v10889_v54 = vadd.f32 %v2529_v48, %v2433_v33  ;;  %8409 = vset.pattern.permute.xlu0 %v13921_v8  ;;  %13944 = vst [vmem:[#allocation54_spill] sm:$0xff] %v10892_v38  ;;  %v10904_v46 = vpop.permute.xlu1 %2748 }
 0x49b   : > { %13943 = vst [vmem:[#allocation51_spill] sm:$0xff] %v10886_v11  ;;  %v2107_v50 = vadd.f32 %v2106_v26, %v2105_v7  ;;  %v2807_v24 = vsel %vm534_vm0, %v2761_v20, 0.0  ;;  %v2213_v9 = vadd.f32 %v2212_v2, %v2211_v31  ;;  %3382 = vperm.xlu0 %8409, %v10817_v55   ;;  %v5576_v60 = vmul.f32 %v13924_v17, %v5352_v59  ;;  %v8068_v31 = vld [vmem:[#allocation3 + $0x1e] ss:$0 sm:$0xff]  ;;  %v10908_v3 = vpop.permute.xlu0 %4161 }
 0x49c   : > { %v6056_v57 = vadd.f32 %v6024_v22, %v5928_v34  ;;  %v2808_v33 = vadd.f32 %v2807_v24, %v10729_v27  ;;  %v2785_v48 = vmul.f32 %v10396_v16, %v10889_v54  ;;  %v6600_v26 = vsub.f32 1.0, %v6568_v56  ;;  %v13946_v27 = vld [vmem:[#allocation41_spill] sm:$0xff] }
 0x49d   : > { %v2108_v20 = vrot.slane %v2107_v50, 1  ;;  %v2214_v2 = vrot.slane %v2213_v9, 2  ;;  %v10912_v17 = vmul.f32 %v10892_v38, %v13939_v43  ;;  %v10916_v59 = vmul.f32 %v10786_v40, %v13946_v27  ;;  %v13947_v56 = vld [vmem:[#allocation21_spill] sm:$0xff] }
 0x49e   : > { %8371 = vset.pattern.permute.xlu1 %v13824_v42  ;;  %v2809_v16 = vrot.slane %v2808_v33, 4  ;;  %v2915_v34 = vsel %vm534_vm0, %v2785_v48, 0.0  ;;  %v10921_v22 = vmul.f32 %v8067_v41, %v13947_v56  ;;  %v10926_v11 = vsel %vm534_vm0, %v5576_v60, 0.0  ;;  %v13948_v38 = vld [vmem:[#allocation33_spill] sm:$0xff]  ;;  %v10932_v48 = vld [vmem:[#allocation4 + $0x16] ss:$0 sm:$0xff] }
 0x49f   : > { %13945 = vst [vmem:[#allocation45_spill] sm:$0xff] %v10912_v17  ;;  %5459 = vperm.xlu1 %8371, %v10799_v61   ;;  %v2109_v24 = vadd.f32 %v2108_v20, %v2107_v50  ;;  %v2215_v7 = vadd.f32 %v2214_v2, %v2213_v9  ;;  %v2916_v15 = vadd.f32 %v2915_v34, %v10739_v47  ;;  %v3328_v60 = vpop.permute.xlu1 %3327  ;;  %v10953_v20 = vld [vmem:[#allocation3 + $0x78] ss:$0 sm:$0xff] }
 0x4a0   : > { %8410 = vset.pattern.permute.xlu0 %v13931_v35  ;;  %v6280_v40 = vmul.f32 %v13942_v58, %v6056_v57  ;;  %v10930_v17 = vmul.f32 %v8068_v31, %v13948_v38  ;;  %v2810_v0 = vadd.f32 %v2809_v16, %v2808_v33  ;;  %v10936_v41 = vmul.f32 %v8051_v28, %v13946_v27  ;;  %v10940_v34 = vpop.permute.xlu0 %4750 }
 0x4a1   : > { %4081 = vperm.xlu0 %8410, %v10846_v1   ;;  %v6632_v50 = vmul.f32 %v6600_v26, %v6056_v57  ;;  %2230 = vst.msk [vmem:[#allocation5 + $0x10] sm:$0x1] %vm2227_vm3, %v2109_v24  ;;  %v2216_v47 = vrot.slane %v2215_v7, 1  ;;  %v2917_v9 = vrot.slane %v2916_v15, 4  ;;  %13950 = vst [vmem:[#allocation47_spill] sm:$0xff] %v10940_v34  ;;  %v13951_v33 = vsub.f32 1.0, %v10745_v10 }
 0x4a2   : > { %13949 = vst [vmem:[#allocation22_spill] sm:$0xff] %v10930_v17  ;;  %v2811_v2 = vrot.slane %v2810_v0, 2  ;;  %v10948_v28 = vsel %vm534_vm0, %v10790_v51, 0.0  ;;  %v6728_v26 = vmul.f32 %v10932_v48, %v13942_v58  ;;  %13952 = vst [vmem:[#allocation25_spill] sm:$0xff] %v10953_v20  ;;  %v10956_v43 = vsel %vm534_vm0, %v6280_v40, 0.0  ;;  %v13953_v58 = vld [vmem:[#allocation46_spill] sm:$0xff] }
 0x4a3   : > { %5464 = vperm.xlu1 %8371, %v10726_v62   ;;  %v3113_v31 = vmul.f32 %v13951_v33, %v10864_v29  ;;  %v2217_v16 = vadd.f32 %v2216_v47, %v2215_v7  ;;  %v2918_v24 = vadd.f32 %v2917_v9, %v2916_v15  ;;  %v10963_v33 = vadd.f32 %v10827_v13, %v10832_v23  ;;  %v3448_v40 = vpop.permute.xlu1 %3447  ;;  %v10968_v47 = vld [vmem:[#allocation3 + $0x74] ss:$0 sm:$0xff]  ;;  %v13958_v17 = vld [vmem:[#allocation48_spill] sm:$0xff]  ;;  %v10989_v34 = vld [vmem:[#allocation4 + $0x78] ss:$0 sm:$0xff] }
 0x4a4   : > { %v2812_v10 = vadd.f32 %v2811_v2, %v2810_v0  ;;  %v6760_v51 = vadd.f32 %v6728_v26, %v6632_v50  ;;  %v3753_v7 = vmul.f32 %v13953_v58, %v3328_v60  ;;  %v13954_v23 = vsub.f32 1.0, %v10755_v49  ;;  %v13956_v26 = vld [vmem:[#allocation49_spill] sm:$0xff]  ;;  %v10982_v58 = vld [vmem:[#allocation3 + $0x7a] ss:$0 sm:$0xff] }
 0x4a5   : > { %v3241_v29 = vadd.f32 %v10778_v63, %v3113_v31  ;;  %8413 = vset.pattern.permute.xlu0 %v13820_v21  ;;  %2242 = vst.msk [vmem:[#allocation5 + $0x70] sm:$0x1] %vm2227_vm3, %v2217_v16  ;;  %v2919_v15 = vrot.slane %v2918_v24, 2  ;;  %v2370_v63 = vmul.f32 %v10953_v20, %v13910_v52  ;;  %v10978_v50 = vmul.f32 %v10968_v47, %v10668_v45 }
 0x4a6   : > { %4790 = vperm.xlu0 %8413, %v10817_v55   ;;  %v2813_v0 = vrot.slane %v2812_v10, 1  ;;  %v3137_v13 = vmul.f32 %v13954_v23, %v10889_v54  ;;  %v3785_v31 = vsub.f32 1.0, %v3753_v7  ;;  %v3777_v16 = vmul.f32 %v13956_v26, %v3448_v40  ;;  %13957 = vst [vmem:[#allocation21_spill] sm:$0xff] %v10982_v58  ;;  %v10987_v54 = vpop.permute.xlu0 %5454  ;;  %13960 = vst [vmem:[#allocation49_spill] sm:$0xff] %v10989_v34 }
 0x4a7   : > { %v3465_v9 = vmul.f32 %v3328_v60, %v3241_v29  ;;  %8373 = vset.pattern.permute.xlu1 %v13838_v6  ;;  %13955 = vst [vmem:[#allocation41_spill] sm:$0xff] %v10978_v50  ;;  %v2920_v2 = vadd.f32 %v2919_v15, %v2918_v24  ;;  %v3913_v20 = vmul.f32 %v13958_v17, %v3328_v60  ;;  %13959 = vst [vmem:[#allocation46_spill] sm:$0xff] %v10987_v54  ;;  %v13962_v60 = vld [vmem:[#allocation32_spill] sm:$0xff]  ;;  %v13975_v50 = vld [vmem:[#allocation53_spill] sm:$0xff] }
 0x4a8   : > { %6168 = vperm.xlu1 %8373, %v10726_v62   ;;  %v2814_v30 = vadd.f32 %v2813_v0, %v2812_v10  ;;  %v3265_v49 = vadd.f32 %v10794_v18, %v3137_v13  ;;  %v3817_v15 = vmul.f32 %v3785_v31, %v3241_v29  ;;  %v3809_v7 = vsub.f32 1.0, %v3777_v16  ;;  %v13961_v0 = vld [vmem:[#allocation50_spill] sm:$0xff]  ;;  %v10997_v18 = vpop.permute.xlu1 %4036 }
 0x4a9   : > { %v3511_v57 = vsel %vm534_vm0, %v3465_v9, 0.0  ;;  %v2921_v23 = vrot.slane %v2920_v2, 1  ;;  %v6984_v62 = vmul.f32 %v10675_v53, %v6760_v51  ;;  %v3937_v17 = vmul.f32 %v13961_v0, %v3448_v40 }
 0x4aa   : > { %v3512_v24 = vadd.f32 %v3511_v57, %v10898_v5  ;;  %8415 = vset.pattern.permute.xlu0 %v13824_v42  ;;  %2934 = vst.msk [vmem:[#allocation5 + $0x11] sm:$0x1] %vm2227_vm3, %v2814_v30  ;;  %v3489_v10 = vmul.f32 %v3448_v40, %v3265_v49  ;;  %v11001_v9 = vmul.f32 %v10982_v58, %v13962_v60  ;;  %v13964_v31 = vmov 7   ;;  %v11014_v40 = vpop.permute.xlu0 %1943  ;;  %v8676_v58 = vld [vmem:[#allocation4 + $0x6c] ss:$0 sm:$0xff] }
 0x4ab   : > { %5494 = vperm.xlu0 %8415, %v10817_v55   ;;  %v2922_v5 = vadd.f32 %v2921_v23, %v2920_v2  ;;  %v11003_v29 = vadd.f32 %v3913_v20, %v3817_v15  ;;  %v3841_v13 = vmul.f32 %v3809_v7, %v3265_v49  ;;  %v11008_v53 = vadd.f32 %v10736_v14, %v10732_v44  ;;  %v11016_v2 = vld [vmem:[#allocation4 + $0x74] ss:$0 sm:$0xff]  ;;  %v7877_v49 = vld [vmem:[#allocation3 + $0x20] ss:$0 sm:$0xff] }
 0x4ac   : > { %13963 = vst [vmem:[#allocation48_spill] sm:$0xff] %v11001_v9  ;;  %v3513_v57 = vrot.slane %v3512_v24, 4  ;;  %8374 = vset.pattern.permute.xlu1 %v13964_v31  ;;  %v2402_v30 = vsub.f32 1.0, %v2370_v63  ;;  %v2530_v55 = vmul.f32 %v10989_v34, %v13910_v52  ;;  %v3619_v51 = vsel %vm534_vm0, %v3489_v10, 0.0  ;;  %13965 = vst [vmem:[#allocation50_spill] sm:$0xff] %v11014_v40  ;;  %v11036_v23 = vpop.permute.xlu1 %4156  ;;  %v11047_v10 = vld [vmem:[%s13542_s4] sm:$0xff] }
 0x4ad   : > { %6867 = vperm.xlu1 %8374, %v10799_v61   ;;  %2946 = vst.msk [vmem:[#allocation5 + $0x71] sm:$0x1] %vm2227_vm3, %v2922_v5  ;;  %v4169_v26 = vmul.f32 %v13929_v37, %v11003_v29  ;;  %v3620_v44 = vadd.f32 %v3619_v51, %v10948_v28  ;;  %v11022_v14 = vadd.f32 %v3937_v17, %v3841_v13  ;;  %v11024_v63 = vld [vmem:[#allocation4 + $0x7a] ss:$0 sm:$0xff]  ;;  %v11027_v52 = vsel %vm534_vm0, %v6984_v62, 0.0  ;;  %v11093_v34 = vld [vmem:[#allocation2 + $0x60] sm:$0xff] }
 0x4ae   : > { %v3514_v20 = vadd.f32 %v3513_v57, %v3512_v24  ;;  %13967 = vst [vmem:[#allocation61_spill] sm:$0xff] %v11024_v63  ;;  %v11032_v16 = vmul.f32 %v11016_v2, %v10668_v45  ;;  %13969 = vst [vmem:[#allocation63_spill] sm:$0xff] %v11036_v23  ;;  %v11038_v28 = vld [vmem:[#allocation2 + $0x58] sm:$0xff]  ;;  %v2434_v0 = vmul.f32 %v11047_v10, %v2402_v30  ;;  %v11063_v30 = vld [vmem:[#allocation2 + $0x90] sm:$0xff] }
 0x4af   : > { %13966 = vst [vmem:[#allocation32_spill] sm:$0xff] %v11022_v14  ;;  %8416 = vset.pattern.permute.xlu0 %v13838_v6  ;;  %v4215_v15 = vsel %vm534_vm0, %v4169_v26, 0.0  ;;  %v3621_v7 = vrot.slane %v3620_v44, 4  ;;  %v4193_v62 = vmul.f32 %v13934_v12, %v11022_v14  ;;  %13970 = vst [vmem:[#allocation64_spill] sm:$0xff] %v11047_v10  ;;  %v11053_v5 = vmul.f32 %v11024_v63, %v13962_v60  ;;  %v13974_v61 = vld [vmem:[#allocation27_spill] sm:$0xff] }
 0x4b0   : > { %13968 = vst [vmem:[#allocation62_spill] sm:$0xff] %v11032_v16  ;;  %v3515_v24 = vrot.slane %v3514_v20, 2  ;;  %6193 = vperm.xlu0 %8416, %v10846_v1   ;;  %v4216_v17 = vadd.f32 %v4215_v15, %v10811_v4  ;;  %v11058_v12 = vsel %vm534_vm0, %v10820_v32, 0.0  ;;  %v13972_v1 = vld [vmem:[#allocation30_spill] sm:$0xff]  ;;  %v11065_v4 = vld [vmem:[#allocation4 + $0x1e] ss:$0 sm:$0xff]  ;;  %v11069_v32 = vpop.permute.xlu0 %2643  ;;  %v11090_v23 = vmul.f32 %v8676_v58, %v13974_v61 }
 0x4b1   : > { %13971 = vst [vmem:[#allocation65_spill] sm:$0xff] %v11053_v5  ;;  %8375 = vset.pattern.permute.xlu1 %v13826_v36  ;;  %v2348_v57 = vmul.f32 %v7877_v49, %v13972_v1  ;;  %v3622_v51 = vadd.f32 %v3621_v7, %v3620_v44  ;;  %v4323_v26 = vsel %vm534_vm0, %v4193_v62, 0.0  ;;  %13973 = vst [vmem:[#allocation30_spill] sm:$0xff] %v11065_v4  ;;  %v8675_v15 = vld [vmem:[#allocation3 + $0x6c] ss:$0 sm:$0xff]  ;;  %v13980_v14 = vmov 1  }
 0x4b2   : > { %v3516_v13 = vadd.f32 %v3515_v24, %v3514_v20  ;;  %1948 = vperm.xlu1 %8375, %v11038_v28   ;;  %v5183_v37 = vmul.f32 %v8675_v15, %v13974_v61  ;;  %v4217_v16 = vrot.slane %v4216_v17, 4  ;;  %v4324_v45 = vadd.f32 %v4323_v26, %v13975_v50  ;;  %13976 = vst [vmem:[#allocation27_spill] sm:$0xff] %v11069_v32  ;;  %v11075_v44 = vld [vmem:[#allocation4 + $0x20] ss:$0 sm:$0xff]  ;;  %v13978_v24 = vld [vmem:[#allocation55_spill] sm:$0xff]  ;;  %v4736_v15 = vpop.permute.xlu1 %4735 }
 0x4b3   : > { %v11073_v20 = vmul.f32 %v10932_v48, %v13947_v56  ;;  %13977 = vst [vmem:[#allocation53_spill] sm:$0xff] %v11075_v44  ;;  %v2059_v49 = vmul.f32 %v11047_v10, %v13972_v1  ;;  %v5184_v7 = vmul.f32 %v10968_v47, %v13978_v24  ;;  %v3623_v63 = vrot.slane %v3622_v51, 2 }
 0x4b4   : > { %v3517_v62 = vrot.slane %v3516_v13, 1  ;;  %8419 = vset.pattern.permute.xlu0 %v13826_v36  ;;  %v11082_v50 = vadd.f32 %v2530_v55, %v2434_v0  ;;  %v4218_v26 = vadd.f32 %v4217_v16, %v4216_v17  ;;  %v4325_v32 = vrot.slane %v4324_v45, 4  ;;  %v7908_v0 = vld [vmem:[#allocation3 + $0x19] ss:$0 sm:$0xff] }
 0x4b5   : > { %1983 = vperm.xlu0 %8419, %v11063_v30   ;;  %v11087_v48 = vmul.f32 %v11065_v4, %v13948_v38  ;;  %v2380_v47 = vsub.f32 1.0, %v2348_v57  ;;  %v3624_v9 = vadd.f32 %v3623_v63, %v3622_v51  ;;  %v5215_v55 = vsub.f32 1.0, %v5183_v37  ;;  %v11098_v4 = vpop.permute.xlu0 %3352  ;;  %v11108_v57 = vld [vmem:[#allocation4 + $0x19] ss:$0 sm:$0xff]  ;;  %v13990_v38 = vld [vmem:[#allocation60_spill] sm:$0xff] }
 0x4b6   : > { %v3518_v5 = vadd.f32 %v3517_v62, %v3516_v13  ;;  %8378 = vset.pattern.permute.xlu1 %v13980_v14  ;;  %v2508_v16 = vmul.f32 %v11075_v44, %v13972_v1  ;;  %v4219_v17 = vrot.slane %v4218_v26, 2  ;;  %v4326_v40 = vadd.f32 %v4325_v32, %v4324_v45  ;;  %13981 = vst [vmem:[#allocation66_spill] sm:$0xff] %v11098_v4  ;;  %v11116_v62 = vpop.permute.xlu1 %5444 }
 0x4b7   : > { %13979 = vst [vmem:[#allocation55_spill] sm:$0xff] %v11087_v48  ;;  %2658 = vperm.xlu1 %8378, %v11093_v34   ;;  %v11101_v58 = vsel %vm534_vm0, %v2059_v49, 0.0  ;;  %v4896_v63 = vmul.f32 %v13978_v24, %v10963_v33  ;;  %v5216_v61 = vsub.f32 1.0, %v5184_v7  ;;  %v3625_v37 = vrot.slane %v3624_v9, 1  ;;  %v11114_v49 = vld [vmem:[#allocation2 + $0x88] sm:$0xff]  ;;  %13984 = vst [vmem:[#allocation68_spill] sm:$0xff] %v11116_v62 }
 0x4b8   : > { %13982 = vst [vmem:[#allocation67_spill] sm:$0xff] %v11101_v58  ;;  %3638 = vst.msk [vmem:[#allocation5 + $0x12] sm:$0x1] %vm2227_vm3, %v3518_v5  ;;  %v5344_v1 = vmul.f32 %v11016_v2, %v13978_v24  ;;  %v4220_v45 = vadd.f32 %v4219_v17, %v4218_v26  ;;  %v4327_v13 = vrot.slane %v4326_v40, 2  ;;  %v13983_v51 = vsub.f32 1.0, %v10839_v25  ;;  %v13985_v2 = vld [vmem:[#allocation35_spill] sm:$0xff] }
 0x4b9   : > { %8420 = vset.pattern.permute.xlu0 %v13980_v14  ;;  %v2412_v5 = vmul.f32 %v11047_v10, %v2380_v47  ;;  %v3050_v7 = vmul.f32 %v7908_v0, %v10874_v19  ;;  %v3626_v44 = vadd.f32 %v3625_v37, %v3624_v9  ;;  %v5161_v24 = vmul.f32 %v13985_v2, %v4736_v15  ;;  %v13986_v26 = vld [vmem:[#allocation57_spill] sm:$0xff]  ;;  %v7920_v47 = vld [vmem:[#allocation3 + $0x79] ss:$0 sm:$0xff]  ;;  %v11138_v4 = vpop.permute.xlu0 %4051  ;;  %v13993_v10 = vld [vmem:[#allocation20_spill] sm:$0xff] }
 0x4ba   : > { %v4521_v32 = vmul.f32 %v13983_v51, %v11003_v29  ;;  %2683 = vperm.xlu0 %8420, %v11114_v49   ;;  %v11123_v17 = vmul.f32 %v7908_v0, %v13986_v26  ;;  %v4221_v25 = vrot.slane %v4220_v45, 1  ;;  %v4328_v29 = vadd.f32 %v4327_v13, %v4326_v40  ;;  %v13987_v51 = vld [vmem:[#allocation39_spill] sm:$0xff]  ;;  %v13989_v0 = vld [vmem:[#allocation34_spill] sm:$0xff] }
 0x4bb   : > { %8379 = vset.pattern.permute.xlu1 %v13921_v8  ;;  %v11129_v48 = vmul.f32 %v11108_v57, %v13986_v26  ;;  %3650 = vst.msk [vmem:[#allocation5 + $0x72] sm:$0x1] %vm2227_vm3, %v3626_v44  ;;  %v5193_v9 = vsub.f32 1.0, %v5161_v24  ;;  %v5248_v37 = vmul.f32 %v5216_v61, %v10963_v33  ;;  %v5247_v2 = vmul.f32 %v5215_v55, %v13989_v0  ;;  %v11147_v33 = vpop.permute.xlu1 %6847 }
 0x4bc   : > { %v4649_v58 = vadd.f32 %v13987_v51, %v4521_v32  ;;  %3357 = vperm.xlu1 %8379, %v11038_v28   ;;  %v11136_v40 = vmul.f32 %v7920_v47, %v13990_v38  ;;  %v4222_v13 = vadd.f32 %v4221_v25, %v4220_v45  ;;  %v4329_v32 = vrot.slane %v4328_v29, 1  ;;  %v7936_v25 = vld [vmem:[#allocation4 + $0x79] ss:$0 sm:$0xff] }
 0x4bd   : > { %13988 = vst [vmem:[#allocation35_spill] sm:$0xff] %v11129_v48  ;;  %v11141_v62 = vsel %vm534_vm0, %v4896_v63, 0.0  ;;  %v11143_v48 = vld [vmem:[#allocation3 + $0x22] ss:$0 sm:$0xff]  ;;  %v3082_v44 = vsub.f32 1.0, %v3050_v7  ;;  %v5321_v14 = vmul.f32 %v13993_v10, %v4736_v15  ;;  %v11153_v63 = vadd.f32 %v2508_v16, %v2412_v5  ;;  %v13996_v5 = vld [vmem:[#allocation31_spill] sm:$0xff] }
 0x4be   : > { %v4873_v51 = vmul.f32 %v4736_v15, %v4649_v58  ;;  %13991 = vst [vmem:[#allocation57_spill] sm:$0xff] %v11141_v62  ;;  %13992 = vst [vmem:[#allocation39_spill] sm:$0xff] %v11143_v48  ;;  %v5225_v24 = vmul.f32 %v5193_v9, %v4649_v58  ;;  %8423 = vset.pattern.permute.xlu0 %v13921_v8  ;;  %v4330_v61 = vadd.f32 %v4329_v32, %v4328_v29  ;;  %v11155_v7 = vld [vmem:[#allocation4 + $0x22] ss:$0 sm:$0xff]  ;;  %v11157_v58 = vld [vmem:[#allocation3 + $0x1b] ss:$0 sm:$0xff] }
 0x4bf   : > { %4342 = vst.msk [vmem:[#allocation5 + $0x13] sm:$0x1] %vm2227_vm3, %v4222_v13  ;;  %3392 = vperm.xlu0 %8423, %v11063_v30   ;;  %13994 = vst [vmem:[#allocation34_spill] sm:$0xff] %v11155_v7  ;;  %v3074_v10 = vmul.f32 %v7920_v47, %v10904_v46  ;;  %v11163_v29 = vadd.f32 %v11090_v23, %v5247_v2  ;;  %v11167_v16 = vmul.f32 %v7936_v25, %v13990_v38  ;;  %v11179_v47 = vld [vmem:[#allocation4 + $0x1b] ss:$0 sm:$0xff] }
 0x4c0   : > { %v4919_v45 = vsel %vm534_vm0, %v4873_v51, 0.0  ;;  %v5353_v9 = vadd.f32 %v5321_v14, %v5225_v24  ;;  %8382 = vset.pattern.permute.xlu1 %v13931_v35  ;;  %v11171_v13 = vmul.f32 %v11143_v48, %v13996_v5  ;;  %4354 = vst.msk [vmem:[#allocation5 + $0x73] sm:$0x1] %vm2227_vm3, %v4330_v61  ;;  %v11177_v14 = vadd.f32 %v5344_v1, %v5248_v37 }
 0x4c1   : > { %v4920_v15 = vadd.f32 %v4919_v45, %v11058_v12  ;;  %13995 = vst [vmem:[#allocation60_spill] sm:$0xff] %v11163_v29  ;;  %4066 = vperm.xlu1 %8382, %v11093_v34   ;;  %v11175_v12 = vpop.permute.xlu0 %4760  ;;  %v3114_v23 = vmul.f32 %v3082_v44, %v11008_v53  ;;  %v14000_v51 = vsub.f32 1.0, %v10916_v59  ;;  %v11185_v45 = vpop.permute.xlu1 %6852  ;;  %v11189_v61 = vmul.f32 %v11155_v7, %v13996_v5  ;;  %v11240_v29 = vld [vmem:[#allocation4 + $0x7b] ss:$0 sm:$0xff] }
 0x4c2   : > { %13997 = vst [vmem:[#allocation20_spill] sm:$0xff] %v11171_v13  ;;  %13998 = vst [vmem:[#allocation69_spill] sm:$0xff] %v11175_v12  ;;  %v5577_v32 = vmul.f32 %v13946_v27, %v5353_v9  ;;  %v11193_v1 = vmul.f32 %v11157_v58, %v10880_v39  ;;  %v2762_v37 = vmul.f32 %v10874_v19, %v11008_v53  ;;  %v3106_v27 = vsub.f32 1.0, %v3074_v10  ;;  %v11212_v10 = vld [vmem:[#allocation3 + $0x7b] ss:$0 sm:$0xff] }
 0x4c3   : > { %13999 = vst [vmem:[#allocation70_spill] sm:$0xff] %v11177_v14  ;;  %v4921_v2 = vrot.slane %v4920_v15, 4  ;;  %v5929_v24 = vmul.f32 %v14000_v51, %v5353_v9  ;;  %14001 = vst [vmem:[#allocation71_spill] sm:$0xff] %v11189_v61  ;;  %v3210_v44 = vmul.f32 %v11108_v57, %v10874_v19  ;;  %8424 = vset.pattern.permute.xlu0 %v13931_v35  ;;  %v8037_v14 = vld [vmem:[#allocation3 + $0x25] ss:$0 sm:$0xff] }
 0x4c4   : > { %v5623_v9 = vsel %vm534_vm0, %v5577_v32, 0.0  ;;  %4091 = vperm.xlu0 %8424, %v11114_v49   ;;  %v11206_v55 = vmul.f32 %v11179_v47, %v10880_v39  ;;  %v2786_v53 = vmul.f32 %v10904_v46, %v11082_v50  ;;  %v14002_v49 = vsub.f32 1.0, %v10921_v22  ;;  %v11231_v22 = vld [vmem:[#allocation3 + $0x24] ss:$0 sm:$0xff] }
 0x4c5   : > { %v4922_v59 = vadd.f32 %v4921_v2, %v4920_v15  ;;  %v6057_v51 = vadd.f32 %v10936_v41, %v5929_v24  ;;  %v5624_v19 = vadd.f32 %v5623_v9, %v10926_v11  ;;  %8383 = vset.pattern.permute.xlu1 %v13820_v21  ;;  %v3242_v57 = vadd.f32 %v3210_v44, %v3114_v23  ;;  %v11217_v32 = vpop.permute.xlu0 %6163  ;;  %v11228_v44 = vpop.permute.xlu1 %4860 }
 0x4c6   : > { %4765 = vperm.xlu1 %8383, %v11038_v28   ;;  %v11222_v0 = vsel %vm534_vm0, %v2762_v37, 0.0  ;;  %v11226_v11 = vmul.f32 %v11212_v10, %v10908_v3  ;;  %14004 = vst [vmem:[#allocation73_spill] sm:$0xff] %v11231_v22  ;;  %v11237_v37 = vsel %vm534_vm0, %v2786_v53, 0.0  ;;  %v3234_v24 = vmul.f32 %v7936_v25, %v10904_v46  ;;  %v11254_v25 = vld [vmem:[#allocation4 + $0x24] ss:$0 sm:$0xff] }
 0x4c7   : > { %v4923_v15 = vrot.slane %v4922_v59, 2  ;;  %v6281_v41 = vmul.f32 %v13947_v56, %v6057_v51  ;;  %v6633_v2 = vmul.f32 %v14002_v49, %v6057_v51  ;;  %v5625_v23 = vrot.slane %v5624_v19, 4  ;;  %14007 = vst [vmem:[#allocation74_spill] sm:$0xff] %v11254_v25 }
 0x4c8   : > { %14003 = vst [vmem:[#allocation72_spill] sm:$0xff] %v11226_v11  ;;  %v3138_v56 = vmul.f32 %v3106_v27, %v11082_v50  ;;  %8427 = vset.pattern.permute.xlu0 %v13820_v21  ;;  %v14005_v27 = vld [vmem:[#allocation23_spill] sm:$0xff] }
 0x4c9   : > { %v4924_v9 = vadd.f32 %v4923_v15, %v4922_v59  ;;  %v6327_v51 = vsel %vm534_vm0, %v6281_v41, 0.0  ;;  %v6761_v49 = vadd.f32 %v11073_v20, %v6633_v2  ;;  %v5626_v62 = vadd.f32 %v5625_v23, %v5624_v19  ;;  %4800 = vperm.xlu0 %8427, %v11063_v30   ;;  %v14008_v19 = vld [vmem:[#allocation47_spill] sm:$0xff]  ;;  %v1929_v46 = vpop.permute.xlu1 %1928 }
 0x4ca   : > { %v6328_v50 = vadd.f32 %v6327_v51, %v10956_v43  ;;  %v11245_v59 = vmul.f32 %v14005_v27, %v3242_v57  ;;  %v11249_v20 = vmul.f32 %v11240_v29, %v10908_v3  ;;  %8385 = vset.pattern.permute.xlu1 %v13824_v42  ;;  %v11258_v43 = vmul.f32 %v11231_v22, %v14008_v19  ;;  %v11267_v27 = vpop.permute.xlu0 %1953 }
 0x4cb   : > { %v4925_v15 = vrot.slane %v4924_v9, 1  ;;  %v6985_v53 = vmul.f32 %v11147_v33, %v6761_v49  ;;  %v5627_v41 = vrot.slane %v5626_v62, 2  ;;  %5469 = vperm.xlu1 %8385, %v11038_v28   ;;  %v11261_v23 = vadd.f32 %v3234_v24, %v3138_v56  ;;  %v11283_v56 = vld [vmem:[%s13542_s4 + $0x8] sm:$0xff] }
 0x4cc   : > { %14006 = vst [vmem:[#allocation23_spill] sm:$0xff] %v11249_v20  ;;  %14009 = vst [vmem:[#allocation75_spill] sm:$0xff] %v11258_v43  ;;  %v6329_v2 = vrot.slane %v6328_v50, 4  ;;  %v11264_v51 = vmul.f32 %v8037_v14, %v10987_v54  ;;  %v14011_v20 = vld [vmem:[#allocation56_spill] sm:$0xff]  ;;  %v11275_v24 = vmul.f32 %v11254_v25, %v14008_v19  ;;  %v4458_v14 = vmul.f32 %v11157_v58, %v10997_v18 }
 0x4cd   : > { %v4926_v33 = vadd.f32 %v4925_v15, %v4924_v9  ;;  %v7031_v49 = vsel %vm534_vm0, %v6985_v53, 0.0  ;;  %v14012_v11 = vsub.f32 1.0, %v14011_v20  ;;  %v5628_v22 = vadd.f32 %v5627_v41, %v5626_v62  ;;  %8429 = vset.pattern.permute.xlu0 %v13824_v42 }
 0x4ce   : > { %14010 = vst [vmem:[#allocation76_spill] sm:$0xff] %v11264_v51  ;;  %v6330_v48 = vadd.f32 %v6329_v2, %v6328_v50  ;;  %v7032_v5 = vadd.f32 %v7031_v49, %v11027_v52  ;;  %14013 = vst [vmem:[#allocation56_spill] sm:$0xff] %v11275_v24  ;;  %v2058_v62 = vmul.f32 %v11283_v56, %v1929_v46  ;;  %5504 = vperm.xlu0 %8429, %v11063_v30   ;;  %v11297_v2 = vpop.permute.xlu0 %2653  ;;  %v2049_v30 = vpop.permute.xlu1 %2048  ;;  %v14017_v49 = vld [vmem:[#allocation59_spill] sm:$0xff]  ;;  %v14019_v51 = vld [vmem:[#allocation44_spill] sm:$0xff] }
 0x4cf   : > { %v3818_v7 = vmul.f32 %v14012_v11, %v3242_v57  ;;  %5046 = vst.msk [vmem:[#allocation5 + $0x14] sm:$0x1] %vm2227_vm3, %v4926_v33  ;;  %v14014_v57 = vld [vmem:[#allocation42_spill] sm:$0xff]  ;;  %v5629_v9 = vrot.slane %v5628_v22, 1  ;;  %8388 = vset.pattern.permute.xlu1 %v13838_v6  ;;  %v11292_v58 = vmul.f32 %v13962_v60, %v11261_v23  ;;  %v11299_v33 = vld [vmem:[#allocation4 + $0x25] ss:$0 sm:$0xff] }
 0x4d0   : > { %v2347_v52 = vmul.f32 %v14014_v57, %v1929_v46  ;;  %v6331_v50 = vrot.slane %v6330_v48, 2  ;;  %v7033_v20 = vrot.slane %v7032_v5, 4  ;;  %v2111_v53 = vsel %vm534_vm0, %v2058_v62, 0.0  ;;  %6178 = vperm.xlu1 %8388, %v11093_v34   ;;  %14015 = vst [vmem:[#allocation42_spill] sm:$0xff] %v11297_v2  ;;  %14016 = vst [vmem:[#allocation77_spill] sm:$0xff] %v11299_v33  ;;  %v14018_v60 = vld [vmem:[#allocation38_spill] sm:$0xff] }
 0x4d1   : > { %v3946_v57 = vadd.f32 %v14017_v49, %v3818_v7  ;;  %v5630_v11 = vadd.f32 %v5629_v9, %v5628_v22  ;;  %v4490_v24 = vsub.f32 1.0, %v4458_v14  ;;  %v2112_v43 = vadd.f32 %v2111_v53, %v14018_v60  ;;  %v7878_v2 = vld [vmem:[#allocation3 + $0x28] ss:$0 sm:$0xff]  ;;  %v14022_v53 = vld [vmem:[#allocation50_spill] sm:$0xff] }
 0x4d2   : > { %v2379_v41 = vsub.f32 1.0, %v2347_v52  ;;  %v6332_v25 = vadd.f32 %v6331_v50, %v6330_v48  ;;  %v7034_v19 = vadd.f32 %v7033_v20, %v7032_v5  ;;  %v2507_v62 = vmul.f32 %v14019_v51, %v1929_v46  ;;  %8432 = vset.pattern.permute.xlu0 %v13826_v36  ;;  %v11306_v52 = vld [vmem:[#allocation2 + $0xa0] sm:$0xff]  ;;  %v14020_v48 = vld [vmem:[#allocation25_spill] sm:$0xff] }
 0x4d3   : > { %5750 = vst.msk [vmem:[#allocation5 + $0x15] sm:$0x1] %vm2227_vm3, %v5630_v11  ;;  %v2082_v7 = vmul.f32 %v11283_v56, %v2049_v30  ;;  %v2371_v5 = vmul.f32 %v14020_v48, %v2049_v30  ;;  %1993 = vperm.xlu0 %8432, %v11306_v52   ;;  %v11314_v22 = vmul.f32 %v11299_v33, %v10987_v54  ;;  %v2113_v51 = vrot.slane %v2112_v43, 4  ;;  %v14023_v48 = vld [vmem:[#allocation43_spill] sm:$0xff]  ;;  %v11323_v54 = vpop.permute.xlu0 %3362 }
 0x4d4   : > { %v2411_v15 = vmul.f32 %v11283_v56, %v2379_v41  ;;  %v6333_v61 = vrot.slane %v6332_v25, 1  ;;  %v7035_v13 = vrot.slane %v7034_v19, 2  ;;  %v4170_v46 = vmul.f32 %v10997_v18, %v3946_v57  ;;  %8389 = vset.pattern.permute.xlu1 %v13964_v31  ;;  %14024 = vst [vmem:[#allocation38_spill] sm:$0xff] %v11323_v54 }
 0x4d5   : > { %14021 = vst [vmem:[#allocation59_spill] sm:$0xff] %v11314_v22  ;;  %v2219_v50 = vsel %vm534_vm0, %v2082_v7, 0.0  ;;  %v2403_v20 = vsub.f32 1.0, %v2371_v5  ;;  %6877 = vperm.xlu1 %8389, %v11038_v28   ;;  %v2350_v41 = vmul.f32 %v7878_v2, %v14022_v53  ;;  %v2114_v49 = vadd.f32 %v2113_v51, %v2112_v43  ;;  %v11325_v22 = vpop.permute.xlu1 %2638  ;;  %v2583_v2 = vld [vmem:[#allocation2 + $0x98] sm:$0xff] }
 0x4d6   : > { %v2539_v14 = vadd.f32 %v2507_v62, %v2411_v15  ;;  %v6334_v9 = vadd.f32 %v6333_v61, %v6332_v25  ;;  %v7036_v11 = vadd.f32 %v7035_v13, %v7034_v19  ;;  %v2220_v33 = vadd.f32 %v2219_v50, %v14023_v48  ;;  %v14025_v25 = vld [vmem:[#allocation49_spill] sm:$0xff]  ;;  %v14029_v50 = vld [vmem:[#allocation28_spill] sm:$0xff] }
 0x4d7   : > { %v4522_v15 = vmul.f32 %v4490_v24, %v3946_v57  ;;  %v2435_v61 = vmul.f32 %v11283_v56, %v2403_v20  ;;  %v2531_v19 = vmul.f32 %v14025_v25, %v2049_v30  ;;  %v14026_v28 = vmov 1   ;;  %v14027_v24 = vld [vmem:[#allocation64_spill] sm:$0xff]  ;;  %v11346_v25 = vpop.permute.xlu0 %4061 }
 0x4d8   : > { %v2763_v60 = vmul.f32 %v13986_v26, %v2539_v14  ;;  %6454 = vst.msk [vmem:[#allocation5 + $0x16] sm:$0x1] %vm2227_vm3, %v6334_v9  ;;  %v7037_v13 = vrot.slane %v7036_v11, 1  ;;  %8433 = vset.pattern.permute.xlu0 %v14026_v28  ;;  %v4618_v26 = vmul.f32 %v11179_v47, %v10997_v18  ;;  %v2115_v43 = vrot.slane %v2114_v49, 2  ;;  %v14028_v30 = vld [vmem:[#allocation32_spill] sm:$0xff] }
 0x4d9   : > { %v2221_v7 = vrot.slane %v2220_v33, 4  ;;  %2693 = vperm.xlu0 %8433, %v2583_v2   ;;  %v2061_v57 = vmul.f32 %v14027_v24, %v14022_v53  ;;  %v2563_v9 = vadd.f32 %v2531_v19, %v2435_v61  ;;  %6882 = vperm.xlu1 %8389, %v11093_v34   ;;  %v14030_v20 = vsub.f32 1.0, %v14029_v50  ;;  %v3338_v61 = vpop.permute.xlu1 %3337  ;;  %v14032_v19 = vld [vmem:[#allocation48_spill] sm:$0xff] }
 0x4da   : > { %v2816_v62 = vsel %vm534_vm0, %v2763_v60, 0.0  ;;  %v7038_v5 = vadd.f32 %v7037_v13, %v7036_v11  ;;  %v11344_v18 = vsel %vm534_vm0, %v4170_v46, 0.0  ;;  %v2116_v47 = vadd.f32 %v2115_v43, %v2114_v49  ;;  %v7894_v11 = vld [vmem:[#allocation4 + $0x28] ss:$0 sm:$0xff]  ;;  %v14036_v43 = vld [vmem:[#allocation40_spill] sm:$0xff] }
 0x4db   : > { %v2817_v51 = vadd.f32 %v2816_v62, %v11222_v0  ;;  %v11341_v48 = vmul.f32 %v14030_v20, %v14028_v30  ;;  %v2222_v60 = vadd.f32 %v2221_v7, %v2220_v33  ;;  %v11348_v31 = vadd.f32 %v4618_v26, %v4522_v15 }
 0x4dc   : > { %v2382_v13 = vsub.f32 1.0, %v2350_v41  ;;  %7158 = vst.msk [vmem:[#allocation5 + $0x17] sm:$0x1] %vm2227_vm3, %v7038_v5  ;;  %v2787_v34 = vmul.f32 %v13990_v38, %v2563_v9  ;;  %v14033_v62 = vsub.f32 1.0, %v14032_v19  ;;  %v2117_v46 = vrot.slane %v2116_v47, 1 }
 0x4dd   : > { %14031 = vst [vmem:[#allocation44_spill] sm:$0xff] %v11341_v48  ;;  %v2818_v0 = vrot.slane %v2817_v51, 4  ;;  %v2223_v50 = vrot.slane %v2222_v60, 2  ;;  %v14034_v33 = vsub.f32 1.0, %v11123_v17  ;;  %8436 = vset.pattern.permute.xlu0 %v13921_v8  ;;  %v11359_v15 = vsel %vm534_vm0, %v2061_v57, 0.0  ;;  %8390 = vset.pattern.permute.xlu1 %v13826_v36  ;;  %v14037_v57 = vld [vmem:[#allocation52_spill] sm:$0xff] }
 0x4de   : > { %v3842_v30 = vmul.f32 %v14033_v62, %v11261_v23  ;;  %14035 = vst [vmem:[#allocation25_spill] sm:$0xff] %v11359_v15  ;;  %v2924_v26 = vsel %vm534_vm0, %v2787_v34, 0.0  ;;  %v3755_v38 = vmul.f32 %v14036_v43, %v3338_v61  ;;  %3402 = vperm.xlu0 %8436, %v11306_v52   ;;  %v11365_v23 = vld [vmem:[#allocation2 + $0x68] sm:$0xff]  ;;  %v11368_v7 = vmul.f32 %v7894_v11, %v14022_v53  ;;  %v11377_v62 = vpop.permute.xlu0 %4770  ;;  %v14041_v43 = vld [vmem:[#allocation58_spill] sm:$0xff] }
 0x4df   : > { %v3115_v49 = vmul.f32 %v14034_v33, %v2539_v14  ;;  %v2819_v41 = vadd.f32 %v2818_v0, %v2817_v51  ;;  %v2118_v17 = vadd.f32 %v2117_v46, %v2116_v47  ;;  %v2224_v14 = vadd.f32 %v2223_v50, %v2222_v60  ;;  %1958 = vperm.xlu1 %8390, %v11365_v23   ;;  %v14038_v0 = vld [vmem:[#allocation35_spill] sm:$0xff]  ;;  %v3458_v33 = vpop.permute.xlu1 %3457  ;;  %v14040_v47 = vld [vmem:[#allocation65_spill] sm:$0xff] }
 0x4e0   : > { %v2925_v5 = vadd.f32 %v2924_v26, %v11237_v37  ;;  %v11374_v51 = vmul.f32 %v14037_v57, %v11348_v31  ;;  %v3787_v19 = vsub.f32 1.0, %v3755_v38  ;;  %14039 = vst [vmem:[#allocation50_spill] sm:$0xff] %v11377_v62  ;;  %v11380_v53 = vmul.f32 %v14027_v24, %v2382_v13  ;;  %v11392_v24 = vld [vmem:[#allocation3 + $0x21] ss:$0 sm:$0xff]  ;;  %v14050_v15 = vld [vmem:[#allocation61_spill] sm:$0xff] }
 0x4e1   : > { %v2820_v20 = vrot.slane %v2819_v41, 2  ;;  %v3243_v34 = vadd.f32 %v14038_v0, %v3115_v49  ;;  %v11383_v60 = vadd.f32 %v14040_v47, %v3842_v30  ;;  %2231 = vst.msk [vmem:[#allocation5 + $0x18] sm:$0x1] %vm2227_vm3, %v2118_v17  ;;  %v2225_v37 = vrot.slane %v2224_v14, 1  ;;  %v14042_v49 = vld [vmem:[#allocation63_spill] sm:$0xff]  ;;  %v14044_v47 = vld [vmem:[#allocation21_spill] sm:$0xff] }
 0x4e2   : > { %v2926_v11 = vrot.slane %v2925_v5, 4  ;;  %v3915_v57 = vmul.f32 %v14041_v43, %v3338_v61  ;;  %8437 = vset.pattern.permute.xlu0 %v13931_v35  ;;  %v11390_v38 = vmul.f32 %v11212_v10, %v14042_v49  ;;  %v3519_v17 = vsel %vm534_vm0, %v11245_v59, 0.0  ;;  %v11420_v43 = vpop.permute.xlu0 %5474 }
 0x4e3   : > { %v2821_v46 = vadd.f32 %v2820_v20, %v2819_v41  ;;  %v3467_v50 = vmul.f32 %v3338_v61, %v3243_v34  ;;  %v3819_v26 = vmul.f32 %v3787_v19, %v3243_v34  ;;  %v2226_v13 = vadd.f32 %v2225_v37, %v2224_v14  ;;  %v7174_v0 = vld [vmem:[#allocation5 + $0x10] sm:$0xff]  ;;  %4101 = vperm.xlu0 %8437, %v2583_v2   ;;  %v11408_v2 = vld [vmem:[#allocation3 + $0x1d] ss:$0 sm:$0xff] }
 0x4e4   : > { %v2927_v30 = vadd.f32 %v2926_v11, %v2925_v5  ;;  %8393 = vset.pattern.permute.xlu1 %v14026_v28  ;;  %v11397_v41 = vld [vmem:[#allocation2 + $0x70] sm:$0xff]  ;;  %8150 = vmatprep.mubr.msk.f32.mxu0 %vm534_vm0, %v7174_v0  ;;  %v14043_v10 = vsub.f32 1.0, %v11136_v40  ;;  %v11406_v59 = vmul.f32 %v11240_v29, %v14042_v49  ;;  %v3779_v37 = vmul.f32 %v14044_v47, %v3458_v33  ;;  %v11412_v11 = vpop.permute.xlu1 %4046 }
 0x4e5   : > { %v2822_v61 = vrot.slane %v2821_v46, 1  ;;  %v3520_v20 = vsel %vm534_vm0, %v3467_v50, 0.0  ;;  %v3947_v34 = vadd.f32 %v3915_v57, %v3819_v26  ;;  %2668 = vperm.xlu1 %8393, %v11397_v41   ;;  %2243 = vst.msk [vmem:[#allocation5 + $0x78] sm:$0x1] %vm2227_vm3, %v2226_v13  ;;  %v14045_v50 = vld [vmem:[#allocation27_spill] sm:$0xff]  ;;  %14046 = vst [vmem:[#allocation43_spill] sm:$0xff] %v11420_v43  ;;  %v4194_v57 = vmul.f32 %v14042_v49, %v11383_v60 }
 0x4e6   : > { %v3139_v19 = vmul.f32 %v14043_v10, %v2563_v9  ;;  %v2928_v14 = vrot.slane %v2927_v30, 2  ;;  %v3521_v5 = vadd.f32 %v3520_v20, %v3519_v17  ;;  %v11416_v40 = vmul.f32 %v11392_v24, %v14045_v50  ;;  %v14047_v10 = vld [vmem:[#allocation68_spill] sm:$0xff]  ;;  %v11443_v62 = vpop.permute.xlu0 %6173 }
 0x4e7   : > { %v2823_v9 = vadd.f32 %v2822_v61, %v2821_v46  ;;  %v4171_v26 = vmul.f32 %v10880_v39, %v3947_v34  ;;  %v3811_v0 = vsub.f32 1.0, %v3779_v37  ;;  %8440 = vset.pattern.permute.xlu0 %v13820_v21  ;;  %v5866_v47 = vmul.f32 %v11408_v2, %v14047_v10  ;;  %v11432_v46 = vld [vmem:[#allocation4 + $0x21] ss:$0 sm:$0xff] }
 0x4e8   : > { %v3267_v29 = vadd.f32 %v11167_v16, %v3139_v19  ;;  %v2929_v13 = vadd.f32 %v2928_v14, %v2927_v30  ;;  %v3522_v17 = vrot.slane %v3521_v5, 4  ;;  %4810 = vperm.xlu0 %8440, %v11306_v52   ;;  %v14048_v14 = vld [vmem:[#allocation29_spill] sm:$0xff]  ;;  %v3939_v48 = vmul.f32 %v14050_v15, %v3458_v33  ;;  %v4746_v43 = vpop.permute.xlu1 %4745  ;;  %v11454_v15 = vld [vmem:[#allocation4 + $0x1d] ss:$0 sm:$0xff] }
 0x4e9   : > { %2935 = vst.msk [vmem:[#allocation5 + $0x19] sm:$0x1] %vm2227_vm3, %v2823_v9  ;;  %v4224_v39 = vsel %vm534_vm0, %v4171_v26, 0.0  ;;  %8394 = vset.pattern.permute.xlu1 %v13921_v8  ;;  %v14049_v37 = vsub.f32 1.0, %v14048_v14  ;;  %v3627_v26 = vsel %vm534_vm0, %v11292_v58, 0.0  ;;  %v14052_v58 = vsub.f32 1.0, %v11193_v1 }
 0x4ea   : > { %v3491_v16 = vmul.f32 %v3458_v33, %v3267_v29  ;;  %v2930_v49 = vrot.slane %v2929_v13, 1  ;;  %v3523_v30 = vadd.f32 %v3522_v17, %v3521_v5  ;;  %v4225_v61 = vadd.f32 %v4224_v39, %v11344_v18  ;;  %3367 = vperm.xlu1 %8394, %v11365_v23  }
 0x4eb   : > { %v3843_v19 = vmul.f32 %v3811_v0, %v3267_v29  ;;  %v5226_v9 = vmul.f32 %v14049_v37, %v11348_v31  ;;  %v11447_v0 = vmul.f32 %v11432_v46, %v14045_v50  ;;  %v5898_v39 = vsub.f32 1.0, %v5866_v47  ;;  %v14053_v47 = vld [vmem:[#allocation45_spill] sm:$0xff] }
 0x4ec   : > { %v3628_v20 = vsel %vm534_vm0, %v3491_v16, 0.0  ;;  %v2931_v5 = vadd.f32 %v2930_v49, %v2929_v13  ;;  %v3524_v17 = vrot.slane %v3523_v30, 2  ;;  %v4226_v18 = vrot.slane %v4225_v61, 4  ;;  %8442 = vset.pattern.permute.xlu0 %v13824_v42 }
 0x4ed   : > { %v3629_v29 = vadd.f32 %v3628_v20, %v3627_v26  ;;  %v11449_v31 = vadd.f32 %v3939_v48, %v3843_v19  ;;  %v4523_v14 = vmul.f32 %v14052_v58, %v3947_v34  ;;  %v8678_v20 = vld [vmem:[#allocation3 + $0x1c] ss:$0 sm:$0xff]  ;;  %5514 = vperm.xlu0 %8442, %v11306_v52   ;;  %v4331_v48 = vsel %vm534_vm0, %v4194_v57, 0.0 }
 0x4ee   : > { %2947 = vst.msk [vmem:[#allocation5 + $0x79] sm:$0x1] %vm2227_vm3, %v2931_v5  ;;  %v3525_v33 = vadd.f32 %v3524_v17, %v3523_v30  ;;  %v4227_v13 = vadd.f32 %v4226_v18, %v4225_v61  ;;  %v5163_v49 = vmul.f32 %v8678_v20, %v4746_v43  ;;  %8397 = vset.pattern.permute.xlu1 %v13931_v35  ;;  %v5450_v5 = vpop.permute.xlu1 %5449  ;;  %v11465_v17 = vpop.permute.xlu0 %1963 }
 0x4ef   : > { %14051 = vst [vmem:[#allocation49_spill] sm:$0xff] %v11449_v31  ;;  %v3630_v16 = vrot.slane %v3629_v29, 4  ;;  %v5354_v1 = vadd.f32 %v14053_v47, %v5226_v9  ;;  %v4195_v34 = vmul.f32 %v10908_v3, %v11449_v31  ;;  %v4651_v19 = vadd.f32 %v11206_v55, %v4523_v14  ;;  %4076 = vperm.xlu1 %8397, %v11397_v41   ;;  %v11471_v14 = vld [vmem:[#allocation2 + $0xb0] sm:$0xff] }
 0x4f0   : > { %v3526_v30 = vrot.slane %v3525_v33, 1  ;;  %v4228_v61 = vrot.slane %v4227_v13, 2  ;;  %v5195_v26 = vsub.f32 1.0, %v5163_v49  ;;  %v6026_v57 = vmul.f32 %v11454_v15, %v14047_v10  ;;  %v14054_v49 = vld [vmem:[#allocation54_spill] sm:$0xff] }
 0x4f1   : > { %v3631_v37 = vadd.f32 %v3630_v16, %v3629_v29  ;;  %v5930_v52 = vmul.f32 %v5898_v39, %v5354_v1  ;;  %v4332_v9 = vsel %vm534_vm0, %v4195_v34, 0.0  ;;  %v4875_v18 = vmul.f32 %v4746_v43, %v4651_v19  ;;  %8445 = vset.pattern.permute.xlu0 %v13826_v36 }
 0x4f2   : > { %v3527_v58 = vadd.f32 %v3526_v30, %v3525_v33  ;;  %v4229_v3 = vadd.f32 %v4228_v61, %v4227_v13  ;;  %v4333_v55 = vadd.f32 %v4332_v9, %v4331_v48  ;;  %v4927_v29 = vsel %vm534_vm0, %v11374_v51, 0.0  ;;  %2003 = vperm.xlu0 %8445, %v11471_v14   ;;  %v11481_v30 = vld [vmem:[#allocation3 + $0x2a] ss:$0 sm:$0xff]  ;;  %v11487_v31 = vpop.permute.xlu0 %2663 }
 0x4f3   : > { %v3632_v20 = vrot.slane %v3631_v37, 2  ;;  %v4928_v16 = vsel %vm534_vm0, %v4875_v18, 0.0  ;;  %v5227_v39 = vmul.f32 %v5195_v26, %v4651_v19  ;;  %v5323_v47 = vmul.f32 %v14054_v49, %v4746_v43  ;;  %8398 = vset.pattern.permute.xlu1 %v13820_v21  ;;  %14055 = vst [vmem:[#allocation64_spill] sm:$0xff] %v11481_v30  ;;  %v11485_v26 = vpop.permute.xlu1 %6153  ;;  %14056 = vst [vmem:[#allocation32_spill] sm:$0xff] %v11487_v31 }
 0x4f4   : > { %3639 = vst.msk [vmem:[#allocation5 + $0x1a] sm:$0x1] %vm2227_vm3, %v3527_v58  ;;  %v4230_v33 = vrot.slane %v4229_v3, 1  ;;  %v4334_v48 = vrot.slane %v4333_v55, 4  ;;  %v4929_v34 = vadd.f32 %v4928_v16, %v4927_v29  ;;  %4775 = vperm.xlu1 %8398, %v11365_v23   ;;  %v5578_v51 = vmul.f32 %v14047_v10, %v5354_v1  ;;  %v11493_v10 = vld [vmem:[#allocation2 + $0xa8] sm:$0xff] }
 0x4f5   : > { %v3633_v13 = vadd.f32 %v3632_v20, %v3631_v37  ;;  %v6058_v61 = vadd.f32 %v6026_v57, %v5930_v52  ;;  %v5355_v19 = vadd.f32 %v5323_v47, %v5227_v39  ;;  %v5867_v43 = vmul.f32 %v11408_v2, %v5450_v5  ;;  %v14057_v2 = vld [vmem:[#allocation66_spill] sm:$0xff] }
 0x4f6   : > { %v4231_v9 = vadd.f32 %v4230_v33, %v4229_v3  ;;  %v4335_v49 = vadd.f32 %v4334_v48, %v4333_v55  ;;  %v4930_v58 = vrot.slane %v4929_v34, 4  ;;  %v3052_v20 = vmul.f32 %v11392_v24, %v11325_v22  ;;  %8446 = vset.pattern.permute.xlu0 %v14026_v28  ;;  %v11508_v48 = vld [vmem:[#allocation4 + $0x2a] ss:$0 sm:$0xff] }
 0x4f7   : > { %v3634_v18 = vrot.slane %v3633_v13, 1  ;;  %v5579_v29 = vmul.f32 %v5450_v5, %v5355_v19  ;;  %v5899_v16 = vsub.f32 1.0, %v5867_v43  ;;  %v11497_v1 = vmul.f32 %v11481_v30, %v14057_v2  ;;  %2703 = vperm.xlu0 %8446, %v11493_v10   ;;  %v11506_v33 = vpop.permute.xlu1 %6158  ;;  %14059 = vst [vmem:[#allocation48_spill] sm:$0xff] %v11508_v48 }
 0x4f8   : > { %4343 = vst.msk [vmem:[#allocation5 + $0x1b] sm:$0x1] %vm2227_vm3, %v4231_v9  ;;  %v4336_v57 = vrot.slane %v4335_v49, 2  ;;  %v4931_v3 = vadd.f32 %v4930_v58, %v4929_v34  ;;  %8400 = vset.pattern.permute.xlu1 %v13824_v42  ;;  %v5631_v24 = vsel %vm534_vm0, %v5578_v51, 0.0  ;;  %v6027_v47 = vmul.f32 %v11454_v15, %v5450_v5  ;;  %v11512_v58 = vpop.permute.xlu0 %3372  ;;  %v11514_v51 = vld [vmem:[#allocation3 + $0x23] ss:$0 sm:$0xff] }
 0x4f9   : > { %14058 = vst [vmem:[#allocation28_spill] sm:$0xff] %v11497_v1  ;;  %v3635_v52 = vadd.f32 %v3634_v18, %v3633_v13  ;;  %v5632_v55 = vsel %vm534_vm0, %v5579_v29, 0.0  ;;  %v5931_v39 = vmul.f32 %v5899_v16, %v5355_v19  ;;  %5479 = vperm.xlu1 %8400, %v11365_v23   ;;  %v14060_v13 = vld [vmem:[#allocation33_spill] sm:$0xff]  ;;  %14061 = vst [vmem:[#allocation40_spill] sm:$0xff] %v11512_v58  ;;  %v14062_v19 = vld [vmem:[#allocation22_spill] sm:$0xff]  ;;  %v3084_v5 = vsub.f32 1.0, %v3052_v20 }
 0x4fa   : > { %v6282_v43 = vmul.f32 %v14060_v13, %v6058_v61  ;;  %v4337_v34 = vadd.f32 %v4336_v57, %v4335_v49  ;;  %v4932_v9 = vrot.slane %v4931_v3, 2  ;;  %v5633_v18 = vadd.f32 %v5632_v55, %v5631_v24  ;;  %v8679_v16 = vld [vmem:[#allocation3 + $0x1e] ss:$0 sm:$0xff] }
 0x4fb   : > { %3651 = vst.msk [vmem:[#allocation5 + $0x7a] sm:$0x1] %vm2227_vm3, %v3635_v52  ;;  %v14063_v29 = vsub.f32 1.0, %v14062_v19  ;;  %v6059_v23 = vadd.f32 %v6027_v47, %v5931_v39  ;;  %v6571_v37 = vmul.f32 %v8679_v16, %v11485_v26  ;;  %v14064_v13 = vsub.f32 1.0, %v11390_v38  ;;  %8449 = vset.pattern.permute.xlu0 %v13921_v8  ;;  %v6858_v19 = vpop.permute.xlu1 %6857 }
 0x4fc   : > { %v4338_v52 = vrot.slane %v4337_v34, 1  ;;  %v4933_v49 = vadd.f32 %v4932_v9, %v4931_v3  ;;  %v5634_v57 = vrot.slane %v5633_v18, 4  ;;  %v11526_v55 = vmul.f32 %v11508_v48, %v14057_v2  ;;  %3412 = vperm.xlu0 %8449, %v11471_v14   ;;  %v11544_v48 = vld [vmem:[#allocation4 + $0x2c] ss:$0 sm:$0xff] }
 0x4fd   : > { %v6634_v15 = vmul.f32 %v14063_v29, %v6058_v61  ;;  %v4546_v30 = vmul.f32 %v14064_v13, %v11383_v60  ;;  %v11528_v61 = vld [vmem:[#allocation3 + $0x2c] ss:$0 sm:$0xff]  ;;  %v6283_v20 = vmul.f32 %v11485_v26, %v6059_v23  ;;  %v6603_v39 = vsub.f32 1.0, %v6571_v37  ;;  %8403 = vset.pattern.permute.xlu1 %v13838_v6  ;;  %v11533_v60 = vld [vmem:[#allocation4 + $0x23] ss:$0 sm:$0xff]  ;;  %v14067_v29 = vld [vmem:[#allocation55_spill] sm:$0xff] }
 0x4fe   : > { %14065 = vst [vmem:[#allocation52_spill] sm:$0xff] %v11526_v55  ;;  %14066 = vst [vmem:[#allocation35_spill] sm:$0xff] %v11528_v61  ;;  %v11537_v38 = vmul.f32 %v11514_v51, %v11138_v4  ;;  %v4339_v3 = vadd.f32 %v4338_v52, %v4337_v34  ;;  %v4934_v47 = vrot.slane %v4933_v49, 1  ;;  %v5635_v9 = vadd.f32 %v5634_v57, %v5633_v18  ;;  %v11551_v52 = vpop.permute.xlu0 %4071  ;;  %v14071_v57 = vld [vmem:[#allocation30_spill] sm:$0xff]  ;;  %v14081_v55 = vld [vmem:[#allocation53_spill] sm:$0xff] }
 0x4ff   : > { %6188 = vperm.xlu1 %8403, %v11397_v41   ;;  %v6762_v16 = vadd.f32 %v14067_v29, %v6634_v15  ;;  %v3116_v37 = vmul.f32 %v3084_v5, %v11153_v63  ;;  %v6335_v13 = vsel %vm534_vm0, %v6282_v43, 0.0  ;;  %v6336_v24 = vsel %vm534_vm0, %v6283_v20, 0.0  ;;  %14068 = vst [vmem:[#allocation65_spill] sm:$0xff] %v11544_v48  ;;  %14070 = vst [vmem:[#allocation63_spill] sm:$0xff] %v11551_v52  ;;  %v11562_v29 = vld [vmem:[#allocation2 + $0x78] sm:$0xff] }
 0x500   : > { %v11548_v2 = vmul.f32 %v11528_v61, %v11175_v12  ;;  %4355 = vst.msk [vmem:[#allocation5 + $0x7b] sm:$0x1] %vm2227_vm3, %v4339_v3  ;;  %v4935_v34 = vadd.f32 %v4934_v47, %v4933_v49  ;;  %v5636_v18 = vrot.slane %v5635_v9, 2  ;;  %v6337_v41 = vadd.f32 %v6336_v24, %v6335_v13  ;;  %8450 = vset.pattern.permute.xlu0 %v13931_v35  ;;  %v11565_v24 = vld [vmem:[#allocation3 + $0x26] ss:$0 sm:$0xff] }
 0x501   : > { %v11555_v15 = vmul.f32 %v11533_v60, %v11138_v4  ;;  %v3212_v43 = vmul.f32 %v11432_v46, %v11325_v22  ;;  %v6635_v5 = vmul.f32 %v6603_v39, %v6059_v23  ;;  %v6731_v20 = vmul.f32 %v14071_v57, %v11485_v26  ;;  %v8016_v47 = vld [vmem:[#allocation3 + $0x7c] ss:$0 sm:$0xff]  ;;  %4111 = vperm.xlu0 %8450, %v11493_v10   ;;  %v11573_v26 = vpop.permute.xlu1 %6862 }
 0x502   : > { %14069 = vst [vmem:[#allocation58_spill] sm:$0xff] %v11548_v2  ;;  %v11568_v3 = vadd.f32 %v11406_v59, %v4546_v30  ;;  %5047 = vst.msk [vmem:[#allocation5 + $0x1c] sm:$0x1] %vm2227_vm3, %v4935_v34  ;;  %v5637_v13 = vadd.f32 %v5636_v18, %v5635_v9  ;;  %v6338_v46 = vrot.slane %v6337_v41, 4  ;;  %v11577_v23 = vmul.f32 %v11544_v48, %v11175_v12  ;;  %v8032_v57 = vld [vmem:[#allocation4 + $0x7c] ss:$0 sm:$0xff]  ;;  %v11584_v49 = vpop.permute.xlu0 %4780 }
 0x503   : > { %8404 = vset.pattern.permute.xlu1 %v13826_v36  ;;  %v6986_v39 = vmul.f32 %v11185_v45, %v6762_v16  ;;  %v11580_v59 = vadd.f32 %v3212_v43, %v3116_v37  ;;  %v6763_v30 = vadd.f32 %v6731_v20, %v6635_v5  ;;  %v7879_v34 = vld [vmem:[#allocation3 + $0x30] ss:$0 sm:$0xff]  ;;  %14073 = vst [vmem:[#allocation27_spill] sm:$0xff] %v11584_v49  ;;  %v14079_v12 = vld [vmem:[#allocation71_spill] sm:$0xff] }
 0x504   : > { %14072 = vst [vmem:[#allocation21_spill] sm:$0xff] %v11577_v23  ;;  %1968 = vperm.xlu1 %8404, %v11562_v29   ;;  %v5638_v10 = vrot.slane %v5637_v13, 1  ;;  %v6339_v18 = vadd.f32 %v6338_v46, %v6337_v41  ;;  %v11588_v61 = vadd.f32 %v11368_v7, %v11380_v53  ;;  %v11592_v45 = vmul.f32 %v11565_v24, %v11217_v32  ;;  %v11604_v53 = vld [vmem:[#allocation4 + $0x26] ss:$0 sm:$0xff] }
 0x505   : > { %v5186_v16 = vmul.f32 %v8016_v47, %v11228_v44  ;;  %v4460_v37 = vmul.f32 %v11514_v51, %v11412_v11  ;;  %v6987_v43 = vmul.f32 %v6858_v19, %v6763_v30  ;;  %v11599_v5 = vmul.f32 %v11228_v44, %v11568_v3  ;;  %8453 = vset.pattern.permute.xlu0 %v13820_v21  ;;  %v14076_v51 = vld [vmem:[#allocation20_spill] sm:$0xff] }
 0x506   : > { %v11602_v41 = vmul.f32 %v8032_v57, %v11228_v44  ;;  %v5639_v20 = vadd.f32 %v5638_v10, %v5637_v13  ;;  %v6340_v7 = vrot.slane %v6339_v18, 2  ;;  %v7039_v46 = vsel %vm534_vm0, %v6986_v39, 0.0  ;;  %4820 = vperm.xlu0 %8453, %v11471_v14   ;;  %v1939_v44 = vpop.permute.xlu1 %1938  ;;  %v11615_v13 = vld [vmem:[#allocation2 + $0x80] sm:$0xff]  ;;  %v11627_v23 = vpop.permute.xlu0 %5484 }
 0x507   : > { %14074 = vst [vmem:[#allocation68_spill] sm:$0xff] %v11599_v5  ;;  %v2352_v47 = vmul.f32 %v7879_v34, %v11267_v27  ;;  %v14077_v19 = vsub.f32 1.0, %v14076_v51  ;;  %v7040_v9 = vsel %vm534_vm0, %v6987_v43, 0.0  ;;  %v2060_v39 = vmul.f32 %v11283_v56, %v1939_v44  ;;  %v8680_v34 = vld [vmem:[#allocation3 + $0x20] ss:$0 sm:$0xff]  ;;  %14078 = vst [vmem:[#allocation61_spill] sm:$0xff] %v11627_v23 }
 0x508   : > { %14075 = vst [vmem:[#allocation29_spill] sm:$0xff] %v11602_v41  ;;  %8407 = vset.pattern.permute.xlu1 %v14026_v28  ;;  %5751 = vst.msk [vmem:[#allocation5 + $0x1d] sm:$0x1] %vm2227_vm3, %v5639_v20  ;;  %v6341_v57 = vadd.f32 %v6340_v7, %v6339_v18  ;;  %v7041_v10 = vadd.f32 %v7040_v9, %v7039_v46  ;;  %v2349_v48 = vmul.f32 %v8680_v34, %v1939_v44  ;;  %v11623_v14 = vld [vmem:[%s13542_s4] sm:$0xff]  ;;  %v7895_v46 = vld [vmem:[#allocation4 + $0x30] ss:$0 sm:$0xff] }
 0x509   : > { %v3820_v30 = vmul.f32 %v14077_v19, %v11580_v59  ;;  %2678 = vperm.xlu1 %8407, %v11615_v13   ;;  %v5218_v51 = vsub.f32 1.0, %v5186_v16  ;;  %v2063_v43 = vmul.f32 %v11623_v14, %v11267_v27  ;;  %v4492_v19 = vsub.f32 1.0, %v4460_v37  ;;  %v14080_v41 = vld [vmem:[#allocation67_spill] sm:$0xff] }
 0x50a   : > { %v11631_v9 = vmul.f32 %v11604_v53, %v11217_v32  ;;  %v6342_v18 = vrot.slane %v6341_v57, 1  ;;  %v7042_v20 = vrot.slane %v7041_v10, 4  ;;  %v2120_v7 = vsel %vm534_vm0, %v2060_v39, 0.0  ;;  %8457 = vset.pattern.permute.xlu0 %v14026_v28  ;;  %v11640_v23 = vld [vmem:[#allocation2 + $0xb8] sm:$0xff] }
 0x50b   : > { %v2381_v16 = vsub.f32 1.0, %v2349_v48  ;;  %v2384_v34 = vsub.f32 1.0, %v2352_v47  ;;  %v11635_v2 = vadd.f32 %v14079_v12, %v3820_v30  ;;  %v2121_v5 = vadd.f32 %v2120_v7, %v14080_v41  ;;  %2713 = vperm.xlu0 %8457, %v11640_v23   ;;  %v11646_v12 = vpop.permute.xlu1 %2648  ;;  %v7943_v7 = vld [vmem:[#allocation3 + $0x32] ss:$0 sm:$0xff] }
 0x50c   : > { %v2509_v37 = vmul.f32 %v14081_v55, %v1939_v44  ;;  %v6343_v49 = vadd.f32 %v6342_v18, %v6341_v57  ;;  %v7043_v52 = vadd.f32 %v7042_v20, %v7041_v10  ;;  %v11649_v48 = vsel %vm534_vm0, %v2063_v43, 0.0  ;;  %v11661_v10 = vpop.permute.xlu0 %6183 }
 0x50d   : > { %v2413_v39 = vmul.f32 %v11283_v56, %v2381_v16  ;;  %8408 = vset.pattern.permute.xlu1 %v13921_v8  ;;  %14082 = vst [vmem:[#allocation45_spill] sm:$0xff] %v11649_v48  ;;  %v2764_v55 = vmul.f32 %v11325_v22, %v11153_v63  ;;  %v4524_v41 = vmul.f32 %v4492_v19, %v11635_v2  ;;  %v2122_v47 = vrot.slane %v2121_v5, 4  ;;  %v11658_v56 = vld [vmem:[#allocation3 + $0x29] ss:$0 sm:$0xff]  ;;  %v14087_v19 = vld [vmem:[#allocation42_spill] sm:$0xff] }
 0x50e   : > { %3377 = vperm.xlu1 %8408, %v11562_v29   ;;  %v11656_v30 = vmul.f32 %v7895_v46, %v11267_v27  ;;  %6455 = vst.msk [vmem:[#allocation5 + $0x1e] sm:$0x1] %vm2227_vm3, %v6343_v49  ;;  %v7044_v44 = vrot.slane %v7043_v52, 2  ;;  %14084 = vst [vmem:[#allocation33_spill] sm:$0xff] %v11661_v10  ;;  %v11664_v43 = vmul.f32 %v5218_v51, %v11568_v3  ;;  %v11669_v22 = vld [vmem:[#allocation4 + $0x29] ss:$0 sm:$0xff] }
 0x50f   : > { %v2541_v57 = vadd.f32 %v2509_v37, %v2413_v39  ;;  %v11667_v63 = vmul.f32 %v11623_v14, %v2384_v34  ;;  %v11673_v27 = vmul.f32 %v11658_v56, %v14087_v19  ;;  %v4620_v18 = vmul.f32 %v11533_v60, %v11412_v11  ;;  %8459 = vset.pattern.permute.xlu0 %v13931_v35  ;;  %v14091_v37 = vld [vmem:[#allocation31_spill] sm:$0xff] }
 0x510   : > { %14083 = vst [vmem:[#allocation54_spill] sm:$0xff] %v11656_v30  ;;  %14085 = vst [vmem:[#allocation22_spill] sm:$0xff] %v11664_v43  ;;  %v2123_v49 = vadd.f32 %v2122_v47, %v2121_v5  ;;  %v11679_v20 = vmul.f32 %v11669_v22, %v14087_v19  ;;  %v7045_v3 = vadd.f32 %v7044_v44, %v7043_v52  ;;  %v14090_v16 = vsub.f32 1.0, %v11416_v40  ;;  %v3348_v52 = vpop.permute.xlu1 %3347  ;;  %v8007_v47 = vld [vmem:[#allocation3 + $0x34] ss:$0 sm:$0xff] }
 0x511   : > { %14086 = vst [vmem:[#allocation55_spill] sm:$0xff] %v11667_v63  ;;  %14088 = vst [vmem:[#allocation30_spill] sm:$0xff] %v11673_v27  ;;  %v2765_v51 = vmul.f32 %v14045_v50, %v2541_v57  ;;  %v2824_v34 = vsel %vm534_vm0, %v2764_v55, 0.0  ;;  %v3468_v39 = vmul.f32 %v14091_v37, %v11580_v59  ;;  %v11688_v60 = vadd.f32 %v4620_v18, %v4524_v41  ;;  %v11700_v41 = vld [vmem:[#allocation3 + $0x2b] ss:$0 sm:$0xff] }
 0x512   : > { %14089 = vst [vmem:[#allocation20_spill] sm:$0xff] %v11679_v20  ;;  %v3117_v46 = vmul.f32 %v14090_v16, %v2541_v57  ;;  %v2124_v5 = vrot.slane %v2123_v49, 2  ;;  %4121 = vperm.xlu0 %8459, %v11640_v23   ;;  %8411 = vset.pattern.permute.xlu1 %v13931_v35  ;;  %v7046_v50 = vrot.slane %v7045_v3, 1  ;;  %v14092_v57 = vld [vmem:[#allocation39_spill] sm:$0xff]  ;;  %v11698_v55 = vmul.f32 %v7943_v7, %v11323_v54  ;;  %v14095_v20 = vld [vmem:[#allocation50_spill] sm:$0xff] }
 0x513   : > { %v2825_v44 = vsel %vm534_vm0, %v2765_v51, 0.0  ;;  %v3757_v16 = vmul.f32 %v14092_v57, %v3348_v52  ;;  %4086 = vperm.xlu1 %8411, %v11615_v13   ;;  %v11704_v1 = vmul.f32 %v11700_v41, %v11346_v25  ;;  %v7959_v57 = vld [vmem:[#allocation4 + $0x32] ss:$0 sm:$0xff]  ;;  %v11709_v43 = vmul.f32 %v8007_v47, %v14095_v20  ;;  %v14097_v7 = vld [vmem:[#allocation75_spill] sm:$0xff] }
 0x514   : > { %v3245_v40 = vadd.f32 %v11447_v0, %v3117_v46  ;;  %14093 = vst [vmem:[#allocation71_spill] sm:$0xff] %v11698_v55  ;;  %v2125_v18 = vadd.f32 %v2124_v5, %v2123_v49  ;;  %v2826_v37 = vadd.f32 %v2825_v44, %v2824_v34  ;;  %v7047_v51 = vadd.f32 %v7046_v50, %v7045_v3  ;;  %v11706_v46 = vpop.permute.xlu0 %1973  ;;  %v5406_v34 = vld [vmem:[#allocation2 + $0xd0] sm:$0xff] }
 0x515   : > { %v3789_v0 = vsub.f32 1.0, %v3757_v16  ;;  %14094 = vst [vmem:[#allocation67_spill] sm:$0xff] %v11706_v46  ;;  %14096 = vst [vmem:[#allocation53_spill] sm:$0xff] %v11709_v43  ;;  %v14098_v59 = vsub.f32 1.0, %v14097_v7  ;;  %v8023_v5 = vld [vmem:[#allocation4 + $0x34] ss:$0 sm:$0xff]  ;;  %v11720_v7 = vpop.permute.xlu1 %4056  ;;  %v4172_v10 = vmul.f32 %v11412_v11, %v11635_v2 }
 0x516   : > { %v3469_v48 = vmul.f32 %v3348_v52, %v3245_v40  ;;  %v2126_v19 = vrot.slane %v2125_v18, 1  ;;  %v2827_v49 = vrot.slane %v2826_v37, 4  ;;  %8461 = vset.pattern.permute.xlu0 %v13824_v42  ;;  %7159 = vst.msk [vmem:[#allocation5 + $0x1f] sm:$0x1] %vm2227_vm3, %v7047_v51  ;;  %v3528_v3 = vsel %vm534_vm0, %v3468_v39, 0.0  ;;  %v14099_v16 = vld [vmem:[#allocation34_spill] sm:$0xff] }
 0x517   : > { %v5228_v27 = vmul.f32 %v14098_v59, %v11688_v60  ;;  %v3821_v44 = vmul.f32 %v3789_v0, %v3245_v40  ;;  %v3917_v47 = vmul.f32 %v14099_v16, %v3348_v52  ;;  %5544 = vperm.xlu0 %8461, %v5406_v34   ;;  %8412 = vset.pattern.permute.xlu1 %v13820_v21  ;;  %v11722_v59 = vld [vmem:[#allocation4 + $0x2b] ss:$0 sm:$0xff]  ;;  %v8039_v46 = vld [vmem:[#allocation3 + $0x35] ss:$0 sm:$0xff] }
 0x518   : > { %v3529_v50 = vsel %vm534_vm0, %v3469_v48, 0.0  ;;  %v2127_v30 = vadd.f32 %v2126_v19, %v2125_v18  ;;  %v2828_v51 = vadd.f32 %v2827_v49, %v2826_v37  ;;  %4785 = vperm.xlu1 %8412, %v11562_v29   ;;  %v11729_v39 = vmul.f32 %v7959_v57, %v11323_v54  ;;  %v11735_v0 = vpop.permute.xlu0 %2673  ;;  %v11742_v18 = vld [vmem:[#allocation2 + $0xe0] sm:$0xff]  ;;  %v14102_v57 = vld [vmem:[#allocation43_spill] sm:$0xff]  ;;  %v8055_v16 = vld [vmem:[#allocation4 + $0x35] ss:$0 sm:$0xff] }
 0x519   : > { %v3530_v63 = vadd.f32 %v3529_v50, %v3528_v3  ;;  %v11733_v52 = vmul.f32 %v11722_v59, %v11346_v25  ;;  %v3949_v40 = vadd.f32 %v3917_v47, %v3821_v44  ;;  %v11739_v11 = vmul.f32 %v8023_v5, %v14095_v20  ;;  %v14104_v3 = vld [vmem:[#allocation56_spill] sm:$0xff]  ;;  %v4756_v37 = vpop.permute.xlu1 %4755 }
 0x51a   : > { %14100 = vst [vmem:[#allocation31_spill] sm:$0xff] %v11729_v39  ;;  %2232 = vst.msk [vmem:[#allocation5 + $0x20] sm:$0x1] %vm2227_vm3, %v2127_v30  ;;  %v2829_v2 = vrot.slane %v2828_v51, 2  ;;  %v11746_v49 = vmul.f32 %v8039_v46, %v14102_v57  ;;  %v5356_v50 = vadd.f32 %v14104_v3, %v5228_v27  ;;  %v4232_v5 = vsel %vm534_vm0, %v4172_v10, 0.0  ;;  %v14106_v46 = vld [vmem:[#allocation47_spill] sm:$0xff] }
 0x51b   : > { %14101 = vst [vmem:[#allocation39_spill] sm:$0xff] %v11739_v11  ;;  %v3531_v19 = vrot.slane %v3530_v63, 4  ;;  %v4173_v44 = vmul.f32 %v11138_v4, %v3949_v40  ;;  %5554 = vperm.xlu0 %8461, %v11742_v18   ;;  %v14105_v48 = vsub.f32 1.0, %v11537_v38  ;;  %v4876_v20 = vmul.f32 %v14106_v46, %v11688_v60  ;;  %v14107_v3 = vld [vmem:[#allocation73_spill] sm:$0xff] }
 0x51c   : > { %14103 = vst [vmem:[#allocation75_spill] sm:$0xff] %v11746_v49  ;;  %v2830_v47 = vadd.f32 %v2829_v2, %v2828_v51  ;;  %8414 = vset.pattern.permute.xlu1 %v13824_v42  ;;  %v6572_v27 = vmul.f32 %v11565_v24, %v11506_v33  ;;  %v5165_v11 = vmul.f32 %v14107_v3, %v4756_v37  ;;  %v11762_v10 = vld [vmem:[#allocation3 + $0x2e] ss:$0 sm:$0xff]  ;;  %v11775_v3 = vpop.permute.xlu0 %3382 }
 0x51d   : > { %v3532_v30 = vadd.f32 %v3531_v19, %v3530_v63  ;;  %v4525_v34 = vmul.f32 %v14105_v48, %v3949_v40  ;;  %v4233_v4 = vsel %vm534_vm0, %v4173_v44, 0.0  ;;  %5489 = vperm.xlu1 %8414, %v11562_v29   ;;  %v7175_v38 = vld [vmem:[#allocation5 + $0x18] sm:$0xff]  ;;  %v5410_v40 = vld [vmem:[#allocation2 + $0xf0] sm:$0xff]  ;;  %v11766_v60 = vmul.f32 %v8055_v16, %v14102_v57  ;;  %v14110_v19 = vld [vmem:[#allocation76_spill] sm:$0xff]  ;;  %14112 = vst [vmem:[#allocation47_spill] sm:$0xff] %v11775_v3 }
 0x51e   : > { %v2831_v63 = vrot.slane %v2830_v47, 1  ;;  %v4234_v2 = vadd.f32 %v4233_v4, %v4232_v5  ;;  %v11770_v24 = vmul.f32 %v11762_v10, %v11443_v62  ;;  %v14111_v44 = vsub.f32 1.0, %v14110_v19  ;;  %8151 = vmatmul.mubr.msk.f32.gmra.mrb[26].mxu0 %vm534_vm0, %v7175_v38  ;;  %v5460_v19 = vpop.permute.xlu1 %5459 }
 0x51f   : > { %v3533_v51 = vrot.slane %v3532_v30, 2  ;;  %v4653_v48 = vadd.f32 %v11555_v15, %v4525_v34  ;;  %14108 = vst [vmem:[#allocation34_spill] sm:$0xff] %v11766_v60  ;;  %v5197_v29 = vsub.f32 1.0, %v5165_v11  ;;  %5564 = vperm.xlu0 %8461, %v5410_v40   ;;  %v6604_v54 = vsub.f32 1.0, %v6572_v27  ;;  %v14113_v60 = vld [vmem:[#allocation74_spill] sm:$0xff]  ;;  %v14114_v27 = vld [vmem:[#allocation59_spill] sm:$0xff] }
 0x520   : > { %14109 = vst [vmem:[#allocation56_spill] sm:$0xff] %v11770_v24  ;;  %v5932_v46 = vmul.f32 %v14111_v44, %v5356_v50  ;;  %v2832_v5 = vadd.f32 %v2831_v63, %v2830_v47  ;;  %v4235_v15 = vrot.slane %v4234_v2, 4  ;;  %v4936_v16 = vsel %vm534_vm0, %v4876_v20, 0.0  ;;  %v7880_v44 = vld [vmem:[#allocation3 + $0x38] ss:$0 sm:$0xff] }
 0x521   : > { %v3534_v4 = vadd.f32 %v3533_v51, %v3532_v30  ;;  %v4877_v34 = vmul.f32 %v4756_v37, %v4653_v48  ;;  %v5229_v57 = vmul.f32 %v5197_v29, %v4653_v48  ;;  %v5325_v43 = vmul.f32 %v14113_v60, %v4756_v37  ;;  %8417 = vset.pattern.permute.xlu1 %v13838_v6  ;;  %v8682_v47 = vld [vmem:[#allocation3 + $0x25] ss:$0 sm:$0xff]  ;;  %v14115_v48 = vld [vmem:[#allocation46_spill] sm:$0xff]  ;;  %v11786_v60 = vpop.permute.xlu0 %4081 }
 0x522   : > { %2936 = vst.msk [vmem:[#allocation5 + $0x21] sm:$0x1] %vm2227_vm3, %v2832_v5  ;;  %v4236_v38 = vadd.f32 %v4235_v15, %v4234_v2  ;;  %v5869_v30 = vmul.f32 %v8682_v47, %v5460_v19  ;;  %6198 = vperm.xlu1 %8417, %v11615_v13   ;;  %v6060_v63 = vadd.f32 %v14114_v27, %v5932_v46  ;;  %14116 = vst [vmem:[#allocation73_spill] sm:$0xff] %v11786_v60 }
 0x523   : > { %v3535_v11 = vrot.slane %v3534_v4, 1  ;;  %v4937_v40 = vsel %vm534_vm0, %v4877_v34, 0.0  ;;  %v5357_v51 = vadd.f32 %v5325_v43, %v5229_v57  ;;  %v5580_v37 = vmul.f32 %v14115_v48, %v5356_v50  ;;  %5529 = vperm.xlu0 %8461, %v11640_v23  }
 0x524   : > { %v4938_v20 = vadd.f32 %v4937_v40, %v4936_v16  ;;  %v2065_v29 = vmul.f32 %v11623_v14, %v11465_v17  ;;  %v4237_v5 = vrot.slane %v4236_v38, 2  ;;  %v5901_v15 = vsub.f32 1.0, %v5869_v30  ;;  %v11792_v16 = vpop.permute.xlu1 %5464  ;;  %v14117_v40 = vld [vmem:[#allocation77_spill] sm:$0xff] }
 0x525   : > { %v3536_v2 = vadd.f32 %v3535_v11, %v3534_v4  ;;  %v2354_v34 = vmul.f32 %v7880_v44, %v11465_v17  ;;  %v6284_v13 = vmul.f32 %v11506_v33, %v6060_v63  ;;  %v5581_v46 = vmul.f32 %v5460_v19, %v5357_v51  ;;  %v11797_v4 = vld [vmem:[#allocation2 + $0x88] sm:$0xff] }
 0x526   : > { %v4939_v47 = vrot.slane %v4938_v20, 4  ;;  %v6636_v43 = vmul.f32 %v6604_v54, %v6060_v63  ;;  %v4238_v57 = vadd.f32 %v4237_v5, %v4236_v38  ;;  %v5933_v50 = vmul.f32 %v5901_v15, %v5357_v51  ;;  %8418 = vset.pattern.permute.xlu1 %v13826_v36  ;;  %v11805_v54 = vld [vmem:[#allocation3 + $0x31] ss:$0 sm:$0xff]  ;;  %v11809_v51 = vpop.permute.xlu0 %4790  ;;  %v7896_v15 = vld [vmem:[#allocation4 + $0x38] ss:$0 sm:$0xff] }
 0x527   : > { %3640 = vst.msk [vmem:[#allocation5 + $0x22] sm:$0x1] %vm2227_vm3, %v3536_v2  ;;  %v6029_v27 = vmul.f32 %v14117_v40, %v5460_v19  ;;  %v3054_v44 = vmul.f32 %v11658_v56, %v11646_v12  ;;  %v5640_v30 = vsel %vm534_vm0, %v5580_v37, 0.0  ;;  %v5641_v48 = vsel %vm534_vm0, %v5581_v46, 0.0  ;;  %8468 = vset.pattern.permute.xlu0 %v13838_v6  ;;  %1978 = vperm.xlu1 %8418, %v11797_v4  }
 0x528   : > { %v4940_v11 = vadd.f32 %v4939_v47, %v4938_v20  ;;  %v6732_v19 = vmul.f32 %v11604_v53, %v11506_v33  ;;  %v4239_v38 = vrot.slane %v4238_v57, 1  ;;  %v5642_v63 = vadd.f32 %v5641_v48, %v5640_v30  ;;  %14118 = vst [vmem:[#allocation76_spill] sm:$0xff] %v11809_v51  ;;  %6203 = vperm.xlu0 %8468, %v11797_v4   ;;  %v7944_v47 = vld [vmem:[#allocation3 + $0x3a] ss:$0 sm:$0xff]  ;;  %v11814_v55 = vpop.permute.xlu1 %6168  ;;  %v11820_v30 = vld [vmem:[#allocation4 + $0x31] ss:$0 sm:$0xff] }
 0x529   : > { %v6061_v56 = vadd.f32 %v6029_v27, %v5933_v50  ;;  %v2386_v2 = vsub.f32 1.0, %v2354_v34  ;;  %v11818_v53 = vsel %vm534_vm0, %v2065_v29, 0.0  ;;  %v11824_v50 = vmul.f32 %v11805_v54, %v11487_v31  ;;  %v8683_v48 = vld [vmem:[#allocation2 + $0xa0] sm:$0xff] }
 0x52a   : > { %v4941_v5 = vrot.slane %v4940_v11, 2  ;;  %v6764_v46 = vadd.f32 %v6732_v19, %v6636_v43  ;;  %v4240_v40 = vadd.f32 %v4239_v38, %v4238_v57  ;;  %v5643_v39 = vrot.slane %v5642_v63, 4  ;;  %14119 = vst [vmem:[#allocation74_spill] sm:$0xff] %v11818_v53  ;;  %v11827_v43 = vld [vmem:[#allocation2 + $0x90] sm:$0xff]  ;;  %v14127_v53 = vld [vmem:[#allocation63_spill] sm:$0xff] }
 0x52b   : > { %v6285_v33 = vmul.f32 %v11217_v32, %v6061_v56  ;;  %14120 = vst [vmem:[#allocation59_spill] sm:$0xff] %v11824_v50  ;;  %v3086_v34 = vsub.f32 1.0, %v3054_v44  ;;  %8421 = vset.pattern.permute.xlu1 %v14026_v28  ;;  %v6344_v57 = vsel %vm534_vm0, %v6284_v13, 0.0  ;;  %v14121_v19 = vsub.f32 1.0, %v11592_v45  ;;  %v11841_v13 = vld [vmem:[#allocation3 + $0x33] ss:$0 sm:$0xff] }
 0x52c   : > { %v4942_v27 = vadd.f32 %v4941_v5, %v4940_v11  ;;  %4344 = vst.msk [vmem:[#allocation5 + $0x23] sm:$0x1] %vm2227_vm3, %v4240_v40  ;;  %v5644_v32 = vadd.f32 %v5643_v39, %v5642_v63  ;;  %6218 = vperm.xlu0 %8468, %v8683_v48   ;;  %2688 = vperm.xlu1 %8421, %v11827_v43   ;;  %v7960_v11 = vld [vmem:[#allocation4 + $0x3a] ss:$0 sm:$0xff] }
 0x52d   : > { %v6345_v29 = vsel %vm534_vm0, %v6285_v33, 0.0  ;;  %v6637_v38 = vmul.f32 %v14121_v19, %v6061_v56  ;;  %v11836_v44 = vmul.f32 %v7896_v15, %v11465_v17  ;;  %v11839_v5 = vmul.f32 %v7944_v47, %v11512_v58  ;;  %v11851_v17 = vpop.permute.xlu0 %5494  ;;  %v11853_v15 = vld [vmem:[#allocation4 + $0x33] ss:$0 sm:$0xff]  ;;  %v8008_v47 = vld [vmem:[#allocation3 + $0x3c] ss:$0 sm:$0xff] }
 0x52e   : > { %v4943_v40 = vrot.slane %v4942_v27, 1  ;;  %v6346_v39 = vadd.f32 %v6345_v29, %v6344_v57  ;;  %v11844_v63 = vmul.f32 %v11623_v14, %v2386_v2  ;;  %v11848_v33 = vmul.f32 %v11820_v30, %v11487_v31  ;;  %14124 = vst [vmem:[#allocation78_spill] sm:$0xff] %v11851_v17  ;;  %14125 = vst [vmem:[#allocation79_spill] sm:$0xff] %v11853_v15  ;;  %v6868_v2 = vpop.permute.xlu1 %6867 }
 0x52f   : > { %14122 = vst [vmem:[#allocation46_spill] sm:$0xff] %v11839_v5  ;;  %v6988_v45 = vmul.f32 %v11573_v26, %v6764_v46  ;;  %v5645_v56 = vrot.slane %v5644_v32, 2  ;;  %v3118_v48 = vmul.f32 %v3086_v34, %v11588_v61  ;;  %v6765_v57 = vadd.f32 %v11631_v9, %v6637_v38  ;;  %v14133_v34 = vld [vmem:[#allocation44_spill] sm:$0xff] }
 0x530   : > { %14123 = vst [vmem:[#allocation77_spill] sm:$0xff] %v11848_v33  ;;  %v4944_v19 = vadd.f32 %v4943_v40, %v4942_v27  ;;  %v6347_v37 = vrot.slane %v6346_v39, 4  ;;  %v11859_v20 = vmul.f32 %v7960_v11, %v11512_v58  ;;  %v11863_v26 = vmul.f32 %v11841_v13, %v14127_v53  ;;  %6233 = vperm.xlu0 %8468, %v11640_v23   ;;  %v14130_v40 = vld [vmem:[#allocation27_spill] sm:$0xff]  ;;  %v14144_v33 = vld [vmem:[#allocation25_spill] sm:$0xff] }
 0x531   : > { %v5646_v46 = vadd.f32 %v5645_v56, %v5644_v32  ;;  %8422 = vset.pattern.permute.xlu1 %v13921_v8  ;;  %v3214_v9 = vmul.f32 %v11669_v22, %v11646_v12  ;;  %v6989_v38 = vmul.f32 %v6868_v2, %v6765_v57  ;;  %v11874_v11 = vmul.f32 %v11853_v15, %v14127_v53  ;;  %v8024_v32 = vld [vmem:[#allocation4 + $0x3c] ss:$0 sm:$0xff]  ;;  %v11879_v29 = vpop.permute.xlu0 %6193  ;;  %v6109_v2 = vld [vmem:[#allocation2 + $0xc8] sm:$0xff] }
 0x532   : > { %14126 = vst [vmem:[#allocation80_spill] sm:$0xff] %v11859_v20  ;;  %14128 = vst [vmem:[#allocation81_spill] sm:$0xff] %v11863_v26  ;;  %v6348_v27 = vadd.f32 %v6347_v37, %v6346_v39  ;;  %3387 = vperm.xlu1 %8422, %v11797_v4   ;;  %v11877_v23 = vmul.f32 %v8008_v47, %v14130_v40  ;;  %v14134_v58 = vld [vmem:[#allocation51_spill] sm:$0xff]  ;;  %v7048_v37 = vsel %vm534_vm0, %v6988_v45, 0.0  ;;  %v1949_v24 = vpop.permute.xlu1 %1948  ;;  %v14142_v53 = vld [vmem:[#allocation61_spill] sm:$0xff] }
 0x533   : > { %5048 = vst.msk [vmem:[#allocation5 + $0x24] sm:$0x1] %vm2227_vm3, %v4944_v19  ;;  %14129 = vst [vmem:[#allocation82_spill] sm:$0xff] %v11874_v11  ;;  %v5647_v56 = vrot.slane %v5646_v46, 1  ;;  %v11883_v22 = vadd.f32 %v14134_v58, %v14133_v34  ;;  %v11886_v39 = vadd.f32 %v3214_v9, %v3118_v48  ;;  %v7049_v57 = vsel %vm534_vm0, %v6989_v38, 0.0  ;;  %v11898_v48 = vld [vmem:[%s13542_s4 + $0x8] sm:$0xff] }
 0x534   : > { %14131 = vst [vmem:[#allocation83_spill] sm:$0xff] %v11877_v23  ;;  %14132 = vst [vmem:[#allocation84_spill] sm:$0xff] %v11879_v29  ;;  %v6349_v19 = vrot.slane %v6348_v27, 2  ;;  %v4462_v47 = vmul.f32 %v11700_v41, %v11720_v7  ;;  %v7050_v11 = vadd.f32 %v7049_v57, %v7048_v37  ;;  %6243 = vperm.xlu0 %8468, %v6109_v2   ;;  %v8040_v34 = vld [vmem:[#allocation3 + $0x3d] ss:$0 sm:$0xff]  ;;  %v14139_v37 = vld [vmem:[#allocation37_spill] sm:$0xff] }
 0x535   : > { %14135 = vst [vmem:[#allocation44_spill] sm:$0xff] %v11883_v22  ;;  %v5648_v5 = vadd.f32 %v5647_v56, %v5646_v46  ;;  %v11893_v58 = vmul.f32 %v8024_v32, %v14130_v40  ;;  %v2062_v9 = vmul.f32 %v11898_v48, %v1949_v24  ;;  %v8685_v38 = vld [vmem:[#allocation3 + $0x28] ss:$0 sm:$0xff]  ;;  %v14137_v32 = vld [vmem:[#allocation55_spill] sm:$0xff]  ;;  %v14140_v2 = vld [vmem:[#allocation28_spill] sm:$0xff]  ;;  %v11920_v49 = vmul.f32 %v8040_v34, %v14142_v53 }
 0x536   : > { %v6350_v45 = vadd.f32 %v6349_v19, %v6348_v27  ;;  %v2351_v20 = vmul.f32 %v8685_v38, %v1949_v24  ;;  %8425 = vset.pattern.permute.xlu1 %v13931_v35  ;;  %v7051_v46 = vrot.slane %v7050_v11, 4  ;;  %v14138_v27 = vld [vmem:[#allocation54_spill] sm:$0xff]  ;;  %v4897_v19 = vmul.f32 %v14139_v37, %v11883_v22  ;;  %v8056_v57 = vld [vmem:[#allocation4 + $0x3d] ss:$0 sm:$0xff] }
 0x537   : > { %14136 = vst [vmem:[#allocation51_spill] sm:$0xff] %v11893_v58  ;;  %5752 = vst.msk [vmem:[#allocation5 + $0x25] sm:$0x1] %vm2227_vm3, %v5648_v5  ;;  %4096 = vperm.xlu1 %8425, %v11827_v43   ;;  %v11907_v56 = vadd.f32 %v14138_v27, %v14137_v32  ;;  %v14141_v38 = vsub.f32 1.0, %v14140_v2  ;;  %v2129_v41 = vsel %vm534_vm0, %v2062_v9, 0.0  ;;  %v11915_v5 = vpop.permute.xlu0 %1983  ;;  %v11917_v26 = vld [vmem:[#allocation2 + $0xd8] sm:$0xff]  ;;  %v11925_v9 = vpop.permute.xlu1 %2658  ;;  %v11929_v22 = vmul.f32 %v8056_v57, %v14142_v53 }
 0x538   : > { %v6351_v40 = vrot.slane %v6350_v45, 1  ;;  %v2383_v23 = vsub.f32 1.0, %v2351_v20  ;;  %14143 = vst [vmem:[#allocation55_spill] sm:$0xff] %v11920_v49  ;;  %v4494_v32 = vsub.f32 1.0, %v4462_v47  ;;  %v7052_v27 = vadd.f32 %v7051_v46, %v7050_v11  ;;  %6253 = vperm.xlu0 %8468, %v11917_v26   ;;  %v11933_v11 = vld [vmem:[#allocation3 + $0x36] ss:$0 sm:$0xff] }
 0x539   : > { %v3822_v58 = vmul.f32 %v14141_v38, %v11886_v39  ;;  %v2130_v37 = vadd.f32 %v2129_v41, %v14144_v33  ;;  %v8686_v38 = vld [vmem:[#allocation4 + $0x28] ss:$0 sm:$0xff]  ;;  %v5027_v20 = vsel %vm534_vm0, %v4897_v19, 0.0  ;;  %14145 = vst [vmem:[#allocation54_spill] sm:$0xff] %v11929_v22  ;;  %v2766_v47 = vmul.f32 %v11646_v12, %v11588_v61  ;;  %14146 = vst [vmem:[#allocation37_spill] sm:$0xff] %v11933_v11  ;;  %v14149_v61 = vld [vmem:[#allocation68_spill] sm:$0xff] }
 0x53a   : > { %v6352_v50 = vadd.f32 %v6351_v40, %v6350_v45  ;;  %v2415_v2 = vmul.f32 %v11898_v48, %v2383_v23  ;;  %v2511_v31 = vmul.f32 %v8686_v38, %v1949_v24  ;;  %v7053_v33 = vrot.slane %v7052_v27, 2  ;;  %v11936_v40 = vld [vmem:[#allocation4 + $0x2e] ss:$0 sm:$0xff]  ;;  %v14147_v23 = vld [vmem:[#allocation52_spill] sm:$0xff]  ;;  %v14154_v22 = vld [vmem:[#allocation42_spill] sm:$0xff] }
 0x53b   : > { %v2131_v34 = vrot.slane %v2130_v37, 4  ;;  %8426 = vset.pattern.permute.xlu1 %v13820_v21  ;;  %v3950_v24 = vadd.f32 %v14147_v23, %v3822_v58  ;;  %v11943_v41 = vmul.f32 %v11936_v40, %v11443_v62  ;;  %v11947_v12 = vsel %vm534_vm0, %v14149_v61, 0.0  ;;  %v7881_v19 = vld [vmem:[#allocation3 + $0x40] ss:$0 sm:$0xff]  ;;  %v14151_v58 = vld [vmem:[#allocation57_spill] sm:$0xff]  ;;  %v14160_v46 = vld [vmem:[#allocation67_spill] sm:$0xff] }
 0x53c   : > { %6456 = vst.msk [vmem:[#allocation5 + $0x26] sm:$0x1] %vm2227_vm3, %v6352_v50  ;;  %v2543_v45 = vadd.f32 %v2511_v31, %v2415_v2  ;;  %4795 = vperm.xlu1 %8426, %v11797_v4   ;;  %14150 = vst [vmem:[#allocation25_spill] sm:$0xff] %v11947_v12  ;;  %v7054_v57 = vadd.f32 %v7053_v33, %v7052_v27  ;;  %6258 = vperm.xlu0 %8468, %v11742_v18   ;;  %v14152_v31 = vld [vmem:[#allocation33_spill] sm:$0xff]  ;;  %v2833_v27 = vsel %vm534_vm0, %v2766_v47, 0.0  ;;  %v3358_v33 = vpop.permute.xlu1 %3357  ;;  %v14161_v49 = vld [vmem:[#allocation30_spill] sm:$0xff] }
 0x53d   : > { %14148 = vst [vmem:[#allocation28_spill] sm:$0xff] %v11943_v41  ;;  %v2132_v38 = vadd.f32 %v2131_v34, %v2130_v37  ;;  %v11952_v50 = vadd.f32 %v5027_v20, %v14151_v58  ;;  %v11956_v2 = vmul.f32 %v11933_v11, %v14152_v31  ;;  %v4526_v23 = vmul.f32 %v4494_v32, %v3950_v24  ;;  %v11959_v41 = vpop.permute.xlu0 %2683  ;;  %v14157_v20 = vld [vmem:[#allocation22_spill] sm:$0xff]  ;;  %v14158_v34 = vld [vmem:[#allocation29_spill] sm:$0xff] }
 0x53e   : > { %v2767_v53 = vmul.f32 %v14154_v22, %v2543_v45  ;;  %14155 = vst [vmem:[#allocation68_spill] sm:$0xff] %v11959_v41  ;;  %v11963_v61 = vadd.f32 %v11836_v44, %v11844_v63  ;;  %v7055_v37 = vrot.slane %v7054_v57, 1  ;;  %v11968_v58 = vadd.f32 %v14158_v34, %v14157_v20  ;;  %v11977_v63 = vld [vmem:[#allocation2 + $0xf8] sm:$0xff]  ;;  %v11979_v47 = vld [vmem:[#allocation3 + $0x2d] ss:$0 sm:$0xff]  ;;  %v14163_v34 = vld [vmem:[#allocation64_spill] sm:$0xff] }
 0x53f   : > { %14153 = vst [vmem:[#allocation52_spill] sm:$0xff] %v11956_v2  ;;  %v2133_v18 = vrot.slane %v2132_v38, 2  ;;  %v2356_v12 = vmul.f32 %v7881_v19, %v14160_v46  ;;  %v4622_v22 = vmul.f32 %v11722_v59, %v11720_v7  ;;  %v14162_v11 = vsub.f32 1.0, %v14161_v49  ;;  %v14164_v59 = vld [vmem:[#allocation66_spill] sm:$0xff] }
 0x540   : > { %14156 = vst [vmem:[#allocation57_spill] sm:$0xff] %v11963_v61  ;;  %14159 = vst [vmem:[#allocation42_spill] sm:$0xff] %v11968_v58  ;;  %v2834_v32 = vsel %vm534_vm0, %v2767_v53, 0.0  ;;  %8428 = vset.pattern.permute.xlu1 %v13824_v42  ;;  %v7056_v61 = vadd.f32 %v7055_v37, %v7054_v57  ;;  %v3759_v58 = vmul.f32 %v14163_v34, %v3358_v33  ;;  %6273 = vperm.xlu0 %8468, %v11977_v63   ;;  %v14168_v53 = vld [vmem:[#allocation48_spill] sm:$0xff]  ;;  %v14169_v2 = vmov 7  }
 0x541   : > { %v3119_v44 = vmul.f32 %v14162_v11, %v2543_v45  ;;  %v2134_v41 = vadd.f32 %v2133_v18, %v2132_v38  ;;  %v2835_v20 = vadd.f32 %v2834_v32, %v2833_v27  ;;  %v3470_v19 = vmul.f32 %v14164_v59, %v11886_v39  ;;  %v14165_v11 = vld [vmem:[#allocation20_spill] sm:$0xff]  ;;  %5499 = vperm.xlu1 %8428, %v11797_v4   ;;  %v11988_v42 = vpop.permute.xlu0 %3392  ;;  %v11993_v18 = vld [vmem:[#allocation4 + $0x36] ss:$0 sm:$0xff]  ;;  %v11998_v4 = vpop.permute.xlu1 %4066 }
 0x542   : > { %v4654_v49 = vadd.f32 %v4622_v22, %v4526_v23  ;;  %14166 = vst [vmem:[#allocation22_spill] sm:$0xff] %v11988_v42  ;;  %v2067_v57 = vmul.f32 %v11623_v14, %v14160_v46  ;;  %7160 = vst.msk [vmem:[#allocation5 + $0x27] sm:$0x1] %vm2227_vm3, %v7056_v61  ;;  %v3791_v37 = vsub.f32 1.0, %v3759_v58  ;;  %v2388_v39 = vsub.f32 1.0, %v2356_v12  ;;  %v6798_v58 = vld [vmem:[#allocation2 + $0x50] sm:$0xff] }
 0x543   : > { %v3247_v45 = vadd.f32 %v14165_v11, %v3119_v44  ;;  %v2135_v38 = vrot.slane %v2134_v41, 1  ;;  %v2836_v27 = vrot.slane %v2835_v20, 4  ;;  %14167 = vst [vmem:[#allocation29_spill] sm:$0xff] %v11993_v18  ;;  %v4174_v32 = vmul.f32 %v11720_v7, %v3950_v24  ;;  %v7897_v44 = vld [vmem:[#allocation4 + $0x40] ss:$0 sm:$0xff]  ;;  %v14170_v42 = vld [vmem:[#allocation58_spill] sm:$0xff] }
 0x544   : > { %v5870_v23 = vmul.f32 %v11979_v47, %v11792_v16  ;;  %v3919_v61 = vmul.f32 %v14168_v53, %v3358_v33  ;;  %8475 = vset.pattern.permute.xlu0 %v14169_v2  ;;  %v14171_v15 = vsub.f32 1.0, %v14170_v42  ;;  %v3537_v7 = vsel %vm534_vm0, %v3470_v19, 0.0  ;;  %v14181_v2 = vld [vmem:[#allocation65_spill] sm:$0xff] }
 0x545   : > { %v3471_v22 = vmul.f32 %v3358_v33, %v3247_v45  ;;  %v2136_v34 = vadd.f32 %v2135_v38, %v2134_v41  ;;  %v2837_v59 = vadd.f32 %v2836_v27, %v2835_v20  ;;  %v3823_v11 = vmul.f32 %v3791_v37, %v3247_v45  ;;  %8430 = vset.pattern.permute.xlu1 %v13838_v6  ;;  %v12027_v37 = vld [vmem:[#allocation4 + $0x2d] ss:$0 sm:$0xff] }
 0x546   : > { %v5230_v12 = vmul.f32 %v14171_v15, %v4654_v49  ;;  %6872 = vperm.xlu0 %8475, %v6798_v58   ;;  %v12009_v41 = vmul.f32 %v11993_v18, %v14152_v31  ;;  %v12012_v20 = vsel %vm534_vm0, %v2067_v57, 0.0  ;;  %6208 = vperm.xlu1 %8430, %v11827_v43   ;;  %v12016_v15 = vpop.permute.xlu0 %4091  ;;  %v12019_v19 = vmul.f32 %v11623_v14, %v2388_v39  ;;  %v12025_v57 = vld [vmem:[#allocation3 + $0x39] ss:$0 sm:$0xff]  ;;  %v4766_v58 = vpop.permute.xlu1 %4765  ;;  %v6801_v14 = vld [vmem:[#allocation2 + $0x68] sm:$0xff] }
 0x547   : > { %v3538_v24 = vsel %vm534_vm0, %v3471_v22, 0.0  ;;  %14173 = vst [vmem:[#allocation30_spill] sm:$0xff] %v12012_v20  ;;  %2233 = vst.msk [vmem:[#allocation5 + $0x28] sm:$0x1] %vm2227_vm3, %v2136_v34  ;;  %v2838_v33 = vrot.slane %v2837_v59, 2  ;;  %v3951_v42 = vadd.f32 %v3919_v61, %v3823_v11  ;;  %v12022_v45 = vmul.f32 %v7897_v44, %v14160_v46  ;;  %v14177_v39 = vld [vmem:[#allocation69_spill] sm:$0xff] }
 0x548   : > { %14172 = vst [vmem:[#allocation67_spill] sm:$0xff] %v12009_v41  ;;  %v3539_v53 = vadd.f32 %v3538_v24, %v3537_v7  ;;  %14174 = vst [vmem:[#allocation64_spill] sm:$0xff] %v12016_v15  ;;  %v4241_v38 = vsel %vm534_vm0, %v4174_v32, 0.0  ;;  %v5902_v27 = vsub.f32 1.0, %v5870_v23  ;;  %v14176_v43 = vsub.f32 1.0, %v11704_v1  ;;  %v14178_v46 = vld [vmem:[#allocation21_spill] sm:$0xff] }
 0x549   : > { %14175 = vst [vmem:[#allocation66_spill] sm:$0xff] %v12025_v57  ;;  %v2839_v22 = vadd.f32 %v2838_v33, %v2837_v59  ;;  %v4175_v11 = vmul.f32 %v11346_v25, %v3951_v42  ;;  %v4878_v7 = vmul.f32 %v14177_v39, %v4654_v49  ;;  %v5358_v44 = vadd.f32 %v14178_v46, %v5230_v12  ;;  %v14179_v23 = vld [vmem:[#allocation35_spill] sm:$0xff]  ;;  %v7176_v41 = vld [vmem:[#allocation5 + $0x20] sm:$0xff] }
 0x54a   : > { %v3540_v34 = vrot.slane %v3539_v53, 4  ;;  %v4527_v61 = vmul.f32 %v14176_v43, %v3951_v42  ;;  %v3056_v32 = vmul.f32 %v11805_v54, %v11925_v9  ;;  %v5167_v24 = vmul.f32 %v14179_v23, %v4766_v58  ;;  %6887 = vperm.xlu0 %8475, %v6801_v14   ;;  %8431 = vset.pattern.permute.xlu1 %v13826_v36  ;;  %v12041_v49 = vld [vmem:[#allocation2 + $0x98] sm:$0xff]  ;;  %v7945_v39 = vld [vmem:[#allocation3 + $0x42] ss:$0 sm:$0xff] }
 0x54b   : > { %v2840_v59 = vrot.slane %v2839_v22, 1  ;;  %v4242_v25 = vsel %vm534_vm0, %v4175_v11, 0.0  ;;  %8153 = vmatprep.mubr.msk.f32.mxu0 %vm534_vm0, %v7176_v41  ;;  %v12045_v12 = vmul.f32 %v12025_v57, %v11735_v0  ;;  %v6030_v54 = vmul.f32 %v12027_v37, %v11792_v16  ;;  %1988 = vperm.xlu1 %8431, %v12041_v49   ;;  %v12052_v41 = vld [vmem:[#allocation2 + $0xa0] sm:$0xff]  ;;  %v12054_v14 = vld [vmem:[#allocation4 + $0x39] ss:$0 sm:$0xff] }
 0x54c   : > { %v3541_v33 = vadd.f32 %v3540_v34, %v3539_v53  ;;  %v4655_v1 = vadd.f32 %v11733_v52, %v4527_v61  ;;  %v4243_v42 = vadd.f32 %v4242_v25, %v4241_v38  ;;  %v5199_v43 = vsub.f32 1.0, %v5167_v24  ;;  %v12050_v53 = vpop.permute.xlu0 %4800  ;;  %v5470_v24 = vpop.permute.xlu1 %5469 }
 0x54d   : > { %14180 = vst [vmem:[#allocation20_spill] sm:$0xff] %v12050_v53  ;;  %v5934_v52 = vmul.f32 %v5902_v27, %v5358_v44  ;;  %v2841_v34 = vadd.f32 %v2840_v59, %v2839_v22  ;;  %v5582_v46 = vmul.f32 %v11792_v16, %v5358_v44  ;;  %v5327_v38 = vmul.f32 %v14181_v2, %v4766_v58 }
 0x54e   : > { %v3542_v11 = vrot.slane %v3541_v33, 2  ;;  %v4879_v61 = vmul.f32 %v4766_v58, %v4655_v1  ;;  %v4244_v23 = vrot.slane %v4243_v42, 4  ;;  %v5231_v31 = vmul.f32 %v5199_v43, %v4655_v1  ;;  %6922 = vperm.xlu0 %8475, %v12052_v41  }
 0x54f   : > { %2937 = vst.msk [vmem:[#allocation5 + $0x29] sm:$0x1] %vm2227_vm3, %v2841_v34  ;;  %v3088_v27 = vsub.f32 1.0, %v3056_v32  ;;  %v4945_v59 = vsel %vm534_vm0, %v4878_v7, 0.0  ;;  %v5871_v16 = vmul.f32 %v11979_v47, %v5470_v24  ;;  %8434 = vset.pattern.permute.xlu1 %v14026_v28  ;;  %v12066_v2 = vmul.f32 %v12054_v14, %v11735_v0 }
 0x550   : > { %v3543_v22 = vadd.f32 %v3542_v11, %v3541_v33  ;;  %v4946_v25 = vsel %vm534_vm0, %v4879_v61, 0.0  ;;  %v4245_v20 = vadd.f32 %v4244_v23, %v4243_v42  ;;  %v5359_v57 = vadd.f32 %v5327_v38, %v5231_v31  ;;  %2698 = vperm.xlu1 %8434, %v12052_v41   ;;  %v12074_v7 = vpop.permute.xlu0 %5504  ;;  %v6812_v33 = vld [vmem:[#allocation2 + $0xc0] sm:$0xff] }
 0x551   : > { %v4947_v18 = vadd.f32 %v4946_v25, %v4945_v59  ;;  %14182 = vst [vmem:[#allocation48_spill] sm:$0xff] %v12066_v2  ;;  %v12069_v58 = vmul.f32 %v7945_v39, %v11775_v3  ;;  %v12071_v44 = vadd.f32 %v6030_v54, %v5934_v52  ;;  %14184 = vst [vmem:[#allocation69_spill] sm:$0xff] %v12074_v7  ;;  %v5903_v42 = vsub.f32 1.0, %v5871_v16  ;;  %v12079_v54 = vpop.permute.xlu1 %6178  ;;  %v7961_v52 = vld [vmem:[#allocation4 + $0x42] ss:$0 sm:$0xff] }
 0x552   : > { %v3544_v32 = vrot.slane %v3543_v22, 1  ;;  %v4246_v31 = vrot.slane %v4245_v20, 2  ;;  %v5583_v47 = vmul.f32 %v5470_v24, %v5359_v57  ;;  %6942 = vperm.xlu0 %8475, %v6812_v33   ;;  %v5649_v43 = vsel %vm534_vm0, %v5582_v46, 0.0  ;;  %v12083_v2 = vld [vmem:[#allocation3 + $0x3b] ss:$0 sm:$0xff] }
 0x553   : > { %14183 = vst [vmem:[#allocation58_spill] sm:$0xff] %v12069_v58  ;;  %v4948_v1 = vrot.slane %v4947_v18, 4  ;;  %v3120_v34 = vmul.f32 %v3088_v27, %v11907_v56  ;;  %v6031_v61 = vmul.f32 %v12027_v37, %v5470_v24  ;;  %v5935_v59 = vmul.f32 %v5903_v42, %v5359_v57  ;;  %v12085_v16 = vld [vmem:[#allocation4 + $0x3b] ss:$0 sm:$0xff]  ;;  %v8041_v33 = vld [vmem:[#allocation3 + $0x45] ss:$0 sm:$0xff] }
 0x554   : > { %v3545_v11 = vadd.f32 %v3544_v32, %v3543_v22  ;;  %v4247_v39 = vadd.f32 %v4246_v31, %v4245_v20  ;;  %v5650_v38 = vsel %vm534_vm0, %v5583_v47, 0.0  ;;  %v6574_v46 = vmul.f32 %v11762_v10, %v11814_v55  ;;  %8435 = vset.pattern.permute.xlu1 %v13921_v8  ;;  %v12096_v22 = vpop.permute.xlu0 %1993 }
 0x555   : > { %v4949_v23 = vadd.f32 %v4948_v1, %v4947_v18  ;;  %v3216_v37 = vmul.f32 %v11820_v30, %v11925_v9  ;;  %v5651_v24 = vadd.f32 %v5650_v38, %v5649_v43  ;;  %v8009_v18 = vld [vmem:[#allocation3 + $0x44] ss:$0 sm:$0xff]  ;;  %v6286_v20 = vmul.f32 %v11814_v55, %v12071_v44  ;;  %3397 = vperm.xlu1 %8435, %v12041_v49  }
 0x556   : > { %3641 = vst.msk [vmem:[#allocation5 + $0x2a] sm:$0x1] %vm2227_vm3, %v3545_v11  ;;  %v4248_v57 = vrot.slane %v4247_v39, 1  ;;  %6957 = vperm.xlu0 %8475, %v11917_v26   ;;  %v12099_v10 = vadd.f32 %v6031_v61, %v5935_v59  ;;  %v12103_v32 = vmul.f32 %v7961_v52, %v11775_v3  ;;  %v12109_v47 = vmul.f32 %v12083_v2, %v11786_v60  ;;  %v12115_v11 = vpop.permute.xlu1 %6877  ;;  %v8025_v61 = vld [vmem:[#allocation4 + $0x44] ss:$0 sm:$0xff] }
 0x557   : > { %v4950_v27 = vrot.slane %v4949_v23, 2  ;;  %v12105_v31 = vadd.f32 %v3216_v37, %v3120_v34  ;;  %v5652_v1 = vrot.slane %v5651_v24, 4  ;;  %v12113_v42 = vmul.f32 %v12085_v16, %v11786_v60  ;;  %v6817_v37 = vld [vmem:[#allocation2 + $0xe8] sm:$0xff] }
 0x558   : > { %14185 = vst [vmem:[#allocation21_spill] sm:$0xff] %v12103_v32  ;;  %v4249_v26 = vadd.f32 %v4248_v57, %v4247_v39  ;;  %v12118_v52 = vmul.f32 %v8009_v18, %v11809_v51  ;;  %v4464_v34 = vmul.f32 %v11841_v13, %v11998_v4  ;;  %v6287_v59 = vmul.f32 %v11443_v62, %v12099_v10  ;;  %v8057_v18 = vld [vmem:[#allocation4 + $0x45] ss:$0 sm:$0xff]  ;;  %v14189_v13 = vld [vmem:[#allocation71_spill] sm:$0xff] }
 0x559   : > { %14186 = vst [vmem:[#allocation35_spill] sm:$0xff] %v12113_v42  ;;  %v4951_v43 = vadd.f32 %v4950_v27, %v4949_v23  ;;  %v5653_v38 = vadd.f32 %v5652_v1, %v5651_v24  ;;  %v6353_v30 = vsel %vm534_vm0, %v6286_v20, 0.0  ;;  %v6606_v25 = vsub.f32 1.0, %v6574_v46  ;;  %v7882_v23 = vld [vmem:[#allocation3 + $0x48] ss:$0 sm:$0xff]  ;;  %8438 = vset.pattern.permute.xlu1 %v13931_v35  ;;  %v12135_v46 = vpop.permute.xlu0 %2693 }
 0x55a   : > { %14187 = vst [vmem:[#allocation65_spill] sm:$0xff] %v12118_v52  ;;  %v12126_v39 = vmul.f32 %v8041_v33, %v11851_v17  ;;  %4345 = vst.msk [vmem:[#allocation5 + $0x2b] sm:$0x1] %vm2227_vm3, %v4249_v26  ;;  %6967 = vperm.xlu0 %8475, %v6817_v37   ;;  %v14190_v24 = vsub.f32 1.0, %v14189_v13  ;;  %v6354_v1 = vsel %vm534_vm0, %v6287_v59, 0.0  ;;  %4106 = vperm.xlu1 %8438, %v12052_v41   ;;  %v5029_v20 = vrot.slane %v11952_v50, 4  ;;  %v12142_v3 = vpop.permute.xlu1 %6882 }
 0x55b   : > { %v4952_v57 = vrot.slane %v4951_v43, 1  ;;  %v5654_v62 = vrot.slane %v5653_v38, 2  ;;  %14191 = vst [vmem:[#allocation71_spill] sm:$0xff] %v12135_v46  ;;  %v12140_v26 = vmul.f32 %v8025_v61, %v11809_v51  ;;  %v6355_v32 = vadd.f32 %v6354_v1, %v6353_v30  ;;  %v8088_v33 = vld [vmem:[#allocation4 + $0x3e] ss:$0 sm:$0xff] }
 0x55c   : > { %14188 = vst [vmem:[#allocation85_spill] sm:$0xff] %v12126_v39  ;;  %v3824_v27 = vmul.f32 %v14190_v24, %v12105_v31  ;;  %v12145_v24 = vld [vmem:[#allocation3 + $0x3e] ss:$0 sm:$0xff]  ;;  %v2358_v59 = vmul.f32 %v7882_v23, %v11915_v5  ;;  %v4496_v41 = vsub.f32 1.0, %v4464_v34  ;;  %v12150_v60 = vmul.f32 %v8057_v18, %v11851_v17  ;;  %v7898_v18 = vld [vmem:[#allocation4 + $0x48] ss:$0 sm:$0xff] }
 0x55d   : > { %14192 = vst [vmem:[#allocation86_spill] sm:$0xff] %v12140_v26  ;;  %v4953_v37 = vadd.f32 %v4952_v57, %v4951_v43  ;;  %14193 = vst [vmem:[#allocation87_spill] sm:$0xff] %v12145_v24  ;;  %v5655_v58 = vadd.f32 %v5654_v62, %v5653_v38  ;;  %v6356_v43 = vrot.slane %v6355_v32, 4  ;;  %v6638_v30 = vmul.f32 %v6606_v25, %v12071_v44  ;;  %v14195_v61 = vld [vmem:[#allocation31_spill] sm:$0xff]  ;;  %v12169_v44 = vpop.permute.xlu0 %3402  ;;  %v14199_v62 = vld [vmem:[#allocation72_spill] sm:$0xff] }
 0x55e   : > { %14194 = vst [vmem:[#allocation88_spill] sm:$0xff] %v12150_v60  ;;  %6977 = vperm.xlu0 %8475, %v11977_v63   ;;  %v12156_v57 = vadd.f32 %v14195_v61, %v3824_v27  ;;  %8439 = vset.pattern.permute.xlu1 %v13820_v21  ;;  %v12161_v34 = vadd.f32 %v12022_v45, %v12019_v19  ;;  %14197 = vst [vmem:[#allocation89_spill] sm:$0xff] %v12169_v44  ;;  %v14198_v27 = vld [vmem:[#allocation49_spill] sm:$0xff]  ;;  %v1959_v42 = vpop.permute.xlu1 %1958  ;;  %v8687_v13 = vld [vmem:[#allocation3 + $0x30] ss:$0 sm:$0xff] }
 0x55f   : > { %5049 = vst.msk [vmem:[#allocation5 + $0x2c] sm:$0x1] %vm2227_vm3, %v4953_v37  ;;  %v5656_v1 = vrot.slane %v5655_v58, 1  ;;  %v5030_v38 = vadd.f32 %v5029_v20, %v11952_v50  ;;  %v12166_v23 = vmul.f32 %v12145_v24, %v11879_v29  ;;  %v6357_v63 = vadd.f32 %v6356_v43, %v6355_v32  ;;  %4805 = vperm.xlu1 %8439, %v12041_v49   ;;  %v14238_v24 = vld [vmem:[#allocation50_spill] sm:$0xff] }
 0x560   : > { %v6734_v25 = vmul.f32 %v11936_v40, %v11814_v55  ;;  %v14200_v37 = vsub.f32 1.0, %v14199_v62  ;;  %v12177_v45 = vmul.f32 %v8088_v33, %v11879_v29  ;;  %v2390_v50 = vsub.f32 1.0, %v2358_v59  ;;  %v12186_v55 = vld [vmem:[%s13542_s4] sm:$0xff] }
 0x561   : > { %14196 = vst [vmem:[#allocation31_spill] sm:$0xff] %v12166_v23  ;;  %v4528_v20 = vmul.f32 %v4496_v41, %v12156_v57  ;;  %v5657_v61 = vadd.f32 %v5656_v1, %v5655_v58  ;;  %v6358_v32 = vrot.slane %v6357_v63, 2  ;;  %v2064_v43 = vmul.f32 %v11898_v48, %v1959_v42  ;;  %v14203_v58 = vld [vmem:[#allocation79_spill] sm:$0xff]  ;;  %v14216_v23 = vld [vmem:[#allocation53_spill] sm:$0xff] }
 0x562   : > { %v4547_v19 = vmul.f32 %v14200_v37, %v14198_v27  ;;  %14201 = vst [vmem:[#allocation49_spill] sm:$0xff] %v12177_v45  ;;  %v2353_v60 = vmul.f32 %v8687_v13, %v1959_v42  ;;  %v12181_v39 = vadd.f32 %v6734_v25, %v6638_v30  ;;  %v2069_v40 = vmul.f32 %v12186_v55, %v11915_v5  ;;  %v12196_v30 = vld [vmem:[#allocation3 + $0x41] ss:$0 sm:$0xff] }
 0x563   : > { %v2518_v33 = vmul.f32 %v7898_v18, %v11915_v5  ;;  %v4624_v59 = vmul.f32 %v14203_v58, %v11998_v4  ;;  %5753 = vst.msk [vmem:[#allocation5 + $0x2d] sm:$0x1] %vm2227_vm3, %v5657_v61  ;;  %v5031_v41 = vrot.slane %v5030_v38, 2  ;;  %v2768_v13 = vmul.f32 %v11925_v9, %v11907_v56  ;;  %v14205_v18 = vld [vmem:[#allocation45_spill] sm:$0xff]  ;;  %v12205_v61 = vpop.permute.xlu0 %4101 }
 0x564   : > { %14202 = vst [vmem:[#allocation72_spill] sm:$0xff] %v12181_v39  ;;  %v6359_v1 = vadd.f32 %v6358_v32, %v6357_v63  ;;  %v2138_v25 = vsel %vm534_vm0, %v2064_v43, 0.0  ;;  %v2385_v27 = vsub.f32 1.0, %v2353_v60  ;;  %v14204_v62 = vmov 5   ;;  %v8689_v63 = vld [vmem:[#allocation4 + $0x30] ss:$0 sm:$0xff]  ;;  %v12208_v43 = vpop.permute.xlu1 %2668 }
 0x565   : > { %8441 = vset.pattern.permute.xlu1 %v14204_v62  ;;  %v2422_v37 = vmul.f32 %v12186_v55, %v2390_v50  ;;  %v12201_v5 = vadd.f32 %v4624_v59, %v4528_v20  ;;  %v2139_v58 = vadd.f32 %v2138_v25, %v14205_v18  ;;  %v5032_v45 = vadd.f32 %v5031_v41, %v5030_v38  ;;  %v14206_v60 = vld [vmem:[#allocation23_spill] sm:$0xff]  ;;  %v14208_v20 = vld [vmem:[#allocation68_spill] sm:$0xff]  ;;  %v7946_v25 = vld [vmem:[#allocation3 + $0x4a] ss:$0 sm:$0xff] }
 0x566   : > { %5509 = vperm.xlu1 %8441, %v12041_v49   ;;  %v6360_v56 = vrot.slane %v6359_v1, 1  ;;  %v2417_v9 = vmul.f32 %v11898_v48, %v2385_v27  ;;  %v2513_v32 = vmul.f32 %v8689_v63, %v1959_v42  ;;  %v12211_v29 = vadd.f32 %v14206_v60, %v4547_v19  ;;  %v14210_v39 = vld [vmem:[#allocation44_spill] sm:$0xff]  ;;  %v14211_v38 = vld [vmem:[#allocation41_spill] sm:$0xff] }
 0x567   : > { %v12216_v59 = vmul.f32 %v12196_v30, %v14208_v20  ;;  %v2140_v18 = vrot.slane %v2139_v58, 4  ;;  %v14212_v41 = vsub.f32 1.0, %v14211_v38  ;;  %v12222_v27 = vsel %vm534_vm0, %v2069_v40, 0.0  ;;  %v12224_v42 = vld [vmem:[#allocation4 + $0x41] ss:$0 sm:$0xff]  ;;  %v14218_v38 = vld [vmem:[#allocation22_spill] sm:$0xff] }
 0x568   : > { %14207 = vst [vmem:[#allocation79_spill] sm:$0xff] %v12211_v29  ;;  %14213 = vst [vmem:[#allocation23_spill] sm:$0xff] %v12222_v27  ;;  %v6361_v63 = vadd.f32 %v6360_v56, %v6359_v1  ;;  %v2545_v19 = vadd.f32 %v2513_v32, %v2417_v9  ;;  %v5033_v60 = vrot.slane %v5032_v45, 1  ;;  %v12226_v29 = vadd.f32 %v2518_v33, %v2422_v37  ;;  %v14220_v1 = vld [vmem:[#allocation32_spill] sm:$0xff]  ;;  %v12239_v33 = vpop.permute.xlu0 %4810 }
 0x569   : > { %14209 = vst [vmem:[#allocation45_spill] sm:$0xff] %v12216_v59  ;;  %v5249_v17 = vmul.f32 %v14212_v41, %v14210_v39  ;;  %14214 = vst [vmem:[#allocation44_spill] sm:$0xff] %v12224_v42  ;;  %v2842_v50 = vsel %vm534_vm0, %v2768_v13, 0.0  ;;  %v14217_v26 = vsub.f32 1.0, %v14216_v23  ;;  %v2141_v52 = vadd.f32 %v2140_v18, %v2139_v58  ;;  %v7962_v39 = vld [vmem:[#allocation4 + $0x4a] ss:$0 sm:$0xff]  ;;  %v3368_v41 = vpop.permute.xlu1 %3367 }
 0x56a   : > { %14215 = vst [vmem:[#allocation41_spill] sm:$0xff] %v12226_v29  ;;  %8443 = vset.pattern.permute.xlu1 %v13838_v6  ;;  %v12234_v40 = vmul.f32 %v7946_v25, %v14218_v38  ;;  %6457 = vst.msk [vmem:[#allocation5 + $0x2e] sm:$0x1] %vm2227_vm3, %v6361_v63  ;;  %v2769_v56 = vmul.f32 %v14220_v1, %v2545_v19  ;;  %v14222_v13 = vld [vmem:[#allocation59_spill] sm:$0xff]  ;;  %v5034_v23 = vadd.f32 %v5033_v60, %v5032_v45  ;;  %v12250_v63 = vld [vmem:[#allocation3 + $0x43] ss:$0 sm:$0xff] }
 0x56b   : > { %v5232_v51 = vmul.f32 %v14217_v26, %v12201_v5  ;;  %6213 = vperm.xlu1 %8443, %v12041_v49   ;;  %14221 = vst [vmem:[#allocation32_spill] sm:$0xff] %v12239_v33  ;;  %v14223_v37 = vsub.f32 1.0, %v14222_v13  ;;  %v14224_v26 = vld [vmem:[#allocation38_spill] sm:$0xff]  ;;  %v12248_v25 = vmul.f32 %v12224_v42, %v14208_v20  ;;  %v2142_v18 = vrot.slane %v2141_v52, 2  ;;  %v14227_v1 = vld [vmem:[#allocation77_spill] sm:$0xff] }
 0x56c   : > { %14219 = vst [vmem:[#allocation53_spill] sm:$0xff] %v12234_v40  ;;  %v3472_v58 = vmul.f32 %v14224_v26, %v12105_v31  ;;  %14226 = vst [vmem:[#allocation38_spill] sm:$0xff] %v12250_v63  ;;  %v2843_v49 = vsel %vm534_vm0, %v2769_v56, 0.0  ;;  %v8690_v13 = vld [vmem:[#allocation3 + $0x32] ss:$0 sm:$0xff]  ;;  %v12259_v60 = vmul.f32 %v7962_v39, %v14218_v38  ;;  %v14231_v26 = vld [vmem:[#allocation39_spill] sm:$0xff]  ;;  %v12274_v39 = vmul.f32 %v12250_v63, %v12016_v15 }
 0x56d   : > { %v3121_v9 = vmul.f32 %v14223_v37, %v2545_v19  ;;  %14225 = vst [vmem:[#allocation59_spill] sm:$0xff] %v12248_v25  ;;  %v3761_v19 = vmul.f32 %v8690_v13, %v3368_v41  ;;  %5058 = vst.msk [vmem:[#allocation5 + $0x74] sm:$0x1] %vm2227_vm3, %v5034_v23  ;;  %v14228_v45 = vld [vmem:[#allocation62_spill] sm:$0xff]  ;;  %v8010_v37 = vld [vmem:[#allocation3 + $0x4c] ss:$0 sm:$0xff]  ;;  %v12262_v32 = vadd.f32 %v14231_v26, %v5232_v51 }
 0x56e   : > { %v12256_v31 = vadd.f32 %v14228_v45, %v5249_v17  ;;  %14230 = vst [vmem:[#allocation62_spill] sm:$0xff] %v12259_v60  ;;  %v2143_v29 = vadd.f32 %v2142_v18, %v2141_v52  ;;  %v2844_v25 = vadd.f32 %v2843_v49, %v2842_v50  ;;  %v12268_v17 = vld [vmem:[#allocation2 + $0xa8] sm:$0xff]  ;;  %v12270_v23 = vld [vmem:[#allocation4 + $0x43] ss:$0 sm:$0xff]  ;;  %14233 = vst [vmem:[#allocation90_spill] sm:$0xff] %v12274_v39  ;;  %v3546_v50 = vsel %vm534_vm0, %v3472_v58, 0.0  ;;  %v12278_v18 = vpop.permute.xlu0 %5514  ;;  %v12284_v26 = vpop.permute.xlu1 %4076 }
 0x56f   : > { %v3249_v27 = vadd.f32 %v14227_v1, %v3121_v9  ;;  %v4176_v9 = vmul.f32 %v11998_v4, %v12156_v57  ;;  %v3793_v13 = vsub.f32 1.0, %v3761_v19  ;;  %8444 = vset.pattern.permute.xlu1 %v13826_v36  ;;  %14232 = vst [vmem:[#allocation39_spill] sm:$0xff] %v12270_v23  ;;  %14234 = vst [vmem:[#allocation91_spill] sm:$0xff] %v12278_v18  ;;  %v8691_v19 = vld [vmem:[#allocation4 + $0x32] ss:$0 sm:$0xff]  ;;  %v14236_v38 = vld [vmem:[#allocation75_spill] sm:$0xff] }
 0x570   : > { %14229 = vst [vmem:[#allocation77_spill] sm:$0xff] %v12256_v31  ;;  %v2144_v51 = vrot.slane %v2143_v29, 1  ;;  %v2845_v52 = vrot.slane %v2844_v25, 4  ;;  %1998 = vperm.xlu1 %8444, %v12268_v17   ;;  %v12281_v4 = vmul.f32 %v8010_v37, %v12050_v53  ;;  %v3921_v45 = vmul.f32 %v8691_v19, %v3368_v41  ;;  %v8026_v56 = vld [vmem:[#allocation4 + $0x4c] ss:$0 sm:$0xff]  ;;  %v8149_v63 = vpop.f32.mrb[24].mxu0 }
 0x571   : > { %v3473_v1 = vmul.f32 %v3368_v41, %v3249_v27  ;;  %v3825_v49 = vmul.f32 %v3793_v13, %v3249_v27  ;;  %v8042_v31 = vld [vmem:[#allocation3 + $0x4d] ss:$0 sm:$0xff]  ;;  %v14237_v60 = vsub.f32 1.0, %v14236_v38  ;;  %v4250_v37 = vsel %vm534_vm0, %v4176_v9, 0.0  ;;  %v12299_v38 = vld [vmem:[%s13546_s8] ss:$0 sm:$0xff] }
 0x572   : > { %14235 = vst [vmem:[#allocation92_spill] sm:$0xff] %v12281_v4  ;;  %v2145_v40 = vadd.f32 %v2144_v51, %v2143_v29  ;;  %v2846_v59 = vadd.f32 %v2845_v52, %v2844_v25  ;;  %v12294_v27 = vmul.f32 %v12270_v23, %v12016_v15  ;;  %v7193_v13 = vld [vmem:[#allocation6 + $0x8] sm:$0xff]  ;;  %v12301_v29 = vpop.f32.mrb[25].mxu0  ;;  %v12310_v52 = vmul.f32 %v8026_v56, %v12050_v53 }
 0x573   : > { %v3547_v57 = vsel %vm534_vm0, %v3473_v1, 0.0  ;;  %v5936_v58 = vmul.f32 %v14237_v60, %v12262_v32  ;;  %v4880_v1 = vmul.f32 %v14238_v24, %v12201_v5  ;;  %v3953_v41 = vadd.f32 %v3921_v45, %v3825_v49  ;;  %v12306_v5 = vld [vmem:[#allocation2 + $0xb0] sm:$0xff]  ;;  %v8058_v19 = vld [vmem:[#allocation4 + $0x4d] ss:$0 sm:$0xff]  ;;  %v4776_v4 = vpop.permute.xlu1 %4775 }
 0x574   : > { %v3548_v20 = vadd.f32 %v3547_v57, %v3546_v50  ;;  %14239 = vst [vmem:[#allocation75_spill] sm:$0xff] %v12294_v27  ;;  %2234 = vst.msk [vmem:[#allocation5 + $0x30] sm:$0x1] %vm2227_vm3, %v2145_v40  ;;  %v2847_v60 = vrot.slane %v2846_v59, 2  ;;  %v7328_v24 = vadd.f32 %v8149_v63, %v7193_v13  ;;  %8447 = vset.pattern.permute.xlu1 %v14026_v28  ;;  %v14242_v57 = vld [vmem:[#allocation63_spill] sm:$0xff]  ;;  %v12317_v40 = vpop.permute.xlu0 %2003  ;;  %v14243_v63 = vld [vmem:[#allocation34_spill] sm:$0xff] }
 0x575   : > { %14240 = vst [vmem:[#allocation50_spill] sm:$0xff] %v12310_v52  ;;  %v12313_v50 = vmul.f32 %v8042_v31, %v12074_v7  ;;  %v4177_v49 = vmul.f32 %v14242_v57, %v3953_v41  ;;  %2708 = vperm.xlu1 %8447, %v12306_v5   ;;  %v6064_v45 = vadd.f32 %v14243_v63, %v5936_v58  ;;  %v7883_v28 = vld [vmem:[#allocation3 + $0x50] ss:$0 sm:$0xff]  ;;  %v14244_v56 = vld [vmem:[#allocation37_spill] sm:$0xff]  ;;  %v4954_v39 = vsel %vm534_vm0, %v4880_v1, 0.0 }
 0x576   : > { %v3549_v9 = vrot.slane %v3548_v20, 4  ;;  %v2848_v13 = vadd.f32 %v2847_v60, %v2846_v59  ;;  %v7409_v51 = vadd.f32 %v12299_v38, %v7328_v24  ;;  %v6576_v53 = vmul.f32 %v14244_v56, %v12079_v54  ;;  %v14245_v52 = vld [vmem:[#allocation81_spill] sm:$0xff]  ;;  %v14248_v60 = vld [vmem:[#allocation66_spill] sm:$0xff] }
 0x577   : > { %14241 = vst [vmem:[#allocation93_spill] sm:$0xff] %v12313_v50  ;;  %v4251_v31 = vsel %vm534_vm0, %v4177_v49, 0.0  ;;  %v14246_v57 = vsub.f32 1.0, %v14245_v52  ;;  %v2360_v58 = vmul.f32 %v7883_v28, %v12096_v22  ;;  %v7899_v24 = vld [vmem:[#allocation4 + $0x50] ss:$0 sm:$0xff]  ;;  %v14252_v56 = vld [vmem:[#allocation29_spill] sm:$0xff] }
 0x578   : > { %v3550_v25 = vadd.f32 %v3549_v9, %v3548_v20  ;;  %v2849_v15 = vrot.slane %v2848_v13, 1  ;;  %v4252_v42 = vadd.f32 %v4251_v31, %v4250_v37  ;;  %8605 = vtanh.f32 %v7409_v51  ;;  %v12337_v37 = vpop.permute.xlu0 %2703  ;;  %v12345_v59 = vpop.permute.xlu1 %5479 }
 0x579   : > { %v4529_v27 = vmul.f32 %v14246_v57, %v3953_v41  ;;  %v12329_v20 = vmul.f32 %v8058_v19, %v12074_v7  ;;  %v3058_v9 = vmul.f32 %v14248_v60, %v12208_v43  ;;  %8448 = vset.pattern.permute.xlu1 %v13921_v8  ;;  %v6288_v41 = vmul.f32 %v12079_v54, %v6064_v45  ;;  %v14250_v19 = vld [vmem:[#allocation56_spill] sm:$0xff]  ;;  %v14253_v57 = vld [vmem:[#allocation82_spill] sm:$0xff] }
 0x57a   : > { %v3551_v23 = vrot.slane %v3550_v25, 2  ;;  %v2850_v1 = vadd.f32 %v2849_v15, %v2848_v13  ;;  %v4253_v49 = vrot.slane %v4252_v42, 4  ;;  %3407 = vperm.xlu1 %8448, %v12268_v17   ;;  %14249 = vst [vmem:[#allocation34_spill] sm:$0xff] %v12337_v37  ;;  %v6608_v51 = vsub.f32 1.0, %v6576_v53  ;;  %v8692_v13 = vld [vmem:[#allocation3 + $0x34] ss:$0 sm:$0xff] }
 0x57b   : > { %14247 = vst [vmem:[#allocation63_spill] sm:$0xff] %v12329_v20  ;;  %v14251_v63 = vsub.f32 1.0, %v14250_v19  ;;  %v6736_v31 = vmul.f32 %v14252_v56, %v12079_v54  ;;  %v4657_v60 = vadd.f32 %v14253_v57, %v4529_v27  ;;  %v2071_v15 = vmul.f32 %v12186_v55, %v12096_v22  ;;  %v12354_v27 = vld [vmem:[#allocation3 + $0x49] ss:$0 sm:$0xff] }
 0x57c   : > { %v3552_v52 = vadd.f32 %v3551_v23, %v3550_v25  ;;  %2938 = vst.msk [vmem:[#allocation5 + $0x31] sm:$0x1] %vm2227_vm3, %v2850_v1  ;;  %v4254_v25 = vadd.f32 %v4253_v49, %v4252_v42  ;;  %v5169_v53 = vmul.f32 %v8692_v13, %v4776_v4  ;;  %v2392_v7 = vsub.f32 1.0, %v2360_v58  ;;  %v14254_v1 = vld [vmem:[#allocation28_spill] sm:$0xff]  ;;  %v12358_v42 = vld [vmem:[#allocation4 + $0x49] ss:$0 sm:$0xff] }
 0x57d   : > { %v6639_v28 = vmul.f32 %v14251_v63, %v12099_v10  ;;  %v2520_v19 = vmul.f32 %v7899_v24, %v12096_v22  ;;  %v3090_v10 = vsub.f32 1.0, %v3058_v9  ;;  %v4881_v63 = vmul.f32 %v4776_v4, %v4657_v60  ;;  %v14255_v22 = vld [vmem:[#allocation43_spill] sm:$0xff] }
 0x57e   : > { %v3553_v23 = vrot.slane %v3552_v52, 1  ;;  %v12352_v54 = vsel %vm534_vm0, %v6288_v41, 0.0  ;;  %v4255_v57 = vrot.slane %v4254_v25, 2  ;;  %v5201_v20 = vsub.f32 1.0, %v5169_v53  ;;  %8451 = vset.pattern.permute.xlu1 %v13931_v35  ;;  %v12364_v41 = vpop.permute.xlu0 %3412  ;;  %v8693_v35 = vld [vmem:[#allocation4 + $0x34] ss:$0 sm:$0xff] }
 0x57f   : > { %v6767_v50 = vadd.f32 %v14254_v1, %v6639_v28  ;;  %v6640_v49 = vmul.f32 %v6608_v51, %v6064_v45  ;;  %v4955_v58 = vsel %vm534_vm0, %v4881_v63, 0.0  ;;  %v5584_v9 = vmul.f32 %v14255_v22, %v12262_v32  ;;  %4116 = vperm.xlu1 %8451, %v12306_v5   ;;  %14256 = vst [vmem:[#allocation37_spill] sm:$0xff] %v12364_v41  ;;  %v12367_v28 = vpop.permute.xlu1 %6188  ;;  %v8114_v45 = vld [vmem:[%s14258_s0] ss:$0 sm:$0xff] }
 0x580   : > { %v3554_v56 = vadd.f32 %v3553_v23, %v3552_v52  ;;  %v4256_v24 = vadd.f32 %v4255_v57, %v4254_v25  ;;  %v4956_v52 = vadd.f32 %v4955_v58, %v4954_v39  ;;  %v5233_v23 = vmul.f32 %v5201_v20, %v4657_v60  ;;  %14257 = vst [vmem:[#allocation81_spill] sm:$0xff] %v12367_v28  ;;  %v14261_v25 = vld [vmem:[#allocation57_spill] sm:$0xff]  ;;  %v7947_v58 = vld [vmem:[#allocation3 + $0x52] ss:$0 sm:$0xff] }
 0x581   : > { %v5329_v13 = vmul.f32 %v8693_v35, %v4776_v4  ;;  %v12373_v51 = vsel %vm534_vm0, %v2071_v15, 0.0  ;;  %v2424_v32 = vmul.f32 %v12186_v55, %v2392_v7  ;;  %v12378_v53 = vmul.f32 %v12354_v27, %v12135_v46 }
 0x582   : > { %3642 = vst.msk [vmem:[#allocation5 + $0x32] sm:$0x1] %vm2227_vm3, %v3554_v56  ;;  %14259 = vst [vmem:[#allocation66_spill] sm:$0xff] %v12373_v51  ;;  %v3122_v39 = vmul.f32 %v3090_v10, %v14261_v25  ;;  %v8606_v20 = vpop.eup %8605  ;;  %v12383_v4 = vmul.f32 %v12358_v42, %v12135_v46  ;;  %v4257_v60 = vrot.slane %v4256_v24, 1  ;;  %v4957_v63 = vrot.slane %v4956_v52, 4 }
 0x583   : > { %14260 = vst [vmem:[#allocation56_spill] sm:$0xff] %v12378_v53  ;;  %v12385_v56 = vadd.f32 %v5329_v13, %v5233_v23  ;;  %v6991_v15 = vmul.f32 %v12115_v11, %v6767_v50  ;;  %v6768_v57 = vadd.f32 %v6736_v31, %v6640_v49  ;;  %v3218_v7 = vmul.f32 %v12054_v14, %v12208_v43  ;;  %v12395_v23 = vpop.permute.xlu0 %4111  ;;  %v12398_v50 = vld [vmem:[#allocation3 + $0x4b] ss:$0 sm:$0xff]  ;;  %v1969_v49 = vpop.permute.xlu1 %1968 }
 0x584   : > { %14262 = vst [vmem:[#allocation29_spill] sm:$0xff] %v12383_v4  ;;  %8452 = vset.pattern.permute.xlu1 %v13820_v21  ;;  %v7448_v1 = vmul.f32 %v8606_v20, %v8114_v45  ;;  %v4258_v10 = vadd.f32 %v4257_v60, %v4256_v24  ;;  %v4958_v22 = vadd.f32 %v4957_v63, %v4956_v52  ;;  %v5658_v35 = vsel %vm534_vm0, %v5584_v9, 0.0  ;;  %v8694_v45 = vld [vmem:[#allocation3 + $0x38] ss:$0 sm:$0xff] }
 0x585   : > { %v5585_v51 = vmul.f32 %v12345_v59, %v12385_v56  ;;  %4815 = vperm.xlu1 %8452, %v12268_v17   ;;  %v3250_v14 = vadd.f32 %v3218_v7, %v3122_v39  ;;  %v12401_v13 = vadd.f32 %v2520_v19, %v2424_v32  ;;  %v2066_v52 = vmul.f32 %v11898_v48, %v1969_v49  ;;  %v7963_v32 = vld [vmem:[#allocation4 + $0x52] ss:$0 sm:$0xff] }
 0x586   : > { %v7466_v31 = vsel %vm534_vm0, %v7448_v1, 0.0  ;;  %4346 = vst.msk [vmem:[#allocation5 + $0x33] sm:$0x1] %vm2227_vm3, %v4258_v10  ;;  %v4959_v9 = vrot.slane %v4958_v22, 2  ;;  %v2355_v20 = vmul.f32 %v8694_v45, %v1969_v49  ;;  %v12407_v60 = vsel %vm534_vm0, %v6991_v15, 0.0  ;;  %v14265_v15 = vld [vmem:[#allocation46_spill] sm:$0xff] }
 0x587   : > { %14263 = vst [vmem:[#allocation82_spill] sm:$0xff] %v12401_v13  ;;  %v5659_v24 = vsel %vm534_vm0, %v5585_v51, 0.0  ;;  %7467 = vadd.xlane.f32.xlu0 %v7466_v31  ;;  %v6992_v39 = vmul.f32 %v12142_v3, %v6768_v57  ;;  %v12411_v63 = vmul.f32 %v7947_v58, %v12169_v44  ;;  %v12415_v7 = vmul.f32 %v12398_v50, %v12205_v61  ;;  %v12419_v31 = vld [vmem:[#allocation4 + $0x4b] ss:$0 sm:$0xff]  ;;  %v12427_v11 = vpop.permute.xlu0 %4820 }
 0x588   : > { %v5660_v19 = vadd.f32 %v5659_v24, %v5658_v35  ;;  %v4960_v51 = vadd.f32 %v4959_v9, %v4958_v22  ;;  %v2147_v1 = vsel %vm534_vm0, %v2066_v52, 0.0  ;;  %v2387_v10 = vsub.f32 1.0, %v2355_v20  ;;  %v14267_v24 = vld [vmem:[#allocation74_spill] sm:$0xff]  ;;  %14268 = vst [vmem:[#allocation43_spill] sm:$0xff] %v12427_v11  ;;  %v8695_v20 = vld [vmem:[#allocation4 + $0x38] ss:$0 sm:$0xff]  ;;  %v12432_v13 = vpop.permute.xlu1 %2678 }
 0x589   : > { %14264 = vst [vmem:[#allocation28_spill] sm:$0xff] %v12415_v7  ;;  %8454 = vset.pattern.permute.xlu1 %v14204_v62  ;;  %v2770_v3 = vmul.f32 %v12208_v43, %v14261_v25  ;;  %v14266_v57 = vsub.f32 1.0, %v14265_v15  ;;  %v2148_v45 = vadd.f32 %v2147_v1, %v14267_v24  ;;  %v4466_v22 = vmul.f32 %v12083_v2, %v12284_v26  ;;  %v8011_v24 = vld [vmem:[#allocation3 + $0x54] ss:$0 sm:$0xff] }
 0x58a   : > { %v5661_v35 = vrot.slane %v5660_v19, 4  ;;  %5519 = vperm.xlu1 %8454, %v12268_v17   ;;  %v4961_v9 = vrot.slane %v4960_v51, 1  ;;  %v2419_v52 = vmul.f32 %v11898_v48, %v2387_v10  ;;  %v2515_v4 = vmul.f32 %v8695_v20, %v1969_v49 }
 0x58b   : > { %v3826_v58 = vmul.f32 %v14266_v57, %v3250_v14  ;;  %v12435_v43 = vsel %vm534_vm0, %v6992_v39, 0.0  ;;  %v12438_v25 = vmul.f32 %v7963_v32, %v12169_v44  ;;  %v2149_v15 = vrot.slane %v2148_v45, 4  ;;  %v8043_v39 = vld [vmem:[#allocation3 + $0x55] ss:$0 sm:$0xff]  ;;  %v12451_v44 = vpop.permute.xlu0 %2713 }
 0x58c   : > { %v5662_v1 = vadd.f32 %v5661_v35, %v5660_v19  ;;  %v12443_v2 = vmul.f32 %v12419_v31, %v12205_v61  ;;  %v4962_v48 = vadd.f32 %v4961_v9, %v4960_v51  ;;  %v2547_v10 = vadd.f32 %v2515_v4, %v2419_v52  ;;  %v14271_v19 = vld [vmem:[#allocation80_spill] sm:$0xff] }
 0x58d   : > { %14269 = vst [vmem:[#allocation57_spill] sm:$0xff] %v12438_v25  ;;  %v2851_v20 = vsel %vm534_vm0, %v2770_v3, 0.0  ;;  %v2150_v46 = vadd.f32 %v2149_v15, %v2148_v45  ;;  %v3954_v32 = vadd.f32 %v14271_v19, %v3826_v58  ;;  %v4498_v35 = vsub.f32 1.0, %v4466_v22  ;;  %v14273_v9 = vld [vmem:[#allocation40_spill] sm:$0xff]  ;;  %v3378_v49 = vpop.permute.xlu1 %3377  ;;  %v8696_v19 = vld [vmem:[#allocation3 + $0x3a] ss:$0 sm:$0xff] }
 0x58e   : > { %14270 = vst [vmem:[#allocation46_spill] sm:$0xff] %v12443_v2  ;;  %v5663_v53 = vrot.slane %v5662_v1, 2  ;;  %5524 = vperm.xlu1 %8454, %v12306_v5   ;;  %5050 = vst.msk [vmem:[#allocation5 + $0x34] sm:$0x1] %vm2227_vm3, %v4962_v48  ;;  %v2771_v57 = vmul.f32 %v11735_v0, %v2547_v10  ;;  %v14272_v4 = vsub.f32 1.0, %v12045_v12  ;;  %v3474_v52 = vmul.f32 %v14273_v9, %v3250_v14  ;;  %v14276_v48 = vld [vmem:[#allocation48_spill] sm:$0xff] }
 0x58f   : > { %v12457_v3 = vmul.f32 %v8011_v24, %v12239_v33  ;;  %v2151_v15 = vrot.slane %v2150_v46, 2  ;;  %v12460_v58 = vmul.f32 %v8043_v39, %v12278_v18  ;;  %v3763_v25 = vmul.f32 %v8696_v19, %v3378_v49  ;;  %v7192_v39 = vld [vmem:[#allocation6] sm:$0xff] }
 0x590   : > { %v3123_v51 = vmul.f32 %v14272_v4, %v2547_v10  ;;  %v5664_v45 = vadd.f32 %v5663_v53, %v5662_v1  ;;  %v2852_v22 = vsel %vm534_vm0, %v2771_v57, 0.0  ;;  %v4626_v12 = vmul.f32 %v12085_v16, %v12284_v26  ;;  %v8027_v53 = vld [vmem:[#allocation4 + $0x54] ss:$0 sm:$0xff]  ;;  %v8059_v57 = vld [vmem:[#allocation4 + $0x55] ss:$0 sm:$0xff] }
 0x591   : > { %14274 = vst [vmem:[#allocation74_spill] sm:$0xff] %v12457_v3  ;;  %14275 = vst [vmem:[#allocation80_spill] sm:$0xff] %v12460_v58  ;;  %v2152_v14 = vadd.f32 %v2151_v15, %v2150_v46  ;;  %v2853_v4 = vadd.f32 %v2852_v22, %v2851_v20  ;;  %v4178_v1 = vmul.f32 %v12284_v26, %v3954_v32  ;;  %v3795_v2 = vsub.f32 1.0, %v3763_v25  ;;  %v12470_v7 = vpop.permute.xlu0 %4121  ;;  %v8697_v26 = vld [vmem:[#allocation4 + $0x3a] ss:$0 sm:$0xff] }
 0x592   : > { %v3251_v0 = vadd.f32 %v14276_v48, %v3123_v51  ;;  %v5665_v10 = vrot.slane %v5664_v45, 1  ;;  %8455 = vset.pattern.permute.xlu1 %v13838_v6  ;;  %v4530_v24 = vmul.f32 %v4498_v35, %v3954_v32  ;;  %v7323_v51 = vadd.f32 %v12301_v29, %v7192_v39  ;;  %14277 = vst [vmem:[#allocation40_spill] sm:$0xff] %v12470_v7  ;;  %v12474_v35 = vpop.permute.xlu1 %4086 }
 0x593   : > { %6223 = vperm.xlu1 %8455, %v12268_v17   ;;  %v2153_v19 = vrot.slane %v2152_v14, 1  ;;  %v2854_v16 = vrot.slane %v2853_v4, 4  ;;  %v3555_v46 = vsel %vm534_vm0, %v3474_v52, 0.0  ;;  %v3923_v32 = vmul.f32 %v8697_v26, %v3378_v49  ;;  %v7884_v17 = vld [vmem:[#allocation3 + $0x58] ss:$0 sm:$0xff] }
 0x594   : > { %v3475_v9 = vmul.f32 %v3378_v49, %v3251_v0  ;;  %v5666_v48 = vadd.f32 %v5665_v10, %v5664_v45  ;;  %v3827_v15 = vmul.f32 %v3795_v2, %v3251_v0  ;;  %v12477_v25 = vmul.f32 %v8027_v53, %v12239_v33  ;;  %v1882_v49 = vld [vmem:[#allocation2 + $0xb8] sm:$0xff]  ;;  %v8047_v33 = vld [vmem:[#allocation3 + $0x75] ss:$0 sm:$0xff] }
 0x595   : > { %v2154_v29 = vadd.f32 %v2153_v19, %v2152_v14  ;;  %v2855_v45 = vadd.f32 %v2854_v16, %v2853_v4  ;;  %v12482_v52 = vmul.f32 %v8059_v57, %v12278_v18  ;;  %v4658_v39 = vadd.f32 %v4626_v12, %v4530_v24  ;;  %v8046_v4 = vld [vmem:[#allocation3 + $0x6d] ss:$0 sm:$0xff] }
 0x596   : > { %v3556_v20 = vsel %vm534_vm0, %v3475_v9, 0.0  ;;  %14278 = vst [vmem:[#allocation48_spill] sm:$0xff] %v12477_v25  ;;  %5754 = vst.msk [vmem:[#allocation5 + $0x35] sm:$0x1] %vm2227_vm3, %v5666_v48  ;;  %v3955_v2 = vadd.f32 %v3923_v32, %v3827_v15  ;;  %v4259_v53 = vsel %vm534_vm0, %v4178_v1, 0.0  ;;  %v7408_v48 = vadd.f32 %v12299_v38, %v7323_v51  ;;  %v14280_v12 = vld [vmem:[#allocation73_spill] sm:$0xff]  ;;  %v12493_v19 = vpop.permute.xlu0 %5544 }
 0x597   : > { %v3557_v22 = vadd.f32 %v3556_v20, %v3555_v46  ;;  %14279 = vst [vmem:[#allocation94_spill] sm:$0xff] %v12482_v52  ;;  %8456 = vset.pattern.permute.xlu1 %v13826_v36  ;;  %2235 = vst.msk [vmem:[#allocation5 + $0x38] sm:$0x1] %vm2227_vm3, %v2154_v29  ;;  %v2856_v9 = vrot.slane %v2855_v45, 2  ;;  %v12490_v57 = vmul.f32 %v7884_v17, %v12317_v40  ;;  %v14281_v36 = vsub.f32 1.0, %v12109_v47  ;;  %v14282_v15 = vld [vmem:[#allocation36_spill] sm:$0xff]  ;;  %v4786_v38 = vpop.permute.xlu1 %4785 }
 0x598   : > { %2008 = vperm.xlu1 %8456, %v1882_v49   ;;  %v4179_v24 = vmul.f32 %v14280_v12, %v3955_v2  ;;  %v2073_v1 = vmul.f32 %v12186_v55, %v12317_v40  ;;  %v12501_v26 = vmul.f32 %v12493_v19, %v14282_v15  ;;  %v14283_v51 = vld [vmem:[#allocation27_spill] sm:$0xff]  ;;  %v5886_v47 = vmul.f32 %v8046_v4, %v12493_v19 }
 0x599   : > { %v3558_v14 = vrot.slane %v3557_v22, 4  ;;  %v4531_v16 = vmul.f32 %v14281_v36, %v3955_v2  ;;  %v2857_v46 = vadd.f32 %v2856_v9, %v2855_v45  ;;  %v4882_v32 = vmul.f32 %v14283_v51, %v4658_v39  ;;  %v14284_v17 = vld [vmem:[#allocation83_spill] sm:$0xff] }
 0x59a   : > { %v14285_v29 = vsub.f32 1.0, %v14284_v17  ;;  %v4260_v0 = vsel %vm534_vm0, %v4179_v24, 0.0  ;;  %v3060_v36 = vmul.f32 %v12196_v30, %v12432_v13  ;;  %8607 = vtanh.f32 %v7408_v48  ;;  %v14286_v51 = vld [vmem:[#allocation35_spill] sm:$0xff] }
 0x59b   : > { %v3559_v20 = vadd.f32 %v3558_v14, %v3557_v22  ;;  %v2858_v2 = vrot.slane %v2857_v46, 1  ;;  %v4261_v22 = vadd.f32 %v4260_v0, %v4259_v53  ;;  %v2394_v9 = vsub.f32 1.0, %v12490_v57  ;;  %v14287_v30 = vld [vmem:[#allocation51_spill] sm:$0xff] }
 0x59c   : > { %v5234_v12 = vmul.f32 %v14285_v29, %v4658_v39  ;;  %8458 = vset.pattern.permute.xlu1 %v13921_v8  ;;  %v5918_v14 = vsub.f32 1.0, %v5886_v47  ;;  %v4659_v10 = vadd.f32 %v14286_v51, %v4531_v16  ;;  %v12513_v39 = vpop.permute.xlu0 %5554  ;;  %v8698_v29 = vld [vmem:[#allocation3 + $0x3c] ss:$0 sm:$0xff]  ;;  %v4963_v8 = vsel %vm534_vm0, %v4882_v32, 0.0  ;;  %v12520_v48 = vpop.permute.xlu1 %5489  ;;  %v7900_v57 = vld [vmem:[#allocation4 + $0x58] ss:$0 sm:$0xff] }
 0x59d   : > { %v3560_v45 = vrot.slane %v3559_v20, 2  ;;  %3417 = vperm.xlu1 %8458, %v1882_v49   ;;  %v2859_v24 = vadd.f32 %v2858_v2, %v2857_v46  ;;  %v4262_v4 = vrot.slane %v4261_v22, 4  ;;  %v5171_v18 = vmul.f32 %v8698_v29, %v4786_v38  ;;  %v12532_v29 = vld [vmem:[#allocation3 + $0x51] ss:$0 sm:$0xff] }
 0x59e   : > { %v5362_v52 = vadd.f32 %v14287_v30, %v5234_v12  ;;  %v12517_v0 = vmul.f32 %v5918_v14, %v14282_v15  ;;  %v4883_v53 = vmul.f32 %v4786_v38, %v4659_v10  ;;  %v3092_v16 = vsub.f32 1.0, %v3060_v36  ;;  %v14289_v12 = vld [vmem:[#allocation70_spill] sm:$0xff] }
 0x59f   : > { %v3561_v17 = vadd.f32 %v3560_v45, %v3559_v20  ;;  %2939 = vst.msk [vmem:[#allocation5 + $0x39] sm:$0x1] %vm2227_vm3, %v2859_v24  ;;  %v4263_v20 = vadd.f32 %v4262_v4, %v4261_v22  ;;  %v5203_v47 = vsub.f32 1.0, %v5171_v18  ;;  %v8699_v45 = vld [vmem:[#allocation4 + $0x3c] ss:$0 sm:$0xff]  ;;  %v12526_v15 = vmul.f32 %v12513_v39, %v14289_v12 }
 0x5a0   : > { %14288 = vst [vmem:[#allocation73_spill] sm:$0xff] %v12517_v0  ;;  %v4964_v2 = vsel %vm534_vm0, %v4883_v53, 0.0  ;;  %v5331_v51 = vmul.f32 %v8699_v45, %v4786_v38  ;;  %v5888_v32 = vmul.f32 %v8047_v33, %v12513_v39  ;;  %v12530_v14 = vpop.permute.xlu0 %5564  ;;  %v8048_v4 = vld [vmem:[#allocation3 + $0x7d] ss:$0 sm:$0xff]  ;;  %v12535_v38 = vsel %vm534_vm0, %v2073_v1, 0.0  ;;  %v14293_v33 = vld [vmem:[#allocation61_spill] sm:$0xff] }
 0x5a1   : > { %v3562_v46 = vrot.slane %v3561_v17, 1  ;;  %8460 = vset.pattern.permute.xlu1 %v13820_v21  ;;  %14290 = vst [vmem:[#allocation36_spill] sm:$0xff] %v12530_v14  ;;  %v4264_v24 = vrot.slane %v4263_v20, 2  ;;  %v4965_v22 = vadd.f32 %v4964_v2, %v4963_v8  ;;  %v5235_v18 = vmul.f32 %v5203_v47, %v4659_v10  ;;  %14291 = vst [vmem:[#allocation27_spill] sm:$0xff] %v12535_v38  ;;  %v12541_v21 = vld [vmem:[#allocation4 + $0x51] ss:$0 sm:$0xff]  ;;  %v12550_v1 = vpop.permute.xlu1 %6198 }
 0x5a2   : > { %4825 = vperm.xlu1 %8460, %v1882_v49   ;;  %v12538_v30 = vmul.f32 %v7900_v57, %v12317_v40  ;;  %v5920_v53 = vsub.f32 1.0, %v5888_v32  ;;  %v5586_v45 = vmul.f32 %v14293_v33, %v5362_v52  ;;  %v14295_v10 = vld [vmem:[#allocation42_spill] sm:$0xff]  ;;  %14297 = vst [vmem:[#allocation70_spill] sm:$0xff] %v12550_v1  ;;  %v12553_v40 = vmul.f32 %v12186_v55, %v2394_v9  ;;  %v12565_v2 = vld [vmem:[#allocation2 + $0xf8] sm:$0xff] }
 0x5a3   : > { %v3563_v36 = vadd.f32 %v3562_v46, %v3561_v17  ;;  %v4265_v0 = vadd.f32 %v4264_v24, %v4263_v20  ;;  %v4966_v17 = vrot.slane %v4965_v22, 4  ;;  %v12544_v46 = vadd.f32 %v5331_v51, %v5235_v18  ;;  %v8700_v24 = vld [vmem:[#allocation3 + $0x35] ss:$0 sm:$0xff]  ;;  %v7948_v33 = vld [vmem:[#allocation3 + $0x5a] ss:$0 sm:$0xff] }
 0x5a4   : > { %14292 = vst [vmem:[#allocation83_spill] sm:$0xff] %v12538_v30  ;;  %v12548_v49 = vmul.f32 %v12530_v14, %v14295_v10  ;;  %14298 = vst [vmem:[#allocation61_spill] sm:$0xff] %v12553_v40  ;;  %v12557_v8 = vmul.f32 %v12532_v29, %v12337_v37  ;;  %v12560_v57 = vmul.f32 %v5920_v53, %v14289_v12  ;;  %v12563_v47 = vpop.permute.xlu0 %5529  ;;  %v12571_v9 = vpop.eup %8607  ;;  %v14304_v30 = vld [vmem:[#allocation55_spill] sm:$0xff] }
 0x5a5   : > { %3643 = vst.msk [vmem:[#allocation5 + $0x3a] sm:$0x1] %vm2227_vm3, %v3563_v36  ;;  %14294 = vst [vmem:[#allocation35_spill] sm:$0xff] %v12544_v46  ;;  %v5890_v20 = vmul.f32 %v8048_v4, %v12530_v14  ;;  %v3124_v51 = vmul.f32 %v3092_v16, %v12161_v34  ;;  %v4266_v32 = vrot.slane %v4265_v0, 1  ;;  %v4967_v36 = vadd.f32 %v4966_v17, %v4965_v22  ;;  %v14303_v4 = vld [vmem:[#allocation44_spill] sm:$0xff] }
 0x5a6   : > { %14296 = vst [vmem:[#allocation51_spill] sm:$0xff] %v12548_v49  ;;  %14299 = vst [vmem:[#allocation42_spill] sm:$0xff] %v12557_v8  ;;  %v5587_v55 = vmul.f32 %v12520_v48, %v12544_v46  ;;  %4865 = vperm.xlu1 %8460, %v12565_v2   ;;  %v12575_v12 = vmul.f32 %v12541_v21, %v12337_v37  ;;  %v5873_v18 = vmul.f32 %v8700_v24, %v12345_v59  ;;  %v1979_v24 = vpop.permute.xlu1 %1978  ;;  %v8704_v46 = vld [vmem:[#allocation4 + $0x40] ss:$0 sm:$0xff] }
 0x5a7   : > { %14300 = vst [vmem:[#allocation95_spill] sm:$0xff] %v12563_v47  ;;  %14301 = vst [vmem:[#allocation96_spill] sm:$0xff] %v12571_v9  ;;  %v3220_v53 = vmul.f32 %v14303_v4, %v12432_v13  ;;  %v5922_v16 = vsub.f32 1.0, %v5890_v20  ;;  %v4267_v22 = vadd.f32 %v4266_v32, %v4265_v0  ;;  %v4968_v17 = vrot.slane %v4967_v36, 2  ;;  %v12593_v0 = vld [vmem:[%s13542_s4 + $0x8] sm:$0xff]  ;;  %v14309_v32 = vld [vmem:[#allocation87_spill] sm:$0xff] }
 0x5a8   : > { %14302 = vst [vmem:[#allocation97_spill] sm:$0xff] %v12575_v12  ;;  %v5667_v49 = vsel %vm534_vm0, %v5586_v45, 0.0  ;;  %v5668_v38 = vsel %vm534_vm0, %v5587_v55, 0.0  ;;  %v14305_v40 = vsub.f32 1.0, %v14304_v30  ;;  %v2068_v45 = vmul.f32 %v12593_v0, %v1979_v24  ;;  %v8702_v30 = vld [vmem:[#allocation3 + $0x40] ss:$0 sm:$0xff] }
 0x5a9   : > { %v5669_v12 = vadd.f32 %v5668_v38, %v5667_v49  ;;  %v12586_v58 = vmul.f32 %v5922_v16, %v14295_v10  ;;  %v3252_v25 = vadd.f32 %v3220_v53, %v3124_v51  ;;  %4347 = vst.msk [vmem:[#allocation5 + $0x3b] sm:$0x1] %vm2227_vm3, %v4267_v22  ;;  %v4969_v20 = vadd.f32 %v4968_v17, %v4967_v36  ;;  %v12596_v38 = vpop.permute.xlu0 %6203  ;;  %v5407_v10 = vld [vmem:[#allocation2 + $0xd8] sm:$0xff]  ;;  %v8703_v49 = vld [vmem:[#allocation4 + $0x35] ss:$0 sm:$0xff] }
 0x5aa   : > { %v5938_v37 = vmul.f32 %v14305_v40, %v5362_v52  ;;  %8462 = vset.pattern.permute.xlu1 %v14204_v62  ;;  %v2357_v52 = vmul.f32 %v8702_v30, %v1979_v24  ;;  %14307 = vst [vmem:[#allocation55_spill] sm:$0xff] %v12596_v38  ;;  %v12599_v40 = vmul.f32 %v8703_v49, %v12345_v59  ;;  %v7964_v4 = vld [vmem:[#allocation4 + $0x5a] ss:$0 sm:$0xff]  ;;  %v14311_v53 = vld [vmem:[#allocation38_spill] sm:$0xff]  ;;  %v2156_v17 = vsel %vm534_vm0, %v2068_v45, 0.0 }
 0x5ab   : > { %14306 = vst [vmem:[#allocation44_spill] sm:$0xff] %v12586_v58  ;;  %v12602_v51 = vmul.f32 %v7948_v33, %v12364_v41  ;;  %v12606_v36 = vmul.f32 %v14309_v32, %v12367_v28  ;;  %v5670_v55 = vrot.slane %v5669_v12, 4  ;;  %5549 = vperm.xlu1 %8462, %v5407_v10   ;;  %v4468_v16 = vmul.f32 %v14311_v53, %v12474_v35  ;;  %v14312_v59 = vld [vmem:[#allocation54_spill] sm:$0xff]  ;;  %v12620_v47 = vpop.permute.xlu1 %2688 }
 0x5ac   : > { %v4970_v22 = vrot.slane %v4969_v20, 1  ;;  %v2389_v30 = vsub.f32 1.0, %v2357_v52  ;;  %v5905_v9 = vsub.f32 1.0, %v5873_v18  ;;  %v12612_v49 = vadd.f32 %v14312_v59, %v5938_v37  ;;  %v14314_v58 = vld [vmem:[#allocation30_spill] sm:$0xff] }
 0x5ad   : > { %14308 = vst [vmem:[#allocation98_spill] sm:$0xff] %v12602_v51  ;;  %14310 = vst [vmem:[#allocation87_spill] sm:$0xff] %v12606_v36  ;;  %v5671_v33 = vadd.f32 %v5670_v55, %v5669_v12  ;;  %v2157_v8 = vadd.f32 %v2156_v17, %v14314_v58  ;;  %v14315_v38 = vld [vmem:[#allocation58_spill] sm:$0xff]  ;;  %v2517_v14 = vmul.f32 %v8704_v46, %v1979_v24  ;;  %v12618_v53 = vpop.permute.xlu0 %6218  ;;  %v4500_v46 = vsub.f32 1.0, %v4468_v16  ;;  %v14328_v36 = vld [vmem:[#allocation24_spill] sm:$0xff] }
 0x5ae   : > { %14313 = vst [vmem:[#allocation38_spill] sm:$0xff] %v12612_v49  ;;  %v14316_v32 = vsub.f32 1.0, %v14315_v38  ;;  %v4971_v3 = vadd.f32 %v4970_v22, %v4969_v20  ;;  %v2421_v10 = vmul.f32 %v12593_v0, %v2389_v30  ;;  %v12623_v18 = vmul.f32 %v7964_v4, %v12364_v41  ;;  %v12630_v52 = vld [vmem:[#allocation3 + $0x53] ss:$0 sm:$0xff]  ;;  %v14318_v22 = vld [vmem:[#allocation47_spill] sm:$0xff]  ;;  %v14319_v30 = vld [vmem:[#allocation21_spill] sm:$0xff] }
 0x5af   : > { %v2772_v37 = vmul.f32 %v12432_v13, %v12161_v34  ;;  %v5672_v12 = vrot.slane %v5671_v33, 2  ;;  %v2158_v58 = vrot.slane %v2157_v8, 4  ;;  %8463 = vset.pattern.permute.xlu1 %v13838_v6  ;;  %v5937_v38 = vmul.f32 %v5905_v9, %v12385_v56  ;;  %v12637_v4 = vld [vmem:[#allocation4 + $0x53] ss:$0 sm:$0xff] }
 0x5b0   : > { %v3828_v1 = vmul.f32 %v14316_v32, %v3252_v25  ;;  %14317 = vst [vmem:[#allocation54_spill] sm:$0xff] %v12623_v18  ;;  %5051 = vst.msk [vmem:[#allocation5 + $0x3c] sm:$0x1] %vm2227_vm3, %v4971_v3  ;;  %v2549_v24 = vadd.f32 %v2517_v14, %v2421_v10  ;;  %6228 = vperm.xlu1 %8463, %v12306_v5   ;;  %v6290_v34 = vmul.f32 %v12367_v28, %v12612_v49  ;;  %v14320_v32 = vld [vmem:[#allocation68_spill] sm:$0xff]  ;;  %v14322_v3 = vld [vmem:[#allocation45_spill] sm:$0xff] }
 0x5b1   : > { %v5673_v13 = vadd.f32 %v5672_v12, %v5671_v33  ;;  %v2159_v55 = vadd.f32 %v2158_v58, %v2157_v8  ;;  %v3476_v17 = vmul.f32 %v14318_v22, %v3252_v25  ;;  %v12642_v45 = vpop.permute.xlu0 %6233  ;;  %v14323_v14 = vsub.f32 1.0, %v14322_v3  ;;  %v3388_v10 = vpop.permute.xlu1 %3387  ;;  %v14325_v58 = vld [vmem:[#allocation59_spill] sm:$0xff]  ;;  %v6802_v3 = vld [vmem:[#allocation2 + $0x70] sm:$0xff] }
 0x5b2   : > { %v3956_v59 = vadd.f32 %v14319_v30, %v3828_v1  ;;  %v2773_v16 = vmul.f32 %v14320_v32, %v2549_v24  ;;  %14321 = vst [vmem:[#allocation30_spill] sm:$0xff] %v12642_v45  ;;  %v12648_v56 = vmul.f32 %v12630_v52, %v12395_v23  ;;  %v2860_v9 = vsel %vm534_vm0, %v2772_v37, 0.0  ;;  %v8705_v30 = vld [vmem:[#allocation3 + $0x42] ss:$0 sm:$0xff]  ;;  %v14326_v45 = vld [vmem:[#allocation39_spill] sm:$0xff] }
 0x5b3   : > { %v3125_v5 = vmul.f32 %v14323_v14, %v2549_v24  ;;  %v5674_v8 = vrot.slane %v5673_v13, 1  ;;  %v2160_v33 = vrot.slane %v2159_v55, 2  ;;  %v14324_v1 = vmov 7  }
 0x5b4   : > { %v4532_v12 = vmul.f32 %v4500_v46, %v3956_v59  ;;  %v2861_v25 = vsel %vm534_vm0, %v2773_v16, 0.0  ;;  %8464 = vset.pattern.permute.xlu1 %v14324_v1  ;;  %v3765_v32 = vmul.f32 %v8705_v30, %v3388_v10  ;;  %v12656_v24 = vmul.f32 %v12637_v4, %v12395_v23 }
 0x5b5   : > { %v3253_v22 = vadd.f32 %v14325_v58, %v3125_v5  ;;  %v5675_v14 = vadd.f32 %v5674_v8, %v5673_v13  ;;  %v2161_v20 = vadd.f32 %v2160_v33, %v2159_v55  ;;  %v2862_v37 = vadd.f32 %v2861_v25, %v2860_v9  ;;  %6892 = vperm.xlu1 %8464, %v6802_v3   ;;  %v12661_v41 = vpop.permute.xlu0 %6243  ;;  %v8012_v55 = vld [vmem:[#allocation3 + $0x5c] ss:$0 sm:$0xff]  ;;  %v8706_v33 = vld [vmem:[#allocation4 + $0x42] ss:$0 sm:$0xff] }
 0x5b6   : > { %v4628_v46 = vmul.f32 %v14326_v45, %v12474_v35  ;;  %v3564_v16 = vsel %vm534_vm0, %v3476_v17, 0.0  ;;  %v3797_v18 = vsub.f32 1.0, %v3765_v32  ;;  %14327 = vst [vmem:[#allocation58_spill] sm:$0xff] %v12661_v41  ;;  %v4180_v5 = vmul.f32 %v12474_v35, %v3956_v59  ;;  %v8028_v9 = vld [vmem:[#allocation4 + $0x5c] ss:$0 sm:$0xff]  ;;  %v12670_v3 = vpop.permute.xlu1 %4096 }
 0x5b7   : > { %v3477_v28 = vmul.f32 %v3388_v10, %v3253_v22  ;;  %5755 = vst.msk [vmem:[#allocation5 + $0x3d] sm:$0x1] %vm2227_vm3, %v5675_v14  ;;  %v2162_v58 = vrot.slane %v2161_v20, 1  ;;  %v2863_v30 = vrot.slane %v2862_v37, 4  ;;  %v12667_v13 = vmul.f32 %v12661_v41, %v14328_v36  ;;  %v6803_v32 = vld [vmem:[#allocation2 + $0x78] sm:$0xff] }
 0x5b8   : > { %v4660_v8 = vadd.f32 %v4628_v46, %v4532_v12  ;;  %v3829_v17 = vmul.f32 %v3797_v18, %v3253_v22  ;;  %v3925_v25 = vmul.f32 %v8706_v33, %v3388_v10  ;;  %v12673_v35 = vsel %vm534_vm0, %v6290_v34, 0.0  ;;  %v12675_v59 = vld [vmem:[#allocation3 + $0x59] ss:$0 sm:$0xff] }
 0x5b9   : > { %14329 = vst [vmem:[#allocation47_spill] sm:$0xff] %v12667_v13  ;;  %v3565_v45 = vsel %vm534_vm0, %v3477_v28, 0.0  ;;  %14330 = vst [vmem:[#allocation21_spill] sm:$0xff] %v12673_v35  ;;  %v2163_v14 = vadd.f32 %v2162_v58, %v2161_v20  ;;  %v2864_v49 = vadd.f32 %v2863_v30, %v2862_v37  ;;  %6897 = vperm.xlu1 %8464, %v6803_v32   ;;  %v12680_v12 = vpop.permute.xlu0 %6253  ;;  %v8063_v20 = vld [vmem:[#allocation4 + $0x75] ss:$0 sm:$0xff]  ;;  %v14333_v58 = vld [vmem:[#allocation65_spill] sm:$0xff] }
 0x5ba   : > { %v3566_v36 = vadd.f32 %v3565_v45, %v3564_v16  ;;  %v3062_v28 = vmul.f32 %v12354_v27, %v12620_v47  ;;  %v3957_v18 = vadd.f32 %v3925_v25, %v3829_v17  ;;  %14331 = vst [vmem:[#allocation68_spill] sm:$0xff] %v12680_v12  ;;  %v12683_v10 = vadd.f32 %v12599_v40, %v5937_v38  ;;  %v14335_v30 = vld [vmem:[#allocation64_spill] sm:$0xff]  ;;  %v12700_v45 = vld [vmem:[#allocation3 + $0x5b] ss:$0 sm:$0xff]  ;;  %v12704_v32 = vld [vmem:[#allocation2 + $0xe8] sm:$0xff] }
 0x5bb   : > { %v12686_v34 = vmul.f32 %v8012_v55, %v12427_v11  ;;  %v12689_v22 = vmul.f32 %v8028_v9, %v12427_v11  ;;  %2236 = vst.msk [vmem:[#allocation5 + $0x40] sm:$0x1] %vm2227_vm3, %v2163_v14  ;;  %v2865_v37 = vrot.slane %v2864_v49, 2  ;;  %v12694_v27 = vmul.f32 %v12675_v59, %v12451_v44  ;;  %v14336_v9 = vld [vmem:[#allocation76_spill] sm:$0xff]  ;;  %v14337_v14 = vld [vmem:[#allocation90_spill] sm:$0xff]  ;;  %v4796_v41 = vpop.permute.xlu1 %4795 }
 0x5bc   : > { %v3567_v46 = vrot.slane %v3566_v36, 4  ;;  %v4268_v16 = vsel %vm534_vm0, %v4180_v5, 0.0  ;;  %v14334_v40 = vsub.f32 1.0, %v14333_v58  ;;  %v4181_v55 = vmul.f32 %v14335_v30, %v3957_v18  ;;  %v8707_v30 = vld [vmem:[#allocation3 + $0x44] ss:$0 sm:$0xff] }
 0x5bd   : > { %14332 = vst [vmem:[#allocation45_spill] sm:$0xff] %v12689_v22  ;;  %v4884_v17 = vmul.f32 %v14336_v9, %v4660_v8  ;;  %v2866_v33 = vadd.f32 %v2865_v37, %v2864_v49  ;;  %8465 = vset.pattern.permute.xlu1 %v14204_v62  ;;  %v14338_v13 = vsub.f32 1.0, %v14337_v14  ;;  %v6048_v5 = vmul.f32 %v8063_v20, %v12513_v39 }
 0x5be   : > { %v5236_v38 = vmul.f32 %v14334_v40, %v4660_v8  ;;  %v3568_v25 = vadd.f32 %v3567_v46, %v3566_v36  ;;  %v3094_v58 = vsub.f32 1.0, %v3062_v28  ;;  %v4269_v40 = vsel %vm534_vm0, %v4181_v55, 0.0  ;;  %5559 = vperm.xlu1 %8465, %v12704_v32   ;;  %v12711_v8 = vpop.permute.xlu0 %6258  ;;  %v14340_v46 = vld [vmem:[#allocation75_spill] sm:$0xff] }
 0x5bf   : > { %v4533_v12 = vmul.f32 %v14338_v13, %v3957_v18  ;;  %v5173_v22 = vmul.f32 %v8707_v30, %v4796_v41  ;;  %14339 = vst [vmem:[#allocation59_spill] sm:$0xff] %v12711_v8  ;;  %v2867_v36 = vrot.slane %v2866_v33, 1  ;;  %v4270_v37 = vadd.f32 %v4269_v40, %v4268_v16  ;;  %v14342_v18 = vld [vmem:[#allocation86_spill] sm:$0xff]  ;;  %v12724_v55 = vld [vmem:[#allocation4 + $0x59] ss:$0 sm:$0xff]  ;;  %v14344_v16 = vld [vmem:[#allocation41_spill] sm:$0xff] }
 0x5c0   : > { %v3569_v49 = vrot.slane %v3568_v25, 2  ;;  %v12716_v13 = vmul.f32 %v12700_v45, %v12470_v7  ;;  %v12719_v39 = vadd.f32 %v14342_v18, %v5236_v38  ;;  %v12722_v20 = vadd.f32 %v6048_v5, %v12560_v57  ;;  %v6108_v57 = vld [vmem:[#allocation2 + $0xc0] sm:$0xff]  ;;  %v12735_v38 = vld [vmem:[#allocation4 + $0x5b] ss:$0 sm:$0xff] }
 0x5c1   : > { %v4661_v9 = vadd.f32 %v14340_v46, %v4533_v12  ;;  %v5205_v28 = vsub.f32 1.0, %v5173_v22  ;;  %v2868_v14 = vadd.f32 %v2867_v36, %v2866_v33  ;;  %v4271_v11 = vrot.slane %v4270_v37, 4  ;;  %v12739_v36 = vpop.permute.xlu1 %5499 }
 0x5c2   : > { %14341 = vst [vmem:[#allocation39_spill] sm:$0xff] %v12716_v13  ;;  %14343 = vst [vmem:[#allocation65_spill] sm:$0xff] %v12722_v20  ;;  %v3570_v30 = vadd.f32 %v3569_v49, %v3568_v25  ;;  %v3126_v40 = vmul.f32 %v3094_v58, %v14344_v16  ;;  %v4972_v12 = vsel %vm534_vm0, %v4884_v17, 0.0  ;;  %v12730_v51 = vmul.f32 %v12711_v8, %v12722_v20  ;;  %v12733_v22 = vpop.permute.xlu0 %6273  ;;  %v8708_v58 = vld [vmem:[#allocation4 + $0x44] ss:$0 sm:$0xff]  ;;  %v14349_v49 = vld [vmem:[#allocation78_spill] sm:$0xff] }
 0x5c3   : > { %v4885_v35 = vmul.f32 %v4796_v41, %v4661_v9  ;;  %v5237_v46 = vmul.f32 %v5205_v28, %v4661_v9  ;;  %8466 = vset.pattern.permute.xlu1 %v13838_v6  ;;  %14346 = vst [vmem:[#allocation76_spill] sm:$0xff] %v12733_v22  ;;  %2940 = vst.msk [vmem:[#allocation5 + $0x41] sm:$0x1] %vm2227_vm3, %v2868_v14  ;;  %v4272_v25 = vadd.f32 %v4271_v11, %v4270_v37  ;;  %v14347_v28 = vld [vmem:[#allocation33_spill] sm:$0xff] }
 0x5c4   : > { %14345 = vst [vmem:[#allocation64_spill] sm:$0xff] %v12730_v51  ;;  %v3571_v33 = vrot.slane %v3570_v30, 1  ;;  %v5333_v17 = vmul.f32 %v8708_v58, %v4796_v41  ;;  %6238 = vperm.xlu1 %8466, %v6108_v57   ;;  %v12744_v9 = vmul.f32 %v12724_v55, %v12451_v44  ;;  %v6289_v22 = vmul.f32 %v14347_v28, %v12683_v10  ;;  %v8062_v28 = vld [vmem:[#allocation4 + $0x6d] ss:$0 sm:$0xff] }
 0x5c5   : > { %v4973_v5 = vsel %vm534_vm0, %v4885_v35, 0.0  ;;  %v3222_v11 = vmul.f32 %v12358_v42, %v12620_v47  ;;  %v4273_v35 = vrot.slane %v4272_v25, 2  ;;  %v12755_v57 = vmul.f32 %v12735_v38, %v12470_v7 }
 0x5c6   : > { %v4974_v18 = vadd.f32 %v4973_v5, %v4972_v12  ;;  %v3572_v37 = vadd.f32 %v3571_v33, %v3570_v30  ;;  %v12750_v14 = vadd.f32 %v5333_v17, %v5237_v46  ;;  %v5588_v12 = vmul.f32 %v14349_v49, %v12719_v39  ;;  %v6873_v46 = vpop.permute.xlu0 %6872  ;;  %v6804_v33 = vld [vmem:[#allocation2 + $0x80] sm:$0xff]  ;;  %v12769_v5 = vpop.permute.xlu1 %6208 }
 0x5c7   : > { %14348 = vst [vmem:[#allocation90_spill] sm:$0xff] %v12755_v57  ;;  %v12760_v51 = vadd.f32 %v3222_v11, %v3126_v40  ;;  %v4274_v42 = vadd.f32 %v4273_v35, %v4272_v25  ;;  %v2774_v17 = vmul.f32 %v12620_v47, %v14344_v16  ;;  %v14350_v49 = vld [vmem:[#allocation72_spill] sm:$0xff]  ;;  %14351 = vst [vmem:[#allocation75_spill] sm:$0xff] %v12769_v5  ;;  %v6363_v40 = vsel %vm534_vm0, %v6289_v22, 0.0 }
 0x5c8   : > { %v4975_v58 = vrot.slane %v4974_v18, 4  ;;  %3644 = vst.msk [vmem:[#allocation5 + $0x42] sm:$0x1] %vm2227_vm3, %v3572_v37  ;;  %v5589_v30 = vmul.f32 %v12739_v36, %v12750_v14  ;;  %8467 = vset.pattern.permute.xlu1 %v14324_v1  ;;  %v6990_v20 = vmul.f32 %v6873_v46, %v14350_v49  ;;  %v4470_v25 = vmul.f32 %v12398_v50, %v12670_v3  ;;  %v14353_v46 = vld [vmem:[#allocation53_spill] sm:$0xff] }
 0x5c9   : > { %6902 = vperm.xlu1 %8467, %v6804_v33   ;;  %v4275_v11 = vrot.slane %v4274_v42, 1  ;;  %v5676_v37 = vsel %vm534_vm0, %v5588_v12, 0.0  ;;  %v12777_v8 = vmul.f32 %v8062_v28, %v12493_v19  ;;  %v14354_v33 = vsub.f32 1.0, %v14353_v46  ;;  %v6805_v49 = vld [vmem:[#allocation2 + $0x88] sm:$0xff] }
 0x5ca   : > { %v4976_v41 = vadd.f32 %v4975_v58, %v4974_v18  ;;  %v5677_v35 = vsel %vm534_vm0, %v5589_v30, 0.0  ;;  %v7057_v18 = vsel %vm534_vm0, %v6990_v20, 0.0  ;;  %v12782_v58 = vsel %vm534_vm0, %v12501_v26, 0.0 }
 0x5cb   : > { %v5678_v16 = vadd.f32 %v5677_v35, %v5676_v37  ;;  %14352 = vst [vmem:[#allocation86_spill] sm:$0xff] %v12782_v58  ;;  %v4276_v22 = vadd.f32 %v4275_v11, %v4274_v42  ;;  %v3830_v50 = vmul.f32 %v14354_v33, %v12760_v51  ;;  %v7059_v12 = vadd.f32 %v12407_v60, %v7057_v18  ;;  %v14356_v37 = vld [vmem:[#allocation52_spill] sm:$0xff]  ;;  %v1989_v18 = vpop.permute.xlu1 %1988  ;;  %v6888_v33 = vpop.permute.xlu0 %6887 }
 0x5cc   : > { %v4977_v47 = vrot.slane %v4976_v41, 2  ;;  %v12790_v19 = vsel %vm534_vm0, %v12526_v15, 0.0  ;;  %v6364_v20 = vadd.f32 %v6363_v40, %v12352_v54  ;;  %v12794_v26 = vsel %vm534_vm0, %v2774_v17, 0.0  ;;  %v14358_v54 = vld [vmem:[#allocation62_spill] sm:$0xff] }
 0x5cd   : > { %14355 = vst [vmem:[#allocation41_spill] sm:$0xff] %v12790_v19  ;;  %v5679_v30 = vrot.slane %v5678_v16, 4  ;;  %6907 = vperm.xlu1 %8467, %v6805_v49   ;;  %4348 = vst.msk [vmem:[#allocation5 + $0x43] sm:$0x1] %vm2227_vm3, %v4276_v22  ;;  %v4502_v42 = vsub.f32 1.0, %v4470_v25  ;;  %v7060_v11 = vrot.slane %v7059_v12, 4  ;;  %v12802_v40 = vadd.f32 %v14358_v54, %v3830_v50 }
 0x5ce   : > { %v4978_v28 = vadd.f32 %v4977_v47, %v4976_v41  ;;  %v14357_v60 = vsub.f32 1.0, %v14356_v37  ;;  %v6365_v41 = vrot.slane %v6364_v20, 4  ;;  %v2070_v47 = vmul.f32 %v12593_v0, %v1989_v18  ;;  %v14359_v49 = vld [vmem:[#allocation67_spill] sm:$0xff]  ;;  %v8709_v22 = vld [vmem:[#allocation3 + $0x48] ss:$0 sm:$0xff]  ;;  %v12821_v54 = vld [vmem:[#allocation2 + $0xd0] sm:$0xff] }
 0x5cf   : > { %v5680_v15 = vadd.f32 %v5679_v30, %v5678_v16  ;;  %v7061_v17 = vadd.f32 %v7060_v11, %v7059_v12  ;;  %v2359_v25 = vmul.f32 %v8709_v22, %v1989_v18  ;;  %v14360_v37 = vld [vmem:[#allocation23_spill] sm:$0xff]  ;;  %v4534_v50 = vmul.f32 %v4502_v42, %v12802_v40 }
 0x5d0   : > { %v6641_v35 = vmul.f32 %v14357_v60, %v12683_v10  ;;  %v4979_v46 = vrot.slane %v4978_v28, 1  ;;  %v6366_v13 = vadd.f32 %v6365_v41, %v6364_v20  ;;  %v2165_v10 = vsel %vm534_vm0, %v2070_v47, 0.0  ;;  %v12811_v20 = vpop.permute.xlu1 %2698 }
 0x5d1   : > { %v5681_v57 = vrot.slane %v5680_v15, 2  ;;  %8469 = vset.pattern.permute.xlu1 %v14204_v62  ;;  %v7062_v16 = vrot.slane %v7061_v17, 2  ;;  %v2166_v60 = vadd.f32 %v2165_v10, %v14360_v37  ;;  %v2391_v7 = vsub.f32 1.0, %v2359_v25  ;;  %v14362_v37 = vld [vmem:[#allocation56_spill] sm:$0xff] }
 0x5d2   : > { %v6769_v19 = vadd.f32 %v14359_v49, %v6641_v35  ;;  %v4980_v58 = vadd.f32 %v4979_v46, %v4978_v28  ;;  %5569 = vperm.xlu1 %8469, %v12565_v2   ;;  %v6367_v11 = vrot.slane %v6366_v13, 2  ;;  %v8710_v28 = vld [vmem:[#allocation4 + $0x48] ss:$0 sm:$0xff] }
 0x5d3   : > { %v5682_v12 = vadd.f32 %v5681_v57, %v5680_v15  ;;  %v2519_v35 = vmul.f32 %v8710_v28, %v1989_v18  ;;  %v7063_v46 = vadd.f32 %v7062_v16, %v7061_v17  ;;  %v2167_v41 = vrot.slane %v2166_v60, 4 }
 0x5d4   : > { %v6993_v30 = vmul.f32 %v6888_v33, %v6769_v19  ;;  %5052 = vst.msk [vmem:[#allocation5 + $0x44] sm:$0x1] %vm2227_vm3, %v4980_v58  ;;  %v2423_v19 = vmul.f32 %v12593_v0, %v2391_v7  ;;  %v4630_v33 = vmul.f32 %v12419_v31, %v12670_v3  ;;  %v6368_v47 = vadd.f32 %v6367_v11, %v6366_v13  ;;  %v3398_v16 = vpop.permute.xlu1 %3397 }
 0x5d5   : > { %v5683_v2 = vrot.slane %v5682_v12, 1  ;;  %v7064_v58 = vrot.slane %v7063_v46, 1  ;;  %v2168_v57 = vadd.f32 %v2167_v41, %v2166_v60  ;;  %v3064_v18 = vmul.f32 %v12532_v29, %v12811_v20  ;;  %v8711_v41 = vld [vmem:[#allocation3 + $0x4a] ss:$0 sm:$0xff] }
 0x5d6   : > { %v7067_v62 = vsel %vm534_vm0, %v6993_v30, 0.0  ;;  %v2551_v15 = vadd.f32 %v2519_v35, %v2423_v19  ;;  %8470 = vset.pattern.permute.xlu1 %v13838_v6  ;;  %v12823_v17 = vadd.f32 %v4630_v33, %v4534_v50  ;;  %v6369_v49 = vrot.slane %v6368_v47, 1  ;;  %v14364_v50 = vld [vmem:[#allocation22_spill] sm:$0xff] }
 0x5d7   : > { %v7068_v42 = vadd.f32 %v7067_v62, %v12435_v43  ;;  %v5684_v7 = vadd.f32 %v5683_v2, %v5682_v12  ;;  %6248 = vperm.xlu1 %8470, %v12821_v54   ;;  %v7065_v31 = vadd.f32 %v7064_v58, %v7063_v46  ;;  %v2169_v13 = vrot.slane %v2168_v57, 2  ;;  %v14361_v43 = vld [vmem:[#allocation71_spill] sm:$0xff]  ;;  %v14365_v46 = vld [vmem:[#allocation82_spill] sm:$0xff] }
 0x5d8   : > { %v2775_v25 = vmul.f32 %v14361_v43, %v2551_v15  ;;  %v3096_v10 = vsub.f32 1.0, %v3064_v18  ;;  %v6370_v29 = vadd.f32 %v6369_v49, %v6368_v47  ;;  %v14363_v60 = vsub.f32 1.0, %v14362_v37  ;;  %v14367_v18 = vld [vmem:[#allocation92_spill] sm:$0xff] }
 0x5d9   : > { %v7069_v22 = vrot.slane %v7068_v42, 4  ;;  %5756 = vst.msk [vmem:[#allocation5 + $0x45] sm:$0x1] %vm2227_vm3, %v5684_v7  ;;  %v3478_v12 = vmul.f32 %v14364_v50, %v12760_v51  ;;  %7161 = vst.msk [vmem:[#allocation5 + $0x2f] sm:$0x1] %vm2227_vm3, %v7065_v31  ;;  %v2170_v28 = vadd.f32 %v2169_v13, %v2168_v57  ;;  %v3767_v19 = vmul.f32 %v8711_v41, %v3398_v16  ;;  %v6806_v51 = vld [vmem:[#allocation2 + $0x90] sm:$0xff] }
 0x5da   : > { %v3127_v11 = vmul.f32 %v14363_v60, %v2551_v15  ;;  %v2870_v35 = vsel %vm534_vm0, %v2775_v25, 0.0  ;;  %v3128_v62 = vmul.f32 %v3096_v10, %v14365_v46  ;;  %6458 = vst.msk [vmem:[#allocation5 + $0x36] sm:$0x1] %vm2227_vm3, %v6370_v29  ;;  %v3224_v47 = vmul.f32 %v12541_v21, %v12811_v20  ;;  %v8712_v57 = vld [vmem:[#allocation3 + $0x3d] ss:$0 sm:$0xff]  ;;  %v12849_v25 = vpop.permute.xlu1 %4106 }
 0x5db   : > { %v7070_v30 = vadd.f32 %v7069_v22, %v7068_v42  ;;  %v2871_v2 = vadd.f32 %v2870_v35, %v12794_v26  ;;  %v14366_v42 = vld [vmem:[#allocation29_spill] sm:$0xff]  ;;  %8471 = vset.pattern.permute.xlu1 %v14324_v1  ;;  %v12842_v15 = vmul.f32 %v8712_v57, %v12520_v48  ;;  %v14368_v7 = vsub.f32 1.0, %v14367_v18  ;;  %v8713_v10 = vld [vmem:[#allocation4 + $0x3d] ss:$0 sm:$0xff] }
 0x5dc   : > { %v3255_v58 = vadd.f32 %v14366_v42, %v3127_v11  ;;  %v2171_v22 = vrot.slane %v2170_v28, 1  ;;  %v3799_v31 = vsub.f32 1.0, %v3767_v19  ;;  %6912 = vperm.xlu1 %8471, %v6806_v51   ;;  %v12847_v43 = vadd.f32 %v3224_v47, %v3128_v62  ;;  %v8714_v11 = vld [vmem:[#allocation4 + $0x4a] ss:$0 sm:$0xff]  ;;  %v12857_v47 = vld [vmem:[#allocation3 + $0x5d] ss:$0 sm:$0xff] }
 0x5dd   : > { %v7071_v33 = vrot.slane %v7070_v30, 2  ;;  %v5238_v49 = vmul.f32 %v14368_v7, %v12823_v17  ;;  %v2872_v13 = vrot.slane %v2871_v2, 4  ;;  %v12852_v29 = vmul.f32 %v8713_v10, %v12520_v48  ;;  %v14374_v10 = vld [vmem:[#allocation20_spill] sm:$0xff] }
 0x5de   : > { %v3479_v21 = vmul.f32 %v3398_v16, %v3255_v58  ;;  %v2172_v37 = vadd.f32 %v2171_v22, %v2170_v28  ;;  %v3831_v60 = vmul.f32 %v3799_v31, %v3255_v58  ;;  %v3927_v50 = vmul.f32 %v8714_v11, %v3398_v16  ;;  %v14369_v16 = vld [vmem:[#allocation50_spill] sm:$0xff] }
 0x5df   : > { %v7072_v26 = vadd.f32 %v7071_v33, %v7070_v30  ;;  %v2873_v41 = vadd.f32 %v2872_v13, %v2871_v2  ;;  %v3573_v19 = vsel %vm534_vm0, %v3478_v12, 0.0  ;;  %v6807_v33 = vld [vmem:[#allocation2 + $0x98] sm:$0xff]  ;;  %v5907_v62 = vsub.f32 1.0, %v12842_v15  ;;  %v8073_v15 = vld [vmem:[#allocation3 + $0x46] ss:$0 sm:$0xff] }
 0x5e0   : > { %v3574_v30 = vsel %vm534_vm0, %v3479_v21, 0.0  ;;  %v4182_v42 = vmul.f32 %v12670_v3, %v12802_v40  ;;  %2237 = vst.msk [vmem:[#allocation5 + $0x48] sm:$0x1] %vm2227_vm3, %v2172_v37  ;;  %v3959_v28 = vadd.f32 %v3927_v50, %v3831_v60  ;;  %6917 = vperm.xlu1 %8471, %v6807_v33   ;;  %v5366_v58 = vadd.f32 %v14369_v16, %v5238_v49  ;;  %v7177_v18 = vld [vmem:[#allocation5 + $0x28] sm:$0xff]  ;;  %v14371_v40 = vld [vmem:[#allocation28_spill] sm:$0xff]  ;;  %v4806_v21 = vpop.permute.xlu1 %4805  ;;  %v14373_v49 = vld [vmem:[#allocation95_spill] sm:$0xff] }
 0x5e1   : > { %v7073_v35 = vrot.slane %v7072_v26, 1  ;;  %v3575_v48 = vadd.f32 %v3574_v30, %v3573_v19  ;;  %v2874_v51 = vrot.slane %v2873_v41, 2  ;;  %v14370_v12 = vsub.f32 1.0, %v12411_v63  ;;  %8154 = vmatmul.mubr.msk.f32.gmra.mrb[28].mxu0 %vm534_vm0, %v7177_v18  ;;  %v14376_v30 = vld [vmem:[#allocation93_spill] sm:$0xff] }
 0x5e2   : > { %v4183_v22 = vmul.f32 %v12205_v61, %v3959_v28  ;;  %v4472_v3 = vmul.f32 %v12630_v52, %v12849_v25  ;;  %v14372_v31 = vsub.f32 1.0, %v14371_v40  ;;  %v4886_v37 = vmul.f32 %v14374_v10, %v12823_v17  ;;  %v8715_v61 = vld [vmem:[#allocation3 + $0x4c] ss:$0 sm:$0xff] }
 0x5e3   : > { %v7074_v2 = vadd.f32 %v7073_v35, %v7072_v26  ;;  %v3832_v57 = vmul.f32 %v14370_v12, %v12847_v43  ;;  %v3576_v7 = vrot.slane %v3575_v48, 4  ;;  %v12874_v26 = vmul.f32 %v12857_v47, %v14373_v49  ;;  %v14375_v35 = vld [vmem:[#allocation46_spill] sm:$0xff]  ;;  %v8716_v40 = vld [vmem:[#allocation4 + $0x4c] ss:$0 sm:$0xff] }
 0x5e4   : > { %v4535_v13 = vmul.f32 %v14372_v31, %v3959_v28  ;;  %v2875_v63 = vadd.f32 %v2874_v51, %v2873_v41  ;;  %v5175_v60 = vmul.f32 %v8715_v61, %v4806_v21  ;;  %v4277_v52 = vsel %vm534_vm0, %v4182_v42, 0.0  ;;  %8472 = vset.pattern.permute.xlu1 %v13838_v6  ;;  %v14378_v51 = vld [vmem:[#allocation57_spill] sm:$0xff] }
 0x5e5   : > { %7162 = vst.msk [vmem:[#allocation5 + $0x37] sm:$0x1] %vm2227_vm3, %v7074_v2  ;;  %v3577_v11 = vadd.f32 %v3576_v7, %v3575_v48  ;;  %v4278_v50 = vsel %vm534_vm0, %v4183_v22, 0.0  ;;  %v14377_v33 = vsub.f32 1.0, %v14376_v30  ;;  %6263 = vperm.xlu1 %8472, %v12704_v32   ;;  %v12887_v12 = vadd.f32 %v14378_v51, %v3832_v57  ;;  %v14379_v32 = vld [vmem:[#allocation63_spill] sm:$0xff] }
 0x5e6   : > { %v4663_v19 = vadd.f32 %v14375_v35, %v4535_v13  ;;  %v2876_v16 = vrot.slane %v2875_v63, 1  ;;  %v4279_v2 = vadd.f32 %v4278_v50, %v4277_v52  ;;  %v5207_v41 = vsub.f32 1.0, %v5175_v60  ;;  %v5510_v13 = vpop.permute.xlu1 %5509  ;;  %v8717_v60 = vld [vmem:[#allocation3 + $0x4d] ss:$0 sm:$0xff] }
 0x5e7   : > { %v5942_v28 = vmul.f32 %v14377_v33, %v5366_v58  ;;  %v3578_v17 = vrot.slane %v3577_v11, 2  ;;  %v4504_v42 = vsub.f32 1.0, %v4472_v3  ;;  %v4981_v22 = vsel %vm534_vm0, %v4886_v37, 0.0  ;;  %v6809_v37 = vld [vmem:[#allocation2 + $0xa8] sm:$0xff] }
 0x5e8   : > { %v4887_v48 = vmul.f32 %v4806_v21, %v4663_v19  ;;  %v2877_v18 = vadd.f32 %v2876_v16, %v2875_v63  ;;  %v4280_v7 = vrot.slane %v4279_v2, 4  ;;  %v5335_v31 = vmul.f32 %v8716_v40, %v4806_v21  ;;  %v14381_v63 = vld [vmem:[#allocation69_spill] sm:$0xff]  ;;  %v8064_v21 = vld [vmem:[#allocation4 + $0x7d] ss:$0 sm:$0xff] }
 0x5e9   : > { %v3579_v10 = vadd.f32 %v3578_v17, %v3577_v11  ;;  %v5239_v52 = vmul.f32 %v5207_v41, %v4663_v19  ;;  %v5879_v50 = vmul.f32 %v8717_v60, %v5510_v13  ;;  %v12892_v35 = vadd.f32 %v14379_v32, %v5942_v28  ;;  %8473 = vset.pattern.permute.xlu1 %v14324_v1  ;;  %v14382_v28 = vld [vmem:[#allocation85_spill] sm:$0xff]  ;;  %v12909_v60 = vld [vmem:[#allocation4 + $0x5d] ss:$0 sm:$0xff] }
 0x5ea   : > { %v4982_v61 = vsel %vm534_vm0, %v4887_v48, 0.0  ;;  %2941 = vst.msk [vmem:[#allocation5 + $0x49] sm:$0x1] %vm2227_vm3, %v2877_v18  ;;  %v4281_v57 = vadd.f32 %v4280_v7, %v4279_v2  ;;  %v5590_v30 = vmul.f32 %v14381_v63, %v5366_v58  ;;  %v4536_v11 = vmul.f32 %v4504_v42, %v12887_v12  ;;  %6927 = vperm.xlu1 %8473, %v6809_v37   ;;  %v8718_v40 = vld [vmem:[#allocation4 + $0x4d] ss:$0 sm:$0xff]  ;;  %v12921_v37 = vld [vmem:[#allocation2 + $0xf0] sm:$0xff] }
 0x5eb   : > { %14380 = vst [vmem:[#allocation33_spill] sm:$0xff] %v12892_v35  ;;  %v4983_v3 = vadd.f32 %v4982_v61, %v4981_v22  ;;  %v3580_v33 = vrot.slane %v3579_v10, 1  ;;  %v5367_v19 = vadd.f32 %v5335_v31, %v5239_v52  ;;  %v5911_v41 = vsub.f32 1.0, %v5879_v50  ;;  %v12904_v61 = vpop.permute.xlu1 %6213  ;;  %v14384_v31 = vld [vmem:[#allocation36_spill] sm:$0xff] }
 0x5ec   : > { %v7178_v16 = vld [vmem:[#allocation5 + $0x30] sm:$0xff]  ;;  %v14383_v17 = vsub.f32 1.0, %v14382_v28  ;;  %v4282_v48 = vrot.slane %v4281_v57, 2  ;;  %v4632_v2 = vmul.f32 %v12637_v4, %v12849_v25  ;;  %v6039_v42 = vmul.f32 %v8718_v40, %v5510_v13 }
 0x5ed   : > { %v4984_v58 = vrot.slane %v4983_v3, 4  ;;  %8156 = vmatprep.mubr.msk.f32.mxu0 %vm534_vm0, %v7178_v16  ;;  %v3581_v18 = vadd.f32 %v3580_v33, %v3579_v10  ;;  %v5591_v7 = vmul.f32 %v5510_v13, %v5367_v19  ;;  %v5943_v22 = vmul.f32 %v5911_v41, %v5367_v19  ;;  %v8719_v40 = vld [vmem:[#allocation3 + $0x50] ss:$0 sm:$0xff] }
 0x5ee   : > { %v5940_v51 = vmul.f32 %v14383_v17, %v12719_v39  ;;  %v12907_v52 = vmul.f32 %v8064_v21, %v14384_v31  ;;  %v6294_v39 = vmul.f32 %v12769_v5, %v12892_v35  ;;  %v4283_v50 = vadd.f32 %v4282_v48, %v4281_v57  ;;  %8474 = vset.pattern.permute.xlu1 %v13838_v6  ;;  %v14385_v21 = vld [vmem:[#allocation35_spill] sm:$0xff]  ;;  %v8720_v31 = vld [vmem:[#allocation3 + $0x45] ss:$0 sm:$0xff]  ;;  %v8721_v19 = vld [vmem:[#allocation4 + $0x50] ss:$0 sm:$0xff] }
 0x5ef   : > { %v4985_v4 = vadd.f32 %v4984_v58, %v4983_v3  ;;  %3645 = vst.msk [vmem:[#allocation5 + $0x4a] sm:$0x1] %vm2227_vm3, %v3581_v18  ;;  %v12914_v32 = vadd.f32 %v4632_v2, %v4536_v11  ;;  %v5685_v10 = vsel %vm534_vm0, %v5590_v30, 0.0  ;;  %v5686_v13 = vsel %vm534_vm0, %v5591_v7, 0.0  ;;  %6268 = vperm.xlu1 %8474, %v12921_v37   ;;  %v14386_v11 = vld [vmem:[#allocation88_spill] sm:$0xff]  ;;  %v1999_v2 = vpop.permute.xlu1 %1998  ;;  %v14387_v58 = vld [vmem:[#allocation74_spill] sm:$0xff] }
 0x5f0   : > { %v12918_v63 = vadd.f32 %v6039_v42, %v5943_v22  ;;  %v12926_v33 = vmul.f32 %v5907_v62, %v14385_v21  ;;  %v4284_v57 = vrot.slane %v4283_v50, 1  ;;  %v5687_v16 = vadd.f32 %v5686_v13, %v5685_v10  ;;  %v6810_v13 = vld [vmem:[#allocation2 + $0xb0] sm:$0xff] }
 0x5f1   : > { %v4986_v3 = vrot.slane %v4985_v4, 2  ;;  %v12930_v30 = vadd.f32 %v14386_v11, %v5940_v51  ;;  %v12935_v6 = vmul.f32 %v12909_v60, %v14373_v49  ;;  %v6389_v62 = vsel %vm534_vm0, %v6294_v39, 0.0  ;;  %v14389_v21 = vld [vmem:[#allocation70_spill] sm:$0xff]  ;;  %v12960_v5 = vpop.f32.mrb[26].mxu0 }
 0x5f2   : > { %v6295_v41 = vmul.f32 %v12904_v61, %v12918_v63  ;;  %v4285_v28 = vadd.f32 %v4284_v57, %v4283_v50  ;;  %v5688_v48 = vrot.slane %v5687_v16, 4  ;;  %v14388_v51 = vsub.f32 1.0, %v14387_v58 }
 0x5f3   : > { %v4987_v17 = vadd.f32 %v4986_v3, %v4985_v4  ;;  %v2072_v22 = vmul.f32 %v12593_v0, %v1999_v2  ;;  %v2361_v42 = vmul.f32 %v8719_v40, %v1999_v2  ;;  %v5877_v10 = vmul.f32 %v8720_v31, %v12739_v36  ;;  %8476 = vset.pattern.permute.xlu1 %v14324_v1  ;;  %v14393_v1 = vld [vmem:[#allocation48_spill] sm:$0xff] }
 0x5f4   : > { %v5240_v18 = vmul.f32 %v14388_v51, %v12914_v32  ;;  %v6390_v7 = vsel %vm534_vm0, %v6295_v41, 0.0  ;;  %4349 = vst.msk [vmem:[#allocation5 + $0x4b] sm:$0x1] %vm2227_vm3, %v4285_v28  ;;  %v5689_v50 = vadd.f32 %v5688_v48, %v5687_v16  ;;  %v6292_v57 = vmul.f32 %v14389_v21, %v12930_v30  ;;  %6932 = vperm.xlu1 %8476, %v6810_v13   ;;  %v14391_v28 = vld [vmem:[#allocation66_spill] sm:$0xff]  ;;  %v14392_v16 = vld [vmem:[#allocation55_spill] sm:$0xff]  ;;  %v7332_v13 = vpop.f32.mrb[27].mxu0 }
 0x5f5   : > { %v4988_v39 = vrot.slane %v4987_v17, 1  ;;  %v6391_v4 = vadd.f32 %v6390_v7, %v6389_v62  ;;  %v12951_v3 = vmul.f32 %v8073_v15, %v14389_v21  ;;  %v2174_v11 = vsel %vm534_vm0, %v2072_v22, 0.0  ;;  %v12962_v21 = vpop.permute.xlu1 %2708 }
 0x5f6   : > { %v2393_v41 = vsub.f32 1.0, %v2361_v42  ;;  %v5690_v51 = vrot.slane %v5689_v50, 2  ;;  %v2175_v31 = vadd.f32 %v2174_v11, %v14391_v28  ;;  %v12956_v62 = vmul.f32 %v8073_v15, %v14392_v16  ;;  %v7194_v11 = vld [vmem:[#allocation6 + $0x10] sm:$0xff]  ;;  %v6811_v15 = vld [vmem:[#allocation2 + $0xb8] sm:$0xff] }
 0x5f7   : > { %14390 = vst [vmem:[#allocation78_spill] sm:$0xff] %v12951_v3  ;;  %v4989_v58 = vadd.f32 %v4988_v39, %v4987_v17  ;;  %v6392_v40 = vrot.slane %v6391_v4, 4  ;;  %v5368_v48 = vadd.f32 %v14393_v1, %v5240_v18  ;;  %v2521_v35 = vmul.f32 %v8721_v19, %v1999_v2  ;;  %v14396_v28 = vld [vmem:[#allocation34_spill] sm:$0xff] }
 0x5f8   : > { %v2425_v7 = vmul.f32 %v12593_v0, %v2393_v41  ;;  %v5909_v22 = vsub.f32 1.0, %v5877_v10  ;;  %v5691_v17 = vadd.f32 %v5690_v51, %v5689_v50  ;;  %v2176_v39 = vrot.slane %v2175_v31, 4  ;;  %6937 = vperm.xlu1 %8476, %v6811_v15   ;;  %v8722_v50 = vld [vmem:[#allocation4 + $0x45] ss:$0 sm:$0xff] }
 0x5f9   : > { %5053 = vst.msk [vmem:[#allocation5 + $0x4c] sm:$0x1] %vm2227_vm3, %v4989_v58  ;;  %v6393_v42 = vadd.f32 %v6392_v40, %v6391_v4  ;;  %v2776_v0 = vmul.f32 %v12811_v20, %v14365_v46  ;;  %v7333_v19 = vadd.f32 %v7332_v13, %v7194_v11  ;;  %v12969_v2 = vsel %vm534_vm0, %v6292_v57, 0.0  ;;  %v14394_v51 = vld [vmem:[#allocation80_spill] sm:$0xff] }
 0x5fa   : > { %v2553_v18 = vadd.f32 %v2521_v35, %v2425_v7  ;;  %v5692_v10 = vrot.slane %v5691_v17, 1  ;;  %v2177_v58 = vadd.f32 %v2176_v39, %v2175_v31  ;;  %v12972_v4 = vmul.f32 %v8722_v50, %v12739_v36  ;;  %v12980_v20 = vld [vmem:[%s13546_s8] ss:$0 sm:$0xff]  ;;  %v3408_v36 = vpop.permute.xlu1 %3407  ;;  %v6813_v39 = vld [vmem:[#allocation2 + $0xc8] sm:$0xff]  ;;  %v8724_v50 = vld [vmem:[#allocation3 + $0x52] ss:$0 sm:$0xff] }
 0x5fb   : > { %v6394_v41 = vrot.slane %v6393_v42, 2  ;;  %v14395_v40 = vsub.f32 1.0, %v14394_v51  ;;  %v7410_v46 = vadd.f32 %v12980_v20, %v7333_v19  ;;  %v12984_v35 = vmul.f32 %v5909_v22, %v12750_v14  ;;  %v14397_v22 = vld [vmem:[#allocation42_spill] sm:$0xff] }
 0x5fc   : > { %v2777_v3 = vmul.f32 %v14396_v28, %v2553_v18  ;;  %v5693_v57 = vadd.f32 %v5692_v10, %v5691_v17  ;;  %v2178_v7 = vrot.slane %v2177_v58, 2  ;;  %v2878_v13 = vsel %vm534_vm0, %v2776_v0, 0.0  ;;  %6947 = vperm.xlu1 %8476, %v6813_v39   ;;  %v14399_v10 = vld [vmem:[#allocation89_spill] sm:$0xff]  ;;  %v14402_v39 = vld [vmem:[#allocation32_spill] sm:$0xff] }
 0x5fd   : > { %v5944_v1 = vmul.f32 %v14395_v40, %v5368_v48  ;;  %v6395_v31 = vadd.f32 %v6394_v41, %v6393_v42  ;;  %v4184_v11 = vmul.f32 %v12849_v25, %v12887_v12  ;;  %8609 = vtanh.f32 %v7410_v46  ;;  %v14400_v12 = vld [vmem:[#allocation94_spill] sm:$0xff] }
 0x5fe   : > { %v2879_v15 = vsel %vm534_vm0, %v2777_v3, 0.0  ;;  %5757 = vst.msk [vmem:[#allocation5 + $0x4d] sm:$0x1] %vm2227_vm3, %v5693_v57  ;;  %v2179_v19 = vadd.f32 %v2178_v7, %v2177_v58  ;;  %v14398_v17 = vsub.f32 1.0, %v14397_v22  ;;  %v3480_v41 = vmul.f32 %v14399_v10, %v12847_v43  ;;  %v14401_v57 = vld [vmem:[#allocation97_spill] sm:$0xff] }
 0x5ff   : > { %v6396_v28 = vrot.slane %v6395_v31, 1  ;;  %v2880_v14 = vadd.f32 %v2879_v15, %v2878_v13  ;;  %v3066_v0 = vmul.f32 %v12675_v59, %v12962_v21  ;;  %v3769_v25 = vmul.f32 %v8724_v50, %v3408_v36  ;;  %v13001_v7 = vld [vmem:[#allocation3 + $0x4e] ss:$0 sm:$0xff]  ;;  %v13007_v59 = vpop.permute.xlu1 %4116  ;;  %v14403_v15 = vld [vmem:[#allocation91_spill] sm:$0xff]  ;;  %v8725_v50 = vld [vmem:[#allocation4 + $0x52] ss:$0 sm:$0xff] }
 0x600   : > { %v3129_v42 = vmul.f32 %v14398_v17, %v2553_v18  ;;  %v12998_v3 = vadd.f32 %v14400_v12, %v5944_v1  ;;  %v2180_v40 = vrot.slane %v2179_v19, 1  ;;  %v4286_v18 = vsel %vm534_vm0, %v4184_v11, 0.0  ;;  %6952 = vperm.xlu1 %8476, %v12821_v54   ;;  %v14404_v11 = vld [vmem:[#allocation61_spill] sm:$0xff] }
 0x601   : > { %v6397_v51 = vadd.f32 %v6396_v28, %v6395_v31  ;;  %v2881_v46 = vrot.slane %v2880_v14, 4  ;;  %v4888_v43 = vmul.f32 %v14402_v39, %v12914_v32  ;;  %v3801_v13 = vsub.f32 1.0, %v3769_v25  ;;  %v6816_v25 = vld [vmem:[#allocation2 + $0xe0] sm:$0xff]  ;;  %v13021_v12 = vld [vmem:[#allocation4 + $0x4e] ss:$0 sm:$0xff] }
 0x602   : > { %v3257_v58 = vadd.f32 %v14401_v57, %v3129_v42  ;;  %v5592_v1 = vmul.f32 %v14403_v15, %v5368_v48  ;;  %v13013_v31 = vmul.f32 %v13001_v7, %v12904_v61  ;;  %v2181_v28 = vadd.f32 %v2180_v40, %v2179_v19  ;;  %v14405_v42 = vld [vmem:[#allocation83_spill] sm:$0xff] }
 0x603   : > { %6461 = vst.msk [vmem:[#allocation5 + $0x4e] sm:$0x1] %vm2227_vm3, %v6397_v51  ;;  %v2882_v22 = vadd.f32 %v2881_v46, %v2880_v14  ;;  %v13017_v10 = vadd.f32 %v14405_v42, %v14404_v11  ;;  %v3929_v54 = vmul.f32 %v8725_v50, %v3408_v36  ;;  %v6296_v48 = vmul.f32 %v12618_v53, %v12998_v3 }
 0x604   : > { %v3481_v17 = vmul.f32 %v3408_v36, %v3257_v58  ;;  %v3833_v32 = vmul.f32 %v3801_v13, %v3257_v58  ;;  %2238 = vst.msk [vmem:[#allocation5 + $0x50] sm:$0x1] %vm2227_vm3, %v2181_v28  ;;  %v3098_v57 = vsub.f32 1.0, %v3066_v0  ;;  %v3582_v19 = vsel %vm534_vm0, %v3480_v41, 0.0  ;;  %6962 = vperm.xlu1 %8476, %v6816_v25   ;;  %v4816_v15 = vpop.permute.xlu1 %4815  ;;  %v13038_v41 = vld [vmem:[%s14258_s0] ss:$0 sm:$0xff] }
 0x605   : > { %v2883_v51 = vrot.slane %v2882_v22, 2  ;;  %v13028_v40 = vmul.f32 %v13021_v12, %v12904_v61  ;;  %v4990_v58 = vsel %vm534_vm0, %v4888_v43, 0.0  ;;  %v13033_v28 = vsel %vm534_vm0, %v5592_v1, 0.0  ;;  %v14406_v0 = vld [vmem:[#allocation96_spill] sm:$0xff] }
 0x606   : > { %v3583_v14 = vsel %vm534_vm0, %v3481_v17, 0.0  ;;  %v3961_v36 = vadd.f32 %v3929_v54, %v3833_v32  ;;  %v7447_v61 = vmul.f32 %v13038_v41, %v14406_v0  ;;  %v14407_v43 = vsub.f32 1.0, %v12648_v56  ;;  %v8727_v54 = vld [vmem:[#allocation3 + $0x54] ss:$0 sm:$0xff] }
 0x607   : > { %v3584_v46 = vadd.f32 %v3583_v14, %v3582_v19  ;;  %v2884_v13 = vadd.f32 %v2883_v51, %v2882_v22  ;;  %v8610_v17 = vpop.eup %8609  ;;  %v13046_v22 = vsel %vm534_vm0, %v6296_v48, 0.0  ;;  %v3130_v50 = vmul.f32 %v3098_v57, %v13017_v10  ;;  %v7195_v19 = vld [vmem:[#allocation6 + $0x18] sm:$0xff] }
 0x608   : > { %v4185_v42 = vmul.f32 %v12395_v23, %v3961_v36  ;;  %v4537_v32 = vmul.f32 %v14407_v43, %v3961_v36  ;;  %v5177_v25 = vmul.f32 %v8727_v54, %v4816_v15  ;;  %v13051_v51 = vadd.f32 %v12852_v29, %v12926_v33  ;;  %6972 = vperm.xlu1 %8476, %v12921_v37   ;;  %v8729_v37 = vld [vmem:[#allocation3 + $0x55] ss:$0 sm:$0xff] }
 0x609   : > { %v3585_v11 = vrot.slane %v3584_v46, 4  ;;  %v2885_v1 = vrot.slane %v2884_v13, 1  ;;  %v7449_v56 = vmul.f32 %v13038_v41, %v8610_v17  ;;  %v7338_v36 = vadd.f32 %v12960_v5, %v7195_v19  ;;  %v8728_v17 = vld [vmem:[#allocation4 + $0x54] ss:$0 sm:$0xff] }
 0x60a   : > { %v4287_v0 = vsel %vm534_vm0, %v4185_v42, 0.0  ;;  %v4665_v23 = vadd.f32 %v12656_v24, %v4537_v32  ;;  %v5209_v43 = vsub.f32 1.0, %v5177_v25  ;;  %v3226_v54 = vmul.f32 %v12724_v55, %v12962_v21  ;;  %v14408_v55 = vld [vmem:[#allocation84_spill] sm:$0xff] }
 0x60b   : > { %v3586_v14 = vadd.f32 %v3585_v11, %v3584_v46  ;;  %v2886_v48 = vadd.f32 %v2885_v1, %v2884_v13  ;;  %v4288_v57 = vadd.f32 %v4287_v0, %v4286_v18  ;;  %v7469_v46 = vsel %vm534_vm0, %v7449_v56, 0.0  ;;  %v5520_v11 = vpop.permute.xlu1 %5519 }
 0x60c   : > { %v4889_v33 = vmul.f32 %v4816_v15, %v4665_v23  ;;  %v5241_v42 = vmul.f32 %v5209_v43, %v4665_v23  ;;  %v5337_v32 = vmul.f32 %v8728_v17, %v4816_v15  ;;  %7470 = vadd.xlane.f32.xlu0 %v7469_v46  ;;  %v5881_v13 = vmul.f32 %v8729_v37, %v5520_v11  ;;  %v8730_v43 = vld [vmem:[#allocation4 + $0x55] ss:$0 sm:$0xff] }
 0x60d   : > { %v3587_v29 = vrot.slane %v3586_v14, 2  ;;  %2942 = vst.msk [vmem:[#allocation5 + $0x51] sm:$0x1] %vm2227_vm3, %v2886_v48  ;;  %v4289_v24 = vrot.slane %v4288_v57, 4  ;;  %v3258_v5 = vadd.f32 %v3226_v54, %v3130_v50  ;;  %v6291_v25 = vmul.f32 %v14408_v55, %v13051_v51 }
 0x60e   : > { %v4991_v1 = vsel %vm534_vm0, %v4889_v33, 0.0  ;;  %v5369_v56 = vadd.f32 %v5337_v32, %v5241_v42  ;;  %v5913_v39 = vsub.f32 1.0, %v5881_v13  ;;  %v2778_v48 = vmul.f32 %v12962_v21, %v13017_v10 }
 0x60f   : > { %v3588_v18 = vadd.f32 %v3587_v29, %v3586_v14  ;;  %v4290_v19 = vadd.f32 %v4289_v24, %v4288_v57  ;;  %v4992_v0 = vadd.f32 %v4991_v1, %v4990_v58  ;;  %v4474_v15 = vmul.f32 %v12700_v45, %v13007_v59  ;;  %v13069_v50 = vpop.permute.xlu1 %5524  ;;  %v14409_v57 = vld [vmem:[#allocation98_spill] sm:$0xff]  ;;  %v14412_v1 = vld [vmem:[#allocation87_spill] sm:$0xff] }
 0x610   : > { %v6041_v46 = vmul.f32 %v8730_v43, %v5520_v11  ;;  %v5593_v29 = vmul.f32 %v5520_v11, %v5369_v56  ;;  %v5945_v33 = vmul.f32 %v5913_v39, %v5369_v56  ;;  %v14410_v58 = vsub.f32 1.0, %v14409_v57 }
 0x611   : > { %v3589_v23 = vrot.slane %v3588_v18, 1  ;;  %v4291_v14 = vrot.slane %v4290_v19, 2  ;;  %v4993_v54 = vrot.slane %v4992_v0, 4  ;;  %v13074_v42 = vsel %vm534_vm0, %v7447_v61, 0.0 }
 0x612   : > { %v3834_v24 = vmul.f32 %v14410_v58, %v3258_v5  ;;  %v6372_v21 = vsel %vm534_vm0, %v6291_v25, 0.0  ;;  %v5695_v45 = vsel %vm534_vm0, %v5593_v29, 0.0  ;;  %v13078_v37 = vadd.f32 %v6041_v46, %v5945_v33  ;;  %v14415_v46 = vld [vmem:[#allocation37_spill] sm:$0xff]  ;;  %v8731_v33 = vld [vmem:[#allocation4 + $0x3e] ss:$0 sm:$0xff] }
 0x613   : > { %v3590_v17 = vadd.f32 %v3589_v23, %v3588_v18  ;;  %v4292_v10 = vadd.f32 %v4291_v14, %v4290_v19  ;;  %v4994_v32 = vadd.f32 %v4993_v54, %v4992_v0  ;;  %v7411_v13 = vadd.f32 %v12980_v20, %v7338_v36  ;;  %v14411_v18 = vld [vmem:[#allocation38_spill] sm:$0xff]  ;;  %v13089_v0 = vpop.permute.xlu1 %6223  ;;  %v14414_v23 = vld [vmem:[#allocation21_spill] sm:$0xff] }
 0x614   : > { %v4506_v39 = vsub.f32 1.0, %v4474_v15  ;;  %v5696_v11 = vadd.f32 %v5695_v45, %v13033_v28  ;;  %v14413_v55 = vsub.f32 1.0, %v14412_v1  ;;  %v13087_v56 = vsel %vm534_vm0, %v2778_v48, 0.0  ;;  %v14416_v36 = vld [vmem:[#allocation54_spill] sm:$0xff] }
 0x615   : > { %3646 = vst.msk [vmem:[#allocation5 + $0x52] sm:$0x1] %vm2227_vm3, %v3590_v17  ;;  %v4293_v25 = vrot.slane %v4292_v10, 1  ;;  %v4995_v19 = vrot.slane %v4994_v32, 2  ;;  %v6373_v43 = vadd.f32 %v6372_v21, %v14414_v23  ;;  %v3482_v20 = vmul.f32 %v14415_v46, %v3258_v5  ;;  %v14417_v17 = vld [vmem:[#allocation81_spill] sm:$0xff] }
 0x616   : > { %v6642_v61 = vmul.f32 %v14413_v55, %v14411_v18  ;;  %v3962_v14 = vadd.f32 %v14416_v36, %v3834_v24  ;;  %v5697_v15 = vrot.slane %v5696_v11, 4  ;;  %v6297_v28 = vmul.f32 %v13089_v0, %v13078_v37 }
 0x617   : > { %v4294_v54 = vadd.f32 %v4293_v25, %v4292_v10  ;;  %v4996_v29 = vadd.f32 %v4995_v19, %v4994_v32  ;;  %v6738_v48 = vmul.f32 %v8731_v33, %v14417_v17  ;;  %v6374_v57 = vrot.slane %v6373_v43, 4  ;;  %v2009_v55 = vpop.permute.xlu1 %2008  ;;  %v8733_v19 = vld [vmem:[#allocation3 + $0x58] ss:$0 sm:$0xff] }
 0x618   : > { %8611 = vtanh.f32 %v7411_v13  ;;  %v4538_v58 = vmul.f32 %v4506_v39, %v3962_v14  ;;  %v5698_v45 = vadd.f32 %v5697_v15, %v5696_v11  ;;  %v6399_v18 = vsel %vm534_vm0, %v6297_v28, 0.0  ;;  %v8734_v33 = vld [vmem:[#allocation4 + $0x58] ss:$0 sm:$0xff] }
 0x619   : > { %4350 = vst.msk [vmem:[#allocation5 + $0x53] sm:$0x1] %vm2227_vm3, %v4294_v54  ;;  %v4997_v5 = vrot.slane %v4996_v29, 1  ;;  %v6400_v24 = vadd.f32 %v6399_v18, %v13046_v22  ;;  %v13100_v21 = vadd.f32 %v6738_v48, %v6642_v61  ;;  %v6375_v1 = vadd.f32 %v6374_v57, %v6373_v43  ;;  %v8732_v22 = vld [vmem:[%s13542_s4 + $0x8] sm:$0xff]  ;;  %v14418_v54 = vld [vmem:[#allocation27_spill] sm:$0xff] }
 0x61a   : > { %v4634_v10 = vmul.f32 %v12735_v38, %v13007_v59  ;;  %v5699_v32 = vrot.slane %v5698_v45, 2  ;;  %v13105_v25 = vsel %vm534_vm0, %v3482_v20, 0.0  ;;  %v13109_v13 = vadd.f32 %v12972_v4, %v12984_v35 }
 0x61b   : > { %v4998_v39 = vadd.f32 %v4997_v5, %v4996_v29  ;;  %v6401_v11 = vrot.slane %v6400_v24, 4  ;;  %v2074_v61 = vmul.f32 %v8732_v22, %v2009_v55  ;;  %v2363_v23 = vmul.f32 %v8733_v19, %v2009_v55 }
 0x61c   : > { %v4186_v38 = vmul.f32 %v13007_v59, %v3962_v14  ;;  %v4666_v43 = vadd.f32 %v4634_v10, %v4538_v58  ;;  %v5700_v46 = vadd.f32 %v5699_v32, %v5698_v45  ;;  %v6376_v36 = vrot.slane %v6375_v1, 2  ;;  %v3418_v14 = vpop.permute.xlu1 %3417  ;;  %v14419_v45 = vld [vmem:[#allocation73_spill] sm:$0xff] }
 0x61d   : > { %5054 = vst.msk [vmem:[#allocation5 + $0x54] sm:$0x1] %vm2227_vm3, %v4998_v39  ;;  %v6402_v20 = vadd.f32 %v6401_v11, %v6400_v24  ;;  %v2183_v4 = vsel %vm534_vm0, %v2074_v61, 0.0  ;;  %v2395_v35 = vsub.f32 1.0, %v2363_v23  ;;  %v6293_v15 = vmul.f32 %v14392_v16, %v13109_v13  ;;  %v8735_v39 = vld [vmem:[#allocation3 + $0x5a] ss:$0 sm:$0xff] }
 0x61e   : > { %v5701_v28 = vrot.slane %v5700_v46, 1  ;;  %v2184_v29 = vadd.f32 %v2183_v4, %v14418_v54  ;;  %v2523_v17 = vmul.f32 %v8734_v33, %v2009_v55  ;;  %v6377_v48 = vadd.f32 %v6376_v36, %v6375_v1  ;;  %v14421_v36 = vld [vmem:[#allocation43_spill] sm:$0xff]  ;;  %v14425_v33 = vld [vmem:[#allocation45_spill] sm:$0xff] }
 0x61f   : > { %v6403_v57 = vrot.slane %v6402_v20, 2  ;;  %v2427_v59 = vmul.f32 %v8732_v22, %v2395_v35  ;;  %v6381_v58 = vsel %vm534_vm0, %v6293_v15, 0.0  ;;  %v13123_v18 = vadd.f32 %v12777_v8, %v14419_v45 }
 0x620   : > { %v5702_v5 = vadd.f32 %v5701_v28, %v5700_v46  ;;  %v14420_v24 = vsub.f32 1.0, %v12686_v34  ;;  %v2185_v32 = vrot.slane %v2184_v29, 4  ;;  %v3771_v11 = vmul.f32 %v8735_v39, %v3418_v14  ;;  %v14422_v34 = vld [vmem:[#allocation31_spill] sm:$0xff] }
 0x621   : > { %v6404_v61 = vadd.f32 %v6403_v57, %v6402_v20  ;;  %v2555_v19 = vadd.f32 %v2523_v17, %v2427_v59  ;;  %v6378_v55 = vrot.slane %v6377_v48, 1  ;;  %v13128_v1 = vadd.f32 %v6381_v58, %v12969_v2  ;;  %v4826_v57 = vpop.permute.xlu1 %4825 }
 0x622   : > { %v5242_v10 = vmul.f32 %v14420_v24, %v4666_v43  ;;  %v8612_v22 = vpop.eup %8611  ;;  %v4295_v23 = vsel %vm534_vm0, %v4186_v38, 0.0  ;;  %v4890_v4 = vmul.f32 %v14421_v36, %v4666_v43  ;;  %5758 = vst.msk [vmem:[#allocation5 + $0x55] sm:$0x1] %vm2227_vm3, %v5702_v5  ;;  %v2186_v8 = vadd.f32 %v2185_v32, %v2184_v29  ;;  %v14427_v36 = vld [vmem:[#allocation79_spill] sm:$0xff] }
 0x623   : > { %v14423_v46 = vsub.f32 1.0, %v14422_v34  ;;  %v6405_v15 = vrot.slane %v6404_v61, 1  ;;  %v2779_v20 = vmul.f32 %v12451_v44, %v2555_v19  ;;  %v14424_v28 = vsub.f32 1.0, %v12694_v27 }
 0x624   : > { %v6379_v54 = vadd.f32 %v6378_v55, %v6377_v48  ;;  %v5370_v17 = vadd.f32 %v14425_v33, %v5242_v10  ;;  %v5882_v38 = vmul.f32 %v12857_v47, %v13069_v50  ;;  %v2187_v43 = vrot.slane %v2186_v8, 2  ;;  %v8736_v10 = vld [vmem:[#allocation4 + $0x5a] ss:$0 sm:$0xff] }
 0x625   : > { %v13136_v35 = vmul.f32 %v14423_v46, %v13051_v51  ;;  %v3131_v2 = vmul.f32 %v14424_v28, %v2555_v19  ;;  %v14426_v29 = vsub.f32 1.0, %v13013_v31  ;;  %v6406_v51 = vadd.f32 %v6405_v15, %v6404_v61  ;;  %v13155_v61 = vpop.permute.xlu1 %4865  ;;  %v14428_v15 = vld [vmem:[#allocation40_spill] sm:$0xff]  ;;  %v14429_v28 = vld [vmem:[#allocation39_spill] sm:$0xff] }
 0x626   : > { %v2888_v58 = vsel %vm534_vm0, %v2779_v20, 0.0  ;;  %v3803_v45 = vsub.f32 1.0, %v3771_v11  ;;  %6459 = vst.msk [vmem:[#allocation5 + $0x3e] sm:$0x1] %vm2227_vm3, %v6379_v54  ;;  %v2188_v27 = vadd.f32 %v2187_v43, %v2186_v8  ;;  %v4999_v5 = vsel %vm534_vm0, %v4890_v4, 0.0 }
 0x627   : > { %v6647_v59 = vmul.f32 %v14426_v29, %v12918_v63  ;;  %v3259_v44 = vadd.f32 %v12744_v9, %v3131_v2  ;;  %v2889_v48 = vadd.f32 %v2888_v58, %v13087_v56  ;;  %v7450_v47 = vmul.f32 %v13038_v41, %v8612_v22  ;;  %6462 = vst.msk [vmem:[#allocation5 + $0x56] sm:$0x1] %vm2227_vm3, %v6406_v51  ;;  %v8737_v41 = vld [vmem:[#allocation3 + $0x5c] ss:$0 sm:$0xff]  ;;  %v14432_v51 = vld [vmem:[#allocation90_spill] sm:$0xff] }
 0x628   : > { %v5594_v24 = vmul.f32 %v13069_v50, %v5370_v17  ;;  %v3931_v32 = vmul.f32 %v8736_v10, %v3418_v14  ;;  %v5914_v39 = vsub.f32 1.0, %v5882_v38  ;;  %v2189_v9 = vrot.slane %v2188_v27, 1  ;;  %v8738_v10 = vld [vmem:[#allocation4 + $0x5c] ss:$0 sm:$0xff] }
 0x629   : > { %v3483_v63 = vmul.f32 %v3418_v14, %v3259_v44  ;;  %v3835_v31 = vmul.f32 %v3803_v45, %v3259_v44  ;;  %v2890_v11 = vrot.slane %v2889_v48, 4  ;;  %v13158_v19 = vadd.f32 %v13028_v40, %v6647_v59  ;;  %v14431_v59 = vld [vmem:[#allocation25_spill] sm:$0xff] }
 0x62a   : > { %v5179_v22 = vmul.f32 %v8737_v41, %v4826_v57  ;;  %v4899_v4 = vmul.f32 %v13155_v61, %v14427_v36  ;;  %v6042_v8 = vmul.f32 %v12909_v60, %v13069_v50  ;;  %v2190_v14 = vadd.f32 %v2189_v9, %v2188_v27  ;;  %v13175_v44 = vpop.permute.xlu1 %5549 }
 0x62b   : > { %v3592_v56 = vsel %vm534_vm0, %v3483_v63, 0.0  ;;  %v3963_v55 = vadd.f32 %v3931_v32, %v3835_v31  ;;  %v2891_v34 = vadd.f32 %v2890_v11, %v2889_v48  ;;  %v14430_v40 = vsub.f32 1.0, %v14429_v28 }
 0x62c   : > { %v3593_v46 = vadd.f32 %v3592_v56, %v13105_v25  ;;  %v5036_v54 = vsel %vm534_vm0, %v4899_v4, 0.0  ;;  %v7472_v33 = vsel %vm534_vm0, %v7450_v47, 0.0  ;;  %v5946_v38 = vmul.f32 %v5914_v39, %v5370_v17  ;;  %2239 = vst.msk [vmem:[#allocation5 + $0x58] sm:$0x1] %vm2227_vm3, %v2190_v14  ;;  %7464 = vadd.xlane.f32.xlu1 %v13074_v42  ;;  %v14433_v39 = vld [vmem:[#allocation60_spill] sm:$0xff] }
 0x62d   : > { %v4187_v20 = vmul.f32 %v14428_v15, %v3963_v55  ;;  %v4539_v2 = vmul.f32 %v14430_v40, %v3963_v55  ;;  %v2892_v43 = vrot.slane %v2891_v34, 2  ;;  %v5037_v60 = vadd.f32 %v5036_v54, %v14431_v59  ;;  %v14435_v54 = vld [vmem:[#allocation86_spill] sm:$0xff] }
 0x62e   : > { %v3594_v29 = vrot.slane %v3593_v46, 4  ;;  %v5211_v58 = vsub.f32 1.0, %v5179_v22  ;;  %v6383_v45 = vrot.slane %v13128_v1, 4  ;;  %v5339_v32 = vmul.f32 %v8738_v10, %v4826_v57  ;;  %v14436_v10 = vld [vmem:[#allocation30_spill] sm:$0xff] }
 0x62f   : > { %v4296_v50 = vsel %vm534_vm0, %v4187_v20, 0.0  ;;  %v4667_v25 = vadd.f32 %v14432_v51, %v4539_v2  ;;  %v2893_v27 = vadd.f32 %v2892_v43, %v2891_v34  ;;  %v5038_v47 = vrot.slane %v5037_v60, 4  ;;  %v13184_v20 = vpop.permute.xlu1 %6228 }
 0x630   : > { %v3595_v48 = vadd.f32 %v3594_v29, %v3593_v46  ;;  %v4297_v63 = vadd.f32 %v4296_v50, %v4295_v23  ;;  %v5599_v9 = vmul.f32 %v13175_v44, %v14433_v39  ;;  %v6384_v23 = vadd.f32 %v6383_v45, %v13128_v1  ;;  %7473 = vadd.xlane.f32.xlu1 %v7472_v33 }
 0x631   : > { %v4891_v17 = vmul.f32 %v4826_v57, %v4667_v25  ;;  %v5243_v31 = vmul.f32 %v5211_v58, %v4667_v25  ;;  %v2894_v11 = vrot.slane %v2893_v27, 1  ;;  %v5039_v41 = vadd.f32 %v5038_v47, %v5037_v60  ;;  %v13198_v47 = vld [vmem:[#allocation3 + $0x56] ss:$0 sm:$0xff] }
 0x632   : > { %v3596_v56 = vrot.slane %v3595_v48, 2  ;;  %v4298_v55 = vrot.slane %v4297_v63, 4  ;;  %v5722_v14 = vsel %vm534_vm0, %v5599_v9, 0.0  ;;  %v14434_v28 = vsub.f32 1.0, %v12874_v26 }
 0x633   : > { %v5000_v22 = vsel %vm534_vm0, %v4891_v17, 0.0  ;;  %v5371_v4 = vadd.f32 %v5339_v32, %v5243_v31  ;;  %v2895_v34 = vadd.f32 %v2894_v11, %v2893_v27  ;;  %v5040_v2 = vrot.slane %v5039_v41, 2 }
 0x634   : > { %v3597_v42 = vadd.f32 %v3596_v56, %v3595_v48  ;;  %v4299_v46 = vadd.f32 %v4298_v55, %v4297_v63  ;;  %v5001_v15 = vadd.f32 %v5000_v22, %v4999_v5  ;;  %v5723_v43 = vadd.f32 %v5722_v14, %v14435_v54 }
 0x635   : > { %v5595_v57 = vmul.f32 %v14373_v49, %v5371_v4  ;;  %v5947_v40 = vmul.f32 %v14434_v28, %v5371_v4  ;;  %v5703_v29 = vsel %vm534_vm0, %v5594_v24, 0.0  ;;  %2943 = vst.msk [vmem:[#allocation5 + $0x59] sm:$0x1] %vm2227_vm3, %v2895_v34  ;;  %v5041_v33 = vadd.f32 %v5040_v2, %v5039_v41  ;;  %v6893_v24 = vpop.permute.xlu1 %6892  ;;  %v14437_v34 = vld [vmem:[#allocation49_spill] sm:$0xff]  ;;  %v13213_v28 = vld [vmem:[#allocation3 + $0x5e] ss:$0 sm:$0xff] }
 0x636   : > { %v3598_v1 = vrot.slane %v3597_v42, 1  ;;  %v4300_v59 = vrot.slane %v4299_v46, 2  ;;  %v5002_v60 = vrot.slane %v5001_v15, 4  ;;  %v5724_v49 = vrot.slane %v5723_v43, 4 }
 0x637   : > { %v5704_v5 = vsel %vm534_vm0, %v5595_v57, 0.0  ;;  %v13194_v50 = vadd.f32 %v12935_v6, %v5947_v40  ;;  %v5042_v45 = vrot.slane %v5041_v33, 1  ;;  %v13196_v48 = vadd.f32 %v6042_v8, %v5946_v38 }
 0x638   : > { %v3599_v51 = vadd.f32 %v3598_v1, %v3597_v42  ;;  %v4301_v26 = vadd.f32 %v4300_v59, %v4299_v46  ;;  %v5003_v25 = vadd.f32 %v5002_v60, %v5001_v15  ;;  %v5705_v58 = vadd.f32 %v5704_v5, %v5703_v29  ;;  %v13221_v60 = vld [vmem:[#allocation4 + $0x66] ss:$0 sm:$0xff] }
 0x639   : > { %v5725_v27 = vadd.f32 %v5724_v49, %v5723_v43  ;;  %v6385_v63 = vrot.slane %v6384_v23, 2  ;;  %v6299_v32 = vmul.f32 %v14436_v10, %v13194_v50  ;;  %v6585_v9 = vmul.f32 %v13198_v47, %v13089_v0  ;;  %v6898_v46 = vpop.permute.xlu1 %6897  ;;  %v13216_v43 = vld [vmem:[#allocation3 + $0x66] ss:$0 sm:$0xff] }
 0x63a   : > { %3647 = vst.msk [vmem:[#allocation5 + $0x5a] sm:$0x1] %vm2227_vm3, %v3599_v51  ;;  %v4302_v17 = vrot.slane %v4301_v26, 1  ;;  %v5004_v31 = vrot.slane %v5003_v25, 2  ;;  %v5706_v6 = vrot.slane %v5705_v58, 4  ;;  %v5043_v11 = vadd.f32 %v5042_v45, %v5041_v33  ;;  %v14438_v45 = vld [vmem:[#allocation58_spill] sm:$0xff] }
 0x63b   : > { %v5726_v56 = vrot.slane %v5725_v27, 2  ;;  %v6298_v8 = vmul.f32 %v13184_v20, %v13196_v48  ;;  %v6408_v22 = vsel %vm534_vm0, %v6299_v32, 0.0  ;;  %v6771_v42 = vadd.f32 %v14437_v34, %v13136_v35 }
 0x63c   : > { %v4303_v38 = vadd.f32 %v4302_v17, %v4301_v26  ;;  %v5005_v55 = vadd.f32 %v5004_v31, %v5003_v25  ;;  %v5707_v41 = vadd.f32 %v5706_v6, %v5705_v58  ;;  %5059 = vst.msk [vmem:[#allocation5 + $0x7c] sm:$0x1] %vm2227_vm3, %v5043_v11  ;;  %v6386_v15 = vadd.f32 %v6385_v63, %v6384_v23  ;;  %v13227_v63 = vld [vmem:[#allocation3 + $0x76] ss:$0 sm:$0xff] }
 0x63d   : > { %v5727_v4 = vadd.f32 %v5726_v56, %v5725_v27  ;;  %v6407_v14 = vsel %vm534_vm0, %v6298_v8, 0.0  ;;  %v6613_v57 = vsub.f32 1.0, %v12956_v62  ;;  %v6586_v1 = vmul.f32 %v13213_v28, %v13184_v20  ;;  %v13230_v31 = vpop.permute.xlu1 %5559  ;;  %v13237_v8 = vld [vmem:[#allocation4 + $0x56] ss:$0 sm:$0xff] }
 0x63e   : > { %4351 = vst.msk [vmem:[#allocation5 + $0x5b] sm:$0x1] %vm2227_vm3, %v4303_v38  ;;  %v5006_v40 = vrot.slane %v5005_v55, 1  ;;  %v5708_v2 = vrot.slane %v5707_v41, 2  ;;  %v6409_v54 = vadd.f32 %v6408_v22, %v6407_v14  ;;  %v6994_v59 = vmul.f32 %v6893_v24, %v13100_v21  ;;  %v14440_v38 = vld [vmem:[#allocation47_spill] sm:$0xff] }
 0x63f   : > { %v5728_v29 = vrot.slane %v5727_v4, 1  ;;  %v6995_v35 = vmul.f32 %v6898_v46, %v6771_v42  ;;  %v6617_v23 = vsub.f32 1.0, %v6585_v9  ;;  %v6387_v58 = vrot.slane %v6386_v15, 1  ;;  %v14439_v9 = vld [vmem:[#allocation77_spill] sm:$0xff]  ;;  %v14441_v14 = vld [vmem:[#allocation59_spill] sm:$0xff] }
 0x640   : > { %v5007_v5 = vadd.f32 %v5006_v40, %v5005_v55  ;;  %v5709_v33 = vadd.f32 %v5708_v2, %v5707_v41  ;;  %v6410_v49 = vrot.slane %v6409_v54, 4  ;;  %v7075_v26 = vsel %vm534_vm0, %v6994_v59, 0.0 }
 0x641   : > { %v5729_v51 = vadd.f32 %v5728_v29, %v5727_v4  ;;  %v7076_v25 = vsel %vm534_vm0, %v6995_v35, 0.0  ;;  %v6589_v27 = vmul.f32 %v13216_v43, %v14438_v45  ;;  %v6749_v6 = vmul.f32 %v13221_v60, %v14438_v45  ;;  %v8089_v35 = vld [vmem:[#allocation4 + $0x46] ss:$0 sm:$0xff]  ;;  %v14444_v45 = vld [vmem:[#allocation26_spill] sm:$0xff] }
 0x642   : > { %5055 = vst.msk [vmem:[#allocation5 + $0x5c] sm:$0x1] %vm2227_vm3, %v5007_v5  ;;  %v5710_v21 = vrot.slane %v5709_v33, 1  ;;  %v6411_v24 = vadd.f32 %v6410_v49, %v6409_v54  ;;  %v7077_v17 = vadd.f32 %v7076_v25, %v7075_v26  ;;  %v6618_v32 = vsub.f32 1.0, %v6586_v1  ;;  %v14442_v54 = vld [vmem:[#allocation41_spill] sm:$0xff]  ;;  %v14443_v1 = vld [vmem:[#allocation44_spill] sm:$0xff] }
 0x643   : > { %5761 = vst.msk [vmem:[#allocation5 + $0x6d] sm:$0x1] %vm2227_vm3, %v5729_v51  ;;  %v5601_v11 = vmul.f32 %v13230_v31, %v14439_v9  ;;  %v6388_v56 = vadd.f32 %v6387_v58, %v6386_v15  ;;  %v6417_v55 = vsel %vm534_vm0, %v14440_v38, 0.0  ;;  %v6592_v34 = vmul.f32 %v13227_v63, %v14441_v14  ;;  %v13255_v49 = vpop.permute.xlu1 %6238 }
 0x644   : > { %v5711_v41 = vadd.f32 %v5710_v21, %v5709_v33  ;;  %v6412_v22 = vrot.slane %v6411_v24, 2  ;;  %v7078_v4 = vrot.slane %v7077_v17, 4  ;;  %v6745_v42 = vmul.f32 %v13237_v8, %v13089_v0  ;;  %v8739_v33 = vld [vmem:[#allocation3 + $0x7c] ss:$0 sm:$0xff] }
 0x645   : > { %v5731_v46 = vsel %vm534_vm0, %v5601_v11, 0.0  ;;  %6460 = vst.msk [vmem:[#allocation5 + $0x46] sm:$0x1] %vm2227_vm3, %v6388_v56  ;;  %v6649_v15 = vmul.f32 %v6617_v23, %v13078_v37  ;;  %v13252_v59 = vadd.f32 %v12907_v52, %v14443_v1  ;;  %v6621_v5 = vsub.f32 1.0, %v6589_v27  ;;  %v13260_v23 = vld [vmem:[#allocation4 + $0x5e] ss:$0 sm:$0xff] }
 0x646   : > { %5759 = vst.msk [vmem:[#allocation5 + $0x5d] sm:$0x1] %vm2227_vm3, %v5711_v41  ;;  %v6413_v40 = vadd.f32 %v6412_v22, %v6411_v24  ;;  %v7079_v2 = vadd.f32 %v7078_v4, %v7077_v17  ;;  %v5732_v29 = vadd.f32 %v5731_v46, %v14442_v54  ;;  %v5187_v0 = vmul.f32 %v8739_v33, %v13155_v61  ;;  %v8740_v24 = vld [vmem:[#allocation3 + $0x6d] ss:$0 sm:$0xff]  ;;  %v14445_v11 = vld [vmem:[#allocation78_spill] sm:$0xff] }
 0x647   : > { %v13257_v51 = vadd.f32 %v6745_v42, %v6649_v15  ;;  %v6650_v37 = vmul.f32 %v6618_v32, %v13196_v48  ;;  %v6300_v52 = vmul.f32 %v13255_v49, %v14444_v45  ;;  %v6624_v21 = vsub.f32 1.0, %v6592_v34  ;;  %v14447_v42 = vld [vmem:[#allocation70_spill] sm:$0xff] }
 0x648   : > { %v6414_v26 = vrot.slane %v6413_v40, 1  ;;  %v7080_v25 = vrot.slane %v7079_v2, 2  ;;  %v5733_v58 = vrot.slane %v5732_v29, 4  ;;  %v5887_v27 = vmul.f32 %v8740_v24, %v13175_v44  ;;  %v13280_v33 = vld [vmem:[#allocation4 + $0x76] ss:$0 sm:$0xff] }
 0x649   : > { %v6746_v17 = vmul.f32 %v13260_v23, %v13184_v20  ;;  %v14446_v56 = vsub.f32 1.0, %v14445_v11  ;;  %v6416_v22 = vsel %vm534_vm0, %v6300_v52, 0.0  ;;  %v6740_v46 = vmul.f32 %v8089_v35, %v14447_v42  ;;  %v14450_v42 = vld [vmem:[#allocation75_spill] sm:$0xff] }
 0x64a   : > { %v6415_v48 = vadd.f32 %v6414_v26, %v6413_v40  ;;  %v7081_v32 = vadd.f32 %v7080_v25, %v7079_v2  ;;  %v5734_v41 = vadd.f32 %v5733_v58, %v5732_v29  ;;  %v6418_v4 = vadd.f32 %v6417_v55, %v6416_v22  ;;  %v14448_v40 = vld [vmem:[#allocation24_spill] sm:$0xff] }
 0x64b   : > { %v6644_v38 = vmul.f32 %v14446_v56, %v12930_v30  ;;  %v6645_v34 = vmul.f32 %v6613_v57, %v13109_v13  ;;  %v13275_v15 = vadd.f32 %v6746_v17, %v6650_v37  ;;  %v5219_v54 = vsub.f32 1.0, %v5187_v0  ;;  %v6903_v30 = vpop.permute.xlu1 %6902 }
 0x64c   : > { %6463 = vst.msk [vmem:[#allocation5 + $0x5e] sm:$0x1] %vm2227_vm3, %v6415_v48  ;;  %v7082_v20 = vrot.slane %v7081_v32, 1  ;;  %v5735_v1 = vrot.slane %v5734_v41, 2  ;;  %v6653_v2 = vmul.f32 %v6621_v5, %v14448_v40  ;;  %v6741_v29 = vmul.f32 %v8089_v35, %v14392_v16  ;;  %v14449_v5 = vld [vmem:[#allocation65_spill] sm:$0xff]  ;;  %v14451_v40 = vld [vmem:[#allocation51_spill] sm:$0xff] }
 0x64d   : > { %v5919_v55 = vsub.f32 1.0, %v5887_v27  ;;  %v6419_v26 = vrot.slane %v6418_v4, 4  ;;  %v6772_v25 = vadd.f32 %v6740_v46, %v6644_v38  ;;  %v6752_v52 = vmul.f32 %v13280_v33, %v14441_v14 }
 0x64e   : > { %v7083_v58 = vadd.f32 %v7082_v20, %v7081_v32  ;;  %v5736_v62 = vadd.f32 %v5735_v1, %v5734_v41  ;;  %v13282_v13 = vadd.f32 %v6749_v6, %v6653_v2  ;;  %v6773_v37 = vadd.f32 %v6741_v29, %v6645_v34  ;;  %v8741_v6 = vld [vmem:[#allocation4 + $0x7c] ss:$0 sm:$0xff]  ;;  %v8742_v41 = vld [vmem:[#allocation4 + $0x6d] ss:$0 sm:$0xff] }
 0x64f   : > { %v6420_v57 = vadd.f32 %v6419_v26, %v6418_v4  ;;  %v6996_v0 = vmul.f32 %v6903_v30, %v6772_v25  ;;  %v5251_v24 = vmul.f32 %v5219_v54, %v14427_v36  ;;  %v6908_v35 = vpop.permute.xlu1 %6907  ;;  %v6656_v27 = vmul.f32 %v6624_v21, %v14449_v5  ;;  %v14452_v26 = vld [vmem:[#allocation68_spill] sm:$0xff] }
 0x650   : > { %7163 = vst.msk [vmem:[#allocation5 + $0x3f] sm:$0x1] %vm2227_vm3, %v7083_v58  ;;  %v5737_v16 = vrot.slane %v5736_v62, 1  ;;  %v5951_v17 = vmul.f32 %v5919_v55, %v14433_v39  ;;  %v6997_v56 = vmul.f32 %v6908_v35, %v6773_v37  ;;  %v5347_v38 = vmul.f32 %v8741_v6, %v13155_v61  ;;  %v14453_v35 = vld [vmem:[#allocation33_spill] sm:$0xff] }
 0x651   : > { %v6421_v11 = vrot.slane %v6420_v57, 2  ;;  %v13291_v32 = vadd.f32 %v6752_v52, %v6656_v27  ;;  %v6047_v14 = vmul.f32 %v8742_v41, %v13175_v44  ;;  %v7084_v22 = vsel %vm534_vm0, %v6996_v0, 0.0  ;;  %v8743_v0 = vld [vmem:[#allocation3 + $0x75] ss:$0 sm:$0xff] }
 0x652   : > { %v5738_v48 = vadd.f32 %v5737_v16, %v5736_v62  ;;  %v7085_v4 = vsel %vm534_vm0, %v6997_v56, 0.0  ;;  %v6582_v21 = vmul.f32 %v13001_v7, %v14450_v42  ;;  %v13299_v46 = vadd.f32 %v5347_v38, %v5251_v24 }
 0x653   : > { %v6422_v36 = vadd.f32 %v6421_v11, %v6420_v57  ;;  %v7086_v39 = vadd.f32 %v7085_v4, %v7084_v22  ;;  %v13301_v61 = vadd.f32 %v6047_v14, %v5951_v17  ;;  %v13303_v54 = vpop.permute.xlu1 %5569  ;;  %v5739_v2 = vsel %vm534_vm0, %v14451_v40, 0.0 }
 0x654   : > { %5762 = vst.msk [vmem:[#allocation5 + $0x75] sm:$0x1] %vm2227_vm3, %v5738_v48  ;;  %v5603_v44 = vmul.f32 %v13303_v54, %v13299_v46  ;;  %v6614_v7 = vsub.f32 1.0, %v6582_v21  ;;  %v5889_v37 = vmul.f32 %v8743_v0, %v13230_v31  ;;  %v6584_v56 = vmul.f32 %v13198_v47, %v12618_v53 }
 0x655   : > { %v6423_v34 = vrot.slane %v6422_v36, 1  ;;  %v7087_v20 = vrot.slane %v7086_v39, 4  ;;  %v6303_v25 = vmul.f32 %v14452_v26, %v13301_v61  ;;  %v6742_v6 = vmul.f32 %v13021_v12, %v14450_v42 }
 0x656   : > { %v5740_v55 = vsel %vm534_vm0, %v5603_v44, 0.0  ;;  %v6646_v5 = vmul.f32 %v6614_v7, %v14453_v35  ;;  %v5921_v41 = vsub.f32 1.0, %v5889_v37  ;;  %v6616_v44 = vsub.f32 1.0, %v6584_v56  ;;  %v8746_v56 = vld [vmem:[#allocation4 + $0x7d] ss:$0 sm:$0xff] }
 0x657   : > { %v6424_v1 = vadd.f32 %v6423_v34, %v6422_v36  ;;  %v7179_v30 = vld [vmem:[#allocation5 + $0x38] sm:$0xff]  ;;  %v7088_v29 = vadd.f32 %v7087_v20, %v7086_v39  ;;  %v5741_v58 = vadd.f32 %v5740_v55, %v5739_v2  ;;  %v13314_v57 = vpop.permute.xlu1 %6248  ;;  %v6426_v17 = vsel %vm534_vm0, %v6303_v25, 0.0 }
 0x658   : > { %8157 = vmatmul.mubr.msk.f32.gmra.mrb[30].mxu0 %vm534_vm0, %v7179_v30  ;;  %v6302_v24 = vmul.f32 %v13314_v57, %v13123_v18  ;;  %v6774_v21 = vadd.f32 %v6742_v6, %v6646_v5  ;;  %v8744_v34 = vld [vmem:[#allocation3 + $0x7d] ss:$0 sm:$0xff]  ;;  %v5953_v30 = vmul.f32 %v5921_v41, %v14439_v9  ;;  %v6648_v7 = vmul.f32 %v6616_v44, %v12998_v3 }
 0x659   : > { %6464 = vst.msk [vmem:[#allocation5 + $0x66] sm:$0x1] %vm2227_vm3, %v6424_v1  ;;  %v7089_v62 = vrot.slane %v7088_v29, 2  ;;  %v5742_v52 = vrot.slane %v5741_v58, 4  ;;  %v5891_v20 = vmul.f32 %v8744_v34, %v13303_v54  ;;  %v6051_v6 = vmul.f32 %v8746_v56, %v13303_v54  ;;  %v8078_v34 = vld [vmem:[#allocation3 + $0x6e] ss:$0 sm:$0xff] }
 0x65a   : > { %v6425_v11 = vsel %vm534_vm0, %v6302_v24, 0.0  ;;  %v6587_v54 = vmul.f32 %v13213_v28, %v14436_v10 }
 0x65b   : > { %v7090_v16 = vadd.f32 %v7089_v62, %v7088_v29  ;;  %v5743_v27 = vadd.f32 %v5742_v52, %v5741_v58  ;;  %v6427_v48 = vadd.f32 %v6426_v17, %v6425_v11  ;;  %v6913_v36 = vpop.permute.xlu1 %6912  ;;  %v8745_v29 = vld [vmem:[#allocation4 + $0x75] ss:$0 sm:$0xff]  ;;  %v5923_v58 = vsub.f32 1.0, %v5891_v20  ;;  %v6923_v11 = vpop.permute.xlu0 %6922 }
 0x65c   : > { %v6998_v47 = vmul.f32 %v6913_v36, %v6774_v21  ;;  %v6049_v55 = vmul.f32 %v8745_v29, %v13230_v31  ;;  %v6744_v62 = vmul.f32 %v13237_v8, %v12618_v53 }
 0x65d   : > { %v7091_v38 = vrot.slane %v7090_v16, 1  ;;  %v5744_v14 = vrot.slane %v5743_v27, 2  ;;  %v6428_v4 = vrot.slane %v6427_v48, 4  ;;  %v5955_v31 = vmul.f32 %v5923_v58, %v13299_v46 }
 0x65e   : > { %v7093_v37 = vsel %vm534_vm0, %v6998_v47, 0.0  ;;  %v13337_v24 = vadd.f32 %v6049_v55, %v5953_v30  ;;  %v6588_v46 = vmul.f32 %v13216_v43, %v13255_v49  ;;  %v14455_v30 = vld [vmem:[#allocation76_spill] sm:$0xff] }
 0x65f   : > { %v7092_v22 = vadd.f32 %v7091_v38, %v7090_v16  ;;  %v5745_v39 = vadd.f32 %v5744_v14, %v5743_v27  ;;  %v6429_v1 = vadd.f32 %v6428_v4, %v6427_v48  ;;  %v6918_v42 = vpop.permute.xlu1 %6917  ;;  %v6776_v16 = vadd.f32 %v6744_v62, %v6648_v7  ;;  %v14454_v27 = vld [vmem:[#allocation64_spill] sm:$0xff] }
 0x660   : > { %v6999_v2 = vmul.f32 %v6918_v42, %v13158_v19  ;;  %v6434_v17 = vsel %vm534_vm0, %v14454_v27, 0.0  ;;  %v13352_v36 = vadd.f32 %v6051_v6, %v5955_v31  ;;  %v6620_v44 = vsub.f32 1.0, %v6588_v46 }
 0x661   : > { %7164 = vst.msk [vmem:[#allocation5 + $0x47] sm:$0x1] %vm2227_vm3, %v7092_v22  ;;  %v5746_v12 = vrot.slane %v5745_v39, 1  ;;  %v6430_v40 = vrot.slane %v6429_v1, 2  ;;  %v7000_v14 = vmul.f32 %v6923_v11, %v6776_v16  ;;  %v6590_v62 = vmul.f32 %v8078_v34, %v13314_v57  ;;  %v8080_v11 = vld [vmem:[#allocation3 + $0x7e] ss:$0 sm:$0xff] }
 0x662   : > { %v7094_v9 = vsel %vm534_vm0, %v6999_v2, 0.0  ;;  %v6591_v2 = vmul.f32 %v8078_v34, %v14452_v26  ;;  %v6652_v58 = vmul.f32 %v6620_v44, %v14444_v45  ;;  %v6943_v45 = vpop.permute.xlu0 %6942 }
 0x663   : > { %v5747_v25 = vadd.f32 %v5746_v12, %v5745_v39  ;;  %v6431_v0 = vadd.f32 %v6430_v40, %v6429_v1  ;;  %v7095_v52 = vadd.f32 %v7094_v9, %v7093_v37  ;;  %v7102_v43 = vsel %vm534_vm0, %v7000_v14, 0.0 }
 0x664   : > { %v13339_v3 = vpop.permute.xlu1 %6263  ;;  %v6307_v12 = vmul.f32 %v14455_v30, %v13352_v36  ;;  %v6623_v16 = vsub.f32 1.0, %v6591_v2  ;;  %v6622_v46 = vsub.f32 1.0, %v6590_v62 }
 0x665   : > { %5763 = vst.msk [vmem:[#allocation5 + $0x7d] sm:$0x1] %vm2227_vm3, %v5747_v25  ;;  %v6432_v19 = vrot.slane %v6431_v0, 1  ;;  %v7096_v35 = vrot.slane %v7095_v52, 4  ;;  %v6305_v53 = vmul.f32 %v13339_v3, %v13337_v24  ;;  %v6619_v25 = vsub.f32 1.0, %v6587_v54 }
 0x666   : > { %v6593_v37 = vmul.f32 %v13227_v63, %v13339_v3  ;;  %v6747_v63 = vmul.f32 %v13260_v23, %v14436_v10  ;;  %v6655_v56 = vmul.f32 %v6623_v16, %v13301_v61  ;;  %v6958_v34 = vpop.permute.xlu0 %6957 }
 0x667   : > { %v6433_v5 = vadd.f32 %v6432_v19, %v6431_v0  ;;  %v7097_v38 = vadd.f32 %v7096_v35, %v7095_v52  ;;  %v6435_v48 = vsel %vm534_vm0, %v6305_v53, 0.0  ;;  %v6444_v52 = vsel %vm534_vm0, %v6307_v12, 0.0 }
 0x668   : > { %v7180_v8 = vld [vmem:[#allocation5 + $0x40] sm:$0xff]  ;;  %v6436_v41 = vadd.f32 %v6435_v48, %v6434_v17  ;;  %v6651_v53 = vmul.f32 %v6619_v25, %v13194_v50 }
 0x669   : > { %8159 = vmatprep.mubr.msk.f32.mxu0 %vm534_vm0, %v7180_v8  ;;  %6465 = vst.msk [vmem:[#allocation5 + $0x6e] sm:$0x1] %vm2227_vm3, %v6433_v5  ;;  %v7098_v22 = vrot.slane %v7097_v38, 2  ;;  %v6928_v4 = vpop.permute.xlu1 %6927  ;;  %v8094_v8 = vld [vmem:[#allocation4 + $0x6e] ss:$0 sm:$0xff]  ;;  %v6748_v5 = vmul.f32 %v13221_v60, %v13255_v49 }
 0x66a   : > { %v6437_v21 = vrot.slane %v6436_v41, 4  ;;  %v7001_v39 = vmul.f32 %v6928_v4, %v13257_v51  ;;  %v6751_v50 = vmul.f32 %v8094_v8, %v14452_v26  ;;  %v6779_v49 = vadd.f32 %v6747_v63, %v6651_v53 }
 0x66b   : > { %v7099_v20 = vadd.f32 %v7098_v22, %v7097_v38  ;;  %v6780_v48 = vadd.f32 %v6748_v5, %v6652_v58  ;;  %v6595_v4 = vmul.f32 %v8080_v11, %v14455_v30 }
 0x66c   : > { %v6438_v1 = vadd.f32 %v6437_v21, %v6436_v41  ;;  %v7103_v47 = vsel %vm534_vm0, %v7001_v39, 0.0  ;;  %v6625_v41 = vsub.f32 1.0, %v6593_v37  ;;  %v6783_v54 = vadd.f32 %v6751_v50, %v6655_v56 }
 0x66d   : > { %v7100_v42 = vrot.slane %v7099_v20, 1  ;;  %v7104_v40 = vadd.f32 %v7103_v47, %v7102_v43  ;;  %v7004_v26 = vmul.f32 %v6943_v45, %v6780_v48 }
 0x66e   : > { %v6439_v7 = vrot.slane %v6438_v1, 2  ;;  %v13362_v51 = vpop.permute.xlu1 %6268 }
 0x66f   : > { %v7101_v29 = vadd.f32 %v7100_v42, %v7099_v20  ;;  %v7105_v28 = vrot.slane %v7104_v40, 4  ;;  %v6306_v55 = vmul.f32 %v13362_v51, %v13252_v59  ;;  %v6657_v20 = vmul.f32 %v6625_v41, %v13337_v24 }
 0x670   : > { %v6440_v0 = vadd.f32 %v6439_v7, %v6438_v1  ;;  %v6654_v1 = vmul.f32 %v6622_v46, %v13123_v18  ;;  %v6627_v42 = vsub.f32 1.0, %v6595_v4  ;;  %v6753_v7 = vmul.f32 %v13280_v33, %v13339_v3 }
 0x671   : > { %7165 = vst.msk [vmem:[#allocation5 + $0x4f] sm:$0x1] %vm2227_vm3, %v7101_v29  ;;  %v7106_v9 = vadd.f32 %v7105_v28, %v7104_v40  ;;  %v6443_v19 = vsel %vm534_vm0, %v6306_v55, 0.0  ;;  %v6750_v40 = vmul.f32 %v8094_v8, %v13314_v57  ;;  %v7007_v28 = vmul.f32 %v6958_v34, %v6783_v54  ;;  %v8096_v55 = vld [vmem:[#allocation4 + $0x7e] ss:$0 sm:$0xff] }
 0x672   : > { %v6441_v31 = vrot.slane %v6440_v0, 1  ;;  %v6445_v35 = vadd.f32 %v6444_v52, %v6443_v19  ;;  %v6659_v25 = vmul.f32 %v6627_v42, %v13352_v36  ;;  %v7120_v62 = vsel %vm534_vm0, %v7004_v26, 0.0  ;;  %v6968_v19 = vpop.permute.xlu0 %6967 }
 0x673   : > { %v7107_v27 = vrot.slane %v7106_v9, 2  ;;  %v6933_v17 = vpop.permute.xlu1 %6932  ;;  %v6785_v37 = vadd.f32 %v6753_v7, %v6657_v20  ;;  %v6755_v3 = vmul.f32 %v8096_v55, %v14455_v30  ;;  %v7130_v53 = vsel %vm534_vm0, %v7007_v28, 0.0 }
 0x674   : > { %v6442_v6 = vadd.f32 %v6441_v31, %v6440_v0  ;;  %v6446_v38 = vrot.slane %v6445_v35, 4  ;;  %v7002_v60 = vmul.f32 %v6933_v17, %v13275_v15  ;;  %v6594_v15 = vmul.f32 %v8080_v11, %v13362_v51 }
 0x675   : > { %v7108_v14 = vadd.f32 %v7107_v27, %v7106_v9  ;;  %v6782_v0 = vadd.f32 %v6750_v40, %v6654_v1  ;;  %v7009_v5 = vmul.f32 %v6968_v19, %v6785_v37  ;;  %v6787_v17 = vadd.f32 %v6755_v3, %v6659_v25  ;;  %v7197_v37 = vld [vmem:[#allocation6 + $0x28] sm:$0xff]  ;;  %v7196_v19 = vld [vmem:[#allocation6 + $0x20] sm:$0xff] }
 0x676   : > { %6466 = vst.msk [vmem:[#allocation5 + $0x76] sm:$0x1] %vm2227_vm3, %v6442_v6  ;;  %v6447_v22 = vadd.f32 %v6446_v38, %v6445_v35  ;;  %v7111_v47 = vsel %vm534_vm0, %v7002_v60, 0.0  ;;  %v6626_v9 = vsub.f32 1.0, %v6594_v15  ;;  %v6754_v6 = vmul.f32 %v8096_v55, %v13362_v51  ;;  %v6978_v48 = vpop.permute.xlu0 %6977 }
 0x677   : > { %v7109_v10 = vrot.slane %v7108_v14, 1  ;;  %v6938_v23 = vpop.permute.xlu1 %6937  ;;  %v7139_v50 = vsel %vm534_vm0, %v7009_v5, 0.0  ;;  %v7011_v60 = vmul.f32 %v6978_v48, %v6787_v17  ;;  %v7199_v48 = vld [vmem:[#allocation6 + $0x38] sm:$0xff] }
 0x678   : > { %v6448_v21 = vrot.slane %v6447_v22, 2  ;;  %v7003_v61 = vmul.f32 %v6938_v23, %v6779_v49  ;;  %v7181_v39 = vld [vmem:[#allocation5 + $0x48] sm:$0xff]  ;;  %v6658_v27 = vmul.f32 %v6626_v9, %v13252_v59 }
 0x679   : > { %v7110_v44 = vadd.f32 %v7109_v10, %v7108_v14  ;;  %8160 = vmatmul.mubr.msk.f32.gmra.mrb[32].mxu0 %vm534_vm0, %v7181_v39  ;;  %v7148_v54 = vsel %vm534_vm0, %v7011_v60, 0.0  ;;  %v7200_v60 = vld [vmem:[#allocation6 + $0x40] sm:$0xff] }
 0x67a   : > { %v6449_v43 = vadd.f32 %v6448_v21, %v6447_v22  ;;  %v7112_v12 = vsel %vm534_vm0, %v7003_v61, 0.0  ;;  %v6786_v59 = vadd.f32 %v6754_v6, %v6658_v27 }
 0x67b   : > { %7166 = vst.msk [vmem:[#allocation5 + $0x57] sm:$0x1] %vm2227_vm3, %v7110_v44  ;;  %v7113_v2 = vadd.f32 %v7112_v12, %v7111_v47  ;;  %v6948_v24 = vpop.permute.xlu1 %6947 }
 0x67c   : > { %v6450_v29 = vrot.slane %v6449_v43, 1  ;;  %v7005_v18 = vmul.f32 %v6948_v24, %v13282_v13 }
 0x67d   : > { %v7114_v58 = vrot.slane %v7113_v2, 4 }
 0x67e   : > { %v6451_v57 = vadd.f32 %v6450_v29, %v6449_v43  ;;  %v7121_v52 = vsel %vm534_vm0, %v7005_v18, 0.0 }
 0x67f   : > { %v7115_v16 = vadd.f32 %v7114_v58, %v7113_v2  ;;  %v7122_v31 = vadd.f32 %v7121_v52, %v7120_v62  ;;  %v6953_v33 = vpop.permute.xlu1 %6952 }
 0x680   : > { %6467 = vst.msk [vmem:[#allocation5 + $0x7e] sm:$0x1] %vm2227_vm3, %v6451_v57  ;;  %v7006_v13 = vmul.f32 %v6953_v33, %v6782_v0 }
 0x681   : > { %v7116_v35 = vrot.slane %v7115_v16, 2  ;;  %v7123_v36 = vrot.slane %v7122_v31, 4 }
 0x682   : > { %v7129_v8 = vsel %vm534_vm0, %v7006_v13, 0.0  ;;  %v7182_v45 = vld [vmem:[#allocation5 + $0x50] sm:$0xff] }
 0x683   : > { %v7117_v63 = vadd.f32 %v7116_v35, %v7115_v16  ;;  %v7124_v11 = vadd.f32 %v7123_v36, %v7122_v31  ;;  %v7131_v56 = vadd.f32 %v7130_v53, %v7129_v8  ;;  %8162 = vmatprep.mubr.msk.f32.mxu0 %vm534_vm0, %v7182_v45  ;;  %v6963_v30 = vpop.permute.xlu1 %6962  ;;  %v13422_v31 = vld [vmem:[%s13546_s8] ss:$0 sm:$0xff] }
 0x684   : > { %v7008_v38 = vmul.f32 %v6963_v30, %v13291_v32  ;;  %v13429_v36 = vld [vmem:[%s14258_s0] ss:$0 sm:$0xff] }
 0x685   : > { %v7118_v46 = vrot.slane %v7117_v63, 1  ;;  %v7125_v41 = vrot.slane %v7124_v11, 2  ;;  %v7132_v14 = vrot.slane %v7131_v56, 4 }
 0x686   : > { %v7138_v22 = vsel %vm534_vm0, %v7008_v38, 0.0 }
 0x687   : > { %v7119_v49 = vadd.f32 %v7118_v46, %v7117_v63  ;;  %v7126_v4 = vadd.f32 %v7125_v41, %v7124_v11  ;;  %v7133_v10 = vadd.f32 %v7132_v14, %v7131_v56  ;;  %v7140_v23 = vadd.f32 %v7139_v50, %v7138_v22  ;;  %v6973_v21 = vpop.permute.xlu1 %6972  ;;  %v7198_v63 = vld [vmem:[#allocation6 + $0x30] sm:$0xff]  ;;  %v7201_v14 = vld [vmem:[#allocation6 + $0x48] sm:$0xff] }
 0x688   : > { %v7010_v61 = vmul.f32 %v6973_v21, %v6786_v59 }
 0x689   : > { %7167 = vst.msk [vmem:[#allocation5 + $0x5f] sm:$0x1] %vm2227_vm3, %v7119_v49  ;;  %v7127_v51 = vrot.slane %v7126_v4, 1  ;;  %v7134_v32 = vrot.slane %v7133_v10, 2  ;;  %v7141_v39 = vrot.slane %v7140_v23, 4 }
 0x68a   : > { %v7147_v34 = vsel %vm534_vm0, %v7010_v61, 0.0 }
 0x68b   : > { %v7128_v20 = vadd.f32 %v7127_v51, %v7126_v4  ;;  %v7135_v44 = vadd.f32 %v7134_v32, %v7133_v10  ;;  %v7142_v26 = vadd.f32 %v7141_v39, %v7140_v23  ;;  %v7149_v1 = vadd.f32 %v7148_v54, %v7147_v34 }
 0x68d   : > { %7168 = vst.msk [vmem:[#allocation5 + $0x67] sm:$0x1] %vm2227_vm3, %v7128_v20  ;;  %v7136_v43 = vrot.slane %v7135_v44, 1  ;;  %v7143_v15 = vrot.slane %v7142_v26, 2  ;;  %v7150_v47 = vrot.slane %v7149_v1, 4 }
 0x68f   : > { %v7137_v12 = vadd.f32 %v7136_v43, %v7135_v44  ;;  %v7144_v42 = vadd.f32 %v7143_v15, %v7142_v26  ;;  %v7151_v40 = vadd.f32 %v7150_v47, %v7149_v1  ;;  %v7203_v44 = vld [vmem:[#allocation6 + $0x58] sm:$0xff]  ;;  %v7202_v15 = vld [vmem:[#allocation6 + $0x50] sm:$0xff] }
 0x690   : > { %v7183_v2 = vld [vmem:[#allocation5 + $0x58] sm:$0xff] }
 0x691   : > { %7169 = vst.msk [vmem:[#allocation5 + $0x6f] sm:$0x1] %vm2227_vm3, %v7137_v12  ;;  %v7145_v24 = vrot.slane %v7144_v42, 1  ;;  %v7152_v7 = vrot.slane %v7151_v40, 2  ;;  %8163 = vmatmul.mubr.msk.f32.gmra.mrb[34].mxu0 %vm534_vm0, %v7183_v2 }
 0x693   : > { %v7146_v29 = vadd.f32 %v7145_v24, %v7144_v42  ;;  %v7153_v18 = vadd.f32 %v7152_v7, %v7151_v40  ;;  %v7205_v40 = vld [vmem:[#allocation6 + $0x68] sm:$0xff] }
 0x694   : > { %v7184_v28 = vld [vmem:[#allocation5 + $0x60] sm:$0xff] }
 0x695   : > { %7170 = vst.msk [vmem:[#allocation5 + $0x77] sm:$0x1] %vm2227_vm3, %v7146_v29  ;;  %v7154_v55 = vrot.slane %v7153_v18, 1  ;;  %8165 = vmatprep.mubr.msk.f32.mxu0 %vm534_vm0, %v7184_v28  ;;  %v7204_v29 = vld [vmem:[#allocation6 + $0x60] sm:$0xff] }
 0x697   : > { %v7155_v25 = vadd.f32 %v7154_v55, %v7153_v18 }
 0x698   : > { %v7185_v58 = vld [vmem:[#allocation5 + $0x68] sm:$0xff] }
 0x699   : > { %7171 = vst.msk [vmem:[#allocation5 + $0x7f] sm:$0x1] %vm2227_vm3, %v7155_v25  ;;  %8166 = vmatmul.mubr.msk.f32.gmra.mrb[36].mxu0 %vm534_vm0, %v7185_v58 }
 0x69c   : > { %v7186_v62 = vld [vmem:[#allocation5 + $0x70] sm:$0xff] }
 0x69d   : > { %8168 = vmatprep.mubr.msk.f32.mxu0 %vm534_vm0, %v7186_v62  ;;  %v7207_v62 = vld [vmem:[#allocation6 + $0x78] sm:$0xff] }
 0x6a0   : > { %v7187_v0 = vld [vmem:[#allocation5 + $0x78] sm:$0xff] }
 0x6a1   : > { %8169 = vmatmul.mubr.msk.f32.gmra.mrb[38].mxu0 %vm534_vm0, %v7187_v0 }
 0x6b4   : > { %v8155_v57 = vpop.f32.mrb[28].mxu0 }
 0x6b5   : > { %v7348_v9 = vadd.f32 %v8155_v57, %v7197_v37  ;;  %v7342_v52 = vpop.f32.mrb[29].mxu0 }
 0x6b6   : > { %v7343_v16 = vadd.f32 %v7342_v52, %v7196_v19  ;;  %v7206_v52 = vld [vmem:[#allocation6 + $0x70] sm:$0xff] }
 0x6b7   : > { %v7413_v33 = vadd.f32 %v13422_v31, %v7348_v9 }
 0x6b8   : > { %v7412_v3 = vadd.f32 %v13422_v31, %v7343_v16 }
 0x6b9   : > { %8613 = vtanh.f32 %v7413_v33 }
 0x6ba   : > { %8615 = vtanh.f32 %v7412_v3 }
 0x6c3   : > { %v8614_v13 = vpop.eup %8613 }
 0x6c4   : > { %v8616_v35 = vpop.eup %8615  ;;  %v7452_v53 = vmul.f32 %v13429_v36, %v8614_v13 }
 0x6c5   : > { %v7451_v45 = vmul.f32 %v13429_v36, %v8616_v35 }
 0x6c6   : > { %v7478_v8 = vsel %vm534_vm0, %v7452_v53, 0.0 }
 0x6c7   : > { %7479 = vadd.xlane.f32.xlu1 %v7478_v8  ;;  %v7475_v5 = vsel %vm534_vm0, %v7451_v45, 0.0 }
 0x6cb   : > { %7476 = vadd.xlane.f32.xlu1 %v7475_v5 }
 0x72b   : > { %v8158_v27 = vpop.f32.mrb[30].mxu0 }
 0x72c   : > { %v7352_v17 = vpop.f32.mrb[31].mxu0  ;;  %v7358_v46 = vadd.f32 %v8158_v27, %v7199_v48 }
 0x72d   : > { %v7353_v11 = vadd.f32 %v7352_v17, %v7198_v63 }
 0x72e   : > { %v7415_v41 = vadd.f32 %v13422_v31, %v7358_v46  ;;  %v7468_v46 = vpop.xlane.xlu0 %7467 }
 0x72f   : > { %v7414_v56 = vadd.f32 %v13422_v31, %v7353_v11 }
 0x731   : > { %8617 = vtanh.f32 %v7414_v56 }
 0x732   : > { %8619 = vtanh.f32 %v7415_v41 }
 0x73b   : > { %v8618_v30 = vpop.eup %8617 }
 0x73c   : > { %v7453_v6 = vmul.f32 %v13429_v36, %v8618_v30  ;;  %v8620_v23 = vpop.eup %8619 }
 0x73d   : > { %v7454_v34 = vmul.f32 %v13429_v36, %v8620_v23 }
 0x73e   : > { %v7481_v38 = vsel %vm534_vm0, %v7453_v6, 0.0 }
 0x73f   : > { %7482 = vadd.xlane.f32.xlu1 %v7481_v38  ;;  %v7484_v20 = vsel %vm534_vm0, %v7454_v34, 0.0  ;;  %v7465_v38 = vpop.xlane.xlu1 %7464 }
 0x743   : > { %v7474_v48 = vpop.xlane.xlu1 %7473 }
 0x74c   : > { %v8161_v50 = vpop.f32.mrb[32].mxu0 }
 0x74d   : > { %v7368_v22 = vadd.f32 %v8161_v50, %v7201_v14  ;;  %v7362_v59 = vpop.f32.mrb[33].mxu0  ;;  %v13465_v14 = vstv %s7511_s11  ;;  %v7471_v50 = vpop.xlane.xlu0 %7470 }
 0x74e   : > { %v7363_v49 = vadd.f32 %v7362_v59, %v7200_v60  ;;  %v7514_v59 = vadd.f32 %v13465_v14, %v7468_v46 }
 0x74f   : > { %v7417_v4 = vadd.f32 %v13422_v31, %v7368_v22  ;;  %v7513_v22 = vadd.f32 %v13465_v14, %v7465_v38 }
 0x750   : > { %v7416_v10 = vadd.f32 %v13422_v31, %v7363_v49  ;;  %v7530_v23 = vmul.f32 0.5, %v7514_v59 }
 0x751   : > { %8621 = vtanh.f32 %v7417_v4  ;;  %v7529_v49 = vmul.f32 0.5, %v7513_v22  ;;  %v7516_v4 = vadd.f32 %v13465_v14, %v7474_v48 }
 0x752   : > { %8623 = vtanh.f32 %v7416_v10 }
 0x754   : > { %v7480_v41 = vpop.xlane.xlu1 %7479 }
 0x758   : > { %v7477_v60 = vpop.xlane.xlu1 %7476 }
 0x759   : > { %v7517_v10 = vadd.f32 %v13465_v14, %v7477_v60 }
 0x75b   : > { %v8622_v21 = vpop.eup %8621 }
 0x75c   : > { %v8624_v61 = vpop.eup %8623  ;;  %v7456_v51 = vmul.f32 %v13429_v36, %v8622_v21 }
 0x75d   : > { %v7455_v32 = vmul.f32 %v13429_v36, %v8624_v61 }
 0x75e   : > { %v7490_v39 = vsel %vm534_vm0, %v7456_v51, 0.0  ;;  %v7532_v51 = vmul.f32 0.5, %v7516_v4 }
 0x75f   : > { %7491 = vadd.xlane.f32.xlu0 %v7490_v39  ;;  %v7487_v54 = vsel %vm534_vm0, %v7455_v32, 0.0  ;;  %v7533_v32 = vmul.f32 0.5, %v7517_v10 }
 0x760   : > { %7488 = vadd.xlane.f32.xlu1 %v7487_v54  ;;  %v7518_v54 = vadd.f32 %v13465_v14, %v7480_v41 }
 0x764   : > { %v8164_v26 = vpop.f32.mrb[34].mxu0  ;;  %7485 = vadd.xlane.f32.xlu1 %v7484_v20  ;;  %v7534_v20 = vmul.f32 0.5, %v7518_v54 }
 0x765   : > { %v7378_v1 = vadd.f32 %v8164_v26, %v7203_v44  ;;  %v7372_v43 = vpop.f32.mrb[35].mxu0 }
 0x766   : > { %v7373_v47 = vadd.f32 %v7372_v43, %v7202_v15 }
 0x767   : > { %v7419_v12 = vadd.f32 %v13422_v31, %v7378_v1  ;;  %v7609_v1 = vlaneseq }
 0x768   : > { %v7418_v42 = vadd.f32 %v13422_v31, %v7373_v47 }
 0x769   : > { %8625 = vtanh.f32 %v7419_v12 }
 0x76a   : > { %8627 = vtanh.f32 %v7418_v42 }
 0x76c   : > { %v8167_v2 = vpop.f32.mrb[36].mxu0 }
 0x76d   : > { %v7388_v24 = vadd.f32 %v8167_v2, %v7205_v40  ;;  %v7382_v7 = vpop.f32.mrb[37].mxu0 }
 0x76e   : > { %v7383_v18 = vadd.f32 %v7382_v7, %v7204_v29  ;;  %v7612_v7 = vshrl.u32 %v7609_v1, 7 }
 0x76f   : > { %v7421_v28 = vadd.f32 %v13422_v31, %v7388_v24  ;;  %v7610_v24 = vand.u32 127, %v7609_v1 }
 0x770   : > { %v7420_v55 = vadd.f32 %v13422_v31, %v7383_v18 }
 0x771   : > { %8629 = vtanh.f32 %v7421_v28 }
 0x772   : > { %8631 = vtanh.f32 %v7420_v55 }
 0x773   : > { %v8626_v25 = vpop.eup %8625 }
 0x774   : > { %v8628_v58 = vpop.eup %8627  ;;  %v8170_v0 = vpop.f32.mrb[38].mxu0  ;;  %v7458_v37 = vmul.f32 %v13429_v36, %v8626_v25 }
 0x775   : > { %v7398_v57 = vadd.f32 %v8170_v0, %v7207_v62  ;;  %v7392_v9 = vpop.f32.mrb[39].mxu0  ;;  %v7457_v33 = vmul.f32 %v13429_v36, %v8628_v58  ;;  %v13475_v0 = vsub.s32 %v7610_v24, %v7612_v7 }
 0x776   : > { %v7393_v19 = vadd.f32 %v7392_v9, %v7206_v52  ;;  %v7496_v16 = vsel %vm534_vm0, %v7458_v37, 0.0 }
 0x777   : > { %v7423_v3 = vadd.f32 %v13422_v31, %v7398_v57  ;;  %7497 = vadd.xlane.f32.xlu0 %v7496_v16  ;;  %v7493_v35 = vsel %vm534_vm0, %v7457_v33, 0.0 }
 0x778   : > { %v7422_v13 = vadd.f32 %v13422_v31, %v7393_v19 }
 0x779   : > { %8633 = vtanh.f32 %v7423_v3 }
 0x77a   : > { %8635 = vtanh.f32 %v7422_v13 }
 0x77b   : > { %v8630_v53 = vpop.eup %8629  ;;  %7494 = vadd.xlane.f32.xlu0 %v7493_v35  ;;  %8637 = vtanh.f32 %v7529_v49 }
 0x77c   : > { %v8632_v8 = vpop.eup %8631  ;;  %v7460_v45 = vmul.f32 %v13429_v36, %v8630_v53  ;;  %8639 = vtanh.f32 %v7530_v23 }
 0x77d   : > { %v7459_v27 = vmul.f32 %v13429_v36, %v8632_v8 }
 0x77e   : > { %v7502_v5 = vsel %vm534_vm0, %v7460_v45, 0.0 }
 0x77f   : > { %7503 = vadd.xlane.f32.xlu0 %v7502_v5  ;;  %v7499_v17 = vsel %vm534_vm0, %v7459_v27, 0.0 }
 0x783   : > { %v8634_v63 = vpop.eup %8633  ;;  %7500 = vadd.xlane.f32.xlu0 %v7499_v17 }
 0x784   : > { %v8636_v11 = vpop.eup %8635  ;;  %v7462_v31 = vmul.f32 %v13429_v36, %v8634_v63 }
 0x785   : > { %v7461_v56 = vmul.f32 %v13429_v36, %v8636_v11  ;;  %v7515_v36 = vadd.f32 %v13465_v14, %v7471_v50  ;;  %v8638_v26 = vpop.eup %8637 }
 0x786   : > { %v7508_v30 = vsel %vm534_vm0, %v7462_v31, 0.0  ;;  %v8640_v43 = vpop.eup %8639  ;;  %v7561_v47 = vadd.f32 1.0, %v8638_v26 }
 0x787   : > { %7509 = vadd.xlane.f32.xlu1 %v7508_v30  ;;  %v7505_v6 = vsel %vm534_vm0, %v7461_v56, 0.0  ;;  %v7531_v61 = vmul.f32 0.5, %v7515_v36  ;;  %v7562_v29 = vadd.f32 1.0, %v8640_v43 }
 0x788   : > { %7506 = vadd.xlane.f32.xlu0 %v7505_v6  ;;  %v7577_v28 = vmul.f32 0.5, %v7561_v47 }
 0x789   : > { %8641 = vtanh.f32 %v7531_v61  ;;  %v7578_v37 = vmul.f32 0.5, %v7562_v29 }
 0x78a   : > { %8643 = vtanh.f32 %v7532_v51  ;;  %v7614_v9 = vrot.slane %v7577_v28, %v13475_v0 }
 0x78b   : > { %8645 = vtanh.f32 %v7533_v32  ;;  %v7618_v3 = vrot.slane %v7578_v37, %v13475_v0 }
 0x78d   : > { %v7676_v35 = vsel %vm7675_vm4, %v7618_v3, %v7614_v9 }
 0x793   : > { %v8642_v15 = vpop.eup %8641 }
 0x794   : > { %v8644_v42 = vpop.eup %8643  ;;  %v7563_v25 = vadd.f32 1.0, %v8642_v15 }
 0x795   : > { %v8646_v2 = vpop.eup %8645  ;;  %v7564_v55 = vadd.f32 1.0, %v8644_v42 }
 0x796   : > { %v7565_v58 = vadd.f32 1.0, %v8646_v2  ;;  %v7579_v19 = vmul.f32 0.5, %v7563_v25 }
 0x797   : > { %v7580_v52 = vmul.f32 0.5, %v7564_v55 }
 0x798   : > { %v7581_v16 = vmul.f32 0.5, %v7565_v58  ;;  %v7622_v45 = vrot.slane %v7579_v19, %v13475_v0 }
 0x799   : > { %v7626_v53 = vrot.slane %v7580_v52, %v13475_v0 }
 0x79a   : > { %v7630_v5 = vrot.slane %v7581_v16, %v13475_v0  ;;  %v7678_v11 = vsel %vm7677_vm5, %v7622_v45, %v7676_v35 }
 0x79b   : > { %v7680_v56 = vsel %vm7679_vm6, %v7626_v53, %v7678_v11 }
 0x79c   : > { %v7682_v38 = vsel %vm7681_vm7, %v7630_v5, %v7680_v56 }
 0x7cc   : > { %v7483_v21 = vpop.xlane.xlu1 %7482 }
 0x7cd   : > { %v7519_v39 = vadd.f32 %v13465_v14, %v7483_v21 }
 0x7cf   : > { %v7535_v34 = vmul.f32 0.5, %v7519_v39 }
 0x7d1   : > { %8647 = vtanh.f32 %v7535_v34 }
 0x7d2   : > { %8649 = vtanh.f32 %v7534_v20 }
 0x7db   : > { %v8648_v62 = vpop.eup %8647 }
 0x7dc   : > { %v8650_v57 = vpop.eup %8649  ;;  %v7567_v33 = vadd.f32 1.0, %v8648_v62 }
 0x7dd   : > { %v7566_v13 = vadd.f32 1.0, %v8650_v57 }
 0x7de   : > { %v7583_v27 = vmul.f32 0.5, %v7567_v33 }
 0x7df   : > { %v7582_v17 = vmul.f32 0.5, %v7566_v13 }
 0x7e0   : > { %v7638_v48 = vrot.slane %v7583_v27, %v13475_v0 }
 0x7e1   : > { %v7634_v46 = vrot.slane %v7582_v17, %v13475_v0 }
 0x7e3   : > { %v7684_v59 = vsel %vm7683_vm8, %v7634_v46, %v7682_v38 }
 0x7e4   : > { %v7686_v49 = vsel %vm7685_vm9, %v7638_v48, %v7684_v59 }
 0x7ec   : > { %v7492_v8 = vpop.xlane.xlu0 %7491 }
 0x7ed   : > { %v7489_v44 = vpop.xlane.xlu1 %7488  ;;  %v7522_v31 = vadd.f32 %v13465_v14, %v7492_v8 }
 0x7ee   : > { %v7521_v30 = vadd.f32 %v13465_v14, %v7489_v44 }
 0x7ef   : > { %v7538_v50 = vmul.f32 0.5, %v7522_v31 }
 0x7f0   : > { %v7537_v60 = vmul.f32 0.5, %v7521_v30 }
 0x7f1   : > { %v7486_v12 = vpop.xlane.xlu1 %7485 }
 0x7f2   : > { %v7520_v40 = vadd.f32 %v13465_v14, %v7486_v12 }
 0x7f4   : > { %v7536_v18 = vmul.f32 0.5, %v7520_v40 }
 0x7f6   : > { %8651 = vtanh.f32 %v7536_v18 }
 0x7f7   : > { %8653 = vtanh.f32 %v7538_v50 }
 0x7f8   : > { %8655 = vtanh.f32 %v7537_v60 }
 0x800   : > { %v8652_v63 = vpop.eup %8651 }
 0x801   : > { %v7568_v6 = vadd.f32 1.0, %v8652_v63  ;;  %v8654_v44 = vpop.eup %8653 }
 0x802   : > { %v8656_v26 = vpop.eup %8655  ;;  %v7570_v12 = vadd.f32 1.0, %v8654_v44 }
 0x803   : > { %v7584_v41 = vmul.f32 0.5, %v7568_v6  ;;  %v7569_v42 = vadd.f32 1.0, %v8656_v26 }
 0x804   : > { %v7498_v22 = vpop.xlane.xlu0 %7497  ;;  %v7586_v28 = vmul.f32 0.5, %v7570_v12 }
 0x805   : > { %v7642_v36 = vrot.slane %v7584_v41, %v13475_v0  ;;  %v7524_v10 = vadd.f32 %v13465_v14, %v7498_v22  ;;  %v7585_v55 = vmul.f32 0.5, %v7569_v42 }
 0x806   : > { %v7650_v37 = vrot.slane %v7586_v28, %v13475_v0 }
 0x807   : > { %v7688_v4 = vsel %vm7687_vm10, %v7642_v36, %v7686_v49  ;;  %v7540_v61 = vmul.f32 0.5, %v7524_v10  ;;  %v7646_v57 = vrot.slane %v7585_v55, %v13475_v0 }
 0x808   : > { %7698 = vst.msk [vmem:[%s13495_s28] sm:$0xff] %vm1824_vm2, %v7688_v4  ;;  %v7495_v23 = vpop.xlane.xlu0 %7494 }
 0x809   : > { %v7523_v21 = vadd.f32 %v13465_v14, %v7495_v23  ;;  %v7689_v33 = vsel %vm7675_vm4, %v7650_v37, %v7646_v57 }
 0x80b   : > { %v7539_v51 = vmul.f32 0.5, %v7523_v21 }
 0x80c   : > { %v7504_v32 = vpop.xlane.xlu0 %7503 }
 0x80d   : > { %8657 = vtanh.f32 %v7539_v51  ;;  %v7526_v39 = vadd.f32 %v13465_v14, %v7504_v32 }
 0x80e   : > { %8659 = vtanh.f32 %v7540_v61 }
 0x80f   : > { %v7542_v54 = vmul.f32 0.5, %v7526_v39 }
 0x810   : > { %v7501_v34 = vpop.xlane.xlu0 %7500 }
 0x811   : > { %v7525_v20 = vadd.f32 %v13465_v14, %v7501_v34  ;;  %8661 = vtanh.f32 %v7542_v54 }
 0x813   : > { %v7541_v1 = vmul.f32 0.5, %v7525_v20 }
 0x814   : > { %v7510_v43 = vpop.xlane.xlu1 %7509 }
 0x815   : > { %8663 = vtanh.f32 %v7541_v1  ;;  %v7528_v15 = vadd.f32 %v13465_v14, %v7510_v43  ;;  %v7507_v47 = vpop.xlane.xlu0 %7506 }
 0x816   : > { %v7527_v40 = vadd.f32 %v13465_v14, %v7507_v47 }
 0x817   : > { %v8658_v2 = vpop.eup %8657  ;;  %v7544_v24 = vmul.f32 0.5, %v7528_v15 }
 0x818   : > { %v7571_v7 = vadd.f32 1.0, %v8658_v2  ;;  %v7543_v29 = vmul.f32 0.5, %v7527_v40  ;;  %v8660_v18 = vpop.eup %8659 }
 0x819   : > { %8665 = vtanh.f32 %v7544_v24  ;;  %v7572_v58 = vadd.f32 1.0, %v8660_v18 }
 0x81a   : > { %8667 = vtanh.f32 %v7543_v29  ;;  %v7587_v25 = vmul.f32 0.5, %v7571_v7 }
 0x81b   : > { %v8662_v62 = vpop.eup %8661  ;;  %v7588_v14 = vmul.f32 0.5, %v7572_v58 }
 0x81c   : > { %v7654_v52 = vrot.slane %v7587_v25, %v13475_v0  ;;  %v7574_v19 = vadd.f32 1.0, %v8662_v62 }
 0x81d   : > { %v7658_v8 = vrot.slane %v7588_v14, %v13475_v0 }
 0x81e   : > { %v7690_v35 = vsel %vm7677_vm5, %v7654_v52, %v7689_v33  ;;  %v7590_v45 = vmul.f32 0.5, %v7574_v19 }
 0x81f   : > { %v8664_v9 = vpop.eup %8663  ;;  %v7691_v63 = vsel %vm7679_vm6, %v7658_v8, %v7690_v35 }
 0x820   : > { %v7573_v16 = vadd.f32 1.0, %v8664_v9  ;;  %v7666_v30 = vrot.slane %v7590_v45, %v13475_v0 }
 0x822   : > { %v7589_v3 = vmul.f32 0.5, %v7573_v16 }
 0x823   : > { %v8666_v13 = vpop.eup %8665 }
 0x824   : > { %v8668_v53 = vpop.eup %8667  ;;  %v7662_v5 = vrot.slane %v7589_v3, %v13475_v0  ;;  %v7576_v27 = vadd.f32 1.0, %v8666_v13 }
 0x825   : > { %v7575_v17 = vadd.f32 1.0, %v8668_v53 }
 0x826   : > { %v7592_v11 = vmul.f32 0.5, %v7576_v27  ;;  %v7692_v31 = vsel %vm7681_vm7, %v7662_v5, %v7691_v63 }
 0x827   : > { %v7591_v56 = vmul.f32 0.5, %v7575_v17  ;;  %v7693_v48 = vsel %vm7683_vm8, %v7666_v30, %v7692_v31 }
 0x828   : > { %v7674_v38 = vrot.slane %v7592_v11, %v13475_v0 }
 0x829   : > { %v7670_v6 = vrot.slane %v7591_v56, %v13475_v0 }
 0x82b   : > { %v7694_v46 = vsel %vm7685_vm9, %v7670_v6, %v7693_v48 }
 0x82c   : > { %v7695_v41 = vsel %vm7687_vm10, %v7674_v38, %v7694_v46 }
 0x82d   : > { %7699 = vst.msk [vmem:[%s13495_s28 + $0x8] sm:$0xff] %vm1824_vm2, %v7695_v41 }
 0x82e PF: > { %p26_p3 = scmp.ge.s32.totalorder %s9146_s9, 4   ;;  %s14457_s19 = smov %s8931_s20 }
 0x82f   : > { %s14458_s20 = smov %s8935_s21  ;;  %s14459_s21 = smov %s9156_s15 }
 0x830   : > { %s14460_s22 = smov %s9146_s9  ;;  %28 = sbr.rel (!%p26_p3) target bundleno = 12 (0xc), region = 129 }
 0x837   :  { %7722 = vsyncpa [#allocation9], 1 }
 0x838   :  { %7724 = vsyncpa [#allocation9 + $0x1], 1 }
 0x839   :  { %7725 = vsyncpa [#allocation11], 1 }
 0x83a   :  { %7727 = vsyncpa [#allocation11 + $0x1], 1 }
 0x83b   :  { %7728 = vsyncpa [#allocation14], 1 }

</bundles_post_ra>
